<compile_context>
chip_gen: v7x
topology: tpu7x:2x2x1
jax: 0.10.0
libtpu: 0.0.40
codegen_flags: <defaults>
</compile_context>

<pallas_src>
import jax
import jax.numpy as jnp
from jax import lax
from jax.experimental import pallas as pl
from jax.experimental.pallas import tpu as pltpu

LANE = 128


def _round_up(x, m):
    return ((x + m - 1) // m) * m


# ----------------------------------------------------------------------------
# Fused kernel: conv1+bn1+relu -> conv2+bn2 -> +residual -> relu   (one image)
# ----------------------------------------------------------------------------
def _fused_basic_block_kernel(x_ref, w1_ref, b1_ref, w2_ref, b2_ref, o_ref,
                              xp_ref, col_ref):
    # x_ref:   (1, H, W, Cp)    bf16 input image (channels padded to Cp)
    # w*_ref:  (9*Cp, Cp)       bf16 im2col weights, BN scale folded in
    # b*_ref:  (1, Cp)          f32 folded BN bias
    # o_ref:   (1, H*W, Cp)     bf16 flat, lane-dense output slab
    # xp_ref:  (H+2, W+2, Cp)   bf16 scratch: zero-halo padded conv input
    #                           (reused by conv1 and conv2)
    # col_ref: (H*W, 9*Cp)      bf16 scratch: im2col column buffer
    H = x_ref.shape[1]
    W = x_ref.shape[2]
    Cp = x_ref.shape[3]

    # Zero only the 1-pixel halo ring; the interior is fully overwritten below.
    zrow = jnp.zeros((1, W + 2, Cp), jnp.bfloat16)
    xp_ref[0:1, :, :] = zrow
    xp_ref[H + 1:H + 2, :, :] = zrow
    zcol = jnp.zeros((H + 2, 1, Cp), jnp.bfloat16)
    xp_ref[:, 0:1, :] = zcol
    xp_ref[:, W + 1:W + 2, :] = zcol

    def conv3x3(w_ref):
        # Write the 9 taps directly into their destination columns of the
        # im2col buffer (one copy per tap), then one K=9*Cp MXU matmul.
        # Column order (kh, kw, cin) must match the host-side weight reshape.
        for kh in range(3):
            for kw in range(3):
                t = kh * 3 + kw
                col_ref[:, t * Cp:(t + 1) * Cp] = (
                    xp_ref[kh:kh + H, kw:kw + W, :].reshape(H * W, Cp))
        return jnp.dot(col_ref[...], w_ref[...],
                       preferred_element_type=jnp.float32)   # (H*W, Cp) f32

    # conv1 (+ folded bn1 scale) + bias + relu, kept resident in VMEM.
    xp_ref[1:H + 1, 1:W + 1, :] = x_ref[0]
    y1 = jnp.maximum(conv3x3(w1_ref) + b1_ref[0], 0.0)

    # conv2 (+ folded bn2 scale): reuse xp_ref as conv2's padded input.
    xp_ref[1:H + 1, 1:W + 1, :] = y1.reshape(H, W, Cp).astype(jnp.bfloat16)
    y2 = conv3x3(w2_ref) + b2_ref[0]

    # residual (re-read from x_ref right before the add) + relu, bf16 out.
    y2 = y2 + x_ref[0].reshape(H * W, Cp).astype(jnp.float32)
    o_ref[0] = jnp.maximum(y2, 0.0).astype(o_ref.dtype)


# ----------------------------------------------------------------------------
# Wrapper
# ----------------------------------------------------------------------------
def _vmem_limit_bytes(H, W, Cp):
    bf16, f32 = 2, 4
    x_buf = 2 * H * W * Cp * bf16           # input block, double-buffered
    o_buf = 2 * H * W * Cp * bf16           # output block, double-buffered
    w_buf = 2 * 2 * 9 * Cp * Cp * bf16      # two weights, double-buffered
    b_buf = 2 * 2 * Cp * f32
    xp = (H + 2) * (W + 2) * Cp * bf16      # padded-input scratch
    col = H * W * 9 * Cp * bf16             # im2col column scratch
    live = 2 * H * W * Cp * f32             # f32 matmul result / temporaries
    need = x_buf + o_buf + w_buf + b_buf + xp + col + live
    return int(min(max(2 * need, 16 * 1024 * 1024), 64 * 1024 * 1024))


def basic_block_apply(x_nhwc_p, params):
    """Fused BasicBlock on padded-NHWC bf16 activations (chain-friendly form).

    x_nhwc_p: (N, H, W, Cp) bf16, channels pre-padded to a lane multiple.
    Returns (N, H, W, Cp) bf16 in the same layout, so stacked blocks need no
    transpose / pad / cast HBM passes between them.
    """
    N, H, W, Cp = x_nhwc_p.shape
    out_flat = pl.pallas_call(
        _fused_basic_block_kernel,
        out_shape=jax.ShapeDtypeStruct((N, H * W, Cp), jnp.bfloat16),
        grid_spec=pltpu.PrefetchScalarGridSpec(
            num_scalar_prefetch=0,
            grid=(N,),
            in_specs=[
                pl.BlockSpec((1, H, W, Cp), lambda n: (n, 0, 0, 0)),
                pl.BlockSpec((9 * Cp, Cp), lambda n: (0, 0)),
                pl.BlockSpec((1, Cp), lambda n: (0, 0)),
                pl.BlockSpec((9 * Cp, Cp), lambda n: (0, 0)),
                pl.BlockSpec((1, Cp), lambda n: (0, 0)),
            ],
            out_specs=pl.BlockSpec((1, H * W, Cp), lambda n: (n, 0, 0)),
            scratch_shapes=[
                pltpu.VMEM((H + 2, W + 2, Cp), jnp.bfloat16),   # padded input
                pltpu.VMEM((H * W, 9 * Cp), jnp.bfloat16),      # im2col cols
            ],
        ),
        compiler_params=pltpu.CompilerParams(
            dimension_semantics=("parallel",),
            vmem_limit_bytes=_vmem_limit_bytes(H, W, Cp)),
    )(x_nhwc_p, params["w1"], params["bias1"], params["w2"], params["bias2"])
    return out_flat.reshape(N, H, W, Cp)


def basic_block_forward(x_nchw, params):
    """PyTorch-compatible entry: NCHW f32 in / out (stride=1, identity shortcut)."""
    N, C, H, W = x_nchw.shape
    Cp = params["w1"].shape[-1]
    # One-time layout conversion (fused away between blocks when chained).
    x = jnp.transpose(x_nchw, (0, 2, 3, 1))                  # NCHW -> NHWC
    x = jnp.pad(x, ((0, 0), (0, 0), (0, 0), (0, Cp - C))).astype(jnp.bfloat16)
    out = basic_block_apply(x, params)                        # (N, H, W, Cp) bf16
    out = out[:, :, :, :C].astype(jnp.float32)                # drop channel pad
    return jnp.transpose(out, (0, 3, 1, 2))                   # NHWC -> NCHW


# ----------------------------------------------------------------------------
# Parameter prep: fold BN into conv, pad channels, im2col-reshape weights
# ----------------------------------------------------------------------------
def _prep_conv_bn(w_oihw, gamma, beta, mean, var, cp, eps=1e-5):
    scale = gamma / jnp.sqrt(var + eps)
    bias = beta - mean * scale
    # OIHW -> HWIO, fold BN scale into output channels, quantize to bf16.
    w = jnp.transpose(w_oihw, (2, 3, 1, 0)) * scale[None, None, None, :]
    w_bf16 = w.astype(jnp.bfloat16)
    cin, cout = w.shape[2], w.shape[3]
    w_pad = jnp.pad(w_bf16, ((0, 0), (0, 0), (0, cp - cin), (0, cp - cout)))
    w_im2col = w_pad.reshape(9 * cp, cp)          # rows ordered (kh, kw, cin)
    bias_pad = jnp.pad(bias, (0, cp - cout)).astype(jnp.float32)[None, :]
    return w_im2col, bias_pad, w_bf16, bias.astype(jnp.float32)


def make_params(key, inplanes, planes):
    assert inplanes == planes, "identity shortcut requires inplanes == planes"
    ks = jax.random.split(key, 8)
    # PyTorch conv weight layout (Cout, Cin, 3, 3), no bias.
    w1 = jax.random.normal(ks[0], (planes, inplanes, 3, 3), jnp.float32) * 0.1
    w2 = jax.random.normal(ks[1], (planes, planes, 3, 3), jnp.float32) * 0.1
    g1 = 1.0 + 0.1 * jax.random.normal(ks[2], (planes,), jnp.float32)
    b1 = 0.1 * jax.random.normal(ks[3], (planes,), jnp.float32)
    g2 = 1.0 + 0.1 * jax.random.normal(ks[4], (planes,), jnp.float32)
    b2 = 0.1 * jax.random.normal(ks[5], (planes,), jnp.float32)
    m1 = 0.1 * jax.random.normal(ks[6], (planes,), jnp.float32)
    m2 = 0.1 * jax.random.normal(ks[7], (planes,), jnp.float32)
    v1 = jnp.ones((planes,), jnp.float32)
    v2 = jnp.ones((planes,), jnp.float32)

    cp = _round_up(planes, LANE)
    kw1, kb1, rw1, rb1 = _prep_conv_bn(w1, g1, b1, m1, v1, cp)
    kw2, kb2, rw2, rb2 = _prep_conv_bn(w2, g2, b2, m2, v2, cp)
    kernel_params = {"w1": kw1, "bias1": kb1, "w2": kw2, "bias2": kb2}
    ref_params = {"w1": rw1, "bias1": rb1, "w2": rw2, "bias2": rb2}
    return kernel_params, ref_params


# ----------------------------------------------------------------------------
# Pure-JAX reference (same bf16 quantization / f32 accumulation as the kernel)
# ----------------------------------------------------------------------------
def _reference(x_nchw, ref_params):
    x = jnp.transpose(x_nchw, (0, 2, 3, 1)).astype(jnp.bfloat16)
    dn = lax.conv_dimension_numbers(x.shape, ref_params["w1"].shape,
                                    ("NHWC", "HWIO", "NHWC"))
    o = lax.conv_general_dilated(x, ref_params["w1"], (1, 1), "SAME",
                                 dimension_numbers=dn,
                                 preferred_element_type=jnp.float32)
    o = jnp.maximum(o + ref_params["bias1"], 0.0).astype(jnp.bfloat16)
    o = lax.conv_general_dilated(o, ref_params["w2"], (1, 1), "SAME",
                                 dimension_numbers=dn,
                                 preferred_element_type=jnp.float32)
    o = o + ref_params["bias2"] + x.astype(jnp.float32)
    # Match the kernel's bf16 output writeback.
    o = jnp.maximum(o, 0.0).astype(jnp.bfloat16).astype(jnp.float32)
    return jnp.transpose(o, (0, 3, 1, 2))


if __name__ == "__main__":
    key = jax.random.PRNGKey(0)
    k_x, k_p = jax.random.split(key)

    N, C, H, W = 2, 8, 16, 16          # inplanes = planes = 8 (identity shortcut)
    x = jax.random.normal(k_x, (N, C, H, W), jnp.float32)
    params, ref_params = make_params(k_p, inplanes=C, planes=C)

    out = jax.block_until_ready(basic_block_forward(x, params))
    ref = jax.block_until_ready(_reference(x, ref_params))

    assert out.shape == (N, C, H, W)
    assert jnp.allclose(out, ref, atol=2e-2, rtol=2e-2), (
        "mismatch vs reference, max |diff| = "
        + str(float(jnp.max(jnp.abs(out - ref)))))

    print("KERNEL_OK")
</pallas_src>

<mosaic_0001>
module attributes {stable_mosaic.version = 11 : i64} {
  func.func @_fused_basic_block_kernel(%arg0: i32, %arg1: memref<1x16x16x128xbf16, #tpu.memory_space<vmem>>, %arg2: memref<1152x128xbf16, #tpu.memory_space<vmem>>, %arg3: memref<1x128xf32, #tpu.memory_space<vmem>>, %arg4: memref<1152x128xbf16, #tpu.memory_space<vmem>>, %arg5: memref<1x128xf32, #tpu.memory_space<vmem>>, %arg6: memref<1x256x128xbf16, #tpu.memory_space<vmem>>, %arg7: memref<18x18x128xbf16, #tpu.memory_space<vmem>>, %arg8: memref<256x1152xbf16, #tpu.memory_space<vmem>>) attributes {dimension_semantics = [#tpu.dimension_semantics<parallel>], iteration_bounds = array<i64: 2>, scalar_prefetch = 0 : i64, scratch_operands = 2 : i64, tpu.core_type = #tpu.core_type<tc>, window_params = [{transform_indices = @transform_0, window_bounds = array<i64: 1, 16, 16, 128>}, {pipeline_mode = #tpu.pipeline_mode<synchronous>, transform_indices = @transform_1, window_bounds = array<i64: 1152, 128>}, {pipeline_mode = #tpu.pipeline_mode<synchronous>, transform_indices = @transform_2, window_bounds = array<i64: 1, 128>}, {pipeline_mode = #tpu.pipeline_mode<synchronous>, transform_indices = @transform_3, window_bounds = array<i64: 1152, 128>}, {pipeline_mode = #tpu.pipeline_mode<synchronous>, transform_indices = @transform_4, window_bounds = array<i64: 1, 128>}, {transform_indices = @transform_5, window_bounds = array<i64: 1, 256, 128>}]} {
    %cst = arith.constant 0.000000e+00 : bf16
    %0 = vector.broadcast %cst : bf16 to vector<1x18x128xbf16>
    %c0 = arith.constant 0 : index
    %c0_0 = arith.constant 0 : index
    %c0_1 = arith.constant 0 : index
    %1 = vector.load %arg7[%c0, %c0_0, %c0_1] : memref<18x18x128xbf16, #tpu.memory_space<vmem>>, vector<1x18x128xbf16>
    tpu.vector_store %arg7[%c0, %c0_0, %c0_1], %0 {strides = array<i32>} : memref<18x18x128xbf16, #tpu.memory_space<vmem>>, vector<1x18x128xbf16>,
    %c17 = arith.constant 17 : index
    %c0_2 = arith.constant 0 : index
    %c0_3 = arith.constant 0 : index
    %2 = vector.load %arg7[%c17, %c0_2, %c0_3] : memref<18x18x128xbf16, #tpu.memory_space<vmem>>, vector<1x18x128xbf16>
    tpu.vector_store %arg7[%c17, %c0_2, %c0_3], %0 {strides = array<i32>} : memref<18x18x128xbf16, #tpu.memory_space<vmem>>, vector<1x18x128xbf16>,
    %cst_4 = arith.constant 0.000000e+00 : bf16
    %3 = vector.broadcast %cst_4 : bf16 to vector<18x1x128xbf16>
    %c0_5 = arith.constant 0 : index
    %c0_6 = arith.constant 0 : index
    %c0_7 = arith.constant 0 : index
    %4 = vector.load %arg7[%c0_5, %c0_6, %c0_7] : memref<18x18x128xbf16, #tpu.memory_space<vmem>>, vector<18x1x128xbf16>
    tpu.vector_store %arg7[%c0_5, %c0_6, %c0_7], %3 {strides = array<i32>} : memref<18x18x128xbf16, #tpu.memory_space<vmem>>, vector<18x1x128xbf16>,
    %c0_8 = arith.constant 0 : index
    %c17_9 = arith.constant 17 : index
    %c0_10 = arith.constant 0 : index
    %5 = vector.load %arg7[%c0_8, %c17_9, %c0_10] : memref<18x18x128xbf16, #tpu.memory_space<vmem>>, vector<18x1x128xbf16>
    tpu.vector_store %arg7[%c0_8, %c17_9, %c0_10], %3 {strides = array<i32>} : memref<18x18x128xbf16, #tpu.memory_space<vmem>>, vector<18x1x128xbf16>,
    %c0_11 = arith.constant 0 : index
    %c0_12 = arith.constant 0 : index
    %c0_13 = arith.constant 0 : index
    %c0_14 = arith.constant 0 : index
    %6 = vector.load %arg1[%c0_11, %c0_12, %c0_13, %c0_14] : memref<1x16x16x128xbf16, #tpu.memory_space<vmem>>, vector<1x16x16x128xbf16>
    %7 = vector.shape_cast %6 : vector<1x16x16x128xbf16> to vector<16x16x128xbf16>
    %c1 = arith.constant 1 : index
    %c1_15 = arith.constant 1 : index
    %c0_16 = arith.constant 0 : index
    %8 = vector.load %arg7[%c1, %c1_15, %c0_16] : memref<18x18x128xbf16, #tpu.memory_space<vmem>>, vector<16x16x128xbf16>
    tpu.vector_store %arg7[%c1, %c1_15, %c0_16], %7 {strides = array<i32>} : memref<18x18x128xbf16, #tpu.memory_space<vmem>>, vector<16x16x128xbf16>,
    %c0_17 = arith.constant 0 : index
    %c0_18 = arith.constant 0 : index
    %c0_19 = arith.constant 0 : index
    %9 = vector.load %arg7[%c0_17, %c0_18, %c0_19] : memref<18x18x128xbf16, #tpu.memory_space<vmem>>, vector<16x16x128xbf16>
    %10 = vector.shape_cast %9 : vector<16x16x128xbf16> to vector<256x128xbf16>
    %c0_20 = arith.constant 0 : index
    %c0_21 = arith.constant 0 : index
    %11 = vector.load %arg8[%c0_20, %c0_21] : memref<256x1152xbf16, #tpu.memory_space<vmem>>, vector<256x128xbf16>
    tpu.vector_store %arg8[%c0_20, %c0_21], %10 {strides = array<i32>} : memref<256x1152xbf16, #tpu.memory_space<vmem>>, vector<256x128xbf16>,
    %c0_22 = arith.constant 0 : index
    %c1_23 = arith.constant 1 : index
    %c0_24 = arith.constant 0 : index
    %12 = vector.load %arg7[%c0_22, %c1_23, %c0_24] : memref<18x18x128xbf16, #tpu.memory_space<vmem>>, vector<16x16x128xbf16>
    %13 = vector.shape_cast %12 : vector<16x16x128xbf16> to vector<256x128xbf16>
    %c0_25 = arith.constant 0 : index
    %c128 = arith.constant 128 : index
    %14 = vector.load %arg8[%c0_25, %c128] : memref<256x1152xbf16, #tpu.memory_space<vmem>>, vector<256x128xbf16>
    tpu.vector_store %arg8[%c0_25, %c128], %13 {strides = array<i32>} : memref<256x1152xbf16, #tpu.memory_space<vmem>>, vector<256x128xbf16>,
    %c0_26 = arith.constant 0 : index
    %c2 = arith.constant 2 : index
    %c0_27 = arith.constant 0 : index
    %15 = vector.load %arg7[%c0_26, %c2, %c0_27] : memref<18x18x128xbf16, #tpu.memory_space<vmem>>, vector<16x16x128xbf16>
    %16 = vector.shape_cast %15 : vector<16x16x128xbf16> to vector<256x128xbf16>
    %c0_28 = arith.constant 0 : index
    %c256 = arith.constant 256 : index
    %17 = vector.load %arg8[%c0_28, %c256] : memref<256x1152xbf16, #tpu.memory_space<vmem>>, vector<256x128xbf16>
    tpu.vector_store %arg8[%c0_28, %c256], %16 {strides = array<i32>} : memref<256x1152xbf16, #tpu.memory_space<vmem>>, vector<256x128xbf16>,
    %c1_29 = arith.constant 1 : index
    %c0_30 = arith.constant 0 : index
    %c0_31 = arith.constant 0 : index
    %18 = vector.load %arg7[%c1_29, %c0_30, %c0_31] : memref<18x18x128xbf16, #tpu.memory_space<vmem>>, vector<16x16x128xbf16>
    %19 = vector.shape_cast %18 : vector<16x16x128xbf16> to vector<256x128xbf16>
    %c0_32 = arith.constant 0 : index
    %c384 = arith.constant 384 : index
    %20 = vector.load %arg8[%c0_32, %c384] : memref<256x1152xbf16, #tpu.memory_space<vmem>>, vector<256x128xbf16>
    tpu.vector_store %arg8[%c0_32, %c384], %19 {strides = array<i32>} : memref<256x1152xbf16, #tpu.memory_space<vmem>>, vector<256x128xbf16>,
    %c1_33 = arith.constant 1 : index
    %c1_34 = arith.constant 1 : index
    %c0_35 = arith.constant 0 : index
    %21 = vector.load %arg7[%c1_33, %c1_34, %c0_35] : memref<18x18x128xbf16, #tpu.memory_space<vmem>>, vector<16x16x128xbf16>
    %22 = vector.shape_cast %21 : vector<16x16x128xbf16> to vector<256x128xbf16>
    %c0_36 = arith.constant 0 : index
    %c512 = arith.constant 512 : index
    %23 = vector.load %arg8[%c0_36, %c512] : memref<256x1152xbf16, #tpu.memory_space<vmem>>, vector<256x128xbf16>
    tpu.vector_store %arg8[%c0_36, %c512], %22 {strides = array<i32>} : memref<256x1152xbf16, #tpu.memory_space<vmem>>, vector<256x128xbf16>,
    %c1_37 = arith.constant 1 : index
    %c2_38 = arith.constant 2 : index
    %c0_39 = arith.constant 0 : index
    %24 = vector.load %arg7[%c1_37, %c2_38, %c0_39] : memref<18x18x128xbf16, #tpu.memory_space<vmem>>, vector<16x16x128xbf16>
    %25 = vector.shape_cast %24 : vector<16x16x128xbf16> to vector<256x128xbf16>
    %c0_40 = arith.constant 0 : index
    %c640 = arith.constant 640 : index
    %26 = vector.load %arg8[%c0_40, %c640] : memref<256x1152xbf16, #tpu.memory_space<vmem>>, vector<256x128xbf16>
    tpu.vector_store %arg8[%c0_40, %c640], %25 {strides = array<i32>} : memref<256x1152xbf16, #tpu.memory_space<vmem>>, vector<256x128xbf16>,
    %c2_41 = arith.constant 2 : index
    %c0_42 = arith.constant 0 : index
    %c0_43 = arith.constant 0 : index
    %27 = vector.load %arg7[%c2_41, %c0_42, %c0_43] : memref<18x18x128xbf16, #tpu.memory_space<vmem>>, vector<16x16x128xbf16>
    %28 = vector.shape_cast %27 : vector<16x16x128xbf16> to vector<256x128xbf16>
    %c0_44 = arith.constant 0 : index
    %c768 = arith.constant 768 : index
    %29 = vector.load %arg8[%c0_44, %c768] : memref<256x1152xbf16, #tpu.memory_space<vmem>>, vector<256x128xbf16>
    tpu.vector_store %arg8[%c0_44, %c768], %28 {strides = array<i32>} : memref<256x1152xbf16, #tpu.memory_space<vmem>>, vector<256x128xbf16>,
    %c2_45 = arith.constant 2 : index
    %c1_46 = arith.constant 1 : index
    %c0_47 = arith.constant 0 : index
    %30 = vector.load %arg7[%c2_45, %c1_46, %c0_47] : memref<18x18x128xbf16, #tpu.memory_space<vmem>>, vector<16x16x128xbf16>
    %31 = vector.shape_cast %30 : vector<16x16x128xbf16> to vector<256x128xbf16>
    %c0_48 = arith.constant 0 : index
    %c896 = arith.constant 896 : index
    %32 = vector.load %arg8[%c0_48, %c896] : memref<256x1152xbf16, #tpu.memory_space<vmem>>, vector<256x128xbf16>
    tpu.vector_store %arg8[%c0_48, %c896], %31 {strides = array<i32>} : memref<256x1152xbf16, #tpu.memory_space<vmem>>, vector<256x128xbf16>,
    %c2_49 = arith.constant 2 : index
    %c2_50 = arith.constant 2 : index
    %c0_51 = arith.constant 0 : index
    %33 = vector.load %arg7[%c2_49, %c2_50, %c0_51] : memref<18x18x128xbf16, #tpu.memory_space<vmem>>, vector<16x16x128xbf16>
    %34 = vector.shape_cast %33 : vector<16x16x128xbf16> to vector<256x128xbf16>
    %c0_52 = arith.constant 0 : index
    %c1024 = arith.constant 1024 : index
    %35 = vector.load %arg8[%c0_52, %c1024] : memref<256x1152xbf16, #tpu.memory_space<vmem>>, vector<256x128xbf16>
    tpu.vector_store %arg8[%c0_52, %c1024], %34 {strides = array<i32>} : memref<256x1152xbf16, #tpu.memory_space<vmem>>, vector<256x128xbf16>,
    %c0_53 = arith.constant 0 : index
    %c0_54 = arith.constant 0 : index
    %36 = vector.load %arg8[%c0_53, %c0_54] : memref<256x1152xbf16, #tpu.memory_space<vmem>>, vector<256x1152xbf16>
    %c0_55 = arith.constant 0 : index
    %c0_56 = arith.constant 0 : index
    %37 = vector.load %arg2[%c0_55, %c0_56] : memref<1152x128xbf16, #tpu.memory_space<vmem>>, vector<1152x128xbf16>
    %cst_57 = arith.constant dense<0.000000e+00> : vector<256x128xf32>
    %38 = tpu.matmul %36, %37, %cst_57 {dimension_numbers = #tpu.dot_dimension_numbers<[1], [0], [0], [1], [0, 0, 1, 1], [], []>} : vector<256x1152xbf16>, vector<1152x128xbf16>, vector<256x128xf32> -> vector<256x128xf32>
    %c0_58 = arith.constant 0 : index
    %c0_59 = arith.constant 0 : index
    %39 = vector.load %arg3[%c0_58, %c0_59] : memref<1x128xf32, #tpu.memory_space<vmem>>, vector<1x128xf32>
    %40 = vector.shape_cast %39 : vector<1x128xf32> to vector<128xf32>
    %41 = vector.shape_cast %40 : vector<128xf32> to vector<1x128xf32>
    %42 = vector.broadcast %41 : vector<1x128xf32> to vector<256x128xf32>
    %43 = arith.addf %38, %42 : vector<256x128xf32>
    %cst_60 = arith.constant 0.000000e+00 : f32
    %44 = vector.broadcast %cst_60 : f32 to vector<256x128xf32>
    %45 = arith.maximumf %43, %44 : vector<256x128xf32>
    %46 = vector.shape_cast %45 : vector<256x128xf32> to vector<16x16x128xf32>
    %47 = arith.truncf %46 : vector<16x16x128xf32> to vector<16x16x128xbf16>
    %c1_61 = arith.constant 1 : index
    %c1_62 = arith.constant 1 : index
    %c0_63 = arith.constant 0 : index
    %48 = vector.load %arg7[%c1_61, %c1_62, %c0_63] : memref<18x18x128xbf16, #tpu.memory_space<vmem>>, vector<16x16x128xbf16>
    tpu.vector_store %arg7[%c1_61, %c1_62, %c0_63], %47 {strides = array<i32>} : memref<18x18x128xbf16, #tpu.memory_space<vmem>>, vector<16x16x128xbf16>,
    %c0_64 = arith.constant 0 : index
    %c0_65 = arith.constant 0 : index
    %c0_66 = arith.constant 0 : index
    %49 = vector.load %arg7[%c0_64, %c0_65, %c0_66] : memref<18x18x128xbf16, #tpu.memory_space<vmem>>, vector<16x16x128xbf16>
    %50 = vector.shape_cast %49 : vector<16x16x128xbf16> to vector<256x128xbf16>
    %c0_67 = arith.constant 0 : index
    %c0_68 = arith.constant 0 : index
    %51 = vector.load %arg8[%c0_67, %c0_68] : memref<256x1152xbf16, #tpu.memory_space<vmem>>, vector<256x128xbf16>
    tpu.vector_store %arg8[%c0_67, %c0_68], %50 {strides = array<i32>} : memref<256x1152xbf16, #tpu.memory_space<vmem>>, vector<256x128xbf16>,
    %c0_69 = arith.constant 0 : index
    %c1_70 = arith.constant 1 : index
    %c0_71 = arith.constant 0 : index
    %52 = vector.load %arg7[%c0_69, %c1_70, %c0_71] : memref<18x18x128xbf16, #tpu.memory_space<vmem>>, vector<16x16x128xbf16>
    %53 = vector.shape_cast %52 : vector<16x16x128xbf16> to vector<256x128xbf16>
    %c0_72 = arith.constant 0 : index
    %c128_73 = arith.constant 128 : index
    %54 = vector.load %arg8[%c0_72, %c128_73] : memref<256x1152xbf16, #tpu.memory_space<vmem>>, vector<256x128xbf16>
    tpu.vector_store %arg8[%c0_72, %c128_73], %53 {strides = array<i32>} : memref<256x1152xbf16, #tpu.memory_space<vmem>>, vector<256x128xbf16>,
    %c0_74 = arith.constant 0 : index
    %c2_75 = arith.constant 2 : index
    %c0_76 = arith.constant 0 : index
    %55 = vector.load %arg7[%c0_74, %c2_75, %c0_76] : memref<18x18x128xbf16, #tpu.memory_space<vmem>>, vector<16x16x128xbf16>
    %56 = vector.shape_cast %55 : vector<16x16x128xbf16> to vector<256x128xbf16>
    %c0_77 = arith.constant 0 : index
    %c256_78 = arith.constant 256 : index
    %57 = vector.load %arg8[%c0_77, %c256_78] : memref<256x1152xbf16, #tpu.memory_space<vmem>>, vector<256x128xbf16>
    tpu.vector_store %arg8[%c0_77, %c256_78], %56 {strides = array<i32>} : memref<256x1152xbf16, #tpu.memory_space<vmem>>, vector<256x128xbf16>,
    %c1_79 = arith.constant 1 : index
    %c0_80 = arith.constant 0 : index
    %c0_81 = arith.constant 0 : index
    %58 = vector.load %arg7[%c1_79, %c0_80, %c0_81] : memref<18x18x128xbf16, #tpu.memory_space<vmem>>, vector<16x16x128xbf16>
    %59 = vector.shape_cast %58 : vector<16x16x128xbf16> to vector<256x128xbf16>
    %c0_82 = arith.constant 0 : index
    %c384_83 = arith.constant 384 : index
    %60 = vector.load %arg8[%c0_82, %c384_83] : memref<256x1152xbf16, #tpu.memory_space<vmem>>, vector<256x128xbf16>
    tpu.vector_store %arg8[%c0_82, %c384_83], %59 {strides = array<i32>} : memref<256x1152xbf16, #tpu.memory_space<vmem>>, vector<256x128xbf16>,
    %c1_84 = arith.constant 1 : index
    %c1_85 = arith.constant 1 : index
    %c0_86 = arith.constant 0 : index
    %61 = vector.load %arg7[%c1_84, %c1_85, %c0_86] : memref<18x18x128xbf16, #tpu.memory_space<vmem>>, vector<16x16x128xbf16>
    %62 = vector.shape_cast %61 : vector<16x16x128xbf16> to vector<256x128xbf16>
    %c0_87 = arith.constant 0 : index
    %c512_88 = arith.constant 512 : index
    %63 = vector.load %arg8[%c0_87, %c512_88] : memref<256x1152xbf16, #tpu.memory_space<vmem>>, vector<256x128xbf16>
    tpu.vector_store %arg8[%c0_87, %c512_88], %62 {strides = array<i32>} : memref<256x1152xbf16, #tpu.memory_space<vmem>>, vector<256x128xbf16>,
    %c1_89 = arith.constant 1 : index
    %c2_90 = arith.constant 2 : index
    %c0_91 = arith.constant 0 : index
    %64 = vector.load %arg7[%c1_89, %c2_90, %c0_91] : memref<18x18x128xbf16, #tpu.memory_space<vmem>>, vector<16x16x128xbf16>
    %65 = vector.shape_cast %64 : vector<16x16x128xbf16> to vector<256x128xbf16>
    %c0_92 = arith.constant 0 : index
    %c640_93 = arith.constant 640 : index
    %66 = vector.load %arg8[%c0_92, %c640_93] : memref<256x1152xbf16, #tpu.memory_space<vmem>>, vector<256x128xbf16>
    tpu.vector_store %arg8[%c0_92, %c640_93], %65 {strides = array<i32>} : memref<256x1152xbf16, #tpu.memory_space<vmem>>, vector<256x128xbf16>,
    %c2_94 = arith.constant 2 : index
    %c0_95 = arith.constant 0 : index
    %c0_96 = arith.constant 0 : index
    %67 = vector.load %arg7[%c2_94, %c0_95, %c0_96] : memref<18x18x128xbf16, #tpu.memory_space<vmem>>, vector<16x16x128xbf16>
    %68 = vector.shape_cast %67 : vector<16x16x128xbf16> to vector<256x128xbf16>
    %c0_97 = arith.constant 0 : index
    %c768_98 = arith.constant 768 : index
    %69 = vector.load %arg8[%c0_97, %c768_98] : memref<256x1152xbf16, #tpu.memory_space<vmem>>, vector<256x128xbf16>
    tpu.vector_store %arg8[%c0_97, %c768_98], %68 {strides = array<i32>} : memref<256x1152xbf16, #tpu.memory_space<vmem>>, vector<256x128xbf16>,
    %c2_99 = arith.constant 2 : index
    %c1_100 = arith.constant 1 : index
    %c0_101 = arith.constant 0 : index
    %70 = vector.load %arg7[%c2_99, %c1_100, %c0_101] : memref<18x18x128xbf16, #tpu.memory_space<vmem>>, vector<16x16x128xbf16>
    %71 = vector.shape_cast %70 : vector<16x16x128xbf16> to vector<256x128xbf16>
    %c0_102 = arith.constant 0 : index
    %c896_103 = arith.constant 896 : index
    %72 = vector.load %arg8[%c0_102, %c896_103] : memref<256x1152xbf16, #tpu.memory_space<vmem>>, vector<256x128xbf16>
    tpu.vector_store %arg8[%c0_102, %c896_103], %71 {strides = array<i32>} : memref<256x1152xbf16, #tpu.memory_space<vmem>>, vector<256x128xbf16>,
    %c2_104 = arith.constant 2 : index
    %c2_105 = arith.constant 2 : index
    %c0_106 = arith.constant 0 : index
    %73 = vector.load %arg7[%c2_104, %c2_105, %c0_106] : memref<18x18x128xbf16, #tpu.memory_space<vmem>>, vector<16x16x128xbf16>
    %74 = vector.shape_cast %73 : vector<16x16x128xbf16> to vector<256x128xbf16>
    %c0_107 = arith.constant 0 : index
    %c1024_108 = arith.constant 1024 : index
    %75 = vector.load %arg8[%c0_107, %c1024_108] : memref<256x1152xbf16, #tpu.memory_space<vmem>>, vector<256x128xbf16>
    tpu.vector_store %arg8[%c0_107, %c1024_108], %74 {strides = array<i32>} : memref<256x1152xbf16, #tpu.memory_space<vmem>>, vector<256x128xbf16>,
    %c0_109 = arith.constant 0 : index
    %c0_110 = arith.constant 0 : index
    %76 = vector.load %arg8[%c0_109, %c0_110] : memref<256x1152xbf16, #tpu.memory_space<vmem>>, vector<256x1152xbf16>
    %c0_111 = arith.constant 0 : index
    %c0_112 = arith.constant 0 : index
    %77 = vector.load %arg4[%c0_111, %c0_112] : memref<1152x128xbf16, #tpu.memory_space<vmem>>, vector<1152x128xbf16>
    %cst_113 = arith.constant dense<0.000000e+00> : vector<256x128xf32>
    %78 = tpu.matmul %76, %77, %cst_113 {dimension_numbers = #tpu.dot_dimension_numbers<[1], [0], [0], [1], [0, 0, 1, 1], [], []>} : vector<256x1152xbf16>, vector<1152x128xbf16>, vector<256x128xf32> -> vector<256x128xf32>
    %c0_114 = arith.constant 0 : index
    %c0_115 = arith.constant 0 : index
    %79 = vector.load %arg5[%c0_114, %c0_115] : memref<1x128xf32, #tpu.memory_space<vmem>>, vector<1x128xf32>
    %80 = vector.shape_cast %79 : vector<1x128xf32> to vector<128xf32>
    %81 = vector.shape_cast %80 : vector<128xf32> to vector<1x128xf32>
    %82 = vector.broadcast %81 : vector<1x128xf32> to vector<256x128xf32>
    %83 = arith.addf %78, %82 : vector<256x128xf32>
    %c0_116 = arith.constant 0 : index
    %c0_117 = arith.constant 0 : index
    %c0_118 = arith.constant 0 : index
    %c0_119 = arith.constant 0 : index
    %84 = vector.load %arg1[%c0_116, %c0_117, %c0_118, %c0_119] : memref<1x16x16x128xbf16, #tpu.memory_space<vmem>>, vector<1x16x16x128xbf16>
    %85 = vector.shape_cast %84 : vector<1x16x16x128xbf16> to vector<16x16x128xbf16>
    %86 = vector.shape_cast %85 : vector<16x16x128xbf16> to vector<256x128xbf16>
    %87 = arith.extf %86 : vector<256x128xbf16> to vector<256x128xf32>
    %88 = arith.addf %83, %87 : vector<256x128xf32>
    %cst_120 = arith.constant 0.000000e+00 : f32
    %89 = vector.broadcast %cst_120 : f32 to vector<256x128xf32>
    %90 = arith.maximumf %88, %89 : vector<256x128xf32>
    %91 = arith.truncf %90 : vector<256x128xf32> to vector<256x128xbf16>
    %c0_121 = arith.constant 0 : index
    %c0_122 = arith.constant 0 : index
    %c0_123 = arith.constant 0 : index
    %92 = vector.load %arg6[%c0_121, %c0_122, %c0_123] : memref<1x256x128xbf16, #tpu.memory_space<vmem>>, vector<1x256x128xbf16>
    %93 = vector.shape_cast %92 : vector<1x256x128xbf16> to vector<256x128xbf16>
    %94 = vector.shape_cast %91 : vector<256x128xbf16> to vector<1x256x128xbf16>
    tpu.vector_store %arg6[%c0_121, %c0_122, %c0_123], %94 {strides = array<i32>} : memref<1x256x128xbf16, #tpu.memory_space<vmem>>, vector<1x256x128xbf16>,
    return
  }
  func.func @transform_0(%arg0: i32) -> (i32, i32, i32, i32) {
    %c0_i32 = arith.constant 0 : i32
    %c0_i32_0 = arith.constant 0 : i32
    %c0_i32_1 = arith.constant 0 : i32
    %c0_i32_2 = arith.constant 0 : i32
    return %arg0, %c0_i32, %c0_i32_0, %c0_i32_1 : i32, i32, i32, i32
  }
  func.func @transform_1(%arg0: i32) -> (i32, i32) {
    %c0_i32 = arith.constant 0 : i32
    %c0_i32_0 = arith.constant 0 : i32
    %c0_i32_1 = arith.constant 0 : i32
    return %c0_i32, %c0_i32_0 : i32, i32
  }
  func.func @transform_2(%arg0: i32) -> (i32, i32) {
    %c0_i32 = arith.constant 0 : i32
    %c0_i32_0 = arith.constant 0 : i32
    %c0_i32_1 = arith.constant 0 : i32
    return %c0_i32, %c0_i32_0 : i32, i32
  }
  func.func @transform_3(%arg0: i32) -> (i32, i32) {
    %c0_i32 = arith.constant 0 : i32
    %c0_i32_0 = arith.constant 0 : i32
    %c0_i32_1 = arith.constant 0 : i32
    return %c0_i32, %c0_i32_0 : i32, i32
  }
  func.func @transform_4(%arg0: i32) -> (i32, i32) {
    %c0_i32 = arith.constant 0 : i32
    %c0_i32_0 = arith.constant 0 : i32
    %c0_i32_1 = arith.constant 0 : i32
    return %c0_i32, %c0_i32_0 : i32, i32
  }
  func.func @transform_5(%arg0: i32) -> (i32, i32, i32) {
    %c0_i32 = arith.constant 0 : i32
    %c0_i32_0 = arith.constant 0 : i32
    %c0_i32_1 = arith.constant 0 : i32
    return %arg0, %c0_i32, %c0_i32_0 : i32, i32, i32
  }
}

</mosaic_0001>

<bundles_post_ra>
// kernel: tpu_custom_call.1
= control target key start
LH: loop header
LB: loop body
LE: loop exit
PB: predicated region body
PF: predicated region fallthrough
CT: control target
= control target key end

     0   :  { %10 = vsyncpa [#allocation5], 0  ;;  %s16154_s0 = inlined_call_operand.hbm [shape: bf16[2,16,16,128], index: 0, kind: input, shape index: {}]   ;;  %s16155_s1 = inlined_call_operand.hbm [shape: bf16[1152,128], index: 1, kind: input, shape index: {}]   ;;  %s16156_s2 = inlined_call_operand.vmem [shape: f32[1,128], index: 2, kind: input, shape index: {}]   ;;  %s16157_s3 = inlined_call_operand.hbm [shape: bf16[1152,128], index: 3, kind: input, shape index: {}]   ;;  %s16158_s4 = inlined_call_operand.vmem [shape: f32[1,128], index: 4, kind: input, shape index: {}]   ;;  %s16159_s5 = inlined_call_operand.hbm [shape: bf16[2,256,128], index: 5, kind: output, shape index: {}]  }
   0x1   :  { %12 = vsyncpa [#allocation5 + $0x1], 0 }
   0x2   :  { %13 = vsyncpa [#allocation8], 0 }
   0x3   :  { %14 = vsyncpa [#allocation6], 0 }
   0x4   :  { %16 = vsyncpa [#allocation6 + $0x1], 0  ;;  %s12955_s18 = smov 0   ;;  %s12957_s19 = smov 0  }
   0x5   :  { %s12959_s20 = smov 0   ;;  %s12961_s21 = smov 0  }
   0x6 LB: > { %s12976_s22 = sadd.s32 4294967295, %s12914_s21   ;;  %s10551_s23 = sadd.s32 4294967294, %s12914_s21   ;;  %s12914_s21 = sphi %s12961_s21, %s16354_s21   ;;  %s12910_s20 = sphi %s12959_s20, %s16353_s20   ;;  %s12906_s19 = sphi %s12957_s19, %s16352_s19   ;;  %s12902_s18 = sphi %s12955_s18, %s16351_s18  }
   0x7   : > { %p42_p0 = scmp.ne.s32.totalorder %s12906_s19, %s12902_s18  ;;  %p16160_p1 = scmp.eq.s32.totalorder %s12976_s22, 0 }
   0x8   : > { %p156_p3 = scmp.eq.s32.totalorder %s10551_s23, 1  ;;  %p10552_p5 = scmp.ge.s32.totalorder %s12914_s21, 1 }
   0x9   : > { %p12985_p4 = por %p16160_p1, %p42_p0  ;;  %p163_p7 = scmp.lt.s32.totalorder %s12914_s21, 3 }
   0xa   : > { %p12990_p6 = por %p156_p3, %p42_p0  ;;  %s12916_s27 = smov [#allocation7]  }
   0xb   : > { %s16175_s24 = scalar_select %p12985_p4, 1, 0 }
   0xc   : > { %s16176_s25 = scalar_select %p12990_p6, 1, 0 }
   0xd   : > { %p12995_p8 = pnand %p10552_p5, %p163_p7  ;;  %s175_s28 = sshll.u32 %s12916_s27, 4  ;;  %s12999_s28 = int_to_ptr.vmem [resolvable:$true] %s175_s28 }
   0xe   : > { %s12917_s30 = smov [#allocation9]   ;;  %s12758_s9 = scalar_lea.hbm %s16155_s1, 9216 }
   0xf   : > { %p12455_p9 = pneg %p12995_p8  ;;  %s191_s6 = sshll.u32 %s12917_s30, 4  ;;  %s13010_s6 = int_to_ptr.vmem [resolvable:$true] %s191_s6 }
  0x10   : > { %p12759_p12 = scmp.ne.s32.totalorder %s16155_s1, %s12758_s9  ;;  %p12765_p5 = scmp.lt.u32.totalorder %s12758_s9, %s16155_s1 }
  0x11   : > { %p13006_p11 = pnand %p12455_p9, %p16160_p1 }
  0x13   : > { %p12760_p13 = pneg %p13006_p11 }
  0x15   : > { %p12761_p0 = pnand %p12760_p13, %p12759_p12 }
  0x17   : > { %p12762_p3 = pneg %p12761_p0 }
  0x19   : > { %p12767_p7 = pnand %p12765_p5, %p12762_p3 }
  0x1b   : > { %12770 = shalt.err (!%p12767_p7)
}
  0x1c   : > { %s12771_s14 = scalar_lea.vmem %s12999_s28, 9216  ;;  %p12779_p2 = scmp.lt.s32.totalorder %s12999_s28, %s12999_s28 }
  0x1d   : > { %p12772_p9 = scmp.ne.s32.totalorder %s12999_s28, %s12771_s14  ;;  %p12780_p12 = scmp.lt.s32.totalorder %s12771_s14, %s12771_s14 }
  0x1f   : > { %p12774_p10 = pnand %p12772_p9, %p12760_p13  ;;  %p12781_p0 = por %p12780_p12, %p12779_p2 }
  0x21   : > { %p12775_p1 = pneg %p12774_p10 }
  0x23   : > { %p12782_p6 = pnand %p12781_p0, %p12775_p1 }
  0x25   : > { %12785 = shalt.err (!%p12782_p6)
}
  0x26   : > { %s12918_s15 = smov 64   ;;  %s12919_s16 = smov 4  }
  0x27   : > { %12458 = dma.hbm_to_vmem [thread:$0]  (!%p13006_p11), %s16155_s1, 9216, %s12999_s28, [#allocation8], %s12918_s15, %s12918_s15, %s12919_s16  }
  0x28   : > { %s12786_s7 = scalar_lea.hbm %s16157_s3, 9216 }
  0x29   : > { %p12787_p1 = scmp.ne.s32.totalorder %s16157_s3, %s12786_s7  ;;  %p12793_p10 = scmp.lt.u32.totalorder %s12786_s7, %s16157_s3 }
  0x2b   : > { %p12789_p2 = pnand %p12787_p1, %p12760_p13 }
  0x2d   : > { %p12790_p6 = pneg %p12789_p2 }
  0x2f   : > { %p12795_p3 = pnand %p12793_p10, %p12790_p6 }
  0x31   : > { %12798 = shalt.err (!%p12795_p3)
}
  0x32   : > { %s12799_s28 = scalar_lea.vmem %s13010_s6, 9216  ;;  %p12807_p12 = scmp.lt.s32.totalorder %s13010_s6, %s13010_s6 }
  0x33   : > { %p12800_p5 = scmp.ne.s32.totalorder %s13010_s6, %s12799_s28  ;;  %p12808_p0 = scmp.lt.s32.totalorder %s12799_s28, %s12799_s28 }
  0x35   : > { %p12802_p7 = pnand %p12800_p5, %p12760_p13  ;;  %p12809_p1 = por %p12808_p0, %p12807_p12 }
  0x37   : > { %p12803_p9 = pneg %p12802_p7 }
  0x39   : > { %p12810_p2 = pnand %p12809_p1, %p12803_p9 }
  0x3b   : > { %12813 = shalt.err (!%p12810_p2)
}
  0x3c   : > { %12461 = dma.hbm_to_vmem [thread:$0]  (!%p13006_p11), %s16157_s3, 9216, %s13010_s6, [#allocation8], %s12918_s15, %s12918_s15, %s12919_s16  }
  0x3d   : > { %s13071_s29 = sadd.s32 1, %s12914_s21   ;;  %s29_s14 = sadd.s32 1, %s12910_s20 }
  0x3e   : > { %s26_s17 = ssub.s32 %s12914_s21, %s13071_s29  ;;  %p36_p13 = scmp.ne.s32.totalorder %s12910_s20, %s12906_s19 }
  0x3f   : > { %p27_p6 = scmp.eq.s32.totalorder %s26_s17, 0  ;;  %p37_p10 = scmp.eq.s32.totalorder %s12914_s21, 0 }
  0x40   : > { %p16179_p3 = scmp.eq.s32.totalorder %s12976_s22, 1  ;;  %p12472_p7 = scmp.lt.s32.totalorder %s12914_s21, 2 }
  0x41   : > { %s13087_s27 = scalar_select %p27_p6, %s12910_s20, %s29_s14  }
  0x42   : > { %p13081_p5 = por %p16179_p3, %p36_p13  ;;  %p38_p9 = por %p37_p10, %p36_p13 }
  0x43   : > { %s208_s30 = sand.u32 1, %s12910_s20   ;;  %s11163_s6 = sshll.u32 %s12914_s21, 11 }
  0x44   : > { %s16180_s23 = scalar_select %p13081_p5, 1, 0 }
  0x45   : > { %s10556_s7 = sshll.u32 %s208_s30, 7  ;;  %s13094_s10 = scalar_lea.hbm %s16154_s0, %s11163_s6 }
  0x46   : > { %s212_s11 = scalar_lea.vmem [#allocation4], %s10556_s7  ;;  %p13098_p11 = pnand %p12472_p7, %p38_p9 }
  0x47   : > { %s219_s28 = sshll.u32 %s212_s11, 4  ;;  %s13102_s13 = scalar_lea.sflag [#allocation5], %s208_s30  ;;  %s13096_s28 = int_to_ptr.vmem [resolvable:$true] %s219_s28 }
  0x48   : > { %s12814_s14 = scalar_lea.hbm %s13094_s10, 2048  ;;  %p12816_p0 = pneg %p13098_p11 }
  0x49   : > { %p12815_p12 = scmp.ne.s32.totalorder %s13094_s10, %s12814_s14  ;;  %s12819_s6 = scalar_lea.hbm %s16154_s0, 4096 }
  0x4a   : > { %p12820_p13 = scmp.lt.u32.totalorder %s13094_s10, %s16154_s0  ;;  %p12821_p6 = scmp.lt.u32.totalorder %s12819_s6, %s12814_s14 }
  0x4b   : > { %p12817_p1 = pnand %p12816_p0, %p12815_p12  ;;  %p12823_p3 = scmp.lt.u32.totalorder %s12814_s14, %s13094_s10 }
  0x4c   : > { %p12822_p10 = por %p12821_p6, %p12820_p13 }
  0x4d   : > { %p12818_p2 = pneg %p12817_p1 }
  0x4e   : > { %p12824_p7 = por %p12823_p3, %p12822_p10 }
  0x50   : > { %p12825_p9 = pnand %p12824_p7, %p12818_p2 }
  0x52   : > { %12828 = shalt.err (!%p12825_p9)
}
  0x53   : > { %s12829_s30 = scalar_lea.vmem %s13096_s28, 2048  ;;  %s12920_s11 = smov [#allocation4]  }
  0x54   : > { %p12830_p12 = scmp.ne.s32.totalorder %s13096_s28, %s12829_s30  ;;  %s12834_s17 = sshll.u32 %s12920_s11, 4  ;;  %s12835_s17 = int_to_ptr.vmem [resolvable:$false] %s12834_s17 }
  0x55   : > { %s12836_s7 = scalar_lea.vmem %s12835_s17, 4096  ;;  %p12837_p4 = scmp.lt.s32.totalorder %s13096_s28, %s12835_s17 }
  0x56   : > { %p12832_p1 = pnand %p12830_p12, %p12816_p0  ;;  %p12838_p13 = scmp.lt.s32.totalorder %s12836_s7, %s12829_s30 }
  0x58   : > { %p12833_p5 = pneg %p12832_p1  ;;  %p12839_p6 = por %p12838_p13, %p12837_p4 }
  0x5a   : > { %p12840_p10 = pnand %p12839_p6, %p12833_p5 }
  0x5c   : > { %12843 = shalt.err (!%p12840_p10)
}
  0x5d   : > { %12465 = dma.hbm_to_vmem [thread:$0]  (!%p13098_p11), %s13094_s10, 2048, %s13096_s28, %s13102_s13, %s12918_s15, %s12918_s15, %s12919_s16  }
  0x5e   : > { %231 = sbr.rel (%p12995_p8) target bundleno = 1359 (0x54f), region = 40 }
  0x65   : > { %s13136_s14 = sand.u32 1, %s12906_s19   ;;  %p16182_p4 = scmp.ne.s32.totalorder %s16175_s24, 0 }
  0x66   : > { %s10560_s6 = sshll.u32 %s13136_s14, 7  ;;  %s234_s8 = scalar_lea.sflag [#allocation5], %s13136_s14 }
  0x67   : > { %s13142_s12 = scalar_lea.vmem [#allocation4], %s10560_s6 }
  0x68   : > { %12889 = dma.done.wait (%p16182_p4), %s234_s8, 2048  }
  0x69   : > { %12891 = vsyncadd (%p16182_p4), %s234_s8, 4294965248  ;;  %p16183_p5 = scmp.eq.s32.totalorder %s12976_s22, 0 }
  0x6b   : > { %12893 = dma.done.wait (%p16183_p5), [#allocation8], 18432   ;;  %p16184_p8 = pmov %p16183_p5 }
  0x6c   : > { %v12921_v0 = vmov 0   ;;  %v12515_v1 = vld [vmem:[#allocation7 + $0x40] sm:$0xff]   ;;  %v12519_v5 = vld [vmem:[#allocation7 + $0x48] sm:$0xff]   ;;  %v12523_v9 = vld [vmem:[#allocation7 + $0x50] sm:$0xff]   ;;  %vm281_vm0 = vsmask.f32 256 }
  0x6d   : > { %12895 = vsyncadd (%p16184_p8), [#allocation8], 4294948864  ;;  %273 = vst [vmem:[#allocation2] sm:$0xf] %v12921_v0  ;;  %v12516_v2 = vld [vmem:[#allocation7] sm:$0xff]   ;;  %11403 = vmatprep.subr.bf16.mxu0 %v12515_v1  ;;  %v12520_v6 = vld [vmem:[#allocation7 + $0x8] sm:$0xff]  }
  0x6e   : > { %274 = vst [vmem:[#allocation2 + $0x4] sm:$0xf] %v12921_v0  ;;  %275 = vst [vmem:[#allocation2 + $0x8] sm:$0x1] %v12921_v0  ;;  %v12517_v3 = vld [vmem:[#allocation7 + $0xc0] sm:$0xff]   ;;  %11404 = vmatpush3.bf16.msra.mxu0 %v12516_v2  ;;  %v12521_v7 = vld [vmem:[#allocation7 + $0xc8] sm:$0xff]  }
  0x6f   : > { %277 = vst [vmem:[#allocation2 + $0xcc] sm:$0xf] %v12921_v0  ;;  %278 = vst [vmem:[#allocation2 + $0xd0] sm:$0xf] %v12921_v0  ;;  %v12518_v4 = vld [vmem:[#allocation7 + $0x80] sm:$0xff]   ;;  %11515 = vmatprep.subr.bf16.mxu1 %v12517_v3  ;;  %11405 = vmatprep.subr.bf16.mxu0 %v12519_v5  ;;  %v12522_v8 = vld [vmem:[#allocation7 + $0x88] sm:$0xff]  }
  0x70   : > { %279 = vst [vmem:[#allocation2 + $0xd4] sm:$0x1] %v12921_v0  ;;  %11516 = vmatpush3.bf16.msra.mxu1 %v12518_v4  ;;  %v12524_v10 = vld [vmem:[#allocation7 + $0x10] sm:$0xff]   ;;  %vm337_vm1 = vsmask.f32 7938  ;;  %v12527_v13 = vld [vmem:[#allocation7 + $0x58] sm:$0xff]  }
  0x71   : > { %11517 = vmatprep.subr.bf16.mxu1 %v12521_v7  ;;  %v12525_v11 = vld [vmem:[#allocation7 + $0xd0] sm:$0xff]   ;;  %v12528_v14 = vld [vmem:[#allocation7 + $0x18] sm:$0xff]   ;;  %v12531_v17 = vld [vmem:[#allocation7 + $0x60] sm:$0xff]   ;;  %vm280_vm2 = vcmask 1040384   ;;  %v16185_v23 = vmov 0  ;;  %v16188_v24 = vmov 0 }
  0x72   : > { %11406 = vmatpush3.bf16.msra.mxu0 %v12520_v6  ;;  %v12526_v12 = vld [vmem:[#allocation7 + $0x90] sm:$0xff]   ;;  %v12529_v15 = vld [vmem:[#allocation7 + $0xd8] sm:$0xff]   ;;  %v12532_v18 = vld [vmem:[#allocation7 + $0x20] sm:$0xff]   ;;  %vm425_vm5 = vsmask.f32 4368  ;;  %vm748_vm8 = vcmask 1043456  }
  0x73   : > { %11407 = vmatprep.subr.bf16.mxu0 %v12523_v9  ;;  %v12530_v16 = vld [vmem:[#allocation7 + $0x98] sm:$0xff]   ;;  %v12533_v19 = vld [vmem:[#allocation7 + $0xe0] sm:$0xff]   ;;  %v12535_v21 = vld [vmem:[#allocation7 + $0x68] sm:$0xff]   ;;  %vm1054_vm6 = vsmask.f32 3328  ;;  %vm1617_vm9 = vcmask 1042432  }
  0x74   : > { %11518 = vmatpush3.bf16.msra.mxu1 %v12522_v8  ;;  %v12534_v20 = vld [vmem:[#allocation7 + $0xa0] sm:$0xff]   ;;  %v12536_v22 = vld [vmem:[#allocation7 + $0x28] sm:$0xff]   ;;  %vm13153_vm3 = vmand %vm280_vm2, %vm281_vm0  ;;  %vm1055_vm7 = vsmask.f32 7440  ;;  %vm1618_vm10 = vcmask 1046532   ;;  %v16191_v3 = vmov 0 }
  0x75   : > { %11519 = vmatprep.subr.bf16.mxu1 %v12525_v11  ;;  %v16186_v23 = vsel %vm13153_vm3, 4294967295, %v16185_v23  ;;  %vm13158_vm4 = vmand %vm280_vm2, %vm337_vm1  ;;  %v12537_v25 = vld [vmem:[#allocation7 + $0xe8] sm:$0xff]   ;;  %v12539_v27 = vld [vmem:[#allocation7 + $0x70] sm:$0xff]   ;;  %v16194_v6 = vmov 0  ;;  %s16047_s13 = scalar_lea.vmem [#allocation10], %s10560_s6  ;;  %s11228_s9 = sshll.u32 %s12976_s22, 11 }
  0x76   : > { %11408 = vmatpush3.bf16.msra.mxu0 %v12524_v10  ;;  %16187 = vst [vmem:[#allocation14_spill] sm:$0xff] %v16186_v23  ;;  %v16189_v24 = vsel %vm13158_vm4, 4294967295, %v16188_v24  ;;  %v12538_v26 = vld [vmem:[#allocation7 + $0xa8] sm:$0xff]   ;;  %v12540_v28 = vld [vmem:[#allocation7 + $0x30] sm:$0xff]   ;;  %v12543_v31 = vld [vmem:[#allocation7 + $0x78] sm:$0xff]   ;;  %s10459_s30 = sshll.u32 %s16047_s13, 4  ;;  %s16106_s7 = scalar_lea.hbm %s16159_s5, %s11228_s9  ;;  %s16108_s30 = int_to_ptr.vmem [resolvable:$true] %s10459_s30 }
  0x77   : > { %11409 = vmatprep.subr.bf16.mxu0 %v12527_v13  ;;  %16190 = vst [vmem:[#allocation15_spill] sm:$0xff] %v16189_v24  ;;  %v12541_v29 = vld [vmem:[#allocation7 + $0xf0] sm:$0xff]   ;;  %v12544_v32 = vld [vmem:[#allocation7 + $0x38] sm:$0xff]   ;;  %v283_v34 = vld [vmem:[#allocation2] sm:$0x1]  ;;  %s10446_s22 = scalar_lea.sflag [#allocation6], %s13136_s14 }
  0x78   : > { %11520 = vmatpush3.bf16.msra.mxu1 %v12526_v12  ;;  %v12542_v30 = vld [vmem:[#allocation7 + $0xb0] sm:$0xff]   ;;  %v12545_v33 = vld [vmem:[#allocation7 + $0xf8] sm:$0xff]   ;;  %v1007_v36 = vld [vmem:[#allocation2 + $0x4] sm:$0xf]  ;;  %v284_v37 = vsel %vm13153_vm3, 0, %v283_v34  ;;  %s12844_s6 = scalar_lea.vmem %s16108_s30, 2048 }
  0x79   : > { %11521 = vmatprep.subr.bf16.mxu1 %v12529_v15  ;;  %v339_v35 = vld [vmem:[#allocation2 + $0x8] sm:$0x1]  ;;  %v1067_v39 = vshll.u32 %v1007_v36, 16  ;;  %v1071_v40 = vshrl.u32 %v1007_v36, 16  ;;  %285 = vst [vmem:[#allocation2] sm:$0x1] %v284_v37  ;;  %vm13177_vm11 = vmor %vm281_vm0, %vm425_vm5  ;;  %p12845_p11 = scmp.ne.s32.totalorder %s16108_s30, %s12844_s6 }
  0x7a   : > { %11410 = vmatpush3.bf16.msra.mxu0 %v12528_v14  ;;  %v340_v38 = vsel %vm13158_vm4, 0, %v339_v35  ;;  %v12546_v41 = vld [vmem:[#allocation7 + $0xb8] sm:$0xff]   ;;  %v12548_v44 = vld [vmem:[#allocation7 + $0x140] sm:$0xff]   ;;  %v286_v45 = vld [vmem:[#allocation2 + $0xc] sm:$0x1]  ;;  %v16192_v3 = vsel %vm13177_vm11, 4294967295, %v16191_v3 }
  0x7b   : > { %11411 = vmatprep.subr.bf16.mxu0 %v12531_v17  ;;  %341 = vst [vmem:[#allocation2 + $0x8] sm:$0x1] %v340_v38  ;;  %v13166_v42 = vrot.slane %v1067_v39, 5  ;;  %v1073_v43 = vrot.slane %v1071_v40, 4  ;;  %v342_v46 = vld [vmem:[#allocation2 + $0x14] sm:$0x1]  ;;  %vm13183_vm12 = vmand %vm748_vm8, %vm337_vm1 }
  0x7c   : > { %11522 = vmatpush3.bf16.msra.mxu1 %v12530_v16  ;;  %v287_v48 = vsel %vm13153_vm3, 0, %v286_v45  ;;  %v343_v49 = vsel %vm13158_vm4, 0, %v342_v46  ;;  %v393_v50 = vld [vmem:[%s13142_s12] sm:$0xf]  ;;  %v394_v51 = vld [vmem:[%s13142_s12 + $0x4] sm:$0xf]  ;;  %vm13190_vm13 = vmor %vm1054_vm6, %vm1055_vm7 }
  0x7d   : > { %11523 = vmatprep.subr.bf16.mxu1 %v12533_v19  ;;  %v1074_v47 = vor.u32 %v1073_v43, %v13166_v42  ;;  %288 = vst [vmem:[#allocation2 + $0xc] sm:$0x1] %v287_v48  ;;  %344 = vst [vmem:[#allocation2 + $0x14] sm:$0x1] %v343_v49  ;;  %v428_v52 = vshrl.u32 %v393_v50, 16  ;;  %v431_v53 = vshll.u32 %v393_v50, 16 }
  0x7e   : > { %11412 = vmatpush3.bf16.msra.mxu0 %v12532_v18  ;;  %v436_v54 = vshrl.u32 %v394_v51, 16  ;;  %v439_v55 = vshll.u32 %v394_v51, 16  ;;  %v1521_v56 = vld [vmem:[#allocation2] sm:$0xe]  ;;  %v1522_v60 = vld [vmem:[#allocation2 + $0x4] sm:$0xf]  ;;  %vm13205_vm14 = vmor %vm1617_vm9, %vm1618_vm10 }
  0x7f   : > { %11413 = vmatprep.subr.bf16.mxu0 %v12535_v21  ;;  %v1075_v57 = vrot.slane %v1074_v47, 4  ;;  %v430_v58 = vrot.slane %v428_v52, 7  ;;  %v10596_v61 = vrot.slane %v1521_v56, 9  ;;  %16193 = vst [vmem:[#allocation16_spill] sm:$0xff] %v16192_v3  ;;  %v16195_v6 = vsel %vm13183_vm12, 4294967295, %v16194_v6  ;;  %v12550_v51 = vld [vmem:[#allocation7 + $0x100] sm:$0xff]  }
  0x80   : > { %11524 = vmatpush3.bf16.msra.mxu1 %v12534_v20  ;;  %v438_v59 = vrot.slane %v436_v54, 7  ;;  %v1006_v62 = vld [vmem:[#allocation2] sm:$0xf]  ;;  %16196 = vst [vmem:[#allocation17_spill] sm:$0xff] %v16195_v6  ;;  %v1622_v10 = vrot.slane %v1522_v60, 5  ;;  %v16197_v17 = vmov 0 }
  0x81   : > { %11525 = vmatprep.subr.bf16.mxu1 %v12537_v25  ;;  %v1058_v0 = vshrl.u32 %v1006_v62, 16  ;;  %v1061_v1 = vshll.u32 %v1006_v62, 16  ;;  %v433_v4 = vor.u32 %v431_v53, %v430_v58  ;;  %v434_v7 = vrot.slane %v430_v58, 4  ;;  %v289_v11 = vld [vmem:[#allocation2 + $0x18] sm:$0x1]  ;;  %v12547_v45 = vld [vmem:[#allocation2] sm:$0xff]  }
  0x82   : > { %11414 = vmatpush3.bf16.msra.mxu0 %v12536_v22  ;;  %v1008_v63 = vld [vmem:[#allocation2 + $0x8] sm:$0x1]  ;;  %v441_v8 = vor.u32 %v439_v55, %v438_v59  ;;  %v443_v9 = vrot.slane %v438_v59, 4  ;;  %v395_v16 = vld [vmem:[%s13142_s12 + $0x8] sm:$0xf]  ;;  %v16198_v17 = vsel %vm13190_vm13, 4294967295, %v16197_v17  ;;  %v1623_v46 = vsel %vm13205_vm14, %v10596_v61, %v1622_v10 }
  0x83   : > { %11415 = vmatprep.subr.bf16.mxu0 %v12539_v27  ;;  %v1077_v2 = vshll.u32 %v1008_v63, 16  ;;  %v1523_v5 = vld [vmem:[#allocation2 + $0x8] sm:$0x1]  ;;  %v1060_v12 = vrot.slane %v1058_v0, 4  ;;  %v1063_v13 = vrot.slane %v1061_v1, 5  ;;  %16199 = vst [vmem:[#allocation18_spill] sm:$0xff] %v16198_v17 }
  0x84   : > { %11526 = vmatpush3.bf16.msra.mxu1 %v12538_v26  ;;  %v1625_v15 = vrot.slane %v1523_v5, 5  ;;  %v442_v18 = vsel %vm13177_vm11, %v434_v7, %v441_v8  ;;  %v750_v19 = vld [vmem:[#allocation2 + $0xc] sm:$0xf]  ;;  %v754_v20 = vld [vmem:[#allocation2 + $0x14] sm:$0x1]  ;;  %v1624_v21 = vrot.slane %v1622_v10, 4 }
  0x85   : > { %11527 = vmatprep.subr.bf16.mxu1 %v12541_v29  ;;  %v1079_v14 = vrot.slane %v1077_v2, 5  ;;  %v290_v22 = vsel %vm13153_vm3, 0, %v289_v11  ;;  %v1064_v25 = vor.u32 %v1063_v13, %v1060_v12  ;;  %v751_v26 = vsel %vm13183_vm12, %v433_v4, %v750_v19  ;;  %753 = vst [vmem:[#allocation2 + $0x10] sm:$0xf] %v442_v18  ;;  %v345_v29 = vld [vmem:[#allocation2 + $0x20] sm:$0x1] }
  0x86   : > { %11416 = vmatpush3.bf16.msra.mxu0 %v12540_v28  ;;  %v755_v27 = vsel %vm13153_vm3, %v443_v9, %v754_v20  ;;  %291 = vst [vmem:[#allocation2 + $0x18] sm:$0x1] %v290_v22  ;;  %v396_v28 = vld [vmem:[%s13142_s12 + $0xc] sm:$0xf]  ;;  %752 = vst [vmem:[#allocation2 + $0xc] sm:$0xf] %v751_v26  ;;  %v1626_v47 = vsel %vm13205_vm14, %v1624_v21, %v1625_v15 }
  0x87   : > { %11417 = vmatprep.subr.bf16.mxu0 %v12543_v31  ;;  %756 = vst [vmem:[#allocation2 + $0x14] sm:$0x1] %v755_v27  ;;  %v445_v31 = vshrl.u32 %v395_v16, 16  ;;  %v1080_v34 = vsel %vm13190_vm13, %v1075_v57, %v1079_v14  ;;  %v456_v35 = vshll.u32 %v396_v28, 16  ;;  %v346_v36 = vsel %vm13158_vm4, 0, %v345_v29  ;;  %v12554_v55 = vld [vmem:[#allocation7 + $0x148] sm:$0xff]  }
  0x88   : > { %11528 = vmatpush3.bf16.msra.mxu1 %v12542_v30  ;;  %v292_v37 = vld [vmem:[#allocation2 + $0x24] sm:$0x1]  ;;  %v448_v39 = vshll.u32 %v395_v16, 16  ;;  %347 = vst [vmem:[#allocation2 + $0x20] sm:$0x1] %v346_v36  ;;  %v10612_v58 = vcombine.low %v1623_v46, %v1626_v47  ;;  %v12560_v2 = vld [vmem:[#allocation7 + $0x150] sm:$0xff]  }
  0x89   : > { %11529 = vmatprep.subr.bf16.mxu1 %v12545_v33  ;;  %v1065_v33 = vrot.slane %v1064_v25, 4  ;;  %v447_v38 = vrot.slane %v445_v31, 7  ;;  %v397_v43 = vld [vmem:[%s13142_s12 + $0x10] sm:$0xf]  ;;  %v13226_v48 = vld [vmem:[%s13142_s12 + $0x14] sm:$0xf] }
  0x8a   : > { %11418 = vmatpush3.bf16.msra.mxu0 %v12544_v32  ;;  %v453_v32 = vshrl.u32 %v396_v28, 16  ;;  %v462_v49 = vshrl.u32 %v397_v43, 16  ;;  %v465_v56 = vshll.u32 %v397_v43, 16  ;;  %v470_v57 = vshrl.u32 %v13226_v48, 16  ;;  %v12556_v62 = vld [vmem:[#allocation7 + $0x108] sm:$0xff]   ;;  %v12562_v21 = vld [vmem:[#allocation7 + $0x110] sm:$0xff]  }
  0x8b   : > { %11627 = vmatprep.subr.bf16.mxu0 %v12548_v44  ;;  %v1070_v44 = vsel %vm13190_vm13, %v1065_v33, %v13166_v42  ;;  %v451_v52 = vrot.slane %v447_v38, 4  ;;  %v450_v60 = vor.u32 %v448_v39, %v447_v38  ;;  %v473_v9 = vshll.u32 %v13226_v48, 16  ;;  %v348_v20 = vld [vmem:[#allocation2 + $0x2c] sm:$0x1]  ;;  %v12566_v39 = vld [vmem:[#allocation7 + $0x158] sm:$0xff]   ;;  %p16348_p0 = scmp.ne.s32.totalorder %s16180_s23, 0 }
  0x8c   : > { %11530 = vmatpush3.bf16.msra.mxu1 %v12546_v41  ;;  %v13213_v40 = vrot.slane %v453_v32, 7  ;;  %v293_v41 = vsel %vm13153_vm3, 0, %v292_v37  ;;  %v10580_v50 = vcombine.low %v1070_v44, %v1080_v34  ;;  %v13230_v42 = vrot.slane %v462_v49, 7  ;;  %v1010_v59 = vld [vmem:[#allocation2 + $0x10] sm:$0xf]  ;;  %s12922_s8 = smov [#allocation10]  }
  0x8d   : > { %294 = vst [vmem:[#allocation2 + $0x24] sm:$0x1] %v293_v41  ;;  %v12549_v63 = vld [vmem:[#allocation2 + $0xc] sm:$0xff]   ;;  %v1091_v1 = vshll.u32 %v1010_v59, 16  ;;  %v1095_v8 = vshrl.u32 %v1010_v59, 16  ;;  %v13242_v37 = vrot.slane %v470_v57, 7  ;;  %p12846_p2 = pnand %p12845_p11, %p16348_p0 }
  0x8e   : > { %v458_v53 = vor.u32 %v456_v35, %v13213_v40  ;;  %v460_v54 = vrot.slane %v13213_v40, 4  ;;  %4460 = vmatprep.mubr.bf16.mxu0 %v10580_v50  ;;  %v1009_v0 = vld [vmem:[#allocation2 + $0xc] sm:$0xf]  ;;  %v1011_v4 = vld [vmem:[#allocation2 + $0x14] sm:$0x1]  ;;  %4621 = vmatprep.mubr.bf16.mxu1 %v12549_v63  ;;  %v467_v13 = vor.u32 %v465_v56, %v13230_v42  ;;  %v468_v36 = vrot.slane %v13230_v42, 4 }
  0x8f   : > { %4461 = vmatmul.mubr.bf16.vlgmr.msra.gmra.mrb[0].mxu0 %v12547_v45  ;;  %v1082_v5 = vshrl.u32 %v1009_v0, 16  ;;  %v1085_v7 = vshll.u32 %v1009_v0, 16  ;;  %v1093_v10 = vrot.slane %v1091_v1, 5  ;;  %v1101_v11 = vshll.u32 %v1011_v4, 16  ;;  %v757_v12 = vld [vmem:[#allocation2 + $0x18] sm:$0xf]  ;;  %4622 = vmatmul.mubr.bf16.vlgmr.msra.gmra.mrb[0].mxu1 %v10612_v58  ;;  %p12847_p3 = pneg %p12846_p2 }
  0x90   : > { %v459_v61 = vsel %vm13177_vm11, %v451_v52, %v458_v53  ;;  %11628 = vmatpush3.bf16.msra.mxu0 %v12550_v51  ;;  %v1097_v16 = vrot.slane %v1095_v8, 4  ;;  %v758_v18 = vsel %vm13183_vm12, %v450_v60, %v757_v12  ;;  %v1524_v19 = vld [vmem:[#allocation2 + $0xc] sm:$0xe]  ;;  %v1525_v25 = vld [vmem:[#allocation2 + $0x10] sm:$0xf]  ;;  %v475_v46 = vor.u32 %v473_v9, %v13242_v37  ;;  %v12572_v60 = vld [vmem:[#allocation7 + $0x160] sm:$0xff]  }
  0x91   : > { %760 = vst [vmem:[#allocation2 + $0x1c] sm:$0xf] %v459_v61  ;;  %11629 = vmatprep.subr.bf16.mxu0 %v12554_v55  ;;  %v1084_v14 = vrot.slane %v1082_v5, 4  ;;  %v1087_v15 = vrot.slane %v1085_v7, 5  ;;  %v1103_v22 = vrot.slane %v1101_v11, 5  ;;  %v10597_v27 = vrot.slane %v1524_v19, 9 }
  0x92   : > { %759 = vst [vmem:[#allocation2 + $0x18] sm:$0xf] %v758_v18  ;;  %v1526_v26 = vld [vmem:[#allocation2 + $0x14] sm:$0x1]  ;;  %v1098_v29 = vor.u32 %v1097_v16, %v1093_v10  ;;  %v1629_v31 = vrot.slane %v1525_v25, 5  ;;  %v349_v47 = vsel %vm13158_vm4, 0, %v348_v20  ;;  %v476_v59 = vsel %vm13177_vm11, %v468_v36, %v475_v46 }
  0x93   : > { %v1088_v28 = vor.u32 %v1087_v15, %v1084_v14  ;;  %v1632_v32 = vrot.slane %v1526_v26, 5  ;;  %v761_v33 = vld [vmem:[#allocation2 + $0x20] sm:$0x1]  ;;  %v295_v48 = vld [vmem:[#allocation2 + $0x30] sm:$0x1]  ;;  %v477_v4 = vrot.slane %v13242_v37, 4 }
  0x94   : > { %v764_v34 = vld [vmem:[#allocation2 + $0x24] sm:$0xf]  ;;  %11630 = vmatpush3.bf16.msra.mxu0 %v12556_v62  ;;  %v762_v35 = vsel %vm13153_vm3, %v460_v54, %v761_v33  ;;  %v1099_v41 = vrot.slane %v1098_v29, 4  ;;  %v1630_v43 = vsel %vm13205_vm14, %v10597_v27, %v1629_v31  ;;  %v1631_v44 = vrot.slane %v1629_v31, 4  ;;  %v12568_v49 = vld [vmem:[#allocation7 + $0x118] sm:$0xff]   ;;  %v12574_v5 = vld [vmem:[#allocation7 + $0x120] sm:$0xff]  }
  0x95   : > { %v765_v38 = vsel %vm13183_vm12, %v467_v13, %v764_v34  ;;  %11631 = vmatprep.subr.bf16.mxu0 %v12560_v2  ;;  %v1089_v40 = vrot.slane %v1088_v28, 4  ;;  %763 = vst [vmem:[#allocation2 + $0x20] sm:$0x1] %v762_v35  ;;  %v12551_v52 = vld [vmem:[#allocation2 + $0xc] sm:$0xff]   ;;  %350 = vst [vmem:[#allocation2 + $0x2c] sm:$0x1] %v349_v47 }
  0x96   : > { %766 = vst [vmem:[#allocation2 + $0x24] sm:$0xf] %v765_v38  ;;  %v1104_v51 = vsel %vm13190_vm13, %v1099_v41, %v1103_v22  ;;  %v1633_v53 = vsel %vm13205_vm14, %v1631_v44, %v1632_v32  ;;  %v399_v42 = vld [vmem:[%s13142_s12 + $0x18] sm:$0xf]  ;;  %767 = vst [vmem:[#allocation2 + $0x28] sm:$0xf] %v476_v59 }
  0x97   : > { %v1094_v50 = vsel %vm13190_vm13, %v1089_v40, %v1093_v10  ;;  %v10613_v57 = vcombine.low %v1630_v43, %v1633_v53  ;;  %v296_v9 = vsel %vm13153_vm3, 0, %v295_v48  ;;  %v479_v10 = vshrl.u32 %v399_v42, 16  ;;  %v12578_v12 = vld [vmem:[#allocation7 + $0x168] sm:$0xff]   ;;  %v13269_v31 = vld [vmem:[%s13142_s12 + $0x1c] sm:$0xf] }
  0x98   : > { %v1013_v45 = vld [vmem:[#allocation2 + $0x1c] sm:$0xf]  ;;  %11632 = vmatpush3.bf16.msra.mxu0 %v12562_v21  ;;  %v10581_v56 = vcombine.low %v1094_v50, %v1104_v51  ;;  %v482_v11 = vshll.u32 %v399_v42, 16  ;;  %297 = vst [vmem:[#allocation2 + $0x30] sm:$0x1] %v296_v9  ;;  %v12580_v32 = vld [vmem:[#allocation7 + $0x128] sm:$0xff]  }
  0x99   : > { %v1115_v54 = vshll.u32 %v1013_v45, 16  ;;  %v1528_v55 = vld [vmem:[#allocation2 + $0x1c] sm:$0xf]  ;;  %v1119_v58 = vshrl.u32 %v1013_v45, 16  ;;  %11633 = vmatprep.subr.bf16.mxu0 %v12566_v39  ;;  %v1012_v62 = vld [vmem:[#allocation2 + $0x18] sm:$0xf] }
  0x9a   : > { %v12552_v61 = vld [vmem:[#allocation2 + $0x18] sm:$0xff]   ;;  %4468 = vmatprep.mubr.bf16.mxu0 %v10581_v56  ;;  %v1106_v0 = vshrl.u32 %v1012_v62, 16  ;;  %v1109_v1 = vshll.u32 %v1012_v62, 16  ;;  %v1636_v8 = vrot.slane %v1528_v55, 5  ;;  %v13266_v22 = vrot.slane %v479_v10, 7  ;;  %v12584_v50 = vld [vmem:[#allocation7 + $0x170] sm:$0xff]  }
  0x9b   : > { %v13260_v63 = vrot.slane %v1115_v54, 5  ;;  %v1121_v2 = vrot.slane %v1119_v58, 4  ;;  %4469 = vmatmul.mubr.bf16.gmra.mrb[4].mxu0 %v12551_v52  ;;  %4629 = vmatprep.mubr.bf16.mxu1 %v12552_v61  ;;  %v1527_v7 = vld [vmem:[#allocation2 + $0x18] sm:$0xe]  ;;  %v351_v44 = vld [vmem:[#allocation2 + $0x38] sm:$0x1] }
  0x9c   : > { %4630 = vmatmul.mubr.bf16.gmra.mrb[4].mxu1 %v10613_v57  ;;  %v1014_v13 = vld [vmem:[#allocation2 + $0x20] sm:$0x1]  ;;  %v1108_v14 = vrot.slane %v1106_v0, 4  ;;  %v1111_v15 = vrot.slane %v1109_v1, 5  ;;  %11634 = vmatpush3.bf16.msra.mxu0 %v12568_v49  ;;  %v10598_v20 = vrot.slane %v1527_v7, 9  ;;  %v1638_v21 = vrot.slane %v1636_v8, 4 }
  0x9d   : > { %v1122_v16 = vor.u32 %v1121_v2, %v13260_v63  ;;  %v1125_v18 = vshll.u32 %v1014_v13, 16  ;;  %v1529_v19 = vld [vmem:[#allocation2 + $0x20] sm:$0x1]  ;;  %11635 = vmatprep.subr.bf16.mxu0 %v12572_v60  ;;  %v768_v28 = vld [vmem:[#allocation2 + $0x2c] sm:$0x1]  ;;  %v12555_v39 = vld [vmem:[#allocation2 + $0x24] sm:$0xff]   ;;  %v484_v43 = vor.u32 %v482_v11, %v13266_v22 }
  0x9e   : > { %v1112_v25 = vor.u32 %v1111_v15, %v1108_v14  ;;  %v1639_v27 = vrot.slane %v1529_v19, 5  ;;  %v1015_v29 = vld [vmem:[#allocation2 + $0x24] sm:$0xf]  ;;  %v1637_v34 = vsel %vm13205_vm14, %v10598_v20, %v1636_v8  ;;  %v769_v35 = vsel %vm13153_vm3, %v477_v4, %v768_v28  ;;  %v1016_v41 = vld [vmem:[#allocation2 + $0x28] sm:$0xf]  ;;  %v12553_v46 = vld [vmem:[#allocation2 + $0x18] sm:$0xff]   ;;  %4637 = vmatprep.mubr.bf16.mxu1 %v12555_v39 }
  0x9f   : > { %v1123_v26 = vrot.slane %v1122_v16, 4  ;;  %v1127_v33 = vrot.slane %v1125_v18, 5  ;;  %v1130_v36 = vshrl.u32 %v1015_v29, 16  ;;  %v13275_v37 = vld [vmem:[#allocation2 + $0x24] sm:$0xe]  ;;  %v1133_v49 = vshll.u32 %v1015_v29, 16 }
  0xa0   : > { %v1113_v38 = vrot.slane %v1112_v25, 4  ;;  %v1640_v40 = vsel %vm13205_vm14, %v1638_v21, %v1639_v27  ;;  %770 = vst [vmem:[#allocation2 + $0x2c] sm:$0x1] %v769_v35  ;;  %11636 = vmatpush3.bf16.msra.mxu0 %v12574_v5  ;;  %v1139_v52 = vshll.u32 %v1016_v41, 16  ;;  %v1143_v53 = vshrl.u32 %v1016_v41, 16  ;;  %v12586_v42 = vld [vmem:[#allocation7 + $0x130] sm:$0xff]  }
  0xa1   : > { %v1128_v45 = vsel %vm13190_vm13, %v1123_v26, %v1127_v33  ;;  %v10614_v47 = vcombine.low %v1637_v34, %v1640_v40  ;;  %v1132_v48 = vrot.slane %v1130_v36, 4  ;;  %11637 = vmatprep.subr.bf16.mxu0 %v12578_v12  ;;  %v485_v54 = vrot.slane %v13266_v22, 4  ;;  %v1531_v55 = vld [vmem:[#allocation2 + $0x28] sm:$0xf]  ;;  %v771_v60 = vld [vmem:[#allocation2 + $0x30] sm:$0xf] }
  0xa2   : > { %v1118_v51 = vsel %vm13190_vm13, %v1113_v38, %v13260_v63  ;;  %v1135_v57 = vrot.slane %v1133_v49, 5  ;;  %v487_v58 = vshrl.u32 %v13269_v31, 16  ;;  %v490_v59 = vshll.u32 %v13269_v31, 16  ;;  %v12587_v61 = vld [vmem:[#allocation7 + $0x1c0] sm:$0xff]   ;;  %v12589_v11 = vld [vmem:[#allocation7 + $0x1c8] sm:$0xff]  }
  0xa3   : > { %v10582_v56 = vcombine.low %v1118_v51, %v1128_v45  ;;  %v13288_v62 = vrot.slane %v1139_v52, 5  ;;  %v1145_v63 = vrot.slane %v1143_v53, 4  ;;  %v772_v0 = vsel %vm13183_vm12, %v484_v43, %v771_v60  ;;  %v298_v2 = vld [vmem:[#allocation2 + $0x3c] sm:$0x1]  ;;  %v401_v10 = vld [vmem:[%s13142_s12 + $0x20] sm:$0xf]  ;;  %11739 = vmatprep.subr.bf16.mxu1 %v12587_v61 }
  0xa4   : > { %4638 = vmatmul.mubr.bf16.gmra.mrb[8].mxu1 %v10614_v47  ;;  %v10599_v1 = vrot.slane %v13275_v37, 9  ;;  %11638 = vmatpush3.bf16.msra.mxu0 %v12580_v32  ;;  %v12588_v4 = vld [vmem:[#allocation7 + $0x180] sm:$0xff]   ;;  %v1136_v5 = vor.u32 %v1135_v57, %v1132_v48  ;;  %v489_v7 = vrot.slane %v487_v58, 7  ;;  %773 = vst [vmem:[#allocation2 + $0x30] sm:$0xf] %v772_v0  ;;  %v1643_v8 = vrot.slane %v1531_v55, 5 }
  0xa5   : > { %4476 = vmatprep.mubr.bf16.mxu0 %v10582_v56  ;;  %v352_v9 = vsel %vm13158_vm4, 0, %v351_v44  ;;  %11639 = vmatprep.subr.bf16.mxu0 %v12584_v50  ;;  %v1146_v12 = vor.u32 %v1145_v63, %v13288_v62  ;;  %v299_v13 = vsel %vm13153_vm3, 0, %v298_v2  ;;  %v402_v14 = vld [vmem:[%s13142_s12 + $0x24] sm:$0xf]  ;;  %v496_v15 = vshrl.u32 %v401_v10, 16  ;;  %v12590_v18 = vld [vmem:[#allocation7 + $0x188] sm:$0xff]  }
  0xa6   : > { %4477 = vmatmul.mubr.bf16.gmra.mrb[8].mxu0 %v12553_v46  ;;  %353 = vst [vmem:[#allocation2 + $0x38] sm:$0x1] %v352_v9  ;;  %v499_v16 = vshll.u32 %v401_v10, 16  ;;  %v1137_v20 = vrot.slane %v1136_v5, 4  ;;  %v492_v21 = vor.u32 %v490_v59, %v489_v7  ;;  %v494_v22 = vrot.slane %v489_v7, 4  ;;  %11740 = vmatpush3.bf16.msra.mxu1 %v12588_v4  ;;  %v12557_v38 = vld [vmem:[#allocation2 + $0x24] sm:$0xff]  }
  0xa7   : > { %v1017_v19 = vld [vmem:[#allocation2 + $0x2c] sm:$0x1]  ;;  %300 = vst [vmem:[#allocation2 + $0x3c] sm:$0x1] %v299_v13  ;;  %v1147_v26 = vrot.slane %v1146_v12, 4  ;;  %v1645_v28 = vrot.slane %v1643_v8, 4  ;;  %11741 = vmatprep.subr.bf16.mxu1 %v12589_v11  ;;  %v13304_v32 = vsel %vm13205_vm14, %v10599_v1, %v1643_v8 }
  0xa8   : > { %v1532_v25 = vld [vmem:[#allocation2 + $0x2c] sm:$0x1]  ;;  %v1149_v27 = vshll.u32 %v1017_v19, 16  ;;  %11640 = vmatpush3.bf16.msra.mxu0 %v12586_v42  ;;  %v493_v31 = vsel %vm13177_vm11, %v485_v54, %v492_v21  ;;  %v498_v33 = vrot.slane %v496_v15, 7  ;;  %v504_v34 = vshrl.u32 %v402_v14, 16 }
  0xa9   : > { %v1646_v29 = vrot.slane %v1532_v25, 5  ;;  %v354_v35 = vld [vmem:[#allocation2 + $0x44] sm:$0x1]  ;;  %v1142_v36 = vsel %vm13190_vm13, %v1137_v20, %v13288_v62  ;;  %774 = vst [vmem:[#allocation2 + $0x34] sm:$0xf] %v493_v31  ;;  %v507_v39 = vshll.u32 %v402_v14, 16 }
  0xaa   : > { %v1151_v37 = vrot.slane %v1149_v27, 5  ;;  %v355_v40 = vsel %vm13158_vm4, 0, %v354_v35  ;;  %v301_v41 = vld [vmem:[#allocation2 + $0x48] sm:$0x1]  ;;  %v501_v45 = vor.u32 %v499_v16, %v498_v33  ;;  %v502_v46 = vrot.slane %v498_v33, 4  ;;  %11742 = vmatpush3.bf16.msra.mxu1 %v12590_v18 }
  0xab   : > { %v12593_v43 = vld [vmem:[#allocation7 + $0x1d0] sm:$0xff]   ;;  %v1647_v44 = vsel %vm13205_vm14, %v1645_v28, %v1646_v29  ;;  %v506_v47 = vrot.slane %v504_v34, 7  ;;  %356 = vst [vmem:[#allocation2 + $0x44] sm:$0x1] %v355_v40  ;;  %v13314_v48 = vld [vmem:[%s13142_s12 + $0x28] sm:$0xf] }
  0xac   : > { %v404_v49 = vld [vmem:[%s13142_s12 + $0x2c] sm:$0xf]  ;;  %v1152_v50 = vsel %vm13190_vm13, %v1147_v26, %v1151_v37  ;;  %v1018_v51 = vld [vmem:[#allocation2 + $0x30] sm:$0xf]  ;;  %11743 = vmatprep.subr.bf16.mxu1 %v12593_v43  ;;  %v10615_v57 = vcombine.low %v13304_v32, %v1647_v44  ;;  %v302_v61 = vsel %vm13153_vm3, 0, %v301_v41  ;;  %v12594_v62 = vld [vmem:[#allocation7 + $0x190] sm:$0xff]  }
  0xad   : > { %v10583_v52 = vcombine.low %v1142_v36, %v1152_v50  ;;  %v775_v53 = vld [vmem:[#allocation2 + $0x38] sm:$0x1]  ;;  %v1154_v54 = vshrl.u32 %v1018_v51, 16  ;;  %v1157_v55 = vshll.u32 %v1018_v51, 16  ;;  %v509_v42 = vor.u32 %v507_v39, %v506_v47  ;;  %v1533_v56 = vld [vmem:[#allocation2 + $0x30] sm:$0xe] }
  0xae   : > { %v776_v58 = vsel %vm13153_vm3, %v494_v22, %v775_v53  ;;  %v511_v59 = vrot.slane %v506_v47, 4  ;;  %v778_v60 = vld [vmem:[#allocation2 + $0x3c] sm:$0xf]  ;;  %303 = vst [vmem:[#allocation2 + $0x48] sm:$0x1] %v302_v61  ;;  %v10600_v5 = vrot.slane %v1533_v56, 9  ;;  %11744 = vmatpush3.bf16.msra.mxu1 %v12594_v62 }
  0xaf   : > { %4484 = vmatprep.mubr.bf16.mxu0 %v10583_v52  ;;  %777 = vst [vmem:[#allocation2 + $0x38] sm:$0x1] %v776_v58  ;;  %v1156_v63 = vrot.slane %v1154_v54, 4  ;;  %v1159_v0 = vrot.slane %v1157_v55, 5  ;;  %v510_v1 = vsel %vm13177_vm11, %v502_v46, %v509_v42  ;;  %v779_v2 = vsel %vm13183_vm12, %v501_v45, %v778_v60  ;;  %v357_v4 = vld [vmem:[#allocation2 + $0x50] sm:$0x1] }
  0xb0   : > { %4485 = vmatmul.mubr.bf16.gmra.mrb[12].mxu0 %v12557_v38  ;;  %780 = vst [vmem:[#allocation2 + $0x3c] sm:$0xf] %v779_v2  ;;  %781 = vst [vmem:[#allocation2 + $0x40] sm:$0xf] %v510_v1  ;;  %v513_v7 = vshrl.u32 %v13314_v48, 16  ;;  %v521_v8 = vshrl.u32 %v404_v49, 16 }
  0xb1   : > { %v524_v9 = vshll.u32 %v404_v49, 16  ;;  %v12558_v10 = vld [vmem:[#allocation2 + $0x30] sm:$0xff]   ;;  %v1160_v12 = vor.u32 %v1159_v0, %v1156_v63  ;;  %v358_v13 = vsel %vm13158_vm4, 0, %v357_v4  ;;  %v516_v18 = vshll.u32 %v13314_v48, 16  ;;  %v405_v0 = vld [vmem:[%s13142_s12 + $0x30] sm:$0xf] }
  0xb2   : > { %v1019_v11 = vld [vmem:[#allocation2 + $0x34] sm:$0xf]  ;;  %v515_v16 = vrot.slane %v513_v7, 7  ;;  %359 = vst [vmem:[#allocation2 + $0x50] sm:$0x1] %v358_v13  ;;  %4645 = vmatprep.mubr.bf16.mxu1 %v12558_v10  ;;  %v13332_v22 = vrot.slane %v521_v8, 7 }
  0xb3   : > { %v1163_v14 = vshll.u32 %v1019_v11, 16  ;;  %v1167_v15 = vshrl.u32 %v1019_v11, 16  ;;  %v1161_v19 = vrot.slane %v1160_v12, 4  ;;  %v1534_v20 = vld [vmem:[#allocation2 + $0x34] sm:$0xf]  ;;  %4646 = vmatmul.mubr.bf16.gmra.mrb[12].mxu1 %v10615_v57 }
  0xb4   : > { %v782_v21 = vld [vmem:[#allocation2 + $0x44] sm:$0x1]  ;;  %v1650_v27 = vrot.slane %v1534_v20, 5  ;;  %v12595_v29 = vld [vmem:[#allocation7 + $0x1d8] sm:$0xff]   ;;  %v519_v31 = vrot.slane %v515_v16, 4  ;;  %v526_v32 = vor.u32 %v524_v9, %v13332_v22  ;;  %v518_v40 = vor.u32 %v516_v18, %v515_v16 }
  0xb5   : > { %v1165_v25 = vrot.slane %v1163_v14, 5  ;;  %v1169_v26 = vrot.slane %v1167_v15, 4  ;;  %v783_v28 = vsel %vm13153_vm3, %v511_v59, %v782_v21  ;;  %11745 = vmatprep.subr.bf16.mxu1 %v12595_v29  ;;  %v12596_v37 = vld [vmem:[#allocation7 + $0x198] sm:$0xff]   ;;  %v528_v56 = vrot.slane %v13332_v22, 4  ;;  %v785_v57 = vld [vmem:[#allocation2 + $0x48] sm:$0xf] }
  0xb6   : > { %784 = vst [vmem:[#allocation2 + $0x44] sm:$0x1] %v783_v28  ;;  %v1020_v33 = vld [vmem:[#allocation2 + $0x38] sm:$0x1]  ;;  %v1652_v36 = vrot.slane %v1650_v27, 4  ;;  %v527_v41 = vsel %vm13177_vm11, %v519_v31, %v526_v32  ;;  %v1651_v45 = vsel %vm13205_vm14, %v10600_v5, %v1650_v27  ;;  %11746 = vmatpush3.bf16.msra.mxu1 %v12596_v37  ;;  %v12559_v50 = vld [vmem:[#allocation2 + $0x30] sm:$0xff]   ;;  %v786_v7 = vsel %vm13183_vm12, %v518_v40, %v785_v57 }
  0xb7   : > { %v1170_v34 = vor.u32 %v1169_v26, %v1165_v25  ;;  %v1535_v35 = vld [vmem:[#allocation2 + $0x38] sm:$0x1]  ;;  %v1173_v38 = vshll.u32 %v1020_v33, 16  ;;  %v12561_v39 = vld [vmem:[#allocation2 + $0x3c] sm:$0xff]   ;;  %v1166_v43 = vsel %vm13190_vm13, %v1161_v19, %v1165_v25  ;;  %788 = vst [vmem:[#allocation2 + $0x4c] sm:$0xf] %v527_v41 }
  0xb8   : > { %v1653_v46 = vrot.slane %v1535_v35, 5  ;;  %v1021_v47 = vld [vmem:[#allocation2 + $0x3c] sm:$0xf]  ;;  %v1022_v48 = vld [vmem:[#allocation2 + $0x40] sm:$0xf]  ;;  %4653 = vmatprep.mubr.bf16.mxu1 %v12561_v39  ;;  %v12598_v14 = vld [vmem:[#allocation7 + $0x178] sm:$0xff]  }
  0xb9   : > { %v1171_v44 = vrot.slane %v1170_v34, 4  ;;  %v1175_v49 = vrot.slane %v1173_v38, 5  ;;  %v1178_v51 = vshrl.u32 %v1021_v47, 16  ;;  %v1181_v52 = vshll.u32 %v1021_v47, 16  ;;  %v304_v54 = vld [vmem:[#allocation2 + $0x54] sm:$0x1]  ;;  %11641 = vmatprep.subr.bf16.mxu0 %v12598_v14 }
  0xba   : > { %v1187_v53 = vshll.u32 %v1022_v48, 16  ;;  %v1654_v55 = vsel %vm13205_vm14, %v1652_v36, %v1653_v46  ;;  %v1191_v42 = vshrl.u32 %v1022_v48, 16  ;;  %v1536_v62 = vld [vmem:[#allocation2 + $0x3c] sm:$0xe]  ;;  %v1537_v63 = vld [vmem:[#allocation2 + $0x40] sm:$0xf] }
  0xbb   : > { %v1176_v58 = vsel %vm13190_vm13, %v1171_v44, %v1175_v49  ;;  %v10616_v59 = vcombine.low %v1651_v45, %v1654_v55  ;;  %v1180_v60 = vrot.slane %v1178_v51, 4  ;;  %v1183_v61 = vrot.slane %v1181_v52, 5  ;;  %787 = vst [vmem:[#allocation2 + $0x48] sm:$0xf] %v786_v7  ;;  %v789_v13 = vld [vmem:[#allocation2 + $0x50] sm:$0x1] }
  0xbc   : > { %v10584_v1 = vcombine.low %v1166_v43, %v1176_v58  ;;  %v1189_v4 = vrot.slane %v1187_v53, 5  ;;  %v1193_v5 = vrot.slane %v1191_v42, 4  ;;  %v10601_v11 = vrot.slane %v1536_v62, 9  ;;  %v406_v20 = vld [vmem:[%s13142_s12 + $0x34] sm:$0xf]  ;;  %v12600_v27 = vld [vmem:[#allocation7 + $0x138] sm:$0xff]  }
  0xbd   : > { %v1023_v2 = vld [vmem:[#allocation2 + $0x44] sm:$0x1]  ;;  %4654 = vmatmul.mubr.bf16.gmra.mrb[16].mxu1 %v10616_v59  ;;  %v1184_v9 = vor.u32 %v1183_v61, %v1180_v60  ;;  %v1657_v12 = vrot.slane %v1537_v63, 5  ;;  %v790_v18 = vsel %vm13153_vm3, %v528_v56, %v789_v13  ;;  %v305_v19 = vsel %vm13153_vm3, 0, %v304_v54  ;;  %11642 = vmatpush3.bf16.msra.mxu0 %v12600_v27  ;;  %v12563_v37 = vld [vmem:[#allocation2 + $0x3c] sm:$0xff]  }
  0xbe   : > { %v1538_v8 = vld [vmem:[#allocation2 + $0x44] sm:$0x1]  ;;  %v1197_v10 = vshll.u32 %v1023_v2, 16  ;;  %4492 = vmatprep.mubr.bf16.mxu0 %v10584_v1  ;;  %v1194_v15 = vor.u32 %v1193_v5, %v1189_v4  ;;  %791 = vst [vmem:[#allocation2 + $0x50] sm:$0x1] %v790_v18  ;;  %v530_v31 = vshrl.u32 %v405_v0, 16 }
  0xbf   : > { %v1660_v16 = vrot.slane %v1538_v8, 5  ;;  %4493 = vmatmul.mubr.bf16.gmra.mrb[16].mxu0 %v12559_v50  ;;  %v1185_v21 = vrot.slane %v1184_v9, 4  ;;  %v1658_v25 = vsel %vm13205_vm14, %v10601_v11, %v1657_v12  ;;  %v1659_v26 = vrot.slane %v1657_v12, 4  ;;  %306 = vst [vmem:[#allocation2 + $0x54] sm:$0x1] %v305_v19  ;;  %v12601_v47 = vld [vmem:[#allocation7 + $0x1e0] sm:$0xff]  }
  0xc0   : > { %v1199_v22 = vrot.slane %v1197_v10, 5  ;;  %v1195_v28 = vrot.slane %v1194_v15, 4  ;;  %v1025_v29 = vld [vmem:[#allocation2 + $0x4c] sm:$0xf]  ;;  %v532_v39 = vrot.slane %v530_v31, 7  ;;  %v533_v40 = vshll.u32 %v405_v0, 16  ;;  %11747 = vmatprep.subr.bf16.mxu1 %v12601_v47 }
  0xc1   : > { %v1190_v32 = vsel %vm13190_vm13, %v1185_v21, %v1189_v4  ;;  %v1661_v33 = vsel %vm13205_vm14, %v1659_v26, %v1660_v16  ;;  %v1211_v34 = vshll.u32 %v1025_v29, 16  ;;  %v1215_v35 = vshrl.u32 %v1025_v29, 16  ;;  %v1540_v46 = vld [vmem:[#allocation2 + $0x4c] sm:$0xf]  ;;  %v360_v42 = vld [vmem:[#allocation2 + $0x5c] sm:$0x1] }
  0xc2   : > { %v1200_v36 = vsel %vm13190_vm13, %v1195_v28, %v1199_v22  ;;  %v10617_v38 = vcombine.low %v1658_v25, %v1661_v33  ;;  %v538_v45 = vshrl.u32 %v406_v20, 16  ;;  %v12564_v48 = vld [vmem:[#allocation2 + $0x48] sm:$0xff]   ;;  %v535_v50 = vor.u32 %v533_v40, %v532_v39  ;;  %v307_v56 = vld [vmem:[#allocation2 + $0x60] sm:$0x1]  ;;  %v407_v61 = vld [vmem:[%s13142_s12 + $0x38] sm:$0xf] }
  0xc3   : > { %v10585_v41 = vcombine.low %v1190_v32, %v1200_v36  ;;  %v13364_v43 = vrot.slane %v1211_v34, 5  ;;  %v1217_v44 = vrot.slane %v1215_v35, 4  ;;  %v1024_v49 = vld [vmem:[#allocation2 + $0x48] sm:$0xf]  ;;  %v536_v51 = vrot.slane %v532_v39, 4  ;;  %4661 = vmatprep.mubr.bf16.mxu1 %v12564_v48  ;;  %v12602_v15 = vld [vmem:[#allocation7 + $0x1a0] sm:$0xff]  }
  0xc4   : > { %v1202_v52 = vshrl.u32 %v1024_v49, 16  ;;  %v1205_v53 = vshll.u32 %v1024_v49, 16  ;;  %v13367_v55 = vrot.slane %v538_v45, 7  ;;  %v541_v58 = vshll.u32 %v406_v20, 16  ;;  %v1539_v2 = vld [vmem:[#allocation2 + $0x48] sm:$0xe]  ;;  %11748 = vmatpush3.bf16.msra.mxu1 %v12602_v15 }
  0xc5   : > { %4500 = vmatprep.mubr.bf16.mxu0 %v10585_v41  ;;  %v1218_v54 = vor.u32 %v1217_v44, %v13364_v43  ;;  %v1026_v57 = vld [vmem:[#allocation2 + $0x50] sm:$0x1]  ;;  %v1664_v60 = vrot.slane %v1540_v46, 5  ;;  %4662 = vmatmul.mubr.bf16.gmra.mrb[20].mxu1 %v10617_v38  ;;  %v408_v4 = vld [vmem:[%s13142_s12 + $0x3c] sm:$0xf]  ;;  %v10602_v9 = vrot.slane %v1539_v2, 9 }
  0xc6   : > { %v792_v59 = vld [vmem:[#allocation2 + $0x54] sm:$0xf]  ;;  %v1204_v62 = vrot.slane %v1202_v52, 4  ;;  %v1207_v63 = vrot.slane %v1205_v53, 5  ;;  %v1221_v1 = vshll.u32 %v1026_v57, 16  ;;  %v543_v5 = vor.u32 %v541_v58, %v13367_v55  ;;  %v12565_v25 = vld [vmem:[#allocation2 + $0x48] sm:$0xff]  }
  0xc7   : > { %4501 = vmatmul.mubr.bf16.gmra.mrb[20].mxu0 %v12563_v37  ;;  %v1219_v0 = vrot.slane %v1218_v54, 4  ;;  %v793_v7 = vsel %vm13183_vm12, %v535_v50, %v792_v59  ;;  %v1541_v8 = vld [vmem:[#allocation2 + $0x50] sm:$0x1]  ;;  %v363_v10 = vld [vmem:[#allocation2 + $0x68] sm:$0x1]  ;;  %v1666_v13 = vrot.slane %v1664_v60, 4  ;;  %v1665_v26 = vsel %vm13205_vm14, %v10602_v9, %v1664_v60 }
  0xc8   : > { %v1208_v11 = vor.u32 %v1207_v63, %v1204_v62  ;;  %v1223_v12 = vrot.slane %v1221_v1, 5  ;;  %794 = vst [vmem:[#allocation2 + $0x54] sm:$0xf] %v793_v7  ;;  %v1667_v14 = vrot.slane %v1541_v8, 5  ;;  %v544_v16 = vsel %vm13177_vm11, %v536_v51, %v543_v5  ;;  %v310_v20 = vld [vmem:[#allocation2 + $0x6c] sm:$0x1] }
  0xc9   : > { %v361_v18 = vsel %vm13158_vm4, 0, %v360_v42  ;;  %v308_v19 = vsel %vm13153_vm3, 0, %v307_v56  ;;  %795 = vst [vmem:[#allocation2 + $0x58] sm:$0xf] %v544_v16  ;;  %v547_v27 = vshrl.u32 %v407_v61, 16  ;;  %v550_v32 = vshll.u32 %v407_v61, 16 }
  0xca   : > { %v1209_v21 = vrot.slane %v1208_v11, 4  ;;  %v1224_v22 = vsel %vm13190_vm13, %v1219_v0, %v1223_v12  ;;  %362 = vst [vmem:[#allocation2 + $0x5c] sm:$0x1] %v361_v18  ;;  %309 = vst [vmem:[#allocation2 + $0x60] sm:$0x1] %v308_v19  ;;  %v1668_v31 = vsel %vm13205_vm14, %v1666_v13, %v1667_v14  ;;  %v555_v33 = vshrl.u32 %v408_v4, 16 }
  0xcb   : > { %v409_v28 = vld [vmem:[%s13142_s12 + $0x40] sm:$0xf]  ;;  %v13386_v29 = vld [vmem:[%s13142_s12 + $0x44] sm:$0xf]  ;;  %v558_v34 = vshll.u32 %v408_v4, 16  ;;  %v12603_v35 = vld [vmem:[#allocation7 + $0x1e8] sm:$0xff]   ;;  %v10618_v51 = vcombine.low %v1665_v26, %v1668_v31 }
  0xcc   : > { %v1214_v36 = vsel %vm13190_vm13, %v1209_v21, %v13364_v43  ;;  %v549_v37 = vrot.slane %v547_v27, 7  ;;  %v364_v38 = vsel %vm13158_vm4, 0, %v363_v10  ;;  %v311_v39 = vsel %vm13153_vm3, 0, %v310_v20  ;;  %v12604_v40 = vld [vmem:[#allocation7 + $0x1a8] sm:$0xff]   ;;  %11749 = vmatprep.subr.bf16.mxu1 %v12603_v35  ;;  %v12607_v46 = vld [vmem:[#allocation7 + $0x1f0] sm:$0xff]   ;;  %v12609_v26 = vld [vmem:[#allocation7 + $0x1f8] sm:$0xff]  }
  0xcd   : > { %v10586_v41 = vcombine.low %v1214_v36, %v1224_v22  ;;  %v557_v44 = vrot.slane %v555_v33, 7  ;;  %365 = vst [vmem:[#allocation2 + $0x68] sm:$0x1] %v364_v38  ;;  %312 = vst [vmem:[#allocation2 + $0x6c] sm:$0x1] %v311_v39  ;;  %v564_v45 = vshrl.u32 %v409_v28, 16  ;;  %11750 = vmatpush3.bf16.msra.mxu1 %v12604_v40 }
  0xce   : > { %v545_v47 = vrot.slane %v13367_v55, 4  ;;  %v553_v48 = vrot.slane %v549_v37, 4  ;;  %v567_v49 = vshll.u32 %v409_v28, 16  ;;  %v572_v43 = vshrl.u32 %v13386_v29, 16  ;;  %v12608_v50 = vld [vmem:[#allocation7 + $0x1b0] sm:$0xff]   ;;  %11751 = vmatprep.subr.bf16.mxu1 %v12607_v46 }
  0xcf   : > { %4508 = vmatprep.mubr.bf16.mxu0 %v10586_v41  ;;  %v1027_v52 = vld [vmem:[#allocation2 + $0x54] sm:$0xf]  ;;  %v552_v53 = vor.u32 %v550_v32, %v549_v37  ;;  %v560_v54 = vor.u32 %v558_v34, %v557_v44  ;;  %v566_v57 = vrot.slane %v564_v45, 7  ;;  %v575_v58 = vshll.u32 %v13386_v29, 16  ;;  %v313_v7 = vld [vmem:[#allocation2 + $0x78] sm:$0x1] }
  0xd0   : > { %4509 = vmatmul.mubr.bf16.gmra.mrb[24].mxu0 %v12565_v25  ;;  %v1226_v42 = vshrl.u32 %v1027_v52, 16  ;;  %v1229_v56 = vshll.u32 %v1027_v52, 16  ;;  %v366_v59 = vld [vmem:[#allocation2 + $0x74] sm:$0x1]  ;;  %v562_v62 = vrot.slane %v557_v44, 4  ;;  %v13406_v16 = vrot.slane %v572_v43, 7 }
  0xd1   : > { %v12567_v55 = vld [vmem:[#allocation2 + $0x54] sm:$0xff]   ;;  %v796_v60 = vld [vmem:[#allocation2 + $0x5c] sm:$0x1]  ;;  %v561_v61 = vsel %vm13177_vm11, %v553_v48, %v560_v54  ;;  %v569_v5 = vor.u32 %v567_v49, %v566_v57  ;;  %11752 = vmatpush3.bf16.msra.mxu1 %v12608_v50  ;;  %v799_v10 = vld [vmem:[#allocation2 + $0x60] sm:$0xf]  ;;  %v570_v11 = vrot.slane %v566_v57, 4 }
  0xd2   : > { %v1542_v63 = vld [vmem:[#allocation2 + $0x54] sm:$0xe]  ;;  %v797_v0 = vsel %vm13153_vm3, %v545_v47, %v796_v60  ;;  %v1028_v1 = vld [vmem:[#allocation2 + $0x58] sm:$0xf]  ;;  %v1228_v2 = vrot.slane %v1226_v42, 4  ;;  %v1231_v4 = vrot.slane %v1229_v56, 5  ;;  %4669 = vmatprep.mubr.bf16.mxu1 %v12567_v55  ;;  %v800_v13 = vsel %vm13183_vm12, %v552_v53, %v799_v10  ;;  %11753 = vmatprep.subr.bf16.mxu1 %v12609_v26 }
  0xd3   : > { %802 = vst [vmem:[#allocation2 + $0x64] sm:$0xf] %v561_v61  ;;  %798 = vst [vmem:[#allocation2 + $0x5c] sm:$0x1] %v797_v0  ;;  %v1235_v8 = vshll.u32 %v1028_v1, 16  ;;  %v1239_v9 = vshrl.u32 %v1028_v1, 16  ;;  %4670 = vmatmul.mubr.bf16.gmra.mrb[24].mxu1 %v10618_v51  ;;  %v577_v28 = vor.u32 %v575_v58, %v13406_v16 }
  0xd4   : > { %v1232_v12 = vor.u32 %v1231_v4, %v1228_v2  ;;  %v1543_v14 = vld [vmem:[#allocation2 + $0x58] sm:$0xf]  ;;  %v803_v15 = vld [vmem:[#allocation2 + $0x68] sm:$0x1]  ;;  %v367_v18 = vsel %vm13158_vm4, 0, %v366_v59  ;;  %v10603_v27 = vrot.slane %v1542_v63, 9 }
  0xd5   : > { %v1237_v19 = vrot.slane %v1235_v8, 5  ;;  %v1241_v20 = vrot.slane %v1239_v9, 4  ;;  %801 = vst [vmem:[#allocation2 + $0x60] sm:$0xf] %v800_v13  ;;  %v1671_v21 = vrot.slane %v1543_v14, 5  ;;  %v804_v22 = vsel %vm13153_vm3, %v562_v62, %v803_v15  ;;  %v12569_v58 = vld [vmem:[#allocation2 + $0x54] sm:$0xff]  }
  0xd6   : > { %v806_v25 = vld [vmem:[#allocation2 + $0x6c] sm:$0xf]  ;;  %368 = vst [vmem:[#allocation2 + $0x74] sm:$0x1] %v367_v18  ;;  %805 = vst [vmem:[#allocation2 + $0x68] sm:$0x1] %v804_v22  ;;  %v578_v36 = vsel %vm13177_vm11, %v570_v11, %v577_v28 }
  0xd7   : > { %v807_v29 = vsel %vm13183_vm12, %v569_v5, %v806_v25  ;;  %v13416_v31 = vld [vmem:[%s13142_s12 + $0x48] sm:$0xf]  ;;  %v1233_v32 = vrot.slane %v1232_v12, 4  ;;  %v1242_v33 = vor.u32 %v1241_v20, %v1237_v19  ;;  %v314_v34 = vsel %vm13153_vm3, 0, %v313_v7  ;;  %v13424_v38 = vld [vmem:[%s13142_s12 + $0x4c] sm:$0xf] }
  0xd8   : > { %808 = vst [vmem:[#allocation2 + $0x6c] sm:$0xf] %v807_v29  ;;  %v1673_v35 = vrot.slane %v1671_v21, 4  ;;  %v579_v37 = vrot.slane %v13406_v16, 4  ;;  %315 = vst [vmem:[#allocation2 + $0x78] sm:$0x1] %v314_v34  ;;  %v1672_v46 = vsel %vm13205_vm14, %v10603_v27, %v1671_v21 }
  0xd9   : > { %809 = vst [vmem:[#allocation2 + $0x70] sm:$0xf] %v578_v36  ;;  %v581_v40 = vshrl.u32 %v13416_v31, 16  ;;  %v584_v41 = vshll.u32 %v13416_v31, 16  ;;  %v1243_v49 = vrot.slane %v1242_v33, 4  ;;  %v589_v51 = vshrl.u32 %v13424_v38, 16 }
  0xda   : > { %v1031_v39 = vld [vmem:[#allocation2 + $0x64] sm:$0xf]  ;;  %v1029_v44 = vld [vmem:[#allocation2 + $0x5c] sm:$0x1]  ;;  %v1238_v52 = vsel %vm13190_vm13, %v1233_v32, %v1237_v19  ;;  %v12610_v26 = vld [vmem:[#allocation7 + $0x1b8] sm:$0xff]  }
  0xdb   : > { %v1544_v45 = vld [vmem:[#allocation2 + $0x5c] sm:$0x1]  ;;  %v1259_v47 = vshll.u32 %v1031_v39, 16  ;;  %v1263_v48 = vshrl.u32 %v1031_v39, 16  ;;  %v1245_v43 = vshll.u32 %v1029_v44, 16  ;;  %11754 = vmatpush3.bf16.msra.mxu1 %v12610_v26 }
  0xdc   : > { %v1674_v50 = vrot.slane %v1544_v45, 5  ;;  %v12570_v53 = vld [vmem:[#allocation2 + $0x60] sm:$0xff]   ;;  %v12611_v33 = vld [vmem:[#allocation7 + $0x200] sm:$0xff]  }
  0xdd   : > { %v1030_v54 = vld [vmem:[#allocation2 + $0x60] sm:$0xf]  ;;  %v1261_v42 = vrot.slane %v1259_v47, 5  ;;  %v1546_v56 = vld [vmem:[#allocation2 + $0x64] sm:$0xf]  ;;  %v1247_v57 = vrot.slane %v1245_v43, 5  ;;  %4677 = vmatprep.mubr.bf16.mxu1 %v12570_v53  ;;  %12347 = vmatprep.subr.bf16.mxu0 %v12611_v33 }
  0xde   : > { %v1675_v59 = vsel %vm13205_vm14, %v1673_v35, %v1674_v50  ;;  %v1032_v55 = vld [vmem:[#allocation2 + $0x68] sm:$0x1]  ;;  %v1250_v60 = vshrl.u32 %v1030_v54, 16  ;;  %v1253_v61 = vshll.u32 %v1030_v54, 16  ;;  %v1265_v63 = vrot.slane %v1263_v48, 4 }
  0xdf   : > { %v10619_v62 = vcombine.low %v1672_v46, %v1675_v59  ;;  %v1269_v0 = vshll.u32 %v1032_v55, 16  ;;  %v1248_v1 = vsel %vm13190_vm13, %v1243_v49, %v1247_v57  ;;  %v1545_v5 = vld [vmem:[#allocation2 + $0x60] sm:$0xe]  ;;  %v1547_v7 = vld [vmem:[#allocation2 + $0x68] sm:$0x1]  ;;  %v1678_v14 = vrot.slane %v1546_v56, 5 }
  0xe0   : > { %v1252_v2 = vrot.slane %v1250_v60, 4  ;;  %v1255_v4 = vrot.slane %v1253_v61, 5  ;;  %v10587_v8 = vcombine.low %v1238_v52, %v1248_v1  ;;  %v1266_v9 = vor.u32 %v1265_v63, %v1261_v42  ;;  %v12573_v11 = vld [vmem:[#allocation2 + $0x6c] sm:$0xff]   ;;  %v810_v16 = vld [vmem:[#allocation2 + $0x74] sm:$0x1]  ;;  %v12571_v56 = vld [vmem:[#allocation2 + $0x60] sm:$0xff]  }
  0xe1   : > { %4678 = vmatmul.mubr.bf16.gmra.mrb[28].mxu1 %v10619_v62  ;;  %v1271_v10 = vrot.slane %v1269_v0, 5  ;;  %v10604_v12 = vrot.slane %v1545_v5, 9  ;;  %v1681_v15 = vrot.slane %v1547_v7, 5  ;;  %v1033_v18 = vld [vmem:[#allocation2 + $0x6c] sm:$0xf]  ;;  %v811_v20 = vsel %vm13153_vm3, %v579_v37, %v810_v16 }
  0xe2   : > { %v1256_v13 = vor.u32 %v1255_v4, %v1252_v2  ;;  %4516 = vmatprep.mubr.bf16.mxu0 %v10587_v8  ;;  %v1267_v19 = vrot.slane %v1266_v9, 4  ;;  %4685 = vmatprep.mubr.bf16.mxu1 %v12573_v11  ;;  %v1034_v21 = vld [vmem:[#allocation2 + $0x70] sm:$0xf]  ;;  %v1274_v22 = vshrl.u32 %v1033_v18, 16  ;;  %v1277_v25 = vshll.u32 %v1033_v18, 16 }
  0xe3   : > { %4517 = vmatmul.mubr.bf16.gmra.mrb[28].mxu0 %v12569_v58  ;;  %v1679_v28 = vsel %vm13205_vm14, %v10604_v12, %v1678_v14  ;;  %v1680_v29 = vrot.slane %v1678_v14, 4  ;;  %812 = vst [vmem:[#allocation2 + $0x74] sm:$0x1] %v811_v20  ;;  %v1283_v32 = vshll.u32 %v1034_v21, 16  ;;  %v1287_v39 = vshrl.u32 %v1034_v21, 16  ;;  %v12575_v33 = vld [vmem:[#allocation2 + $0x6c] sm:$0xff]  }
  0xe4   : > { %v1257_v27 = vrot.slane %v1256_v13, 4  ;;  %v1272_v34 = vsel %vm13190_vm13, %v1267_v19, %v1271_v10  ;;  %v1276_v35 = vrot.slane %v1274_v22, 4  ;;  %v1279_v36 = vrot.slane %v1277_v25, 5  ;;  %v1548_v47 = vld [vmem:[#allocation2 + $0x6c] sm:$0xe] }
  0xe5   : > { %v1682_v44 = vsel %vm13205_vm14, %v1680_v29, %v1681_v15  ;;  %v13447_v45 = vrot.slane %v1283_v32, 5  ;;  %v583_v46 = vrot.slane %v581_v40, 7  ;;  %v369_v48 = vld [vmem:[#allocation2 + $0x80] sm:$0x1]  ;;  %v1289_v52 = vrot.slane %v1287_v39, 4 }
  0xe6   : > { %v1262_v37 = vsel %vm13190_vm13, %v1257_v27, %v1261_v42  ;;  %v10620_v43 = vcombine.low %v1679_v28, %v1682_v44  ;;  %v1280_v50 = vor.u32 %v1279_v36, %v1276_v35  ;;  %v813_v53 = vld [vmem:[#allocation2 + $0x78] sm:$0xf]  ;;  %v1549_v54 = vld [vmem:[#allocation2 + $0x70] sm:$0xf]  ;;  %v316_v42 = vld [vmem:[#allocation2 + $0x84] sm:$0x1] }
  0xe7   : > { %v10588_v49 = vcombine.low %v1262_v37, %v1272_v34  ;;  %v586_v57 = vor.u32 %v584_v41, %v583_v46  ;;  %v587_v58 = vrot.slane %v583_v46, 4  ;;  %v591_v40 = vrot.slane %v589_v51, 7  ;;  %v413_v55 = vld [vmem:[%s13142_s12 + $0x50] sm:$0xf]  ;;  %v414_v60 = vld [vmem:[%s13142_s12 + $0x54] sm:$0xf] }
  0xe8   : > { %v592_v59 = vshll.u32 %v13424_v38, 16  ;;  %v1281_v61 = vrot.slane %v1280_v50, 4  ;;  %v1290_v62 = vor.u32 %v1289_v52, %v13447_v45  ;;  %v10605_v63 = vrot.slane %v1548_v47, 9  ;;  %v372_v51 = vld [vmem:[#allocation2 + $0x8c] sm:$0x1] }
  0xe9   : > { %4524 = vmatprep.mubr.bf16.mxu0 %v10588_v49  ;;  %4686 = vmatmul.mubr.bf16.gmra.mrb[32].mxu1 %v10620_v43  ;;  %v1685_v0 = vrot.slane %v1549_v54, 5  ;;  %v596_v2 = vrot.slane %v591_v40, 4  ;;  %v814_v31 = vsel %vm13183_vm12, %v586_v57, %v813_v53  ;;  %v370_v41 = vsel %vm13158_vm4, 0, %v369_v48  ;;  %v319_v12 = vld [vmem:[#allocation2 + $0x90] sm:$0x1] }
  0xea   : > { %v594_v1 = vor.u32 %v592_v59, %v591_v40  ;;  %v1035_v4 = vld [vmem:[#allocation2 + $0x74] sm:$0x1]  ;;  %v1291_v38 = vrot.slane %v1290_v62, 4  ;;  %815 = vst [vmem:[#allocation2 + $0x78] sm:$0xf] %v814_v31  ;;  %v317_v11 = vsel %vm13153_vm3, 0, %v316_v42  ;;  %v1286_v13 = vsel %vm13190_vm13, %v1281_v61, %v13447_v45 }
  0xeb   : > { %v1550_v5 = vld [vmem:[#allocation2 + $0x74] sm:$0x1]  ;;  %v1687_v7 = vrot.slane %v1685_v0, 4  ;;  %371 = vst [vmem:[#allocation2 + $0x80] sm:$0x1] %v370_v41  ;;  %4525 = vmatmul.mubr.bf16.gmra.mrb[32].mxu0 %v12571_v56  ;;  %v1293_v8 = vshll.u32 %v1035_v4, 16  ;;  %v1686_v26 = vsel %vm13205_vm14, %v10605_v63, %v1685_v0 }
  0xec   : > { %v595_v9 = vsel %vm13177_vm11, %v587_v58, %v594_v1  ;;  %v1688_v10 = vrot.slane %v1550_v5, 5  ;;  %318 = vst [vmem:[#allocation2 + $0x84] sm:$0x1] %v317_v11  ;;  %v598_v14 = vshrl.u32 %v413_v55, 16  ;;  %v606_v15 = vshrl.u32 %v414_v60, 16 }
  0xed   : > { %816 = vst [vmem:[#allocation2 + $0x7c] sm:$0xf] %v595_v9  ;;  %v609_v16 = vshll.u32 %v414_v60, 16  ;;  %v13471_v18 = vld [vmem:[%s13142_s12 + $0x58] sm:$0xf]  ;;  %v1295_v19 = vrot.slane %v1293_v8, 5 }
  0xee   : > { %v601_v20 = vshll.u32 %v413_v55, 16  ;;  %v373_v21 = vsel %vm13158_vm4, 0, %v372_v51  ;;  %v320_v22 = vsel %vm13153_vm3, 0, %v319_v12  ;;  %v13478_v25 = vld [vmem:[%s13142_s12 + $0x5c] sm:$0xf]  ;;  %v1689_v27 = vsel %vm13205_vm14, %v1687_v7, %v1688_v10 }
  0xef   : > { %v600_v28 = vrot.slane %v598_v14, 7  ;;  %v608_v29 = vrot.slane %v606_v15, 7  ;;  %374 = vst [vmem:[#allocation2 + $0x8c] sm:$0x1] %v373_v21  ;;  %321 = vst [vmem:[#allocation2 + $0x90] sm:$0x1] %v320_v22  ;;  %v1296_v32 = vsel %vm13190_vm13, %v1291_v38, %v1295_v19  ;;  %v10621_v45 = vcombine.low %v1686_v26, %v1689_v27 }
  0xf0   : > { %v615_v34 = vshrl.u32 %v13471_v18, 16  ;;  %v618_v35 = vshll.u32 %v13471_v18, 16  ;;  %v10589_v36 = vcombine.low %v1286_v13, %v1296_v32  ;;  %v623_v44 = vshrl.u32 %v13478_v25, 16  ;;  %v375_v57 = vld [vmem:[#allocation2 + $0x98] sm:$0x1] }
  0xf1   : > { %v604_v39 = vrot.slane %v600_v28, 4  ;;  %v611_v37 = vor.u32 %v609_v16, %v608_v29  ;;  %v1036_v47 = vld [vmem:[#allocation2 + $0x78] sm:$0xf]  ;;  %v603_v48 = vor.u32 %v601_v20, %v600_v28  ;;  %v613_v56 = vrot.slane %v608_v29, 4  ;;  %v322_v58 = vld [vmem:[#allocation2 + $0x9c] sm:$0x1] }
  0xf2   : > { %v817_v46 = vld [vmem:[#allocation2 + $0x80] sm:$0x1]  ;;  %4532 = vmatprep.mubr.bf16.mxu0 %v10589_v36  ;;  %v1298_v43 = vshrl.u32 %v1036_v47, 16  ;;  %v1301_v50 = vshll.u32 %v1036_v47, 16  ;;  %v1551_v53 = vld [vmem:[#allocation2 + $0x78] sm:$0xe] }
  0xf3   : > { %v818_v49 = vsel %vm13153_vm3, %v596_v2, %v817_v46  ;;  %v612_v52 = vsel %vm13177_vm11, %v604_v39, %v611_v37  ;;  %4533 = vmatmul.mubr.bf16.gmra.mrb[36].mxu0 %v12575_v33  ;;  %v820_v61 = vld [vmem:[#allocation2 + $0x84] sm:$0xf]  ;;  %v10606_v63 = vrot.slane %v1551_v53, 9  ;;  %v626_v0 = vshll.u32 %v13478_v25, 16  ;;  %v13505_v13 = vld [vmem:[%s13142_s12 + $0x60] sm:$0xf] }
  0xf4   : > { %v12576_v54 = vld [vmem:[#allocation2 + $0x78] sm:$0xff]   ;;  %819 = vst [vmem:[#allocation2 + $0x80] sm:$0x1] %v818_v49  ;;  %823 = vst [vmem:[#allocation2 + $0x88] sm:$0xf] %v612_v52  ;;  %v1300_v40 = vrot.slane %v1298_v43, 4  ;;  %v821_v41 = vsel %vm13183_vm12, %v603_v48, %v820_v61 }
  0xf5   : > { %v1037_v42 = vld [vmem:[#allocation2 + $0x7c] sm:$0xf]  ;;  %v1303_v59 = vrot.slane %v1301_v50, 5  ;;  %4693 = vmatprep.mubr.bf16.mxu1 %v12576_v54  ;;  %822 = vst [vmem:[#allocation2 + $0x84] sm:$0xf] %v821_v41  ;;  %v617_v5 = vrot.slane %v615_v34, 7 }
  0xf6   : > { %v1307_v55 = vshll.u32 %v1037_v42, 16  ;;  %v1311_v60 = vshrl.u32 %v1037_v42, 16  ;;  %v1552_v62 = vld [vmem:[#allocation2 + $0x7c] sm:$0xf]  ;;  %4694 = vmatmul.mubr.bf16.gmra.mrb[36].mxu1 %v10621_v45  ;;  %v824_v51 = vld [vmem:[#allocation2 + $0x8c] sm:$0x1] }
  0xf7   : > { %v1304_v1 = vor.u32 %v1303_v59, %v1300_v40  ;;  %v1692_v4 = vrot.slane %v1552_v62, 5  ;;  %v825_v38 = vsel %vm13153_vm3, %v613_v56, %v824_v51  ;;  %v13498_v7 = vrot.slane %v623_v44, 7  ;;  %v827_v8 = vld [vmem:[#allocation2 + $0x90] sm:$0xf]  ;;  %v13518_v36 = vld [vmem:[%s13142_s12 + $0x64] sm:$0xf] }
  0xf8   : > { %v1309_v2 = vrot.slane %v1307_v55, 5  ;;  %v1313_v31 = vrot.slane %v1311_v60, 4  ;;  %826 = vst [vmem:[#allocation2 + $0x8c] sm:$0x1] %v825_v38  ;;  %v376_v11 = vsel %vm13158_vm4, 0, %v375_v57  ;;  %v323_v12 = vsel %vm13153_vm3, 0, %v322_v58 }
  0xf9   : > { %v1305_v9 = vrot.slane %v1304_v1, 4  ;;  %v620_v14 = vor.u32 %v618_v35, %v617_v5  ;;  %v621_v15 = vrot.slane %v617_v5, 4  ;;  %377 = vst [vmem:[#allocation2 + $0x98] sm:$0x1] %v376_v11  ;;  %324 = vst [vmem:[#allocation2 + $0x9c] sm:$0x1] %v323_v12  ;;  %v1693_v19 = vsel %vm13205_vm14, %v10606_v63, %v1692_v4 }
  0xfa   : > { %v1314_v10 = vor.u32 %v1313_v31, %v1309_v2  ;;  %v1694_v20 = vrot.slane %v1692_v4, 4  ;;  %v628_v21 = vor.u32 %v626_v0, %v13498_v7  ;;  %v632_v29 = vshrl.u32 %v13505_v13, 16  ;;  %v12577_v37 = vld [vmem:[#allocation2 + $0x78] sm:$0xff]  }
  0xfb   : > { %v1038_v16 = vld [vmem:[#allocation2 + $0x80] sm:$0x1]  ;;  %v1310_v22 = vsel %vm13190_vm13, %v1305_v9, %v1309_v2  ;;  %v1040_v27 = vld [vmem:[#allocation2 + $0x88] sm:$0xf]  ;;  %v828_v28 = vsel %vm13183_vm12, %v620_v14, %v827_v8  ;;  %v630_v44 = vrot.slane %v13498_v7, 4  ;;  %v635_v47 = vshll.u32 %v13505_v13, 16 }
  0xfc   : > { %v1315_v18 = vrot.slane %v1314_v10, 4  ;;  %v1317_v25 = vshll.u32 %v1038_v16, 16  ;;  %v1553_v26 = vld [vmem:[#allocation2 + $0x80] sm:$0x1]  ;;  %v1331_v33 = vshll.u32 %v1040_v27, 16  ;;  %v1335_v34 = vshrl.u32 %v1040_v27, 16 }
  0xfd   : > { %v1695_v32 = vrot.slane %v1553_v26, 5  ;;  %v629_v35 = vsel %vm13177_vm11, %v621_v15, %v628_v21  ;;  %829 = vst [vmem:[#allocation2 + $0x90] sm:$0xf] %v828_v28  ;;  %v1555_v45 = vld [vmem:[#allocation2 + $0x88] sm:$0xf]  ;;  %v13521_v46 = vrot.slane %v632_v29, 7 }
  0xfe   : > { %v1319_v39 = vrot.slane %v1317_v25, 5  ;;  %830 = vst [vmem:[#allocation2 + $0x94] sm:$0xf] %v629_v35  ;;  %v12579_v48 = vld [vmem:[#allocation2 + $0x84] sm:$0xff]   ;;  %v1333_v50 = vrot.slane %v1331_v33, 5  ;;  %v1337_v58 = vrot.slane %v1335_v34, 4 }
  0xff   : > { %v1696_v49 = vsel %vm13205_vm14, %v1694_v20, %v1695_v32  ;;  %v1039_v43 = vld [vmem:[#allocation2 + $0x84] sm:$0xf]  ;;  %v1041_v54 = vld [vmem:[#allocation2 + $0x8c] sm:$0x1]  ;;  %4701 = vmatprep.mubr.bf16.mxu1 %v12579_v48  ;;  %v1699_v55 = vrot.slane %v1555_v45, 5  ;;  %v640_v0 = vshrl.u32 %v13518_v36, 16  ;;  %v637_v12 = vor.u32 %v635_v47, %v13521_v46 }
 0x100   : > { %v1320_v52 = vsel %vm13190_vm13, %v1315_v18, %v1319_v39  ;;  %v10622_v53 = vcombine.low %v1693_v19, %v1696_v49  ;;  %v1322_v42 = vshrl.u32 %v1039_v43, 16  ;;  %v1325_v56 = vshll.u32 %v1039_v43, 16  ;;  %v1554_v59 = vld [vmem:[#allocation2 + $0x84] sm:$0xe]  ;;  %v1556_v62 = vld [vmem:[#allocation2 + $0x8c] sm:$0x1] }
 0x101   : > { %v10590_v57 = vcombine.low %v1310_v22, %v1320_v52  ;;  %v1341_v40 = vshll.u32 %v1041_v54, 16  ;;  %v10607_v63 = vrot.slane %v1554_v59, 9  ;;  %v1338_v1 = vor.u32 %v1337_v58, %v1333_v50  ;;  %v831_v51 = vld [vmem:[#allocation2 + $0x98] sm:$0x1]  ;;  %v834_v22 = vld [vmem:[#allocation2 + $0x9c] sm:$0xf] }
 0x102   : > { %4702 = vmatmul.mubr.bf16.gmra.mrb[40].mxu1 %v10622_v53  ;;  %v1324_v60 = vrot.slane %v1322_v42, 4  ;;  %v1327_v61 = vrot.slane %v1325_v56, 5  ;;  %v1701_v31 = vrot.slane %v1699_v55, 4  ;;  %v1702_v41 = vrot.slane %v1556_v62, 5  ;;  %v12581_v26 = vld [vmem:[#allocation2 + $0x84] sm:$0xff]  }
 0x103   : > { %4540 = vmatprep.mubr.bf16.mxu0 %v10590_v57  ;;  %v1343_v2 = vrot.slane %v1341_v40, 5  ;;  %v1700_v38 = vsel %vm13205_vm14, %v10607_v63, %v1699_v55  ;;  %v832_v5 = vsel %vm13153_vm3, %v630_v44, %v831_v51  ;;  %v1339_v8 = vrot.slane %v1338_v1, 4  ;;  %v378_v57 = vld [vmem:[#allocation2 + $0xa4] sm:$0x1]  ;;  %v325_v55 = vld [vmem:[#allocation2 + $0xa8] sm:$0x1] }
 0x104   : > { %4541 = vmatmul.mubr.bf16.gmra.mrb[40].mxu0 %v12577_v37  ;;  %v1328_v4 = vor.u32 %v1327_v61, %v1324_v60  ;;  %v1042_v7 = vld [vmem:[#allocation2 + $0x90] sm:$0xf]  ;;  %v1703_v10 = vsel %vm13205_vm14, %v1701_v31, %v1702_v41  ;;  %833 = vst [vmem:[#allocation2 + $0x98] sm:$0x1] %v832_v5  ;;  %v638_v21 = vrot.slane %v13521_v46, 4  ;;  %v13541_v29 = vrot.slane %v640_v0, 7 }
 0x105   : > { %v12582_v9 = vld [vmem:[#allocation2 + $0x90] sm:$0xff]   ;;  %v10623_v14 = vcombine.low %v1700_v38, %v1703_v10  ;;  %v1346_v15 = vshrl.u32 %v1042_v7, 16  ;;  %v1349_v16 = vshll.u32 %v1042_v7, 16  ;;  %v1344_v18 = vsel %vm13190_vm13, %v1339_v8, %v1343_v2  ;;  %v419_v63 = vld [vmem:[%s13142_s12 + $0x68] sm:$0xf] }
 0x106   : > { %v1043_v11 = vld [vmem:[#allocation2 + $0x94] sm:$0xf]  ;;  %v1329_v13 = vrot.slane %v1328_v4, 4  ;;  %4709 = vmatprep.mubr.bf16.mxu1 %v12582_v9  ;;  %v1557_v32 = vld [vmem:[#allocation2 + $0x90] sm:$0xe]  ;;  %v643_v39 = vshll.u32 %v13518_v36, 16  ;;  %v835_v45 = vsel %vm13183_vm12, %v637_v12, %v834_v22 }
 0x107   : > { %v1355_v19 = vshll.u32 %v1043_v11, 16  ;;  %v1359_v20 = vshrl.u32 %v1043_v11, 16  ;;  %v1348_v27 = vrot.slane %v1346_v15, 4  ;;  %v1351_v28 = vrot.slane %v1349_v16, 5  ;;  %v1558_v37 = vld [vmem:[#allocation2 + $0x94] sm:$0xf] }
 0x108   : > { %v1334_v25 = vsel %vm13190_vm13, %v1329_v13, %v1333_v50  ;;  %v645_v47 = vor.u32 %v643_v39, %v13541_v29  ;;  %836 = vst [vmem:[#allocation2 + $0x9c] sm:$0xf] %v835_v45  ;;  %v1706_v48 = vrot.slane %v1558_v37, 5  ;;  %v10608_v52 = vrot.slane %v1557_v32, 9  ;;  %v12583_v60 = vld [vmem:[#allocation2 + $0x90] sm:$0xff]  }
 0x109   : > { %v10591_v33 = vcombine.low %v1334_v25, %v1344_v18  ;;  %v1357_v34 = vrot.slane %v1355_v19, 5  ;;  %v1361_v35 = vrot.slane %v1359_v20, 4  ;;  %v1352_v44 = vor.u32 %v1351_v28, %v1348_v27  ;;  %v420_v0 = vld [vmem:[%s13142_s12 + $0x6c] sm:$0xf]  ;;  %v381_v37 = vld [vmem:[#allocation2 + $0xb0] sm:$0x1] }
 0x10a   : > { %4710 = vmatmul.mubr.bf16.gmra.mrb[44].mxu1 %v10623_v14  ;;  %v646_v54 = vsel %vm13177_vm11, %v638_v21, %v645_v47  ;;  %v1708_v42 = vrot.slane %v1706_v48, 4  ;;  %v379_v59 = vsel %vm13158_vm4, 0, %v378_v57  ;;  %v1707_v61 = vsel %vm13205_vm14, %v10608_v52, %v1706_v48 }
 0x10b   : > { %4548 = vmatprep.mubr.bf16.mxu0 %v10591_v33  ;;  %v1362_v46 = vor.u32 %v1361_v35, %v1357_v34  ;;  %v1044_v49 = vld [vmem:[#allocation2 + $0x98] sm:$0x1]  ;;  %v1353_v43 = vrot.slane %v1352_v44, 4  ;;  %837 = vst [vmem:[#allocation2 + $0xa0] sm:$0xf] %v646_v54  ;;  %v326_v62 = vsel %vm13153_vm3, 0, %v325_v55 }
 0x10c   : > { %4549 = vmatmul.mubr.bf16.gmra.mrb[44].mxu0 %v12581_v26  ;;  %v1559_v50 = vld [vmem:[#allocation2 + $0x98] sm:$0x1]  ;;  %v1365_v36 = vshll.u32 %v1044_v49, 16  ;;  %380 = vst [vmem:[#allocation2 + $0xa4] sm:$0x1] %v379_v59  ;;  %v649_v31 = vshrl.u32 %v419_v63, 16 }
 0x10d   : > { %v1363_v53 = vrot.slane %v1362_v46, 4  ;;  %v1709_v56 = vrot.slane %v1559_v50, 5  ;;  %v1358_v58 = vsel %vm13190_vm13, %v1353_v43, %v1357_v34  ;;  %327 = vst [vmem:[#allocation2 + $0xa8] sm:$0x1] %v326_v62  ;;  %v652_v41 = vshll.u32 %v419_v63, 16 }
 0x10e   : > { %v1367_v40 = vrot.slane %v1365_v36, 5  ;;  %v651_v7 = vrot.slane %v649_v31, 7  ;;  %v657_v8 = vshrl.u32 %v420_v0, 16  ;;  %v647_v9 = vrot.slane %v13541_v29, 4  ;;  %v328_v49 = vld [vmem:[#allocation2 + $0xb4] sm:$0x1] }
 0x10f   : > { %v1710_v2 = vsel %vm13205_vm14, %v1708_v42, %v1709_v56  ;;  %v1045_v4 = vld [vmem:[#allocation2 + $0x9c] sm:$0xf]  ;;  %v660_v11 = vshll.u32 %v420_v0, 16  ;;  %v382_v44 = vsel %vm13158_vm4, 0, %v381_v37  ;;  %v421_v43 = vld [vmem:[%s13142_s12 + $0x70] sm:$0xf] }
 0x110   : > { %v1368_v1 = vsel %vm13190_vm13, %v1363_v53, %v1367_v40  ;;  %v1370_v38 = vshrl.u32 %v1045_v4, 16  ;;  %v1373_v5 = vshll.u32 %v1045_v4, 16  ;;  %v10624_v10 = vcombine.low %v1707_v61, %v1710_v2  ;;  %v1560_v25 = vld [vmem:[#allocation2 + $0x9c] sm:$0xe]  ;;  %383 = vst [vmem:[#allocation2 + $0xb0] sm:$0x1] %v382_v44 }
 0x111   : > { %v10592_v51 = vcombine.low %v1358_v58, %v1368_v1  ;;  %v654_v15 = vor.u32 %v652_v41, %v651_v7  ;;  %v655_v21 = vrot.slane %v651_v7, 4  ;;  %v659_v22 = vrot.slane %v657_v8, 7  ;;  %v422_v36 = vld [vmem:[%s13142_s12 + $0x74] sm:$0xf]  ;;  %v2933_v6 = vld [vmem:[#allocation2 + $0x98] sm:$0x1] }
 0x112   : > { %v12585_v12 = vld [vmem:[#allocation2 + $0x9c] sm:$0xff]   ;;  %v1372_v14 = vrot.slane %v1370_v38, 4  ;;  %v1375_v16 = vrot.slane %v1373_v5, 5  ;;  %v10609_v48 = vrot.slane %v1560_v25, 9  ;;  %v329_v53 = vsel %vm13153_vm3, 0, %v328_v49 }
 0x113   : > { %4556 = vmatprep.mubr.bf16.mxu0 %v10592_v51  ;;  %v1046_v13 = vld [vmem:[#allocation2 + $0xa0] sm:$0xf]  ;;  %4717 = vmatprep.mubr.bf16.mxu1 %v12585_v12  ;;  %v838_v20 = vld [vmem:[#allocation2 + $0xa4] sm:$0x1]  ;;  %v662_v34 = vor.u32 %v660_v11, %v659_v22  ;;  %v664_v47 = vrot.slane %v659_v22, 4  ;;  %v666_v54 = vshrl.u32 %v421_v43, 16 }
 0x114   : > { %4557 = vmatmul.mubr.bf16.gmra.mrb[48].mxu0 %v12583_v60  ;;  %v1379_v18 = vshll.u32 %v1046_v13, 16  ;;  %v1383_v19 = vshrl.u32 %v1046_v13, 16  ;;  %v1561_v26 = vld [vmem:[#allocation2 + $0xa0] sm:$0xf]  ;;  %4718 = vmatmul.mubr.bf16.gmra.mrb[48].mxu1 %v10624_v10  ;;  %v839_v27 = vsel %vm13153_vm3, %v647_v9, %v838_v20  ;;  %v841_v32 = vld [vmem:[#allocation2 + $0xa8] sm:$0xf]  ;;  %v1376_v33 = vor.u32 %v1375_v16, %v1372_v14 }
 0x115   : > { %840 = vst [vmem:[#allocation2 + $0xa4] sm:$0x1] %v839_v27  ;;  %v842_v35 = vsel %vm13183_vm12, %v654_v15, %v841_v32  ;;  %v1713_v39 = vrot.slane %v1561_v26, 5  ;;  %v663_v45 = vsel %vm13177_vm11, %v655_v21, %v662_v34  ;;  %330 = vst [vmem:[#allocation2 + $0xb4] sm:$0x1] %v329_v53  ;;  %v669_v42 = vshll.u32 %v421_v43, 16 }
 0x116   : > { %v1381_v28 = vrot.slane %v1379_v18, 5  ;;  %v1385_v29 = vrot.slane %v1383_v19, 4  ;;  %843 = vst [vmem:[#allocation2 + $0xa8] sm:$0xf] %v842_v35  ;;  %844 = vst [vmem:[#allocation2 + $0xac] sm:$0xf] %v663_v45 }
 0x117   : > { %v1377_v50 = vrot.slane %v1376_v33, 4  ;;  %v1715_v52 = vrot.slane %v1713_v39, 4  ;;  %v674_v56 = vshrl.u32 %v422_v36, 16  ;;  %v668_v57 = vrot.slane %v666_v54, 7  ;;  %v845_v2 = vld [vmem:[#allocation2 + $0xb0] sm:$0x1] }
 0x118   : > { %v1386_v46 = vor.u32 %v1385_v29, %v1381_v28  ;;  %v677_v58 = vshll.u32 %v422_v36, 16  ;;  %v1714_v62 = vsel %vm13205_vm14, %v10609_v48, %v1713_v39  ;;  %v846_v7 = vsel %vm13153_vm3, %v664_v47, %v845_v2  ;;  %v12591_v15 = vld [vmem:[#allocation2 + $0x9c] sm:$0xff]   ;;  %v424_v54 = vld [vmem:[%s13142_s12 + $0x7c] sm:$0xf] }
 0x119   : > { %v13576_v60 = vrot.slane %v674_v56, 7  ;;  %v1382_v1 = vsel %vm13190_vm13, %v1377_v50, %v1381_v28  ;;  %v671_v51 = vor.u32 %v669_v42, %v668_v57  ;;  %847 = vst [vmem:[#allocation2 + $0xb0] sm:$0x1] %v846_v7  ;;  %v672_v18 = vrot.slane %v668_v57, 4  ;;  %v384_v39 = vld [vmem:[#allocation2 + $0xbc] sm:$0x1] }
 0x11a   : > { %v1387_v59 = vrot.slane %v1386_v46, 4  ;;  %v385_v44 = vsel %vm13158_vm4, 0, %v384_v39  ;;  %v331_v50 = vld [vmem:[#allocation2 + $0xc0] sm:$0x1] }
 0x11b   : > { %v679_v9 = vor.u32 %v677_v58, %v13576_v60  ;;  %386 = vst [vmem:[#allocation2 + $0xbc] sm:$0x1] %v385_v44  ;;  %v681_v53 = vrot.slane %v13576_v60, 4  ;;  %v332_v36 = vsel %vm13153_vm3, 0, %v331_v50 }
 0x11c   : > { %v1047_v40 = vld [vmem:[#allocation2 + $0xa4] sm:$0x1]  ;;  %v848_v19 = vld [vmem:[#allocation2 + $0xb4] sm:$0xf]  ;;  %333 = vst [vmem:[#allocation2 + $0xc0] sm:$0x1] %v332_v36 }
 0x11d   : > { %v1562_v55 = vld [vmem:[#allocation2 + $0xa4] sm:$0x1]  ;;  %v1389_v61 = vshll.u32 %v1047_v40, 16  ;;  %v1048_v0 = vld [vmem:[#allocation2 + $0xa8] sm:$0xf]  ;;  %v849_v25 = vsel %vm13183_vm12, %v671_v51, %v848_v19  ;;  %v680_v29 = vsel %vm13177_vm11, %v672_v18, %v679_v9 }
 0x11e   : > { %v1716_v63 = vrot.slane %v1562_v55, 5  ;;  %v1394_v31 = vshrl.u32 %v1048_v0, 16  ;;  %v1397_v41 = vshll.u32 %v1048_v0, 16  ;;  %v12592_v38 = vld [vmem:[#allocation2 + $0xa8] sm:$0xff]   ;;  %850 = vst [vmem:[#allocation2 + $0xb4] sm:$0xf] %v849_v25 }
 0x11f   : > { %v1391_v4 = vrot.slane %v1389_v61, 5  ;;  %v1049_v8 = vld [vmem:[#allocation2 + $0xac] sm:$0xf]  ;;  %4725 = vmatprep.mubr.bf16.mxu1 %v12592_v38  ;;  %v1563_v26 = vld [vmem:[#allocation2 + $0xa8] sm:$0xe]  ;;  %v691_v55 = vshrl.u32 %v424_v54, 16 }
 0x120   : > { %v1717_v5 = vsel %vm13205_vm14, %v1715_v52, %v1716_v63  ;;  %v1396_v11 = vrot.slane %v1394_v31, 4  ;;  %v1399_v12 = vrot.slane %v1397_v41, 5  ;;  %v1403_v13 = vshll.u32 %v1049_v8, 16  ;;  %v1564_v27 = vld [vmem:[#allocation2 + $0xac] sm:$0xf] }
 0x121   : > { %v10625_v10 = vcombine.low %v1714_v62, %v1717_v5  ;;  %v1392_v14 = vsel %vm13190_vm13, %v1387_v59, %v1391_v4  ;;  %v1407_v16 = vshrl.u32 %v1049_v8, 16  ;;  %v1720_v32 = vrot.slane %v1564_v27, 5  ;;  %851 = vst [vmem:[#allocation2 + $0xb8] sm:$0xf] %v680_v29  ;;  %v1050_v45 = vld [vmem:[#allocation2 + $0xb0] sm:$0x1] }
 0x122   : > { %v10593_v20 = vcombine.low %v1382_v1, %v1392_v14  ;;  %v1400_v21 = vor.u32 %v1399_v12, %v1396_v11  ;;  %v1405_v22 = vrot.slane %v1403_v13, 5  ;;  %v10610_v33 = vrot.slane %v1563_v26, 9  ;;  %v1565_v47 = vld [vmem:[#allocation2 + $0xb0] sm:$0x1]  ;;  %v12597_v1 = vld [vmem:[#allocation2 + $0xa8] sm:$0xff]  }
 0x123   : > { %4726 = vmatmul.mubr.bf16.gmra.mrb[52].mxu1 %v10625_v10  ;;  %v1409_v28 = vrot.slane %v1407_v16, 4  ;;  %v1722_v37 = vrot.slane %v1720_v32, 4  ;;  %v1413_v48 = vshll.u32 %v1050_v45, 16  ;;  %v1723_v43 = vrot.slane %v1565_v47, 5  ;;  %v423_v52 = vld [vmem:[%s13142_s12 + $0x78] sm:$0xf] }
 0x124   : > { %4564 = vmatprep.mubr.bf16.mxu0 %v10593_v20  ;;  %v1401_v34 = vrot.slane %v1400_v21, 4  ;;  %v1721_v49 = vsel %vm13205_vm14, %v10610_v33, %v1720_v32  ;;  %v683_v42 = vshrl.u32 %v423_v52, 16  ;;  %v686_v56 = vshll.u32 %v423_v52, 16  ;;  %v852_v7 = vld [vmem:[#allocation2 + $0xbc] sm:$0x1] }
 0x125   : > { %4565 = vmatmul.mubr.bf16.gmra.mrb[52].mxu0 %v12591_v15  ;;  %v1410_v35 = vor.u32 %v1409_v28, %v1405_v22  ;;  %v1415_v58 = vrot.slane %v1413_v48, 5  ;;  %v1724_v40 = vsel %vm13205_vm14, %v1722_v37, %v1723_v43  ;;  %v1051_v59 = vld [vmem:[#allocation2 + $0xb4] sm:$0xf]  ;;  %v13608_v5 = vrot.slane %v691_v55, 7  ;;  %v855_v21 = vld [vmem:[#allocation2 + $0xc0] sm:$0xf] }
 0x126   : > { %v1406_v57 = vsel %vm13190_vm13, %v1401_v34, %v1405_v22  ;;  %v10626_v62 = vcombine.low %v1721_v49, %v1724_v40  ;;  %v1418_v60 = vshrl.u32 %v1051_v59, 16  ;;  %v1421_v2 = vshll.u32 %v1051_v59, 16  ;;  %v1566_v15 = vld [vmem:[#allocation2 + $0xb4] sm:$0xe]  ;;  %v2468_v32 = vld [vmem:[#allocation2 + $0xc] sm:$0xe] }
 0x127   : > { %v1411_v46 = vrot.slane %v1410_v35, 4  ;;  %v685_v38 = vrot.slane %v683_v42, 7  ;;  %16202 = vst [vmem:[#allocation19_spill] sm:$0xff] %v13608_v5  ;;  %v694_v11 = vshll.u32 %v424_v54, 16  ;;  %v853_v12 = vsel %vm13153_vm3, %v681_v53, %v852_v7  ;;  %v2469_v34 = vld [vmem:[#allocation2 + $0x10] sm:$0xf] }
 0x128   : > { %v12599_v61 = vld [vmem:[#allocation2 + $0xb4] sm:$0xff]   ;;  %v1420_v4 = vrot.slane %v1418_v60, 4  ;;  %v1423_v8 = vrot.slane %v1421_v2, 5  ;;  %854 = vst [vmem:[#allocation2 + $0xbc] sm:$0x1] %v853_v12  ;;  %v10611_v27 = vrot.slane %v1566_v15, 9 }
 0x129   : > { %v1052_v63 = vld [vmem:[#allocation2 + $0xb8] sm:$0xf]  ;;  %v1416_v0 = vsel %vm13190_vm13, %v1411_v46, %v1415_v58  ;;  %4733 = vmatprep.mubr.bf16.mxu1 %v12599_v61  ;;  %v688_v13 = vor.u32 %v686_v56, %v685_v38  ;;  %v689_v14 = vrot.slane %v685_v38, 4  ;;  %v696_v20 = vor.u32 %v694_v11, %v13608_v5  ;;  %v2470_v35 = vld [vmem:[#allocation2 + $0x14] sm:$0x1] }
 0x12a   : > { %v1427_v31 = vshll.u32 %v1052_v63, 16  ;;  %v1431_v41 = vshrl.u32 %v1052_v63, 16  ;;  %v10594_v51 = vcombine.low %v1406_v57, %v1416_v0  ;;  %v1567_v16 = vld [vmem:[#allocation2 + $0xb8] sm:$0xf]  ;;  %v1424_v18 = vor.u32 %v1423_v8, %v1420_v4  ;;  %v1956_v45 = vld [vmem:[#allocation2 + $0xc] sm:$0xf] }
 0x12b   : > { %4734 = vmatmul.mubr.bf16.gmra.mrb[56].mxu1 %v10626_v62  ;;  %v1727_v22 = vrot.slane %v1567_v16, 5  ;;  %v697_v25 = vsel %vm13177_vm11, %v689_v14, %v696_v20  ;;  %v856_v26 = vsel %vm13183_vm12, %v688_v13, %v855_v21  ;;  %v10660_v39 = vrot.slane %v2468_v32, 9  ;;  %v1957_v46 = vld [vmem:[#allocation2 + $0x10] sm:$0xf]  ;;  %v1958_v47 = vld [vmem:[#allocation2 + $0x14] sm:$0x1] }
 0x12c   : > { %v13610_v9 = vrot.slane %v1427_v31, 5  ;;  %v1433_v10 = vrot.slane %v1431_v41, 4  ;;  %4572 = vmatprep.mubr.bf16.mxu0 %v10594_v51  ;;  %v1425_v28 = vrot.slane %v1424_v18, 4  ;;  %857 = vst [vmem:[#allocation2 + $0xc0] sm:$0xf] %v856_v26  ;;  %v2566_v37 = vrot.slane %v2469_v34, 5 }
 0x12d   : > { %4573 = vmatmul.mubr.bf16.gmra.mrb[56].mxu0 %v12597_v1  ;;  %858 = vst [vmem:[#allocation2 + $0xc4] sm:$0xf] %v697_v25  ;;  %v1729_v33 = vrot.slane %v1727_v22, 4  ;;  %v2569_v44 = vrot.slane %v2470_v35, 5  ;;  %v1728_v43 = vsel %vm13205_vm14, %v10611_v27, %v1727_v22  ;;  %v2005_v53 = vshrl.u32 %v1956_v45, 16  ;;  %v12605_v60 = vld [vmem:[#allocation2 + $0xb4] sm:$0xff]  }
 0x12e   : > { %v1434_v19 = vor.u32 %v1433_v10, %v13610_v9  ;;  %v2567_v50 = vsel %vm13205_vm14, %v10660_v39, %v2566_v37  ;;  %v2568_v52 = vrot.slane %v2566_v37, 4  ;;  %v2008_v42 = vshll.u32 %v1956_v45, 16  ;;  %v2901_v41 = vld [vmem:[#allocation2 + $0x18] sm:$0xf]  ;;  %v2902_v7 = vld [vmem:[#allocation2 + $0x1c] sm:$0xf] }
 0x12f   : > { %v1053_v48 = vld [vmem:[#allocation2 + $0xbc] sm:$0x1]  ;;  %v2014_v56 = vshll.u32 %v1957_v46, 16  ;;  %v2007_v58 = vrot.slane %v2005_v53, 4  ;;  %v2018_v40 = vshrl.u32 %v1957_v46, 16  ;;  %v2024_v59 = vshll.u32 %v1958_v47, 16 }
 0x130   : > { %v1435_v29 = vrot.slane %v1434_v19, 4  ;;  %v1568_v49 = vld [vmem:[#allocation2 + $0xbc] sm:$0x1]  ;;  %v1437_v36 = vshll.u32 %v1053_v48, 16  ;;  %v2570_v57 = vsel %vm13205_vm14, %v2568_v52, %v2569_v44  ;;  %v1430_v55 = vsel %vm13190_vm13, %v1425_v28, %v13610_v9  ;;  %v2903_v8 = vld [vmem:[#allocation2 + $0x20] sm:$0x1] }
 0x131   : > { %v1730_v54 = vrot.slane %v1568_v49, 5  ;;  %v2010_v1 = vrot.slane %v2008_v42, 5  ;;  %v2016_v2 = vrot.slane %v2014_v56, 5  ;;  %v2020_v31 = vrot.slane %v2018_v40, 4  ;;  %v2471_v19 = vld [vmem:[#allocation2 + $0x18] sm:$0xe] }
 0x132   : > { %v1439_v61 = vrot.slane %v1437_v36, 5  ;;  %v10676_v4 = vcombine.low %v2567_v50, %v2570_v57  ;;  %v2026_v38 = vrot.slane %v2024_v59, 5  ;;  %v2950_v9 = vshrl.u32 %v2901_v41, 16  ;;  %v2472_v25 = vld [vmem:[#allocation2 + $0x1c] sm:$0xf] }
 0x133   : > { %v1731_v63 = vsel %vm13205_vm14, %v1729_v33, %v1730_v54  ;;  %v2011_v11 = vor.u32 %v2010_v1, %v2007_v58  ;;  %v2021_v12 = vor.u32 %v2020_v31, %v2016_v2  ;;  %v2953_v13 = vshll.u32 %v2901_v41, 16  ;;  %v2473_v32 = vld [vmem:[#allocation2 + $0x20] sm:$0x1]  ;;  %v1959_v44 = vld [vmem:[#allocation2 + $0x18] sm:$0xf] }
 0x134   : > { %v12606_v62 = vld [vmem:[#allocation2 + $0xc0] sm:$0xff]   ;;  %v10627_v0 = vcombine.low %v1728_v43, %v1731_v63  ;;  %v1440_v51 = vsel %vm13190_vm13, %v1435_v29, %v1439_v61  ;;  %v2952_v14 = vrot.slane %v2950_v9, 4  ;;  %v2959_v15 = vshll.u32 %v2902_v7, 16  ;;  %v1960_v45 = vld [vmem:[#allocation2 + $0x1c] sm:$0xf] }
 0x135   : > { %4741 = vmatprep.mubr.bf16.mxu1 %v12606_v62  ;;  %v10595_v10 = vcombine.low %v1430_v55, %v1440_v51  ;;  %v2963_v16 = vshrl.u32 %v2902_v7, 16  ;;  %v2969_v18 = vshll.u32 %v2903_v8, 16  ;;  %v2012_v20 = vrot.slane %v2011_v11, 4  ;;  %v1961_v43 = vld [vmem:[#allocation2 + $0x20] sm:$0x1] }
 0x136   : > { %4742 = vmatmul.mubr.bf16.gmra.mrb[60].mxu1 %v10627_v0  ;;  %v2022_v21 = vrot.slane %v2021_v12, 4  ;;  %v2955_v22 = vrot.slane %v2953_v13, 5  ;;  %v10661_v26 = vrot.slane %v2471_v19, 9  ;;  %v2961_v27 = vrot.slane %v2959_v15, 5  ;;  %v2904_v50 = vld [vmem:[#allocation2 + $0x24] sm:$0xf] }
 0x137   : > { %4580 = vmatprep.mubr.bf16.mxu0 %v10595_v10  ;;  %v2965_v28 = vrot.slane %v2963_v16, 4  ;;  %v2971_v29 = vrot.slane %v2969_v18, 5  ;;  %v2573_v33 = vrot.slane %v2472_v25, 5  ;;  %v2017_v34 = vsel %vm13190_vm13, %v2012_v20, %v2016_v2  ;;  %v2905_v42 = vld [vmem:[#allocation2 + $0x28] sm:$0xf]  ;;  %v12612_v0 = vld [vmem:[#allocation2 + $0x18] sm:$0xff]  }
 0x138   : > { %4581 = vmatmul.mubr.bf16.gmra.mrb[60].mxu0 %v12605_v60  ;;  %v2027_v35 = vsel %vm13190_vm13, %v2022_v21, %v2026_v38  ;;  %v2956_v39 = vor.u32 %v2955_v22, %v2952_v14  ;;  %v2576_v37 = vrot.slane %v2473_v32, 5  ;;  %v2029_v53 = vshrl.u32 %v1959_v44, 16  ;;  %v2906_v59 = vld [vmem:[#allocation2 + $0x2c] sm:$0x1]  ;;  %v2474_v41 = vld [vmem:[#allocation2 + $0x24] sm:$0xe] }
 0x139   : > { %4782 = vmatprep.mubr.bf16.mxu0 %v10676_v4  ;;  %v10644_v46 = vcombine.low %v2017_v34, %v2027_v35  ;;  %v2966_v47 = vor.u32 %v2965_v28, %v2961_v27  ;;  %v2574_v48 = vsel %vm13205_vm14, %v10661_v26, %v2573_v33  ;;  %v2575_v49 = vrot.slane %v2573_v33, 4  ;;  %v2475_v8 = vld [vmem:[#allocation2 + $0x28] sm:$0xf]  ;;  %v12614_v9 = vld [vmem:[#allocation7 + $0x208] sm:$0xff]   ;;  %v2476_v14 = vld [vmem:[#allocation2 + $0x2c] sm:$0x1] }
 0x13a   : > { %v2957_v52 = vrot.slane %v2956_v39, 4  ;;  %v2032_v36 = vshll.u32 %v1959_v44, 16  ;;  %v2038_v54 = vshll.u32 %v1960_v45, 16  ;;  %v2042_v58 = vshrl.u32 %v1960_v45, 16  ;;  %v12617_v15 = vld [vmem:[#allocation7 + $0x210] sm:$0xff]   ;;  %v12755_v16 = vld [vmem:[#allocation7 + $0x200] sm:$0xff]  }
 0x13b   : > { %v2967_v56 = vrot.slane %v2966_v47, 4  ;;  %v2577_v57 = vsel %vm13205_vm14, %v2575_v49, %v2576_v37  ;;  %v2048_v40 = vshll.u32 %v1961_v43, 16  ;;  %v2031_v62 = vrot.slane %v2029_v53, 4  ;;  %v1962_v22 = vld [vmem:[#allocation2 + $0x24] sm:$0xf]  ;;  %v12620_v47 = vld [vmem:[#allocation7 + $0x218] sm:$0xff]  }
 0x13c   : > { %v2962_v55 = vsel %vm13190_vm13, %v2957_v52, %v2961_v27  ;;  %v10677_v61 = vcombine.low %v2574_v48, %v2577_v57  ;;  %v2034_v63 = vrot.slane %v2032_v36, 5  ;;  %v2040_v1 = vrot.slane %v2038_v54, 5  ;;  %v1964_v44 = vld [vmem:[#allocation2 + $0x2c] sm:$0x1]  ;;  %v2907_v52 = vld [vmem:[#allocation2 + $0x30] sm:$0xf] }
 0x13d   : > { %v2972_v60 = vsel %vm13190_vm13, %v2967_v56, %v2971_v29  ;;  %v2044_v2 = vrot.slane %v2042_v58, 4  ;;  %v2050_v31 = vrot.slane %v2048_v40, 5  ;;  %v2974_v38 = vshrl.u32 %v2904_v50, 16  ;;  %v1963_v29 = vld [vmem:[#allocation2 + $0x28] sm:$0xf] }
 0x13e   : > { %v10708_v51 = vcombine.low %v2962_v55, %v2972_v60  ;;  %v2035_v4 = vor.u32 %v2034_v63, %v2031_v62  ;;  %v2977_v7 = vshll.u32 %v2904_v50, 16  ;;  %v2983_v11 = vshll.u32 %v2905_v42, 16 }
 0x13f   : > { %v2045_v10 = vor.u32 %v2044_v2, %v2040_v1  ;;  %v2987_v12 = vshrl.u32 %v2905_v42, 16  ;;  %v2993_v13 = vshll.u32 %v2906_v59, 16  ;;  %v2976_v19 = vrot.slane %v2974_v38, 4  ;;  %v2908_v59 = vld [vmem:[#allocation2 + $0x34] sm:$0xf]  ;;  %v12623_v38 = vld [vmem:[#allocation7 + $0x220] sm:$0xff]  }
 0x140   : > { %4783 = vmatmul.mubr.bf16.vlgmr.msra.gmra.mrb[64].mxu0 %v10644_v46  ;;  %4943 = vmatprep.mubr.bf16.mxu1 %v10708_v51  ;;  %v2036_v18 = vrot.slane %v2035_v4, 4  ;;  %v2979_v20 = vrot.slane %v2977_v7, 5  ;;  %v10662_v21 = vrot.slane %v2474_v41, 9  ;;  %v2985_v26 = vrot.slane %v2983_v11, 5  ;;  %v2478_v4 = vld [vmem:[#allocation2 + $0x34] sm:$0xf] }
 0x141   : > { %12348 = vmatpush3.bf16.msra.mxu0 %v12755_v16  ;;  %4944 = vmatmul.mubr.bf16.vlgmr.msra.gmra.mrb[64].mxu1 %v12612_v0  ;;  %v2046_v25 = vrot.slane %v2045_v10, 4  ;;  %v2989_v27 = vrot.slane %v2987_v12, 4  ;;  %v2995_v28 = vrot.slane %v2993_v13, 5  ;;  %v2580_v34 = vrot.slane %v2475_v8, 5  ;;  %v2909_v0 = vld [vmem:[#allocation2 + $0x38] sm:$0x1] }
 0x142   : > { %4790 = vmatprep.mubr.bf16.mxu0 %v10677_v61  ;;  %v2041_v32 = vsel %vm13190_vm13, %v2036_v18, %v2040_v1  ;;  %v2980_v33 = vor.u32 %v2979_v20, %v2976_v19  ;;  %v2583_v35 = vrot.slane %v2476_v14, 5  ;;  %12349 = vmatprep.subr.bf16.mxu0 %v12614_v9  ;;  %v2053_v45 = vshrl.u32 %v1962_v22, 16  ;;  %v12613_v61 = vld [vmem:[#allocation2 + $0x24] sm:$0xff]   ;;  %v2477_v1 = vld [vmem:[#allocation2 + $0x30] sm:$0xe] }
 0x143   : > { %v2051_v39 = vsel %vm13190_vm13, %v2046_v25, %v2050_v31  ;;  %v2990_v37 = vor.u32 %v2989_v27, %v2985_v26  ;;  %v2056_v46 = vshll.u32 %v1962_v22, 16  ;;  %v2581_v43 = vsel %vm13205_vm14, %v10662_v21, %v2580_v34  ;;  %v2479_v11 = vld [vmem:[#allocation2 + $0x38] sm:$0x1]  ;;  %v1965_v18 = vld [vmem:[#allocation2 + $0x30] sm:$0xf] }
 0x144   : > { %v10645_v48 = vcombine.low %v2041_v32, %v2051_v39  ;;  %v2981_v49 = vrot.slane %v2980_v33, 4  ;;  %v2582_v50 = vrot.slane %v2580_v34, 4  ;;  %v2055_v36 = vrot.slane %v2053_v45, 4  ;;  %v1966_v22 = vld [vmem:[#allocation2 + $0x34] sm:$0xf] }
 0x145   : > { %12350 = vmatpush3.bf16.msra.mxu0 %v12614_v9  ;;  %v2991_v53 = vrot.slane %v2990_v37, 4  ;;  %v2058_v54 = vrot.slane %v2056_v46, 5  ;;  %v2062_v42 = vshll.u32 %v1963_v29, 16  ;;  %v2066_v58 = vshrl.u32 %v1963_v29, 16  ;;  %v12626_v29 = vld [vmem:[#allocation7 + $0x228] sm:$0xff]  }
 0x146   : > { %12351 = vmatprep.subr.bf16.mxu0 %v12617_v15  ;;  %v2986_v56 = vsel %vm13190_vm13, %v2981_v49, %v2985_v26  ;;  %v2584_v57 = vsel %vm13205_vm14, %v2582_v50, %v2583_v35  ;;  %v2072_v40 = vshll.u32 %v1964_v44, 16  ;;  %v2998_v51 = vshrl.u32 %v2907_v52, 16  ;;  %v1967_v45 = vld [vmem:[#allocation2 + $0x38] sm:$0x1] }
 0x147   : > { %v2996_v55 = vsel %vm13190_vm13, %v2991_v53, %v2995_v28  ;;  %v10678_v62 = vcombine.low %v2581_v43, %v2584_v57  ;;  %v2059_v63 = vor.u32 %v2058_v54, %v2055_v36  ;;  %v2064_v60 = vrot.slane %v2062_v42, 5  ;;  %v12615_v53 = vld [vmem:[#allocation2 + $0x30] sm:$0xff]   ;;  %v2912_v57 = vld [vmem:[#allocation2 + $0x44] sm:$0x1] }
 0x148   : > { %4791 = vmatmul.mubr.bf16.gmra.mrb[68].mxu0 %v10645_v48  ;;  %v10709_v2 = vcombine.low %v2986_v56, %v2996_v55  ;;  %v2068_v31 = vrot.slane %v2066_v58, 4  ;;  %v2074_v41 = vrot.slane %v2072_v40, 5  ;;  %v3001_v8 = vshll.u32 %v2907_v52, 16  ;;  %v2910_v48 = vld [vmem:[#allocation2 + $0x3c] sm:$0xf] }
 0x149   : > { %12352 = vmatpush3.bf16.msra.mxu0 %v12617_v15  ;;  %4798 = vmatprep.mubr.bf16.mxu0 %v10678_v62  ;;  %v2060_v7 = vrot.slane %v2059_v63, 4  ;;  %v3007_v9 = vshll.u32 %v2908_v59, 16  ;;  %v3011_v10 = vshrl.u32 %v2908_v59, 16  ;;  %v3000_v13 = vrot.slane %v2998_v51, 4  ;;  %v2911_v52 = vld [vmem:[#allocation2 + $0x40] sm:$0xf] }
 0x14a   : > { %12353 = vmatprep.subr.bf16.mxu0 %v12620_v47  ;;  %4951 = vmatprep.mubr.bf16.mxu1 %v10709_v2  ;;  %v2069_v12 = vor.u32 %v2068_v31, %v2064_v60  ;;  %v3017_v14 = vshll.u32 %v2909_v0, 16  ;;  %v10663_v16 = vrot.slane %v2477_v1, 9  ;;  %v3003_v20 = vrot.slane %v3001_v8, 5  ;;  %v2481_v62 = vld [vmem:[#allocation2 + $0x40] sm:$0xf]  ;;  %v12629_v63 = vld [vmem:[#allocation7 + $0x230] sm:$0xff]  }
 0x14b   : > { %4952 = vmatmul.mubr.bf16.gmra.mrb[68].mxu1 %v12613_v61  ;;  %v2065_v19 = vsel %vm13190_vm13, %v2060_v7, %v2064_v60  ;;  %v3009_v15 = vrot.slane %v3007_v9, 5  ;;  %v3013_v21 = vrot.slane %v3011_v10, 4  ;;  %v2587_v27 = vrot.slane %v2478_v4, 5  ;;  %v2480_v61 = vld [vmem:[#allocation2 + $0x3c] sm:$0xe] }
 0x14c   : > { %v2070_v25 = vrot.slane %v2069_v12, 4  ;;  %v3019_v26 = vrot.slane %v3017_v14, 5  ;;  %v2590_v28 = vrot.slane %v2479_v11, 5  ;;  %v3004_v32 = vor.u32 %v3003_v20, %v3000_v13  ;;  %v1968_v11 = vld [vmem:[#allocation2 + $0x3c] sm:$0xf] }
 0x14d   : > { %12354 = vmatpush3.bf16.msra.mxu0 %v12620_v47  ;;  %v3014_v33 = vor.u32 %v3013_v21, %v3009_v15  ;;  %v2077_v34 = vshrl.u32 %v1965_v18, 16  ;;  %v2080_v35 = vshll.u32 %v1965_v18, 16  ;;  %v2588_v37 = vsel %vm13205_vm14, %v10663_v16, %v2587_v27 }
 0x14e   : > { %12355 = vmatprep.subr.bf16.mxu0 %v12623_v38  ;;  %v2075_v39 = vsel %vm13190_vm13, %v2070_v25, %v2074_v41  ;;  %v2589_v44 = vrot.slane %v2587_v27, 4  ;;  %v2086_v46 = vshll.u32 %v1966_v22, 16  ;;  %v3005_v43 = vrot.slane %v3004_v32, 4 }
 0x14f   : > { %v10646_v49 = vcombine.low %v2065_v19, %v2075_v39  ;;  %v3015_v50 = vrot.slane %v3014_v33, 4  ;;  %v2079_v47 = vrot.slane %v2077_v34, 4  ;;  %v2082_v54 = vrot.slane %v2080_v35, 5  ;;  %v1970_v35 = vld [vmem:[#allocation2 + $0x44] sm:$0x1] }
 0x150   : > { %v2591_v36 = vsel %vm13205_vm14, %v2589_v44, %v2590_v28  ;;  %v2088_v42 = vrot.slane %v2086_v46, 5  ;;  %v2090_v56 = vshrl.u32 %v1966_v22, 16  ;;  %v3010_v58 = vsel %vm13190_vm13, %v3005_v43, %v3009_v15  ;;  %v1969_v28 = vld [vmem:[#allocation2 + $0x40] sm:$0xf] }
 0x151   : > { %12356 = vmatpush3.bf16.msra.mxu0 %v12623_v38  ;;  %v3020_v40 = vsel %vm13190_vm13, %v3015_v50, %v3019_v26  ;;  %v10679_v59 = vcombine.low %v2588_v37, %v2591_v36  ;;  %v2096_v55 = vshll.u32 %v1967_v45, 16  ;;  %v2083_v0 = vor.u32 %v2082_v54, %v2079_v47  ;;  %v2482_v38 = vld [vmem:[#allocation2 + $0x44] sm:$0x1]  ;;  %v12616_v46 = vld [vmem:[#allocation2 + $0x3c] sm:$0xff]   ;;  %v2914_v36 = vld [vmem:[#allocation2 + $0x4c] sm:$0xf] }
 0x152   : > { %4799 = vmatmul.mubr.bf16.gmra.mrb[72].mxu0 %v10646_v49  ;;  %12357 = vmatprep.subr.bf16.mxu0 %v12626_v29  ;;  %v10710_v60 = vcombine.low %v3010_v58, %v3020_v40  ;;  %v2092_v1 = vrot.slane %v2090_v56, 4  ;;  %v3022_v2 = vshrl.u32 %v2910_v48, 16  ;;  %v3025_v41 = vshll.u32 %v2910_v48, 16  ;;  %v2913_v49 = vld [vmem:[#allocation2 + $0x48] sm:$0xf] }
 0x153   : > { %4806 = vmatprep.mubr.bf16.mxu0 %v10679_v59  ;;  %v2098_v31 = vrot.slane %v2096_v55, 5  ;;  %v3031_v51 = vshll.u32 %v2911_v52, 16  ;;  %v3035_v4 = vshrl.u32 %v2911_v52, 16  ;;  %v2084_v7 = vrot.slane %v2083_v0, 4  ;;  %v2915_v40 = vld [vmem:[#allocation2 + $0x50] sm:$0x1] }
 0x154   : > { %4959 = vmatprep.mubr.bf16.mxu1 %v10710_v60  ;;  %v2093_v8 = vor.u32 %v2092_v1, %v2088_v42  ;;  %v3024_v9 = vrot.slane %v3022_v2, 4  ;;  %v3041_v10 = vshll.u32 %v2912_v57, 16  ;;  %v3027_v13 = vrot.slane %v3025_v41, 5  ;;  %v2483_v59 = vld [vmem:[#allocation2 + $0x48] sm:$0xe] }
 0x155   : > { %12358 = vmatpush3.bf16.msra.mxu0 %v12626_v29  ;;  %4960 = vmatmul.mubr.bf16.gmra.mrb[72].mxu1 %v12615_v53  ;;  %v3033_v14 = vrot.slane %v3031_v51, 5  ;;  %v3037_v16 = vrot.slane %v3035_v4, 4  ;;  %v10664_v18 = vrot.slane %v2480_v61, 9  ;;  %v2089_v19 = vsel %vm13190_vm13, %v2084_v7, %v2088_v42  ;;  %v2484_v0 = vld [vmem:[#allocation2 + $0x4c] sm:$0xf] }
 0x156   : > { %12359 = vmatprep.subr.bf16.mxu0 %v12629_v63  ;;  %v2094_v20 = vrot.slane %v2093_v8, 4  ;;  %v3043_v15 = vrot.slane %v3041_v10, 5  ;;  %v2594_v21 = vrot.slane %v2481_v62, 5  ;;  %v3028_v25 = vor.u32 %v3027_v13, %v3024_v9  ;;  %v2485_v1 = vld [vmem:[#allocation2 + $0x50] sm:$0x1] }
 0x157   : > { %v3038_v26 = vor.u32 %v3037_v16, %v3033_v14  ;;  %v2597_v27 = vrot.slane %v2482_v38, 5  ;;  %v2101_v29 = vshrl.u32 %v1968_v11, 16  ;;  %v2104_v39 = vshll.u32 %v1968_v11, 16  ;;  %v1971_v2 = vld [vmem:[#allocation2 + $0x48] sm:$0xf] }
 0x158   : > { %v2099_v32 = vsel %vm13190_vm13, %v2094_v20, %v2098_v31  ;;  %v2595_v33 = vsel %vm13205_vm14, %v10664_v18, %v2594_v21  ;;  %v2596_v34 = vrot.slane %v2594_v21, 4  ;;  %v3029_v44 = vrot.slane %v3028_v25, 4  ;;  %v1972_v18 = vld [vmem:[#allocation2 + $0x4c] sm:$0xf] }
 0x159   : > { %12360 = vmatpush3.bf16.msra.mxu0 %v12629_v63  ;;  %v10647_v37 = vcombine.low %v2089_v19, %v2099_v32  ;;  %v3039_v45 = vrot.slane %v3038_v26, 4  ;;  %v2103_v48 = vrot.slane %v2101_v29, 4  ;;  %v2106_v47 = vrot.slane %v2104_v39, 5 }
 0x15a   : > { %v2598_v50 = vsel %vm13205_vm14, %v2596_v34, %v2597_v27  ;;  %v2110_v52 = vshll.u32 %v1969_v28, 16  ;;  %v2114_v53 = vshrl.u32 %v1969_v28, 16  ;;  %v3034_v42 = vsel %vm13190_vm13, %v3029_v44, %v3033_v14  ;;  %v2916_v44 = vld [vmem:[#allocation2 + $0x54] sm:$0xf] }
 0x15b   : > { %4807 = vmatmul.mubr.bf16.gmra.mrb[76].mxu0 %v10647_v37  ;;  %v3044_v56 = vsel %vm13190_vm13, %v3039_v45, %v3043_v15  ;;  %v10680_v57 = vcombine.low %v2595_v33, %v2598_v50  ;;  %v2120_v58 = vshll.u32 %v1970_v35, 16  ;;  %v2107_v62 = vor.u32 %v2106_v47, %v2103_v48  ;;  %v1973_v35 = vld [vmem:[#allocation2 + $0x50] sm:$0x1]  ;;  %v2917_v50 = vld [vmem:[#allocation2 + $0x58] sm:$0xf] }
 0x15c   : > { %v10711_v61 = vcombine.low %v3034_v42, %v3044_v56  ;;  %v2112_v63 = vrot.slane %v2110_v52, 5  ;;  %v2116_v60 = vrot.slane %v2114_v53, 4  ;;  %v3046_v41 = vshrl.u32 %v2913_v49, 16  ;;  %v12618_v52 = vld [vmem:[#allocation2 + $0x48] sm:$0xff]  }
 0x15d   : > { %4814 = vmatprep.mubr.bf16.mxu0 %v10680_v57  ;;  %v2122_v31 = vrot.slane %v2120_v58, 5  ;;  %v3049_v51 = vshll.u32 %v2913_v49, 16  ;;  %v3055_v4 = vshll.u32 %v2914_v36, 16  ;;  %v2108_v38 = vrot.slane %v2107_v62, 4 }
 0x15e   : > { %4967 = vmatprep.mubr.bf16.mxu1 %v10711_v61  ;;  %v2117_v7 = vor.u32 %v2116_v60, %v2112_v63  ;;  %v3059_v8 = vshrl.u32 %v2914_v36, 16  ;;  %v3065_v9 = vshll.u32 %v2915_v40, 16  ;;  %v3048_v11 = vrot.slane %v3046_v41, 4  ;;  %v2486_v61 = vld [vmem:[#allocation2 + $0x54] sm:$0xe] }
 0x15f   : > { %4968 = vmatmul.mubr.bf16.gmra.mrb[76].mxu1 %v12616_v46  ;;  %v3051_v13 = vrot.slane %v3049_v51, 5  ;;  %v3057_v14 = vrot.slane %v3055_v4, 5  ;;  %v10665_v16 = vrot.slane %v2483_v59, 9  ;;  %v2113_v19 = vsel %vm13190_vm13, %v2108_v38, %v2112_v63  ;;  %v2918_v59 = vld [vmem:[#allocation2 + $0x5c] sm:$0x1] }
 0x160   : > { %v2118_v20 = vrot.slane %v2117_v7, 4  ;;  %v3061_v15 = vrot.slane %v3059_v8, 4  ;;  %v3067_v21 = vrot.slane %v3065_v9, 5  ;;  %v2601_v27 = vrot.slane %v2484_v0, 5 }
 0x161   : > { %v3052_v26 = vor.u32 %v3051_v13, %v3048_v11  ;;  %v2604_v28 = vrot.slane %v2485_v1, 5  ;;  %v2125_v29 = vshrl.u32 %v1971_v2, 16  ;;  %v2128_v39 = vshll.u32 %v1971_v2, 16  ;;  %v2487_v1 = vld [vmem:[#allocation2 + $0x58] sm:$0xf] }
 0x162   : > { %v13669_v12 = vpop.f32.mrb[0].mxu0  ;;  %v13683_v54 = vpop.f32.mrb[0].mxu1  ;;  %v2123_v33 = vsel %vm13190_vm13, %v2118_v20, %v2122_v31  ;;  %v3062_v34 = vor.u32 %v3061_v15, %v3057_v14  ;;  %v2134_v37 = vshll.u32 %v1972_v18, 16  ;;  %v2602_v48 = vsel %vm13205_vm14, %v10665_v16, %v2601_v27  ;;  %v2488_v13 = vld [vmem:[#allocation2 + $0x5c] sm:$0x1] }
 0x163   : > { %v13673_v22 = vpop.f32.mrb[1].mxu0  ;;  %v13691_v10 = vpop.f32.mrb[1].mxu1  ;;  %v10648_v45 = vcombine.low %v2113_v19, %v2123_v33  ;;  %v3053_v46 = vrot.slane %v3052_v26, 4  ;;  %v2603_v49 = vrot.slane %v2601_v27, 4  ;;  %v2127_v53 = vrot.slane %v2125_v29, 4 }
 0x164   : > { %v13679_v43 = vpop.f32.mrb[2].mxu0  ;;  %v13695_v25 = vpop.f32.mrb[2].mxu1  ;;  %v3063_v47 = vrot.slane %v3062_v34, 4  ;;  %v2130_v36 = vrot.slane %v2128_v39, 5  ;;  %v2136_v42 = vrot.slane %v2134_v37, 5  ;;  %v2138_v58 = vshrl.u32 %v1972_v18, 16 }
 0x165   : > { %v13689_v55 = vpop.f32.mrb[3].mxu0  ;;  %v13697_v32 = vpop.f32.mrb[3].mxu1  ;;  %4815 = vmatmul.mubr.bf16.gmra.mrb[80].mxu0 %v10648_v45  ;;  %v3058_v56 = vsel %vm13190_vm13, %v3053_v46, %v3057_v14  ;;  %v2605_v57 = vsel %vm13205_vm14, %v2603_v49, %v2604_v28  ;;  %v2144_v40 = vshll.u32 %v1973_v35, 16  ;;  %v3070_v0 = vshrl.u32 %v2916_v44, 16  ;;  %v1974_v20 = vld [vmem:[#allocation2 + $0x54] sm:$0xf] }
 0x166   : > { %v3068_v62 = vsel %vm13190_vm13, %v3063_v47, %v3067_v21  ;;  %v10681_v63 = vcombine.low %v2602_v48, %v2605_v57  ;;  %v2131_v60 = vor.u32 %v2130_v36, %v2127_v53  ;;  %v2140_v41 = vrot.slane %v2138_v58, 4  ;;  %v1975_v29 = vld [vmem:[#allocation2 + $0x58] sm:$0xf]  ;;  %v1976_v49 = vld [vmem:[#allocation2 + $0x5c] sm:$0x1] }
 0x167   : > { %v10712_v31 = vcombine.low %v3058_v56, %v3068_v62  ;;  %v2146_v51 = vrot.slane %v2144_v40, 5  ;;  %v3073_v4 = vshll.u32 %v2916_v44, 16  ;;  %v3072_v8 = vrot.slane %v3070_v0, 4  ;;  %v12619_v40 = vld [vmem:[#allocation2 + $0x54] sm:$0xff]   ;;  %v2920_v62 = vld [vmem:[#allocation2 + $0x64] sm:$0xf] }
 0x168   : > { %4822 = vmatprep.mubr.bf16.mxu0 %v10681_v63  ;;  %v2132_v7 = vrot.slane %v2131_v60, 4  ;;  %v3079_v9 = vshll.u32 %v2917_v50, 16  ;;  %v3083_v11 = vshrl.u32 %v2917_v50, 16  ;;  %v2141_v14 = vor.u32 %v2140_v41, %v2136_v42 }
 0x169   : > { %4975 = vmatprep.mubr.bf16.mxu1 %v10712_v31  ;;  %v3075_v16 = vrot.slane %v3073_v4, 5  ;;  %v3089_v18 = vshll.u32 %v2918_v59, 16  ;;  %v10666_v19 = vrot.slane %v2486_v61, 9  ;;  %v2608_v28 = vrot.slane %v2487_v1, 5  ;;  %v2921_v4 = vld [vmem:[#allocation2 + $0x68] sm:$0x1] }
 0x16a   : > { %4976 = vmatmul.mubr.bf16.gmra.mrb[80].mxu1 %v12618_v52  ;;  %v2137_v21 = vsel %vm13190_vm13, %v2132_v7, %v2136_v42  ;;  %v3081_v26 = vrot.slane %v3079_v9, 5  ;;  %v3085_v27 = vrot.slane %v3083_v11, 4  ;;  %v2142_v34 = vrot.slane %v2141_v14, 4  ;;  %v2919_v42 = vld [vmem:[#allocation2 + $0x60] sm:$0xf] }
 0x16b   : > { %v3076_v35 = vor.u32 %v3075_v16, %v3072_v8  ;;  %v3091_v39 = vrot.slane %v3089_v18, 5  ;;  %v2611_v37 = vrot.slane %v2488_v13, 5  ;;  %v2609_v46 = vsel %vm13205_vm14, %v10666_v19, %v2608_v28  ;;  %v2489_v16 = vld [vmem:[#allocation2 + $0x60] sm:$0xe]  ;;  %v2490_v18 = vld [vmem:[#allocation2 + $0x64] sm:$0xf] }
 0x16c   : > { %v3086_v45 = vor.u32 %v3085_v27, %v3081_v26  ;;  %v2610_v48 = vrot.slane %v2608_v28, 4  ;;  %v2149_v50 = vshrl.u32 %v1974_v20, 16  ;;  %v2147_v47 = vsel %vm13190_vm13, %v2142_v34, %v2146_v51  ;;  %v2491_v27 = vld [vmem:[#allocation2 + $0x68] sm:$0x1] }
 0x16d   : > { %v3077_v52 = vrot.slane %v3076_v35, 4  ;;  %v2152_v53 = vshll.u32 %v1974_v20, 16  ;;  %v2158_v36 = vshll.u32 %v1975_v29, 16  ;;  %v10649_v57 = vcombine.low %v2137_v21, %v2147_v47 }
 0x16e   : > { %v13709_v2 = vpop.f32.mrb[4].mxu0  ;;  %v3087_v58 = vrot.slane %v3086_v45, 4  ;;  %v2612_v59 = vsel %vm13205_vm14, %v2610_v48, %v2611_v37  ;;  %v2151_v61 = vrot.slane %v2149_v50, 4  ;;  %v2162_v41 = vshrl.u32 %v1975_v29, 16 }
 0x16f   : > { %v13711_v38 = vpop.f32.mrb[5].mxu0  ;;  %v13717_v33 = vpop.f32.mrb[4].mxu1  ;;  %v3082_v63 = vsel %vm13190_vm13, %v3077_v52, %v3081_v26  ;;  %v10682_v60 = vcombine.low %v2609_v46, %v2612_v59  ;;  %v2154_v0 = vrot.slane %v2152_v53, 5  ;;  %v2160_v1 = vrot.slane %v2158_v36, 5  ;;  %4823 = vmatmul.mubr.bf16.gmra.mrb[84].mxu0 %v10649_v57 }
 0x170   : > { %v13713_v15 = vpop.f32.mrb[6].mxu0  ;;  %v13725_v56 = vpop.f32.mrb[5].mxu1  ;;  %v3092_v31 = vsel %vm13190_vm13, %v3087_v58, %v3091_v39  ;;  %v2168_v51 = vshll.u32 %v1976_v49, 16  ;;  %v3094_v7 = vshrl.u32 %v2919_v42, 16  ;;  %v3097_v13 = vshll.u32 %v2919_v42, 16 }
 0x171   : > { %v13719_v44 = vpop.f32.mrb[7].mxu0  ;;  %v13733_v8 = vpop.f32.mrb[6].mxu1  ;;  %v10713_v9 = vcombine.low %v3082_v63, %v3092_v31  ;;  %4830 = vmatprep.mubr.bf16.mxu0 %v10682_v60  ;;  %v2155_v11 = vor.u32 %v2154_v0, %v2151_v61  ;;  %v3103_v14 = vshll.u32 %v2920_v62, 16  ;;  %v2164_v19 = vrot.slane %v2162_v41, 4  ;;  %v1977_v39 = vld [vmem:[#allocation2 + $0x60] sm:$0xf] }
 0x172   : > { %v2170_v20 = vrot.slane %v2168_v51, 5  ;;  %v3096_v21 = vrot.slane %v3094_v7, 4  ;;  %v3107_v26 = vshrl.u32 %v2920_v62, 16  ;;  %v3099_v29 = vrot.slane %v3097_v13, 5  ;;  %v1978_v49 = vld [vmem:[#allocation2 + $0x64] sm:$0xf] }
 0x173   : > { %4983 = vmatprep.mubr.bf16.mxu1 %v10713_v9  ;;  %v2156_v28 = vrot.slane %v2155_v11, 4  ;;  %v3105_v34 = vrot.slane %v3103_v14, 5  ;;  %v3113_v35 = vshll.u32 %v2921_v4, 16  ;;  %v2165_v37 = vor.u32 %v2164_v19, %v2160_v1  ;;  %v13735_v50 = vpop.f32.mrb[7].mxu1  ;;  %v2922_v0 = vld [vmem:[#allocation2 + $0x6c] sm:$0xf] }
 0x174   : > { %4984 = vmatmul.mubr.bf16.gmra.mrb[84].mxu1 %v12619_v40  ;;  %v3109_v45 = vrot.slane %v3107_v26, 4  ;;  %v10667_v46 = vrot.slane %v2489_v16, 9  ;;  %v2615_v48 = vrot.slane %v2490_v18, 5  ;;  %v3100_v52 = vor.u32 %v3099_v29, %v3096_v21  ;;  %v1979_v40 = vld [vmem:[#allocation2 + $0x68] sm:$0x1]  ;;  %v12621_v9 = vld [vmem:[#allocation2 + $0x60] sm:$0xff]  }
 0x175   : > { %v2161_v47 = vsel %vm13190_vm13, %v2156_v28, %v2160_v1  ;;  %v3115_v53 = vrot.slane %v3113_v35, 5  ;;  %v2618_v36 = vrot.slane %v2491_v27, 5  ;;  %v2166_v42 = vrot.slane %v2165_v37, 4  ;;  %v2923_v14 = vld [vmem:[#allocation2 + $0x70] sm:$0xf] }
 0x176   : > { %v3110_v57 = vor.u32 %v3109_v45, %v3105_v34  ;;  %v2616_v58 = vsel %vm13205_vm14, %v10667_v46, %v2615_v48  ;;  %v2617_v59 = vrot.slane %v2615_v48, 4  ;;  %v3101_v61 = vrot.slane %v3100_v52, 4  ;;  %v2924_v26 = vld [vmem:[#allocation2 + $0x74] sm:$0x1] }
 0x177   : > { %v2173_v62 = vshrl.u32 %v1977_v39, 16  ;;  %v2176_v63 = vshll.u32 %v1977_v39, 16  ;;  %v2182_v60 = vshll.u32 %v1978_v49, 16  ;;  %v2171_v31 = vsel %vm13190_vm13, %v2166_v42, %v2170_v20  ;;  %v2492_v39 = vld [vmem:[#allocation2 + $0x6c] sm:$0xe] }
 0x178   : > { %v3111_v41 = vrot.slane %v3110_v57, 4  ;;  %v2619_v1 = vsel %vm13205_vm14, %v2617_v59, %v2618_v36  ;;  %v2186_v51 = vshrl.u32 %v1978_v49, 16  ;;  %v10650_v4 = vcombine.low %v2161_v47, %v2171_v31  ;;  %v2493_v47 = vld [vmem:[#allocation2 + $0x70] sm:$0xf]  ;;  %v2494_v52 = vld [vmem:[#allocation2 + $0x74] sm:$0x1] }
 0x179   : > { %v3106_v7 = vsel %vm13190_vm13, %v3101_v61, %v3105_v34  ;;  %v10683_v11 = vcombine.low %v2616_v58, %v2619_v1  ;;  %v2175_v13 = vrot.slane %v2173_v62, 4  ;;  %v13747_v16 = vpop.f32.mrb[8].mxu0  ;;  %v2178_v19 = vrot.slane %v2176_v63, 5  ;;  %v1980_v58 = vld [vmem:[#allocation2 + $0x6c] sm:$0xf] }
 0x17a   : > { %v3116_v18 = vsel %vm13190_vm13, %v3111_v41, %v3115_v53  ;;  %v2184_v20 = vrot.slane %v2182_v60, 5  ;;  %v2188_v21 = vrot.slane %v2186_v51, 4  ;;  %v13751_v27 = vpop.f32.mrb[9].mxu0  ;;  %4831 = vmatmul.mubr.bf16.gmra.mrb[88].mxu0 %v10650_v4  ;;  %v2192_v29 = vshll.u32 %v1979_v40, 16  ;;  %v1981_v63 = vld [vmem:[#allocation2 + $0x70] sm:$0xf] }
 0x17b   : > { %v10714_v28 = vcombine.low %v3106_v7, %v3116_v18  ;;  %v3118_v35 = vshrl.u32 %v2922_v0, 16  ;;  %v3121_v34 = vshll.u32 %v2922_v0, 16  ;;  %v13753_v37 = vpop.f32.mrb[10].mxu0  ;;  %4838 = vmatprep.mubr.bf16.mxu0 %v10683_v11  ;;  %v2179_v45 = vor.u32 %v2178_v19, %v2175_v13  ;;  %v1982_v1 = vld [vmem:[#allocation2 + $0x74] sm:$0x1]  ;;  %v13755_v51 = vpop.f32.mrb[8].mxu1 }
 0x17c   : > { %v2189_v46 = vor.u32 %v2188_v21, %v2184_v20  ;;  %v3127_v48 = vshll.u32 %v2923_v14, 16  ;;  %v3131_v49 = vshrl.u32 %v2923_v14, 16  ;;  %v2194_v53 = vrot.slane %v2192_v29, 5  ;;  %v13761_v13 = vpop.f32.mrb[11].mxu0  ;;  %v12622_v29 = vld [vmem:[#allocation2 + $0x6c] sm:$0xff]  }
 0x17d   : > { %4991 = vmatprep.mubr.bf16.mxu1 %v10714_v28  ;;  %v3120_v36 = vrot.slane %v3118_v35, 4  ;;  %v3123_v42 = vrot.slane %v3121_v34, 5  ;;  %v3137_v57 = vshll.u32 %v2924_v26, 16  ;;  %v2180_v59 = vrot.slane %v2179_v45, 4  ;;  %v2925_v26 = vld [vmem:[#allocation2 + $0x78] sm:$0xf] }
 0x17e   : > { %4992 = vmatmul.mubr.bf16.gmra.mrb[88].mxu1 %v12621_v9  ;;  %v2190_v40 = vrot.slane %v2189_v46, 4  ;;  %v3129_v61 = vrot.slane %v3127_v48, 5  ;;  %v3133_v62 = vrot.slane %v3131_v49, 4  ;;  %v10668_v31 = vrot.slane %v2492_v39, 9 }
 0x17f   : > { %v3124_v60 = vor.u32 %v3123_v42, %v3120_v36  ;;  %v3139_v0 = vrot.slane %v3137_v57, 5  ;;  %v2622_v41 = vrot.slane %v2493_v47, 5  ;;  %v2185_v4 = vsel %vm13190_vm13, %v2180_v59, %v2184_v20  ;;  %v2926_v20 = vld [vmem:[#allocation2 + $0x7c] sm:$0xf]  ;;  %v2927_v47 = vld [vmem:[#allocation2 + $0x80] sm:$0x1] }
 0x180   : > { %v2195_v7 = vsel %vm13190_vm13, %v2190_v40, %v2194_v53  ;;  %v3134_v11 = vor.u32 %v3133_v62, %v3129_v61  ;;  %v2625_v9 = vrot.slane %v2494_v52, 5  ;;  %v2197_v35 = vshrl.u32 %v1980_v58, 16  ;;  %v2495_v52 = vld [vmem:[#allocation2 + $0x78] sm:$0xe] }
 0x181   : > { %v10651_v14 = vcombine.low %v2185_v4, %v2195_v7  ;;  %v3125_v18 = vrot.slane %v3124_v60, 4  ;;  %v2623_v19 = vsel %vm13205_vm14, %v10668_v31, %v2622_v41  ;;  %v2624_v21 = vrot.slane %v2622_v41, 4  ;;  %v13771_v31 = vpop.f32.mrb[9].mxu1  ;;  %v2497_v4 = vld [vmem:[#allocation2 + $0x80] sm:$0x1] }
 0x182   : > { %v3135_v28 = vrot.slane %v3134_v11, 4  ;;  %v2200_v34 = vshll.u32 %v1980_v58, 16  ;;  %v2206_v39 = vshll.u32 %v1981_v63, 16  ;;  %v2210_v48 = vshrl.u32 %v1981_v63, 16  ;;  %v2496_v58 = vld [vmem:[#allocation2 + $0x7c] sm:$0xf] }
 0x183   : > { %4839 = vmatmul.mubr.bf16.gmra.mrb[92].mxu0 %v10651_v14  ;;  %v3130_v45 = vsel %vm13190_vm13, %v3125_v18, %v3129_v61  ;;  %v2626_v46 = vsel %vm13205_vm14, %v2624_v21, %v2625_v9  ;;  %v2216_v49 = vshll.u32 %v1982_v1, 16  ;;  %v2199_v42 = vrot.slane %v2197_v35, 4  ;;  %v13773_v7 = vpop.f32.mrb[10].mxu1  ;;  %v1983_v18 = vld [vmem:[#allocation2 + $0x78] sm:$0xf] }
 0x184   : > { %v3140_v53 = vsel %vm13190_vm13, %v3135_v28, %v3139_v0  ;;  %v10684_v36 = vcombine.low %v2623_v19, %v2626_v46  ;;  %v2202_v57 = vrot.slane %v2200_v34, 5  ;;  %v2208_v40 = vrot.slane %v2206_v39, 5  ;;  %v13775_v19 = vpop.f32.mrb[11].mxu1 }
 0x185   : > { %v10715_v59 = vcombine.low %v3130_v45, %v3140_v53  ;;  %v2212_v62 = vrot.slane %v2210_v48, 4  ;;  %v2218_v60 = vrot.slane %v2216_v49, 5  ;;  %v3142_v41 = vshrl.u32 %v2925_v26, 16 }
 0x186   : > { %4846 = vmatprep.mubr.bf16.mxu0 %v10684_v36  ;;  %v2203_v61 = vor.u32 %v2202_v57, %v2199_v42  ;;  %v3145_v63 = vshll.u32 %v2925_v26, 16  ;;  %v3151_v1 = vshll.u32 %v2926_v20, 16  ;;  %v3155_v11 = vshrl.u32 %v2926_v20, 16  ;;  %v1984_v20 = vld [vmem:[#allocation2 + $0x7c] sm:$0xf] }
 0x187   : > { %4999 = vmatprep.mubr.bf16.mxu1 %v10715_v59  ;;  %v2213_v0 = vor.u32 %v2212_v62, %v2208_v40  ;;  %v3161_v9 = vshll.u32 %v2927_v47, 16  ;;  %v10669_v14 = vrot.slane %v2495_v52, 9  ;;  %v3144_v28 = vrot.slane %v3142_v41, 4  ;;  %v1985_v57 = vld [vmem:[#allocation2 + $0x80] sm:$0x1]  ;;  %v13783_v59 = vpop.f32.mrb[12].mxu0 }
 0x188   : > { %5000 = vmatmul.mubr.bf16.gmra.mrb[92].mxu1 %v12622_v29  ;;  %v2204_v21 = vrot.slane %v2203_v61, 4  ;;  %v3147_v35 = vrot.slane %v3145_v63, 5  ;;  %v3153_v34 = vrot.slane %v3151_v1, 5  ;;  %v3157_v45 = vrot.slane %v3155_v11, 4  ;;  %v13785_v63 = vpop.f32.mrb[13].mxu0 }
 0x189   : > { %v2214_v39 = vrot.slane %v2213_v0, 4  ;;  %v3163_v26 = vrot.slane %v3161_v9, 5  ;;  %v2629_v46 = vrot.slane %v2496_v58, 5  ;;  %v2632_v53 = vrot.slane %v2497_v4, 5  ;;  %v12624_v4 = vld [vmem:[#allocation2 + $0x78] sm:$0xff]   ;;  %v13789_v9 = vpop.f32.mrb[14].mxu0 }
 0x18a   : > { %v2209_v48 = vsel %vm13190_vm13, %v2204_v21, %v2208_v40  ;;  %v3148_v49 = vor.u32 %v3147_v35, %v3144_v28  ;;  %v2221_v47 = vshrl.u32 %v1983_v18, 16  ;;  %v3158_v36 = vor.u32 %v3157_v45, %v3153_v34  ;;  %v2928_v40 = vld [vmem:[#allocation2 + $0x84] sm:$0xf] }
 0x18b   : > { %v2219_v52 = vsel %vm13190_vm13, %v2214_v39, %v2218_v60  ;;  %v2630_v29 = vsel %vm13205_vm14, %v10669_v14, %v2629_v46  ;;  %v2631_v42 = vrot.slane %v2629_v46, 4  ;;  %v2224_v41 = vshll.u32 %v1983_v18, 16  ;;  %v2929_v18 = vld [vmem:[#allocation2 + $0x88] sm:$0xf]  ;;  %v2930_v39 = vld [vmem:[#allocation2 + $0x8c] sm:$0x1] }
 0x18c   : > { %v10652_v62 = vcombine.low %v2209_v48, %v2219_v52  ;;  %v3149_v58 = vrot.slane %v3148_v49, 4  ;;  %v2223_v61 = vrot.slane %v2221_v47, 4  ;;  %v3159_v1 = vrot.slane %v3158_v36, 4  ;;  %v13795_v47 = vpop.f32.mrb[12].mxu1 }
 0x18d   : > { %v2633_v60 = vsel %vm13205_vm14, %v2631_v42, %v2632_v53  ;;  %v2230_v0 = vshll.u32 %v1984_v20, 16  ;;  %v2234_v11 = vshrl.u32 %v1984_v20, 16  ;;  %v2226_v28 = vrot.slane %v2224_v41, 5  ;;  %v2498_v53 = vld [vmem:[#allocation2 + $0x84] sm:$0xe] }
 0x18e   : > { %4847 = vmatmul.mubr.bf16.gmra.mrb[96].mxu0 %v10652_v62  ;;  %v3154_v14 = vsel %vm13190_vm13, %v3149_v58, %v3153_v34  ;;  %v10685_v21 = vcombine.low %v2630_v29, %v2633_v60  ;;  %v2240_v35 = vshll.u32 %v1985_v57, 16  ;;  %v3164_v45 = vsel %vm13190_vm13, %v3159_v1, %v3163_v26  ;;  %v2499_v34 = vld [vmem:[#allocation2 + $0x88] sm:$0xf]  ;;  %v2500_v29 = vld [vmem:[#allocation2 + $0x8c] sm:$0x1]  ;;  %v13797_v60 = vpop.f32.mrb[15].mxu0 }
 0x18f   : > { %v2232_v46 = vrot.slane %v2230_v0, 5  ;;  %v2236_v48 = vrot.slane %v2234_v11, 4  ;;  %v3166_v49 = vshrl.u32 %v2928_v40, 16  ;;  %v10716_v20 = vcombine.low %v3154_v14, %v3164_v45 }
 0x190   : > { %4854 = vmatprep.mubr.bf16.mxu0 %v10685_v21  ;;  %v2227_v52 = vor.u32 %v2226_v28, %v2223_v61  ;;  %v2242_v36 = vrot.slane %v2240_v35, 5  ;;  %v3169_v42 = vshll.u32 %v2928_v40, 16  ;;  %v3175_v58 = vshll.u32 %v2929_v18, 16  ;;  %v1986_v28 = vld [vmem:[#allocation2 + $0x84] sm:$0xf] }
 0x191   : > { %v2237_v62 = vor.u32 %v2236_v48, %v2232_v46  ;;  %v3168_v57 = vrot.slane %v3166_v49, 4  ;;  %v3179_v41 = vshrl.u32 %v2929_v18, 16  ;;  %5007 = vmatprep.mubr.bf16.mxu1 %v10716_v20  ;;  %v3185_v0 = vshll.u32 %v2930_v39, 16  ;;  %v1987_v18 = vld [vmem:[#allocation2 + $0x88] sm:$0xf] }
 0x192   : > { %v2228_v26 = vrot.slane %v2227_v52, 4  ;;  %v3171_v1 = vrot.slane %v3169_v42, 5  ;;  %v10670_v11 = vrot.slane %v2498_v53, 9  ;;  %5008 = vmatmul.mubr.bf16.gmra.mrb[96].mxu1 %v12624_v4  ;;  %v3177_v14 = vrot.slane %v3175_v58, 5  ;;  %v1988_v53 = vld [vmem:[#allocation2 + $0x8c] sm:$0x1] }
 0x193   : > { %v2238_v3 = vrot.slane %v2237_v62, 4  ;;  %v3181_v21 = vrot.slane %v3179_v41, 4  ;;  %v2636_v61 = vrot.slane %v2499_v34, 5  ;;  %v3187_v45 = vrot.slane %v3185_v0, 5  ;;  %v13805_v52 = vpop.f32.mrb[13].mxu1  ;;  %v12625_v41 = vld [vmem:[#allocation2 + $0x84] sm:$0xff]  }
 0x194   : > { %v2233_v40 = vsel %vm13190_vm13, %v2228_v26, %v2232_v46  ;;  %v3172_v35 = vor.u32 %v3171_v1, %v3168_v57  ;;  %v2639_v48 = vrot.slane %v2500_v29, 5  ;;  %v2245_v62 = vshrl.u32 %v1986_v28, 16  ;;  %v2931_v46 = vld [vmem:[#allocation2 + $0x90] sm:$0xf]  ;;  %v13807_v57 = vpop.f32.mrb[14].mxu1 }
 0x195   : > { %v2243_v49 = vsel %vm13190_vm13, %v2238_v3, %v2242_v36  ;;  %v3182_v20 = vor.u32 %v3181_v21, %v3177_v14  ;;  %v2637_v39 = vsel %vm13205_vm14, %v10670_v11, %v2636_v61  ;;  %v2638_v4 = vrot.slane %v2636_v61, 4  ;;  %v13811_v1 = vpop.f32.mrb[15].mxu1 }
 0x196   : > { %v10653_v42 = vcombine.low %v2233_v40, %v2243_v49  ;;  %v3173_v34 = vrot.slane %v3172_v35, 4  ;;  %v2248_v58 = vshll.u32 %v1986_v28, 16  ;;  %v2254_v36 = vshll.u32 %v1987_v18, 16  ;;  %v2932_v28 = vld [vmem:[#allocation2 + $0x94] sm:$0xf] }
 0x197   : > { %v3183_v29 = vrot.slane %v3182_v20, 4  ;;  %v2640_v3 = vsel %vm13205_vm14, %v2638_v4, %v2639_v48  ;;  %v2258_v26 = vshrl.u32 %v1987_v18, 16  ;;  %v2247_v21 = vrot.slane %v2245_v62, 4  ;;  %v12632_v48 = vld [vmem:[#allocation7 + $0x238] sm:$0xff]  }
 0x198   : > { %4855 = vmatmul.mubr.bf16.gmra.mrb[100].mxu0 %v10653_v42  ;;  %v3178_v0 = vsel %vm13190_vm13, %v3173_v34, %v3177_v14  ;;  %v10686_v11 = vcombine.low %v2637_v39, %v2640_v3  ;;  %v2250_v61 = vrot.slane %v2248_v58, 5  ;;  %v2256_v35 = vrot.slane %v2254_v36, 5  ;;  %12361 = vmatprep.subr.bf16.mxu0 %v12632_v48 }
 0x199   : > { %v3188_v40 = vsel %vm13190_vm13, %v3183_v29, %v3187_v45  ;;  %v2260_v49 = vrot.slane %v2258_v26, 4  ;;  %v2264_v20 = vshll.u32 %v1988_v53, 16  ;;  %v3190_v23 = vshrl.u32 %v2931_v46, 16  ;;  %12362 = vmatpush3.bf16.msra.mxu0 %v12632_v48  ;;  %v13821_v26 = vpop.f32.mrb[16].mxu0 }
 0x19a   : > { %v10717_v4 = vcombine.low %v3178_v0, %v3188_v40  ;;  %4862 = vmatprep.mubr.bf16.mxu0 %v10686_v11  ;;  %v2251_v18 = vor.u32 %v2250_v61, %v2247_v21  ;;  %v3193_v42 = vshll.u32 %v2931_v46, 16  ;;  %v3199_v14 = vshll.u32 %v2932_v28, 16  ;;  %v2501_v46 = vld [vmem:[#allocation2 + $0x90] sm:$0xe]  ;;  %v1990_v40 = vld [vmem:[#allocation2 + $0x94] sm:$0xf] }
 0x19b   : > { %v2261_v5 = vor.u32 %v2260_v49, %v2256_v35  ;;  %v2266_v24 = vrot.slane %v2264_v20, 5  ;;  %v3203_v39 = vshrl.u32 %v2932_v28, 16  ;;  %v3192_v62 = vrot.slane %v3190_v23, 4  ;;  %v1989_v28 = vld [vmem:[#allocation2 + $0x90] sm:$0xf] }
 0x19c   : > { %5015 = vmatprep.mubr.bf16.mxu1 %v10717_v4  ;;  %v2252_v34 = vrot.slane %v2251_v18, 4  ;;  %v3195_v58 = vrot.slane %v3193_v42, 5  ;;  %v3209_v45 = vshll.u32 %v2933_v6, 16  ;;  %v3201_v29 = vrot.slane %v3199_v14, 5  ;;  %v2502_v6 = vld [vmem:[#allocation2 + $0x94] sm:$0xf] }
 0x19d   : > { %5016 = vmatmul.mubr.bf16.gmra.mrb[100].mxu1 %v12625_v41  ;;  %v2262_v53 = vrot.slane %v2261_v5, 4  ;;  %v3205_v3 = vrot.slane %v3203_v39, 4  ;;  %v13819_v36 = vadd.f32 %v13673_v22, %v13669_v12  ;;  %v13827_v23 = vadd.f32 %v13689_v55, %v13679_v43  ;;  %v2503_v41 = vld [vmem:[#allocation2 + $0x98] sm:$0x1]  ;;  %v13829_v5 = vpop.f32.mrb[17].mxu0 }
 0x19e   : > { %v2257_v0 = vsel %vm13190_vm13, %v2252_v34, %v2256_v35  ;;  %v3196_v11 = vor.u32 %v3195_v58, %v3192_v62  ;;  %v3211_v22 = vrot.slane %v3209_v45, 5  ;;  %v13835_v61 = vadd.f32 %v13691_v10, %v13683_v54  ;;  %v1991_v43 = vld [vmem:[#allocation2 + $0x98] sm:$0x1]  ;;  %v2934_v55 = vld [vmem:[#allocation2 + $0x9c] sm:$0xf]  ;;  %v13845_v34 = vpop.f32.mrb[16].mxu1 }
 0x19f   : > { %v2267_v21 = vsel %vm13190_vm13, %v2262_v53, %v2266_v24  ;;  %v3206_v12 = vor.u32 %v3205_v3, %v3201_v29  ;;  %v10671_v20 = vrot.slane %v2501_v46, 9  ;;  %v2643_v4 = vrot.slane %v2502_v6, 5  ;;  %v13841_v24 = vpop.f32.mrb[18].mxu0  ;;  %v12627_v58 = vld [vmem:[#allocation2 + $0x90] sm:$0xff]   ;;  %v2935_v53 = vld [vmem:[#allocation2 + $0xa0] sm:$0xf] }
 0x1a0   : > { %16203 = vst [vmem:[#allocation20_spill] sm:$0xff] %v13835_v61  ;;  %v10654_v35 = vcombine.low %v2257_v0, %v2267_v21  ;;  %v3197_v49 = vrot.slane %v3196_v11, 4  ;;  %v2646_v18 = vrot.slane %v2503_v41, 5  ;;  %v13839_v42 = vadd.f32 %v13697_v32, %v13695_v25  ;;  %v12630_v61 = vld [vmem:[#allocation2 + $0xa8] sm:$0xff]  }
 0x1a1   : > { %v3207_v48 = vrot.slane %v3206_v12, 4  ;;  %v2269_v10 = vshrl.u32 %v1989_v28, 16  ;;  %v2272_v14 = vshll.u32 %v1989_v28, 16  ;;  %v2278_v39 = vshll.u32 %v1990_v40, 16  ;;  %v2936_v12 = vld [vmem:[#allocation2 + $0xa4] sm:$0x1] }
 0x1a2   : > { %16204 = vst [vmem:[#allocation21_spill] sm:$0xff] %v13839_v42  ;;  %4863 = vmatmul.mubr.bf16.gmra.mrb[104].mxu0 %v10654_v35  ;;  %v3202_v54 = vsel %vm13190_vm13, %v3197_v49, %v3201_v29  ;;  %v2644_v45 = vsel %vm13205_vm14, %v10671_v20, %v2643_v4  ;;  %v2645_v25 = vrot.slane %v2643_v4, 4  ;;  %v2282_v32 = vshrl.u32 %v1990_v40, 16  ;;  %v13851_v29 = vpop.f32.mrb[19].mxu0  ;;  %v13855_v28 = vpop.f32.mrb[17].mxu1 }
 0x1a3   : > { %v3212_v62 = vsel %vm13190_vm13, %v3207_v48, %v3211_v22  ;;  %v2271_v46 = vrot.slane %v2269_v10, 4  ;;  %v2274_v0 = vrot.slane %v2272_v14, 5  ;;  %v2280_v11 = vrot.slane %v2278_v39, 5  ;;  %v2504_v14 = vld [vmem:[#allocation2 + $0x9c] sm:$0xe]  ;;  %v13857_v39 = vpop.f32.mrb[18].mxu1 }
 0x1a4   : > { %v10718_v3 = vcombine.low %v3202_v54, %v3212_v62  ;;  %v2647_v6 = vsel %vm13205_vm14, %v2645_v25, %v2646_v18  ;;  %v2284_v41 = vrot.slane %v2282_v32, 4  ;;  %v2288_v21 = vshll.u32 %v1991_v43, 16 }
 0x1a5   : > { %v3214_v22 = vshrl.u32 %v2934_v55, 16  ;;  %v10687_v35 = vcombine.low %v2644_v45, %v2647_v6  ;;  %v2275_v49 = vor.u32 %v2274_v0, %v2271_v46  ;;  %v3217_v40 = vshll.u32 %v2934_v55, 16  ;;  %v1992_v6 = vld [vmem:[#allocation2 + $0x9c] sm:$0xf] }
 0x1a6   : > { %5023 = vmatprep.mubr.bf16.mxu1 %v10718_v3  ;;  %v3223_v20 = vshll.u32 %v2935_v53, 16  ;;  %v2285_v48 = vor.u32 %v2284_v41, %v2280_v11  ;;  %v2290_v4 = vrot.slane %v2288_v21, 5  ;;  %v3227_v10 = vshrl.u32 %v2935_v53, 16  ;;  %v2506_v53 = vld [vmem:[#allocation2 + $0xa4] sm:$0x1]  ;;  %v13873_v41 = vpop.f32.mrb[19].mxu1 }
 0x1a7   : > { %5024 = vmatmul.mubr.bf16.gmra.mrb[104].mxu1 %v12627_v58  ;;  %v3216_v54 = vrot.slane %v3214_v22, 4  ;;  %4870 = vmatprep.mubr.bf16.mxu0 %v10687_v35  ;;  %v2276_v18 = vrot.slane %v2275_v49, 4  ;;  %v3219_v43 = vrot.slane %v3217_v40, 5  ;;  %v3233_v25 = vshll.u32 %v2936_v12, 16  ;;  %v2505_v58 = vld [vmem:[#allocation2 + $0xa0] sm:$0xf] }
 0x1a8   : > { %v3225_v62 = vrot.slane %v3223_v20, 5  ;;  %v2286_v32 = vrot.slane %v2285_v48, 4  ;;  %v3229_v42 = vrot.slane %v3227_v10, 4  ;;  %v13861_v45 = vadd.f32 %v13711_v38, %v13709_v2  ;;  %v1993_v35 = vld [vmem:[#allocation2 + $0xa0] sm:$0xf]  ;;  %v13877_v49 = vpop.f32.mrb[20].mxu0 }
 0x1a9   : > { %v13865_v55 = vadd.f32 %v13719_v44, %v13713_v15  ;;  %v2281_v3 = vsel %vm13190_vm13, %v2276_v18, %v2280_v11  ;;  %v3220_v46 = vor.u32 %v3219_v43, %v3216_v54  ;;  %v13871_v0 = vadd.f32 %v13725_v56, %v13717_v33  ;;  %v12628_v40 = vld [vmem:[#allocation2 + $0x9c] sm:$0xff]   ;;  %v1994_v56 = vld [vmem:[#allocation2 + $0xa4] sm:$0x1]  ;;  %v13883_v54 = vpop.f32.mrb[21].mxu0  ;;  %v2937_v18 = vld [vmem:[#allocation2 + $0xa8] sm:$0xf] }
 0x1aa   : > { %16205 = vst [vmem:[#allocation22_spill] sm:$0xff] %v13861_v45  ;;  %v2291_v2 = vsel %vm13190_vm13, %v2286_v32, %v2290_v4  ;;  %v3230_v38 = vor.u32 %v3229_v42, %v3225_v62  ;;  %v3235_v21 = vrot.slane %v3233_v25, 5  ;;  %v10672_v12 = vrot.slane %v2504_v14, 9  ;;  %v2938_v43 = vld [vmem:[#allocation2 + $0xac] sm:$0xf] }
 0x1ab   : > { %16206 = vst [vmem:[#allocation23_spill] sm:$0xff] %v13865_v55  ;;  %16207 = vst [vmem:[#allocation24_spill] sm:$0xff] %v13871_v0  ;;  %v10655_v15 = vcombine.low %v2281_v3, %v2291_v2  ;;  %v3221_v44 = vrot.slane %v3220_v46, 4  ;;  %v2650_v22 = vrot.slane %v2505_v58, 5  ;;  %v2653_v20 = vrot.slane %v2506_v53, 5  ;;  %v13891_v53 = vpop.f32.mrb[22].mxu0 }
 0x1ac   : > { %v3231_v11 = vrot.slane %v3230_v38, 4  ;;  %v13881_v33 = vadd.f32 %v13735_v50, %v13733_v8  ;;  %v2293_v48 = vshrl.u32 %v1992_v6, 16  ;;  %v2296_v14 = vshll.u32 %v1992_v6, 16  ;;  %v2939_v58 = vld [vmem:[#allocation2 + $0xb0] sm:$0x1]  ;;  %v13895_v38 = vpop.f32.mrb[20].mxu1 }
 0x1ad   : > { %4871 = vmatmul.mubr.bf16.gmra.mrb[108].mxu0 %v10655_v15  ;;  %v3226_v42 = vsel %vm13190_vm13, %v3221_v44, %v3225_v62  ;;  %v2651_v4 = vsel %vm13205_vm14, %v10672_v12, %v2650_v22  ;;  %v2652_v10 = vrot.slane %v2650_v22, 4  ;;  %v2302_v50 = vshll.u32 %v1993_v35, 16  ;;  %v13897_v6 = vpop.f32.mrb[23].mxu0  ;;  %v13899_v22 = vpop.f32.mrb[21].mxu1 }
 0x1ae   : > { %16208 = vst [vmem:[#allocation25_spill] sm:$0xff] %v13881_v33  ;;  %v3236_v25 = vsel %vm13190_vm13, %v3231_v11, %v3235_v21  ;;  %v2295_v8 = vrot.slane %v2293_v48, 4  ;;  %v2306_v32 = vshrl.u32 %v1993_v35, 16  ;;  %v2298_v46 = vrot.slane %v2296_v14, 5  ;;  %v2507_v33 = vld [vmem:[#allocation2 + $0xa8] sm:$0xe] }
 0x1af   : > { %v10719_v3 = vcombine.low %v3226_v42, %v3236_v25  ;;  %v2654_v62 = vsel %vm13205_vm14, %v2652_v10, %v2653_v20  ;;  %v2312_v2 = vshll.u32 %v1994_v56, 16  ;;  %v2304_v44 = vrot.slane %v2302_v50, 5  ;;  %v13901_v25 = vpop.f32.mrb[22].mxu1 }
 0x1b0   : > { %v10688_v15 = vcombine.low %v2651_v4, %v2654_v62  ;;  %v2308_v12 = vrot.slane %v2306_v32, 4  ;;  %v3238_v21 = vshrl.u32 %v2937_v18, 16  ;;  %v2299_v35 = vor.u32 %v2298_v46, %v2295_v8  ;;  %v13903_v4 = vpop.f32.mrb[23].mxu1 }
 0x1b1   : > { %5031 = vmatprep.mubr.bf16.mxu1 %v10719_v3  ;;  %v2314_v11 = vrot.slane %v2312_v2, 5  ;;  %v3241_v48 = vshll.u32 %v2937_v18, 16  ;;  %v3247_v42 = vshll.u32 %v2938_v43, 16  ;;  %v3251_v10 = vshrl.u32 %v2938_v43, 16  ;;  %v2508_v18 = vld [vmem:[#allocation2 + $0xac] sm:$0xf] }
 0x1b2   : > { %5032 = vmatmul.mubr.bf16.gmra.mrb[108].mxu1 %v12628_v40  ;;  %4878 = vmatprep.mubr.bf16.mxu0 %v10688_v15  ;;  %v2309_v20 = vor.u32 %v2308_v12, %v2304_v44  ;;  %v3240_v56 = vrot.slane %v3238_v21, 4  ;;  %v3257_v14 = vshll.u32 %v2939_v58, 16  ;;  %v2300_v50 = vrot.slane %v2299_v35, 4  ;;  %v13909_v3 = vpop.f32.mrb[24].mxu0  ;;  %v2509_v43 = vld [vmem:[#allocation2 + $0xb0] sm:$0x1] }
 0x1b3   : > { %v3243_v32 = vrot.slane %v3241_v48, 5  ;;  %v3249_v62 = vrot.slane %v3247_v42, 5  ;;  %v13907_v8 = vadd.f32 %v13751_v27, %v13747_v16  ;;  %v3253_v40 = vrot.slane %v3251_v10, 4  ;;  %v13915_v58 = vpop.f32.mrb[25].mxu0  ;;  %v1995_v27 = vld [vmem:[#allocation2 + $0xa8] sm:$0xf] }
 0x1b4   : > { %v2310_v46 = vrot.slane %v2309_v20, 4  ;;  %v13913_v2 = vadd.f32 %v13761_v13, %v13753_v37  ;;  %v2305_v15 = vsel %vm13190_vm13, %v2300_v50, %v2304_v44  ;;  %v13921_v16 = vadd.f32 %v13771_v31, %v13755_v51  ;;  %v1996_v21 = vld [vmem:[#allocation2 + $0xac] sm:$0xf]  ;;  %v13923_v35 = vpop.f32.mrb[26].mxu0  ;;  %v13925_v48 = vpop.f32.mrb[24].mxu1 }
 0x1b5   : > { %16209 = vst [vmem:[#allocation26_spill] sm:$0xff] %v13907_v8  ;;  %v3244_v12 = vor.u32 %v3243_v32, %v3240_v56  ;;  %v3254_v13 = vor.u32 %v3253_v40, %v3249_v62  ;;  %v3259_v42 = vrot.slane %v3257_v14, 5  ;;  %v10673_v20 = vrot.slane %v2507_v33, 9  ;;  %v13929_v10 = vpop.f32.mrb[27].mxu0  ;;  %v13931_v44 = vpop.f32.mrb[25].mxu1  ;;  %v12635_v56 = vld [vmem:[#allocation9 + $0x40] sm:$0xff]  }
 0x1b6   : > { %16210 = vst [vmem:[#allocation27_spill] sm:$0xff] %v13913_v2  ;;  %16211 = vst [vmem:[#allocation28_spill] sm:$0xff] %v13921_v16  ;;  %v2315_v37 = vsel %vm13190_vm13, %v2310_v46, %v2314_v11  ;;  %v2657_v31 = vrot.slane %v2508_v18, 5  ;;  %v2660_v32 = vrot.slane %v2509_v43, 5  ;;  %v13933_v16 = vpop.f32.mrb[26].mxu1  ;;  %v13937_v2 = vadd.f32 %v13775_v19, %v13773_v7  ;;  %11875 = vmatprep.subr.bf16.mxu1 %v12635_v56 }
 0x1b7   : > { %v10656_v50 = vcombine.low %v2305_v15, %v2315_v37  ;;  %v3245_v51 = vrot.slane %v3244_v12, 4  ;;  %v3255_v0 = vrot.slane %v3254_v13, 4  ;;  %v1997_v11 = vld [vmem:[#allocation2 + $0xb0] sm:$0x1]  ;;  %v2317_v14 = vshrl.u32 %v1995_v27, 16  ;;  %v13939_v46 = vpop.f32.mrb[27].mxu1 }
 0x1b8   : > { %16212 = vst [vmem:[#allocation29_spill] sm:$0xff] %v13937_v2  ;;  %v2320_v33 = vshll.u32 %v1995_v27, 16  ;;  %v2658_v18 = vsel %vm13205_vm14, %v10673_v20, %v2657_v31  ;;  %v2659_v43 = vrot.slane %v2657_v31, 4  ;;  %v2326_v15 = vshll.u32 %v1996_v21, 16  ;;  %v2940_v12 = vld [vmem:[#allocation2 + $0xb4] sm:$0xf] }
 0x1b9   : > { %4879 = vmatmul.mubr.bf16.gmra.mrb[112].mxu0 %v10656_v50  ;;  %v3250_v40 = vsel %vm13190_vm13, %v3245_v51, %v3249_v62  ;;  %v2941_v37 = vld [vmem:[#allocation2 + $0xb8] sm:$0xf]  ;;  %v3260_v7 = vsel %vm13190_vm13, %v3255_v0, %v3259_v42  ;;  %v2319_v19 = vrot.slane %v2317_v14, 4  ;;  %v2330_v27 = vshrl.u32 %v1996_v21, 16  ;;  %v13947_v2 = vpop.f32.mrb[28].mxu0  ;;  %v13949_v56 = vpop.f32.mrb[28].mxu1 }
 0x1ba   : > { %v2322_v13 = vrot.slane %v2320_v33, 5  ;;  %16213 = vst [vmem:[#allocation30_spill] sm:$0xff] %v13947_v2  ;;  %v12636_v50 = vld [vmem:[#allocation9] sm:$0xff]   ;;  %v10720_v8 = vcombine.low %v3250_v40, %v3260_v7  ;;  %v2661_v62 = vsel %vm13205_vm14, %v2659_v43, %v2660_v32  ;;  %v2328_v20 = vrot.slane %v2326_v15, 5  ;;  %v13953_v55 = vpop.f32.mrb[29].mxu0  ;;  %v13955_v45 = vpop.f32.mrb[29].mxu1 }
 0x1bb   : > { %v2336_v51 = vshll.u32 %v1997_v11, 16  ;;  %v2942_v31 = vld [vmem:[#allocation2 + $0xbc] sm:$0x1]  ;;  %16214 = vst [vmem:[#allocation31_spill] sm:$0xff] %v13955_v45  ;;  %v10689_v0 = vcombine.low %v2658_v18, %v2661_v62  ;;  %v2332_v14 = vrot.slane %v2330_v27, 4  ;;  %v3262_v21 = vshrl.u32 %v2940_v12, 16  ;;  %11876 = vmatpush3.bf16.msra.mxu1 %v12636_v50 }
 0x1bc   : > { %v2323_v42 = vor.u32 %v2322_v13, %v2319_v19  ;;  %v13957_v33 = vpop.f32.mrb[30].mxu0  ;;  %v13959_v2 = vpop.f32.mrb[30].mxu1  ;;  %5039 = vmatprep.mubr.bf16.mxu1 %v10720_v8  ;;  %v3265_v7 = vshll.u32 %v2940_v12, 16  ;;  %v3271_v32 = vshll.u32 %v2941_v37, 16  ;;  %v3275_v43 = vshrl.u32 %v2941_v37, 16 }
 0x1bd   : > { %16215 = vst [vmem:[#allocation32_spill] sm:$0xff] %v13959_v2  ;;  %v2338_v40 = vrot.slane %v2336_v51, 5  ;;  %v13961_v11 = vpop.f32.mrb[31].mxu0  ;;  %v13963_v15 = vpop.f32.mrb[31].mxu1  ;;  %5040 = vmatmul.mubr.bf16.gmra.mrb[112].mxu1 %v12630_v61  ;;  %4886 = vmatprep.mubr.bf16.mxu0 %v10689_v0  ;;  %v2333_v19 = vor.u32 %v2332_v14, %v2328_v20  ;;  %v3264_v13 = vrot.slane %v3262_v21, 4  ;;  %v3281_v27 = vshll.u32 %v2942_v31, 16 }
 0x1be   : > { %v2324_v18 = vrot.slane %v2323_v42, 4  ;;  %v2510_v62 = vld [vmem:[#allocation2 + $0xb4] sm:$0xe]  ;;  %v13965_v45 = vpop.f32.mrb[32].mxu0  ;;  %v3267_v2 = vrot.slane %v3265_v7, 5  ;;  %v3273_v50 = vrot.slane %v3271_v32, 5  ;;  %v13969_v12 = vadd.f32 %v13785_v63, %v13783_v59 }
 0x1bf   : > { %v3277_v8 = vrot.slane %v3275_v43, 4  ;;  %v2511_v37 = vld [vmem:[#allocation2 + $0xb8] sm:$0xf]  ;;  %v13971_v51 = vpop.f32.mrb[33].mxu0  ;;  %v2334_v0 = vrot.slane %v2333_v19, 4  ;;  %v13977_v31 = vadd.f32 %v13797_v60, %v13789_v9  ;;  %v3283_v7 = vrot.slane %v3281_v27, 5 }
 0x1c0   : > { %16216 = vst [vmem:[#allocation33_spill] sm:$0xff] %v13971_v51  ;;  %v2329_v61 = vsel %vm13190_vm13, %v2324_v18, %v2328_v20  ;;  %v2512_v42 = vld [vmem:[#allocation2 + $0xbc] sm:$0x1]  ;;  %v3268_v14 = vor.u32 %v3267_v2, %v3264_v13  ;;  %v13981_v32 = vadd.f32 %v13805_v52, %v13795_v47  ;;  %v1998_v59 = vld [vmem:[#allocation2 + $0xb4] sm:$0xf]  ;;  %v13983_v63 = vpop.f32.mrb[34].mxu0 }
 0x1c1   : > { %v3278_v21 = vor.u32 %v3277_v8, %v3273_v50  ;;  %16218 = vst [vmem:[#allocation35_spill] sm:$0xff] %v13983_v63  ;;  %v13985_v43 = vpop.f32.mrb[32].mxu1  ;;  %v2339_v20 = vsel %vm13190_vm13, %v2334_v0, %v2338_v40  ;;  %v10674_v18 = vrot.slane %v2510_v62, 9  ;;  %v2664_v19 = vrot.slane %v2511_v37, 5  ;;  %v1999_v9 = vld [vmem:[#allocation2 + $0xb8] sm:$0xf] }
 0x1c2   : > { %16217 = vst [vmem:[#allocation34_spill] sm:$0xff] %v13981_v32  ;;  %16219 = vst [vmem:[#allocation36_spill] sm:$0xff] %v13985_v43  ;;  %v13989_v60 = vpop.f32.mrb[35].mxu0  ;;  %v13991_v2 = vpop.f32.mrb[33].mxu1  ;;  %v10657_v13 = vcombine.low %v2329_v61, %v2339_v20  ;;  %v3269_v27 = vrot.slane %v3268_v14, 4  ;;  %v12631_v47 = vld [vmem:[#allocation2 + $0xb4] sm:$0xff]   ;;  %v13999_v40 = vadd.f32 %v13811_v1, %v13807_v57 }
 0x1c3   : > { %16220 = vst [vmem:[#allocation37_spill] sm:$0xff] %v13991_v2  ;;  %v3279_v8 = vrot.slane %v3278_v21, 4  ;;  %v2667_v52 = vrot.slane %v2512_v42, 5  ;;  %v2000_v32 = vld [vmem:[#allocation2 + $0xbc] sm:$0x1]  ;;  %v13993_v51 = vpop.f32.mrb[34].mxu1  ;;  %v2665_v43 = vsel %vm13205_vm14, %v10674_v18, %v2664_v19 }
 0x1c4   : > { %16221 = vst [vmem:[#allocation38_spill] sm:$0xff] %v13993_v51  ;;  %v2666_v63 = vrot.slane %v2664_v19, 4  ;;  %16222 = vst [vmem:[#allocation39_spill] sm:$0xff] %v13999_v40  ;;  %v2341_v62 = vshrl.u32 %v1998_v59, 16  ;;  %v387_v37 = vld [vmem:[#allocation2 + $0xc8] sm:$0x1]  ;;  %4887 = vmatmul.mubr.bf16.gmra.mrb[116].mxu0 %v10657_v13  ;;  %v3274_v42 = vsel %vm13190_vm13, %v3269_v27, %v3273_v50 }
 0x1c5   : > { %v14001_v0 = vpop.f32.mrb[35].mxu1  ;;  %v3284_v14 = vsel %vm13190_vm13, %v3279_v8, %v3283_v7  ;;  %v2344_v21 = vshll.u32 %v1998_v59, 16  ;;  %v2350_v20 = vshll.u32 %v1999_v9, 16  ;;  %v2943_v18 = vld [vmem:[#allocation2 + $0xc0] sm:$0xf]  ;;  %v2360_v8 = vshll.u32 %v2000_v32, 16 }
 0x1c6   : > { %16223 = vst [vmem:[#allocation40_spill] sm:$0xff] %v14001_v0  ;;  %v14003_v61 = vpop.f32.mrb[36].mxu0  ;;  %v10721_v1 = vcombine.low %v3274_v42, %v3284_v14  ;;  %v2668_v40 = vsel %vm13205_vm14, %v2666_v63, %v2667_v52  ;;  %v2343_v0 = vrot.slane %v2341_v62, 4  ;;  %v2944_v13 = vld [vmem:[#allocation2 + $0xc4] sm:$0xf]  ;;  %v388_v63 = vsel %vm13158_vm4, 0, %v387_v37 }
 0x1c7   : > { %16224 = vst [vmem:[#allocation41_spill] sm:$0xff] %v14003_v61  ;;  %v14009_v19 = vpop.f32.mrb[37].mxu0  ;;  %v2354_v61 = vshrl.u32 %v1999_v9, 16  ;;  %v10690_v27 = vcombine.low %v2665_v43, %v2668_v40  ;;  %v2346_v7 = vrot.slane %v2344_v21, 5  ;;  %v2352_v59 = vrot.slane %v2350_v20, 5 }
 0x1c8   : > { %16225 = vst [vmem:[#allocation42_spill] sm:$0xff] %v14009_v19  ;;  %v14015_v51 = vpop.f32.mrb[38].mxu0  ;;  %5047 = vmatprep.mubr.bf16.mxu1 %v10721_v1  ;;  %v3286_v52 = vshrl.u32 %v2943_v18, 16  ;;  %v3289_v9 = vshll.u32 %v2943_v18, 16  ;;  %389 = vst [vmem:[#allocation2 + $0xc8] sm:$0x1] %v388_v63 }
 0x1c9   : > { %v14011_v57 = vpop.f32.mrb[36].mxu1  ;;  %v14019_v2 = vpop.f32.mrb[39].mxu0  ;;  %v2356_v42 = vrot.slane %v2354_v61, 4  ;;  %5048 = vmatmul.mubr.bf16.gmra.mrb[116].mxu1 %v12631_v47  ;;  %4894 = vmatprep.mubr.bf16.mxu0 %v10690_v27  ;;  %v2347_v62 = vor.u32 %v2346_v7, %v2343_v0  ;;  %v3295_v43 = vshll.u32 %v2944_v13, 16  ;;  %v3299_v40 = vshrl.u32 %v2944_v13, 16 }
 0x1ca   : > { %16226 = vst [vmem:[#allocation43_spill] sm:$0xff] %v14011_v57  ;;  %v14017_v50 = vpop.f32.mrb[37].mxu1  ;;  %v2362_v57 = vrot.slane %v2360_v8, 5  ;;  %v3288_v20 = vrot.slane %v3286_v52, 4  ;;  %v14029_v61 = vadd.f32 %v13829_v5, %v13821_v26  ;;  %v14031_v1 = vld [vmem:[#allocation2 + $0xc0] sm:$0xe]  ;;  %v14037_v0 = vadd.f32 %v13851_v29, %v13841_v24 }
 0x1cb   : > { %16227 = vst [vmem:[#allocation44_spill] sm:$0xff] %v14017_v50  ;;  %v14021_v19 = vpop.f32.mrb[38].mxu1  ;;  %v2357_v32 = vor.u32 %v2356_v42, %v2352_v59  ;;  %v3291_v50 = vrot.slane %v3289_v9, 5  ;;  %v2348_v37 = vrot.slane %v2347_v62, 4  ;;  %v14033_v18 = vrot.slane %v3295_v43, 5  ;;  %v12637_v9 = vld [vmem:[#allocation9 + $0x48] sm:$0xff]  }
 0x1cc   : > { %v14025_v21 = vpop.f32.mrb[39].mxu1  ;;  %v3301_v47 = vrot.slane %v3299_v40, 4  ;;  %v14039_v13 = vld [vmem:[#allocation2 + $0xc4] sm:$0xf]  ;;  %v2001_v27 = vld [vmem:[#allocation2 + $0xc0] sm:$0xf]  ;;  %v14045_v26 = vadd.f32 %v13855_v28, %v13845_v34  ;;  %11877 = vmatprep.subr.bf16.mxu1 %v12637_v9 }
 0x1cd   : > { %v2358_v8 = vrot.slane %v2357_v32, 4  ;;  %v3292_v42 = vor.u32 %v3291_v50, %v3288_v20  ;;  %v2002_v5 = vld [vmem:[#allocation2 + $0xc4] sm:$0xf]  ;;  %v2353_v29 = vsel %vm13190_vm13, %v2348_v37, %v2352_v59  ;;  %v334_v40 = vld [vmem:[#allocation2 + $0xcc] sm:$0x1]  ;;  %v14063_v20 = vadd.f32 %v13873_v41, %v13857_v39 }
 0x1ce   : > { %16230 = vst [vmem:[#allocation45_spill] sm:$0xff] %v14045_v26  ;;  %v16233_v62 = vld [vmem:[#allocation19_spill] sm:$0xff]  ;;  %v3302_v43 = vor.u32 %v3301_v47, %v14033_v18  ;;  %v390_v26 = vld [vmem:[#allocation2 + $0xd4] sm:$0x1]  ;;  %v10675_v47 = vrot.slane %v14031_v1, 9  ;;  %v2671_v41 = vrot.slane %v14039_v13, 5 }
 0x1cf   : > { %v698_v24 = vrot.slane %v16233_v62, 4  ;;  %v12638_v34 = vld [vmem:[#allocation9 + $0x8] sm:$0xff]   ;;  %v2363_v28 = vsel %vm13190_vm13, %v2358_v8, %v2362_v57  ;;  %16236 = vst [vmem:[#allocation49_spill] sm:$0xff] %v14063_v20  ;;  %v2947_v62 = vld [vmem:[#allocation2 + $0xd0] sm:$0xf]  ;;  %v14072_v8 = vrot.slane %v3292_v42, 4 }
 0x1d0   : > { %v10658_v37 = vcombine.low %v2353_v29, %v2363_v28  ;;  %11878 = vmatpush3.bf16.msra.mxu1 %v12638_v34  ;;  %v859_v57 = vld [vmem:[#allocation2 + $0xc8] sm:$0x1]  ;;  %v14074_v39 = vrot.slane %v3302_v43, 4  ;;  %v2374_v20 = vshll.u32 %v2002_v5, 16  ;;  %v2378_v28 = vshrl.u32 %v2002_v5, 16 }
 0x1d1   : > { %v860_v9 = vsel %vm13153_vm3, %v698_v24, %v859_v57  ;;  %v335_v42 = vsel %vm13153_vm3, 0, %v334_v40  ;;  %v391_v13 = vsel %vm13158_vm4, 0, %v390_v26  ;;  %v3319_v43 = vshll.u32 %v2947_v62, 16 }
 0x1d2   : > { %4895 = vmatmul.mubr.bf16.gmra.mrb[120].mxu0 %v10658_v37  ;;  %861 = vst [vmem:[#allocation2 + $0xc8] sm:$0x1] %v860_v9  ;;  %v14081_v34 = vrot.slane %v2374_v20, 5  ;;  %336 = vst [vmem:[#allocation2 + $0xcc] sm:$0x1] %v335_v42  ;;  %v3323_v5 = vshrl.u32 %v2947_v62, 16  ;;  %v14103_v26 = vadd.f32 %v13897_v6, %v13891_v53  ;;  %v14107_v9 = vadd.f32 %v13899_v22, %v13895_v38 }
 0x1d3   : > { %392 = vst [vmem:[#allocation2 + $0xd4] sm:$0x1] %v391_v13  ;;  %v3415_v20 = vld [vmem:[#allocation2 + $0x20] sm:$0x1]  ;;  %v14099_v14 = vrot.slane %v3319_v43, 5  ;;  %v2672_v53 = vsel %vm13205_vm14, %v10675_v47, %v2671_v41  ;;  %v2673_v42 = vrot.slane %v2671_v41, 4 }
 0x1d4   : > { %16242 = vst [vmem:[#allocation54_spill] sm:$0xff] %v14107_v9  ;;  %v14122_v38 = vld [vmem:[#allocation2 + $0x28] sm:$0xf]  ;;  %v14124_v22 = vld [vmem:[#allocation2 + $0x2c] sm:$0x1]  ;;  %v3514_v47 = vrot.slane %v3415_v20, 5  ;;  %v14150_v20 = vadd.f32 %v13931_v44, %v13925_v48 }
 0x1d5   : > { %v14049_v52 = vpop.f32.mrb[40].mxu1  ;;  %v3521_v41 = vrot.slane %v14124_v22, 5  ;;  %v12633_v22 = vld [vmem:[#allocation2 + $0xc0] sm:$0xff]  }
 0x1d6   : > { %16232 = vst [vmem:[#allocation47_spill] sm:$0xff] %v14049_v52  ;;  %v14057_v50 = vpop.f32.mrb[41].mxu1  ;;  %16246 = vst [vmem:[#allocation58_spill] sm:$0xff] %v14150_v20 }
 0x1d7   : > { %v14041_v7 = vpop.f32.mrb[40].mxu0  ;;  %16235 = vst [vmem:[#allocation48_spill] sm:$0xff] %v14057_v50  ;;  %v14067_v59 = vpop.f32.mrb[42].mxu1  ;;  %v2368_v50 = vshll.u32 %v2001_v27, 16 }
 0x1d8   : > { %16229 = vst [vmem:[#allocation15_spill] sm:$0xff] %v14041_v7  ;;  %v14047_v63 = vpop.f32.mrb[41].mxu0  ;;  %16238 = vst [vmem:[#allocation51_spill] sm:$0xff] %v14067_v59  ;;  %v14070_v7 = vpop.f32.mrb[43].mxu1  ;;  %v14130_v59 = vadd.f32 %v13903_v4, %v13901_v25  ;;  %v14142_v25 = vadd.f32 %v13915_v58, %v13909_v3  ;;  %v14146_v4 = vadd.f32 %v13929_v10, %v13923_v35 }
 0x1d9   : > { %16231 = vst [vmem:[#allocation46_spill] sm:$0xff] %v14047_v63  ;;  %v14055_v32 = vpop.f32.mrb[42].mxu0  ;;  %v3413_v63 = vld [vmem:[#allocation2 + $0x18] sm:$0xe]  ;;  %16239 = vst [vmem:[#allocation52_spill] sm:$0xff] %v14070_v7  ;;  %v2370_v1 = vrot.slane %v2368_v50, 5  ;;  %v14093_v50 = vadd.f32 %v13883_v54, %v13877_v49 }
 0x1da   : > { %16234 = vst [vmem:[#allocation19_spill] sm:$0xff] %v14055_v32  ;;  %v14065_v52 = vpop.f32.mrb[43].mxu0  ;;  %v2365_v32 = vshrl.u32 %v2001_v27, 16  ;;  %v3414_v27 = vld [vmem:[#allocation2 + $0x1c] sm:$0xf]  ;;  %v10724_v62 = vrot.slane %v3413_v63, 9 }
 0x1db   : > { %16237 = vst [vmem:[#allocation50_spill] sm:$0xff] %v14065_v52  ;;  %v3511_v43 = vrot.slane %v3414_v27, 5  ;;  %16245 = vst [vmem:[#allocation57_spill] sm:$0xff] %v14130_v59  ;;  %v2945_v27 = vld [vmem:[#allocation2 + $0xc8] sm:$0x1] }
 0x1dc   : > { %v2367_v29 = vrot.slane %v2365_v32, 4  ;;  %v2380_v32 = vrot.slane %v2378_v28, 4  ;;  %v3325_v28 = vrot.slane %v3323_v5, 4  ;;  %v2948_v48 = vld [vmem:[#allocation2 + $0xd4] sm:$0x1] }
 0x1dd   : > { %v14089_v7 = vpop.f32.mrb[44].mxu1  ;;  %v14136_v5 = vsel %vm13205_vm14, %v10724_v62, %v3511_v43  ;;  %v3513_v9 = vrot.slane %v3511_v43, 4  ;;  %v14154_v62 = vadd.f32 %v13939_v46, %v13933_v16 }
 0x1de   : > { %v2371_v24 = vor.u32 %v2370_v1, %v2367_v29  ;;  %v14097_v40 = vpop.f32.mrb[45].mxu1  ;;  %v14109_v29 = vld [vmem:[#allocation2 + $0x24] sm:$0xe]  ;;  %v3298_v1 = vsel %vm13190_vm13, %v14072_v8, %v14033_v18  ;;  %v2381_v6 = vor.u32 %v2380_v32, %v14081_v34  ;;  %v3326_v8 = vor.u32 %v3325_v28, %v14099_v14  ;;  %v2946_v28 = vld [vmem:[#allocation2 + $0xcc] sm:$0xf] }
 0x1df   : > { %v14079_v52 = vpop.f32.mrb[44].mxu0  ;;  %16241 = vst [vmem:[#allocation53_spill] sm:$0xff] %v14097_v40  ;;  %v14113_v54 = vpop.f32.mrb[46].mxu1  ;;  %v10725_v32 = vrot.slane %v14109_v29, 9  ;;  %16247 = vst [vmem:[#allocation59_spill] sm:$0xff] %v14154_v62  ;;  %v3310_v10 = vshrl.u32 %v2946_v28, 16  ;;  %v3515_v16 = vsel %vm13205_vm14, %v3513_v9, %v3514_v47 }
 0x1e0   : > { %v14087_v37 = vpop.f32.mrb[45].mxu0  ;;  %16243 = vst [vmem:[#allocation55_spill] sm:$0xff] %v14113_v54  ;;  %v14126_v63 = vpop.f32.mrb[47].mxu1  ;;  %v2372_v13 = vrot.slane %v2371_v24, 4  ;;  %v2382_v18 = vrot.slane %v2381_v6, 4  ;;  %v3305_v6 = vshll.u32 %v2945_v27, 16 }
 0x1e1   : > { %v14095_v57 = vpop.f32.mrb[46].mxu0  ;;  %16244 = vst [vmem:[#allocation56_spill] sm:$0xff] %v14126_v63  ;;  %v3518_v63 = vrot.slane %v14122_v38, 5  ;;  %v2515_v24 = vld [vmem:[#allocation2 + $0xc8] sm:$0x1]  ;;  %v14161_v38 = vrot.slane %v3326_v8, 4 }
 0x1e2   : > { %v14111_v49 = vpop.f32.mrb[47].mxu0  ;;  %v2003_v54 = vld [vmem:[#allocation2 + $0xc8] sm:$0x1]  ;;  %v14159_v29 = vld [vmem:[%s16156_s2] ss:$0 sm:$0xff]  ;;  %v2674_v3 = vrot.slane %v2515_v24, 5  ;;  %v2377_v35 = vsel %vm13190_vm13, %v2372_v13, %v14081_v34  ;;  %v10740_v34 = vcombine.low %v14136_v5, %v3515_v16 }
 0x1e3   : > { %v2384_v58 = vshll.u32 %v2003_v54, 16  ;;  %v3313_v44 = vshll.u32 %v2946_v28, 16  ;;  %v3307_v46 = vrot.slane %v3305_v6, 5  ;;  %v3329_v54 = vshll.u32 %v2948_v48, 16  ;;  %v3419_v24 = vld [vmem:[#allocation2 + $0x30] sm:$0xe] }
 0x1e4   : > { %v2675_v43 = vsel %vm13205_vm14, %v2673_v42, %v2674_v3  ;;  %v3312_v20 = vrot.slane %v3310_v10, 4  ;;  %v3420_v13 = vld [vmem:[#allocation2 + $0x34] sm:$0xf]  ;;  %v3520_v6 = vrot.slane %v3518_v63, 4  ;;  %v3421_v3 = vld [vmem:[#allocation2 + $0x38] sm:$0x1]  ;;  %v14188_v5 = vadd.f32 %v13819_v36, %v14159_v29 }
 0x1e5   : > { %v2386_v27 = vrot.slane %v2384_v58, 5  ;;  %v10691_v62 = vcombine.low %v2672_v53, %v2675_v43  ;;  %v3315_v59 = vrot.slane %v3313_v44, 5  ;;  %v3308_v9 = vsel %vm13190_vm13, %v14074_v39, %v3307_v46  ;;  %v3422_v16 = vld [vmem:[#allocation2 + $0x3c] sm:$0xe]  ;;  %v3423_v39 = vld [vmem:[#allocation2 + $0x40] sm:$0xf] }
 0x1e6   : > { %v3331_v47 = vrot.slane %v3329_v54, 5  ;;  %v10722_v48 = vcombine.low %v3298_v1, %v3308_v9  ;;  %v14196_v43 = vadd.f32 %v13827_v23, %v14159_v29  ;;  %v3519_v36 = vsel %vm13205_vm14, %v10725_v32, %v3518_v63  ;;  %v3425_v9 = vld [vmem:[#allocation2 + $0x48] sm:$0xe]  ;;  %v16251_v63 = vld [vmem:[#allocation23_spill] sm:$0xff] }
 0x1e7   : > { %v14170_v8 = vpop.f32.mrb[48].mxu0  ;;  %v14175_v40 = vpop.f32.mrb[48].mxu1  ;;  %v2387_v42 = vsel %vm13190_vm13, %v2382_v18, %v2386_v27  ;;  %4902 = vmatprep.mubr.bf16.mxu0 %v10691_v62  ;;  %v3316_v44 = vor.u32 %v3315_v59, %v3312_v20  ;;  %v10726_v1 = vrot.slane %v3419_v24, 9  ;;  %v3424_v62 = vld [vmem:[#allocation2 + $0x44] sm:$0x1]  ;;  %v3525_v54 = vrot.slane %v3420_v13, 5 }
 0x1e8   : > { %v14173_v28 = vpop.f32.mrb[49].mxu0  ;;  %v14184_v58 = vpop.f32.mrb[49].mxu1  ;;  %v10659_v10 = vcombine.low %v2377_v35, %v2387_v42  ;;  %16248 = vst [vmem:[#allocation60_spill] sm:$0xff] %v14196_v43  ;;  %v3332_v27 = vsel %vm13190_vm13, %v14161_v38, %v3331_v47  ;;  %5055 = vmatprep.mubr.bf16.mxu1 %v10722_v48  ;;  %v3522_v35 = vsel %vm13205_vm14, %v3520_v6, %v3521_v41  ;;  %v3528_v23 = vrot.slane %v3421_v3, 5  ;;  %v3426_v42 = vld [vmem:[#allocation2 + $0x4c] sm:$0xf] }
 0x1e9   : > { %v14182_v53 = vpop.f32.mrb[50].mxu0  ;;  %v14192_v18 = vpop.f32.mrb[50].mxu1  ;;  %v3317_v20 = vrot.slane %v3316_v44, 4  ;;  %v12639_v43 = vld [vmem:[#allocation9 + $0x50] sm:$0xff]   ;;  %v16249_v38 = vld [vmem:[#allocation22_spill] sm:$0xff]  ;;  %v14213_v32 = vadd.f32 %v16251_v63, %v14159_v29  ;;  %5056 = vmatmul.mubr.bf16.gmra.mrb[120].mxu1 %v12633_v22  ;;  %v3532_v24 = vrot.slane %v3423_v39, 5  ;;  %v3526_v44 = vsel %vm13205_vm14, %v10726_v1, %v3525_v54 }
 0x1ea   : > { %v14190_v46 = vpop.f32.mrb[51].mxu0  ;;  %v14203_v59 = vpop.f32.mrb[51].mxu1  ;;  %4903 = vmatmul.mubr.bf16.gmra.mrb[124].mxu0 %v10659_v10  ;;  %v14209_v47 = vadd.f32 %v16249_v38, %v14159_v29  ;;  %v16253_v48 = vld [vmem:[#allocation30_spill] sm:$0xff]  ;;  %v3427_v41 = vld [vmem:[#allocation2 + $0x50] sm:$0x1]  ;;  %v12640_v6 = vld [vmem:[#allocation9 + $0x10] sm:$0xff]   ;;  %v14228_v22 = vadd.f32 %v13961_v11, %v13957_v33  ;;  %11879 = vmatprep.subr.bf16.mxu1 %v12639_v43 }
 0x1eb   : > { %16252 = vst [vmem:[#allocation23_spill] sm:$0xff] %v14213_v32  ;;  %12363 = vmatprep.mubr.bf16.mxu0 %v10740_v34  ;;  %v14217_v10 = vadd.f32 %v13953_v55, %v16253_v48  ;;  %v14219_v13 = vld [vmem:[#allocation2 + $0x58] sm:$0xf]  ;;  %v3322_v3 = vsel %vm13190_vm13, %v3317_v20, %v14099_v14  ;;  %v3527_v38 = vrot.slane %v3525_v54, 4  ;;  %v12634_v63 = vld [vmem:[#allocation2 + $0xcc] sm:$0xff]   ;;  %v10741_v48 = vcombine.low %v3519_v36, %v3522_v35  ;;  %v16255_v33 = vld [vmem:[#allocation31_spill] sm:$0xff] }
 0x1ec   : > { %16250 = vst [vmem:[#allocation22_spill] sm:$0xff] %v14209_v47  ;;  %v16254_v55 = vld [vmem:[#allocation26_spill] sm:$0xff]  ;;  %v10723_v39 = vcombine.low %v3322_v3, %v3332_v27  ;;  %v10727_v32 = vrot.slane %v3422_v16, 9  ;;  %v14234_v47 = vld [vmem:[#allocation2 + $0x54] sm:$0xe]  ;;  %11880 = vmatpush3.bf16.msra.mxu1 %v12640_v6  ;;  %v3534_v1 = vrot.slane %v3532_v24, 4  ;;  %v14240_v11 = vadd.f32 %v16255_v33, %v13949_v56 }
 0x1ed   : > { %v14232_v34 = vadd.f32 %v16254_v55, %v14159_v29  ;;  %v3529_v14 = vsel %vm13205_vm14, %v3527_v38, %v3528_v23  ;;  %v3535_v20 = vrot.slane %v3424_v62, 5  ;;  %v14242_v43 = vld [vmem:[#allocation2 + $0x5c] sm:$0x1]  ;;  %v14244_v54 = vld [vmem:[#allocation2 + $0x64] sm:$0xf]  ;;  %v10728_v35 = vrot.slane %v3425_v9, 9 }
 0x1ee   : > { %16256 = vst [vmem:[#allocation30_spill] sm:$0xff] %v14240_v11  ;;  %v16257_v27 = vld [vmem:[#allocation27_spill] sm:$0xff]  ;;  %5063 = vmatprep.mubr.bf16.mxu1 %v10723_v39  ;;  %v10742_v16 = vcombine.low %v3526_v44, %v3529_v14  ;;  %v3539_v6 = vrot.slane %v3426_v42, 5  ;;  %v14252_v23 = vadd.f32 %v13969_v12, %v14159_v29  ;;  %v3542_v62 = vrot.slane %v3427_v41, 5  ;;  %v16258_v3 = vld [vmem:[#allocation32_spill] sm:$0xff]  ;;  %v16260_v44 = vld [vmem:[#allocation33_spill] sm:$0xff] }
 0x1ef   : > { %v14248_v36 = vadd.f32 %v16257_v27, %v14159_v29  ;;  %v14256_v56 = vadd.f32 %v13963_v15, %v16258_v3  ;;  %v3546_v38 = vrot.slane %v14219_v13, 5  ;;  %v3431_v55 = vld [vmem:[#allocation2 + $0x60] sm:$0xe]  ;;  %v14261_v33 = vadd.f32 %v13977_v31, %v14159_v29  ;;  %v3433_v39 = vld [vmem:[#allocation2 + $0x68] sm:$0x1]  ;;  %v16263_v3 = vld [vmem:[#allocation37_spill] sm:$0xff] }
 0x1f0   : > { %v3533_v9 = vsel %vm13205_vm14, %v10727_v32, %v3532_v24  ;;  %v3541_v42 = vrot.slane %v3539_v6, 4  ;;  %v11469_v12 = vadd.f32 %v16260_v44, %v13965_v45  ;;  %v14267_v41 = vld [vmem:[#allocation2 + $0x70] sm:$0xf]  ;;  %v3536_v15 = vsel %vm13205_vm14, %v3534_v1, %v3535_v20  ;;  %v16261_v14 = vld [vmem:[#allocation35_spill] sm:$0xff]  ;;  %v16262_v27 = vld [vmem:[#allocation36_spill] sm:$0xff] }
 0x1f1   : > { %16259 = vst [vmem:[#allocation26_spill] sm:$0xff] %v14256_v56  ;;  %v10729_v13 = vrot.slane %v14234_v47, 9  ;;  %v11472_v31 = vadd.f32 %v13989_v60, %v16261_v14  ;;  %v11581_v17 = vadd.f32 %v16263_v3, %v16262_v27  ;;  %v14278_v32 = vadd.f32 %v14029_v61, %v14159_v29  ;;  %5064 = vmatmul.mubr.bf16.gmra.mrb[124].mxu1 %v12634_v63  ;;  %v14288_v44 = vld [vmem:[#allocation2 + $0x7c] sm:$0xf]  ;;  %v16268_v14 = vld [vmem:[#allocation40_spill] sm:$0xff] }
 0x1f2   : > { %12364 = vmatmul.mubr.bf16.vlgmr.msra.gmra.mrb[128].mxu0 %v10741_v48  ;;  %v3549_v45 = vrot.slane %v14242_v43, 5  ;;  %v4527_v24 = vadd.f32 %v11469_v12, %v14159_v29  ;;  %v3553_v48 = vrot.slane %v14244_v54, 5  ;;  %v3540_v47 = vsel %vm13205_vm14, %v10728_v35, %v3539_v6  ;;  %v3434_v12 = vld [vmem:[#allocation2 + $0x6c] sm:$0xe]  ;;  %v3436_v27 = vld [vmem:[#allocation2 + $0x74] sm:$0x1] }
 0x1f3   : > { %16264 = vst [vmem:[#allocation31_spill] sm:$0xff] %v14278_v32  ;;  %12367 = vmatprep.mubr.bf16.mxu0 %v10742_v16  ;;  %v3543_v60 = vsel %vm13205_vm14, %v3541_v42, %v3542_v62  ;;  %v3548_v1 = vrot.slane %v3546_v38, 4  ;;  %v4530_v20 = vadd.f32 %v11472_v31, %v14159_v29  ;;  %v14294_v63 = vadd.f32 %v14037_v0, %v14159_v29  ;;  %v16267_v42 = vld [vmem:[#allocation38_spill] sm:$0xff]  ;;  %v16269_v0 = vld [vmem:[#allocation41_spill] sm:$0xff] }
 0x1f4   : > { %v10743_v43 = vcombine.low %v3533_v9, %v3536_v15  ;;  %v14296_v16 = vadd.f32 %v11581_v17, %v4527_v24  ;;  %v10730_v54 = vrot.slane %v3431_v55, 9  ;;  %v3555_v6 = vrot.slane %v3553_v48, 4  ;;  %v16271_v55 = vld [vmem:[#allocation43_spill] sm:$0xff]  ;;  %v16272_v15 = vld [vmem:[#allocation44_spill] sm:$0xff] }
 0x1f5   : > { %16265 = vst [vmem:[#allocation27_spill] sm:$0xff] %v14294_v63  ;;  %v3556_v62 = vrot.slane %v3433_v39, 5  ;;  %v11584_v31 = vadd.f32 %v16268_v14, %v16267_v42  ;;  %v3560_v3 = vrot.slane %v14267_v41, 5  ;;  %v10744_v11 = vcombine.low %v3540_v47, %v3543_v60  ;;  %v16270_v63 = vld [vmem:[#allocation42_spill] sm:$0xff]  ;;  %v3439_v14 = vld [vmem:[#allocation2 + $0x80] sm:$0x1] }
 0x1f6   : > { %v14290_v61 = vpop.f32.mrb[52].mxu1  ;;  %16266 = vst [vmem:[#allocation32_spill] sm:$0xff] %v14296_v16  ;;  %v11475_v9 = vadd.f32 %v16270_v63, %v16269_v0  ;;  %v11478_v17 = vadd.f32 %v14019_v2, %v14015_v51  ;;  %v11587_v24 = vadd.f32 %v16272_v15, %v16271_v55  ;;  %v3437_v16 = vld [vmem:[#allocation2 + $0x78] sm:$0xe]  ;;  %v14317_v41 = vadd.f32 %v14093_v50, %v14159_v29 }
 0x1f7   : > { %v14298_v35 = vpop.f32.mrb[53].mxu1  ;;  %v14321_v47 = vadd.f32 %v14103_v26, %v14159_v29  ;;  %v14325_v60 = vadd.f32 %v14142_v25, %v14159_v29  ;;  %v14327_v51 = vadd.f32 %v11584_v31, %v4530_v20  ;;  %v3547_v63 = vsel %vm13205_vm14, %v10729_v13, %v3546_v38  ;;  %v14344_v13 = vld [vmem:[#allocation2 + $0x88] sm:$0xf] }
 0x1f8   : > { %v14303_v56 = vpop.f32.mrb[54].mxu1  ;;  %v14311_v39 = vpop.f32.mrb[52].mxu0  ;;  %16273 = vst [vmem:[#allocation33_spill] sm:$0xff] %v14317_v41  ;;  %v4535_v42 = vadd.f32 %v11475_v9, %v14159_v29  ;;  %v4538_v50 = vadd.f32 %v11478_v17, %v14159_v29  ;;  %v3567_v0 = vrot.slane %v14288_v44, 5  ;;  %v3550_v25 = vsel %vm13205_vm14, %v3548_v1, %v3549_v45  ;;  %v14352_v45 = vld [vmem:[#allocation2 + $0x84] sm:$0xe] }
 0x1f9   : > { %v14313_v32 = vpop.f32.mrb[55].mxu1  ;;  %16274 = vst [vmem:[#allocation35_spill] sm:$0xff] %v14321_v47  ;;  %16275 = vst [vmem:[#allocation36_spill] sm:$0xff] %v14325_v60  ;;  %v14329_v2 = vpop.f32.mrb[53].mxu0  ;;  %v3554_v20 = vsel %vm13205_vm14, %v10730_v54, %v3553_v48  ;;  %v10731_v31 = vrot.slane %v3434_v12, 9  ;;  %v11590_v38 = vadd.f32 %v14025_v21, %v14021_v19  ;;  %v3557_v44 = vsel %vm13205_vm14, %v3555_v6, %v3556_v62  ;;  %v16279_v19 = vld [vmem:[#allocation15_spill] sm:$0xff] }
 0x1fa   : > { %16276 = vst [vmem:[#allocation37_spill] sm:$0xff] %v14327_v51  ;;  %v14336_v26 = vpop.f32.mrb[54].mxu0  ;;  %12368 = vmatmul.mubr.bf16.gmra.mrb[132].mxu0 %v10743_v43  ;;  %v3562_v17 = vrot.slane %v3560_v3, 4  ;;  %v3563_v43 = vrot.slane %v3436_v27, 5  ;;  %v14350_v55 = vadd.f32 %v11587_v24, %v4535_v42  ;;  %v14354_v1 = vld [vmem:[#allocation2 + $0x8c] sm:$0x1] }
 0x1fb   : > { %v14346_v9 = vpop.f32.mrb[55].mxu0  ;;  %12371 = vmatprep.mubr.bf16.mxu0 %v10744_v11  ;;  %v10732_v48 = vrot.slane %v3437_v16, 9  ;;  %v3570_v54 = vrot.slane %v3439_v14, 5  ;;  %v14356_v12 = vadd.f32 %v11590_v38, %v4538_v50  ;;  %v16280_v21 = vld [vmem:[#allocation46_spill] sm:$0xff]  ;;  %v12641_v51 = vld [vmem:[#allocation9 + $0x58] sm:$0xff]   ;;  %v3569_v60 = vrot.slane %v3567_v0, 4 }
 0x1fc   : > { %16277 = vst [vmem:[#allocation38_spill] sm:$0xff] %v14350_v55  ;;  %v11481_v15 = vadd.f32 %v16280_v21, %v16279_v19  ;;  %v12642_v11 = vld [vmem:[#allocation9 + $0x18] sm:$0xff]   ;;  %v3574_v6 = vrot.slane %v14344_v13, 5  ;;  %v16281_v62 = vld [vmem:[#allocation19_spill] sm:$0xff]  ;;  %v16282_v27 = vld [vmem:[#allocation50_spill] sm:$0xff]  ;;  %v14369_v16 = vadd.f32 %v14146_v4, %v14159_v29  ;;  %v14373_v50 = vadd.f32 %v14217_v10, %v14159_v29  ;;  %11881 = vmatprep.subr.bf16.mxu1 %v12641_v51 }
 0x1fd   : > { %16278 = vst [vmem:[#allocation40_spill] sm:$0xff] %v14356_v12  ;;  %v11484_v24 = vadd.f32 %v16282_v27, %v16281_v62  ;;  %v16283_v42 = vld [vmem:[#allocation47_spill] sm:$0xff]  ;;  %v16284_v55 = vld [vmem:[#allocation48_spill] sm:$0xff]  ;;  %v14365_v41 = vld [vmem:[#allocation2 + $0x94] sm:$0xf]  ;;  %v10745_v14 = vcombine.low %v3547_v63, %v3550_v25  ;;  %v14384_v62 = vsel %vm13205_vm14, %v10731_v31, %v3560_v3  ;;  %11882 = vmatpush3.bf16.msra.mxu1 %v12642_v11  ;;  %v3577_v51 = vrot.slane %v14354_v1, 5 }
 0x1fe   : > { %v11593_v47 = vadd.f32 %v16284_v55, %v16283_v42  ;;  %16285 = vst [vmem:[#allocation41_spill] sm:$0xff] %v14373_v50  ;;  %v4543_v38 = vadd.f32 %v11481_v15, %v14159_v29  ;;  %v14376_v13 = vld [vmem:[#allocation2 + $0x90] sm:$0xe]  ;;  %v14378_v19 = vld [vmem:[#allocation2 + $0x98] sm:$0x1]  ;;  %v10746_v55 = vcombine.low %v3554_v20, %v3557_v44  ;;  %v16286_v27 = vld [vmem:[#allocation51_spill] sm:$0xff]  ;;  %v3564_v25 = vsel %vm13205_vm14, %v3562_v17, %v3563_v43 }
 0x1ff   : > { %v14380_v21 = vld [vmem:[#allocation2 + $0xa0] sm:$0xf]  ;;  %v4546_v4 = vadd.f32 %v11484_v24, %v14159_v29  ;;  %v16287_v10 = vld [vmem:[#allocation52_spill] sm:$0xff]  ;;  %v10733_v15 = vrot.slane %v14352_v45, 9  ;;  %v3446_v44 = vld [vmem:[#allocation2 + $0x9c] sm:$0xe]  ;;  %v3568_v31 = vsel %vm13205_vm14, %v10732_v48, %v3567_v0  ;;  %v3571_v24 = vsel %vm13205_vm14, %v3569_v60, %v3570_v54 }
 0x200   : > { %v11596_v42 = vadd.f32 %v16287_v10, %v16286_v27  ;;  %v14389_v63 = vld [vmem:[#allocation2 + $0xac] sm:$0xf]  ;;  %v14395_v20 = vadd.f32 %v11593_v47, %v4543_v38  ;;  %v14397_v3 = vpop.f32.mrb[56].mxu1  ;;  %v3576_v27 = vrot.slane %v3574_v6, 4  ;;  %v14409_v17 = vadd.f32 %v14228_v22, %v14159_v29  ;;  %v3448_v43 = vld [vmem:[#allocation2 + $0xa4] sm:$0x1] }
 0x201   : > { %v14405_v10 = vpop.f32.mrb[57].mxu1  ;;  %v3581_v47 = vrot.slane %v14365_v41, 5  ;;  %v3588_v45 = vrot.slane %v14380_v21, 5  ;;  %v11487_v0 = vadd.f32 %v14087_v37, %v14079_v52  ;;  %v3449_v1 = vld [vmem:[#allocation2 + $0xa8] sm:$0xe]  ;;  %v14415_v60 = vpop.f32.mrb[56].mxu0  ;;  %v10747_v52 = vcombine.low %v14384_v62, %v3564_v25 }
 0x202   : > { %16288 = vst [vmem:[#allocation42_spill] sm:$0xff] %v14395_v20  ;;  %v14403_v11 = vadd.f32 %v11596_v42, %v4546_v4  ;;  %16290 = vst [vmem:[#allocation44_spill] sm:$0xff] %v14409_v17  ;;  %12372 = vmatmul.mubr.bf16.gmra.mrb[136].mxu0 %v10745_v14  ;;  %v14417_v48 = vpop.f32.mrb[58].mxu1  ;;  %v10734_v54 = vrot.slane %v14376_v13, 9  ;;  %v3584_v22 = vrot.slane %v14378_v19, 5  ;;  %v11490_v14 = vadd.f32 %v14111_v49, %v14095_v57  ;;  %v16291_v41 = vld [vmem:[#allocation53_spill] sm:$0xff] }
 0x203   : > { %12375 = vmatprep.mubr.bf16.mxu0 %v10746_v55  ;;  %v11599_v38 = vadd.f32 %v16291_v41, %v14089_v7  ;;  %v3451_v21 = vld [vmem:[#allocation2 + $0xb0] sm:$0x1]  ;;  %v11504_v4 = vpop.f32.mrb[57].mxu0  ;;  %v14425_v42 = vpop.f32.mrb[59].mxu1  ;;  %v10748_v37 = vcombine.low %v3568_v31, %v3571_v24  ;;  %v3595_v55 = vrot.slane %v14389_v63, 5  ;;  %v14434_v57 = vsel %vm13205_vm14, %v10733_v15, %v3574_v6  ;;  %v16292_v41 = vld [vmem:[#allocation55_spill] sm:$0xff] }
 0x204   : > { %16289 = vst [vmem:[#allocation43_spill] sm:$0xff] %v14403_v11  ;;  %v4551_v11 = vadd.f32 %v11487_v0, %v14159_v29  ;;  %v14430_v13 = vld [vmem:[#allocation2 + $0xb8] sm:$0xf]  ;;  %v11506_v19 = vpop.f32.mrb[58].mxu0  ;;  %v10735_v49 = vrot.slane %v3446_v44, 9  ;;  %v4554_v7 = vadd.f32 %v11490_v14, %v14159_v29  ;;  %v16293_v20 = vld [vmem:[#allocation56_spill] sm:$0xff]  ;;  %v3578_v62 = vsel %vm13205_vm14, %v3576_v27, %v3577_v51 }
 0x205   : > { %v11602_v12 = vadd.f32 %v16293_v20, %v16292_v41  ;;  %v11507_v17 = vpop.f32.mrb[59].mxu0  ;;  %v3583_v25 = vrot.slane %v3581_v47, 4  ;;  %v3590_v31 = vrot.slane %v3588_v45, 4  ;;  %v14443_v24 = vld [vmem:[#allocation2 + $0xb4] sm:$0xe]  ;;  %v3591_v0 = vrot.slane %v3448_v43, 5 }
 0x206   : > { %v14441_v63 = vadd.f32 %v11599_v38, %v4551_v11  ;;  %v10736_v50 = vrot.slane %v3449_v1, 9  ;;  %v14447_v15 = vld [vmem:[#allocation2 + $0xbc] sm:$0x1]  ;;  %v11493_v44 = vadd.f32 %v14173_v28, %v14170_v8  ;;  %v14451_v20 = vld [vmem:[#allocation2 + $0xc4] sm:$0xf]  ;;  %v3597_v14 = vrot.slane %v3595_v55, 4 }
 0x207   : > { %v14445_v6 = vadd.f32 %v11602_v12, %v4554_v7  ;;  %v3598_v41 = vrot.slane %v3451_v21, 5  ;;  %v11496_v51 = vadd.f32 %v14190_v46, %v14182_v53  ;;  %v11605_v27 = vadd.f32 %v14184_v58, %v14175_v40  ;;  %v14457_v11 = vld [vmem:[#allocation2 + $0xc0] sm:$0xe]  ;;  %v14471_v58 = vld [vmem:[#allocation2 + $0xc8] sm:$0x1] }
 0x208   : > { %v10749_v12 = vcombine.low %v14434_v57, %v3578_v62  ;;  %v3582_v43 = vsel %vm13205_vm14, %v10734_v54, %v3581_v47  ;;  %v3602_v1 = vrot.slane %v14430_v13, 5  ;;  %v4559_v8 = vadd.f32 %v11493_v44, %v14159_v29 }
 0x209   : > { %v3585_v28 = vsel %vm13205_vm14, %v3583_v25, %v3584_v22  ;;  %v14468_v53 = vsel %vm13205_vm14, %v10735_v49, %v3588_v45  ;;  %v4562_v40 = vadd.f32 %v11496_v51, %v14159_v29  ;;  %v11608_v46 = vadd.f32 %v14203_v59, %v14192_v18 }
 0x20a   : > { %12376 = vmatmul.mubr.bf16.gmra.mrb[140].mxu0 %v10747_v52  ;;  %v14477_v47 = vsel %vm13205_vm14, %v3590_v31, %v3591_v0  ;;  %v14481_v54 = vsel %vm13205_vm14, %v10736_v50, %v3595_v55  ;;  %v10737_v22 = vrot.slane %v14443_v24, 9  ;;  %v14484_v45 = vadd.f32 %v11605_v27, %v4559_v8 }
 0x20b   : > { %12379 = vmatprep.mubr.bf16.mxu0 %v10748_v37  ;;  %v14488_v38 = vsel %vm13205_vm14, %v3597_v14, %v3598_v41  ;;  %v3605_v21 = vrot.slane %v14447_v15, 5  ;;  %v3609_v18 = vrot.slane %v14451_v20, 5  ;;  %v14492_v59 = vadd.f32 %v11608_v46, %v4562_v40  ;;  %v11509_v27 = vpop.f32.mrb[60].mxu0  ;;  %v16298_v46 = vld [vmem:[#allocation24_spill] sm:$0xff] }
 0x20c   : > { %v10750_v52 = vcombine.low %v3582_v43, %v3585_v28  ;;  %v14496_v37 = vrot.slane %v3602_v1, 4  ;;  %v10738_v50 = vrot.slane %v14457_v11, 9  ;;  %v11499_v55 = vadd.f32 %v14329_v2, %v14311_v39  ;;  %v11621_v2 = vpop.f32.mrb[60].mxu1  ;;  %v16296_v43 = vld [vmem:[#allocation21_spill] sm:$0xff]  ;;  %v12643_v28 = vld [vmem:[#allocation9 + $0x60] sm:$0xff]  }
 0x20d   : > { %v10751_v57 = vcombine.low %v14468_v53, %v14477_v47  ;;  %v11502_v49 = vadd.f32 %v14346_v9, %v14336_v26  ;;  %v11611_v7 = vadd.f32 %v14298_v35, %v14290_v61  ;;  %v11614_v62 = vadd.f32 %v14313_v32, %v14303_v56  ;;  %v11622_v56 = vpop.f32.mrb[61].mxu1  ;;  %v12644_v53 = vld [vmem:[#allocation9 + $0x20] sm:$0xff]   ;;  %11883 = vmatprep.subr.bf16.mxu1 %v12643_v28 }
 0x20e   : > { %v10752_v25 = vcombine.low %v14481_v54, %v14488_v38  ;;  %v3612_v31 = vrot.slane %v14471_v58, 5  ;;  %v4567_v0 = vadd.f32 %v11499_v55, %v14159_v29  ;;  %v11505_v39 = vadd.f32 %v11504_v4, %v14415_v60  ;;  %v11624_v60 = vpop.f32.mrb[62].mxu1  ;;  %v16299_v54 = vld [vmem:[#allocation23_spill] sm:$0xff]  ;;  %v16300_v38 = vld [vmem:[#allocation25_spill] sm:$0xff]  ;;  %11884 = vmatpush3.bf16.msra.mxu1 %v12644_v53 }
 0x20f   : > { %v3611_v44 = vrot.slane %v3609_v18, 4  ;;  %v4570_v26 = vadd.f32 %v11502_v49, %v14159_v29  ;;  %v11508_v9 = vadd.f32 %v11507_v17, %v11506_v19  ;;  %v11617_v61 = vadd.f32 %v14405_v10, %v14397_v3  ;;  %v11625_v17 = vpop.f32.mrb[63].mxu1  ;;  %v16294_v19 = vld [vmem:[#allocation20_spill] sm:$0xff]  ;;  %v16316_v53 = vld [vmem:[#allocation41_spill] sm:$0xff] }
 0x210   : > { %v14519_v32 = vadd.f32 %v11611_v7, %v4567_v0  ;;  %v4575_v35 = vadd.f32 %v11505_v39, %v14159_v29  ;;  %v11620_v14 = vadd.f32 %v14425_v42, %v14417_v48  ;;  %v11623_v41 = vadd.f32 %v11622_v56, %v11621_v2  ;;  %v16295_v10 = vld [vmem:[#allocation60_spill] sm:$0xff]  ;;  %v11510_v48 = vpop.f32.mrb[61].mxu0  ;;  %v3459_v2 = vld [vmem:[#allocation2 + $0xd0] sm:$0xf]  ;;  %v16304_v56 = vld [vmem:[#allocation39_spill] sm:$0xff] }
 0x211   : > { %v14524_v4 = vadd.f32 %v11614_v62, %v4570_v26  ;;  %v4578_v51 = vadd.f32 %v11508_v9, %v14159_v29  ;;  %v4624_v3 = vadd.f32 %v16294_v19, %v14188_v5  ;;  %v4627_v8 = vadd.f32 %v16296_v43, %v16295_v10  ;;  %v11512_v7 = vpop.f32.mrb[62].mxu0  ;;  %v16301_v62 = vld [vmem:[#allocation28_spill] sm:$0xff]  ;;  %v16303_v9 = vld [vmem:[#allocation34_spill] sm:$0xff]  ;;  %v16309_v43 = vld [vmem:[#allocation33_spill] sm:$0xff] }
 0x212   : > { %12380 = vmatmul.mubr.bf16.gmra.mrb[144].mxu0 %v10749_v12  ;;  %v14531_v40 = vadd.f32 %v11617_v61, %v4575_v35  ;;  %v11626_v42 = vadd.f32 %v11625_v17, %v11624_v60  ;;  %v16297_v12 = vld [vmem:[#allocation22_spill] sm:$0xff]  ;;  %v14539_v55 = vadd.f32 %v16300_v38, %v16299_v54  ;;  %v11511_v5 = vadd.f32 %v11510_v48, %v11509_v27  ;;  %v11513_v26 = vpop.f32.mrb[63].mxu0  ;;  %v16306_v60 = vld [vmem:[#allocation45_spill] sm:$0xff]  ;;  %v16311_v48 = vld [vmem:[#allocation35_spill] sm:$0xff] }
 0x213   : > { %12383 = vmatprep.mubr.bf16.mxu0 %v10750_v52  ;;  %v14535_v47 = vadd.f32 %v16298_v46, %v16297_v12  ;;  %v14541_v49 = vadd.f32 %v11620_v14, %v4578_v51  ;;  %v14545_v0 = vadd.f32 %v16301_v62, %v14232_v34  ;;  %v16302_v52 = vld [vmem:[#allocation29_spill] sm:$0xff]  ;;  %v14553_v61 = vadd.f32 %v16303_v9, %v14252_v23  ;;  %v16305_v14 = vld [vmem:[#allocation31_spill] sm:$0xff]  ;;  %v16310_v23 = vld [vmem:[#allocation54_spill] sm:$0xff] }
 0x214   : > { %v14549_v39 = vadd.f32 %v16302_v52, %v14248_v36  ;;  %v14557_v35 = vadd.f32 %v16304_v56, %v14261_v33  ;;  %v14561_v51 = vadd.f32 %v16306_v60, %v16305_v14  ;;  %v16307_v34 = vld [vmem:[#allocation27_spill] sm:$0xff]  ;;  %v16308_v27 = vld [vmem:[#allocation49_spill] sm:$0xff]  ;;  %v3458_v36 = vld [vmem:[#allocation2 + $0xcc] sm:$0xe]  ;;  %v4583_v19 = vadd.f32 %v11511_v5, %v14159_v29 }
 0x215   : > { %v14565_v17 = vadd.f32 %v16308_v27, %v16307_v34  ;;  %v11514_v10 = vadd.f32 %v11513_v26, %v11512_v7  ;;  %v14570_v28 = vadd.f32 %v16310_v23, %v16309_v43  ;;  %v16312_v33 = vld [vmem:[#allocation57_spill] sm:$0xff]  ;;  %v16313_v46 = vld [vmem:[#allocation36_spill] sm:$0xff]  ;;  %v16314_v54 = vld [vmem:[#allocation58_spill] sm:$0xff]  ;;  %v3606_v34 = vsel %vm13205_vm14, %v14496_v37, %v3605_v21 }
 0x216   : > { %v14574_v12 = vadd.f32 %v16312_v33, %v16311_v48  ;;  %v14578_v38 = vadd.f32 %v16314_v54, %v16313_v46  ;;  %v16315_v62 = vld [vmem:[#allocation59_spill] sm:$0xff]  ;;  %v16317_v9 = vld [vmem:[#allocation30_spill] sm:$0xff]  ;;  %v16318_v7 = vld [vmem:[#allocation44_spill] sm:$0xff]  ;;  %v14593_v60 = vadd.f32 %v11623_v41, %v4583_v19  ;;  %v3616_v43 = vrot.slane %v3459_v2, 5 }
 0x217   : > { %v14582_v52 = vadd.f32 %v16315_v62, %v14369_v16  ;;  %v14586_v5 = vadd.f32 %v16317_v9, %v16316_v53  ;;  %v16319_v26 = vld [vmem:[#allocation26_spill] sm:$0xff]  ;;  %v4586_v14 = vadd.f32 %v11514_v10, %v14159_v29  ;;  %v3603_v16 = vsel %vm13205_vm14, %v10737_v22, %v3602_v1  ;;  %v3460_v27 = vld [vmem:[#allocation2 + $0xd4] sm:$0x1]  ;;  %v11643_v29 = vpop.f32.mrb[64].mxu0  ;;  %v11755_v22 = vpop.f32.mrb[64].mxu1 }
 0x218   : > { %v14590_v56 = vadd.f32 %v16319_v26, %v16318_v7  ;;  %v11644_v41 = vpop.f32.mrb[65].mxu0  ;;  %v3610_v13 = vsel %vm13205_vm14, %v10738_v50, %v3609_v18  ;;  %v3613_v24 = vsel %vm13205_vm14, %v3611_v44, %v3612_v31  ;;  %v10753_v21 = vcombine.low %v3603_v16, %v3606_v34 }
 0x219   : > { %v14606_v23 = vadd.f32 %v11626_v42, %v4586_v14  ;;  %v11645_v15 = vadd.f32 %v11644_v41, %v11643_v29  ;;  %v11646_v1 = vpop.f32.mrb[66].mxu0  ;;  %v3618_v42 = vrot.slane %v3616_v43, 4  ;;  %v10754_v11 = vcombine.low %v3610_v13, %v3613_v24  ;;  %v12645_v41 = vld [vmem:[#allocation9 + $0x68] sm:$0xff]  }
 0x21a   : > { %12384 = vmatmul.mubr.bf16.gmra.mrb[148].mxu0 %v10751_v57  ;;  %v10739_v57 = vrot.slane %v3458_v36, 9  ;;  %v11647_v37 = vpop.f32.mrb[67].mxu0  ;;  %v3619_v10 = vrot.slane %v3460_v27, 5  ;;  %11885 = vmatprep.subr.bf16.mxu1 %v12645_v41 }
 0x21b   : > { %12387 = vmatprep.mubr.bf16.mxu0 %v10752_v25  ;;  %v11756_v25 = vpop.f32.mrb[65].mxu1  ;;  %v4785_v2 = vadd.f32 %v11645_v15, %v4624_v3  ;;  %v11648_v36 = vadd.f32 %v11647_v37, %v11646_v1  ;;  %v11649_v31 = vpop.f32.mrb[68].mxu0 }
 0x21c   : > { %v11757_v20 = vadd.f32 %v11756_v25, %v11755_v22  ;;  %v11758_v19 = vpop.f32.mrb[66].mxu1  ;;  %v3617_v33 = vsel %vm13205_vm14, %v10739_v57, %v3616_v43  ;;  %v3620_v3 = vsel %vm13205_vm14, %v3618_v42, %v3619_v10  ;;  %v11650_v46 = vpop.f32.mrb[69].mxu0  ;;  %v12646_v43 = vld [vmem:[#allocation9 + $0x28] sm:$0xff]  }
 0x21d   : > { %v11759_v48 = vpop.f32.mrb[67].mxu1  ;;  %v4788_v18 = vadd.f32 %v11648_v36, %v4627_v8  ;;  %v11651_v54 = vadd.f32 %v11650_v46, %v11649_v31  ;;  %v11652_v62 = vpop.f32.mrb[70].mxu0  ;;  %v10755_v9 = vcombine.low %v3617_v33, %v3620_v3  ;;  %11886 = vmatpush3.bf16.msra.mxu1 %v12646_v43 }
 0x21e   : > { %v11760_v50 = vadd.f32 %v11759_v48, %v11758_v19  ;;  %v14618_v58 = vadd.f32 %v11757_v20, %v4785_v2  ;;  %v11653_v53 = vpop.f32.mrb[71].mxu0  ;;  %v11761_v7 = vpop.f32.mrb[68].mxu1 }
 0x21f   : > { %v4793_v8 = vadd.f32 %v11651_v54, %v14535_v47  ;;  %v11654_v26 = vadd.f32 %v11653_v53, %v11652_v62  ;;  %v11762_v14 = vpop.f32.mrb[69].mxu1 }
 0x220   : > { %v14620_v44 = vadd.f32 %v11760_v50, %v4788_v18  ;;  %v11763_v34 = vadd.f32 %v11762_v14, %v11761_v7  ;;  %v11764_v27 = vpop.f32.mrb[70].mxu1 }
 0x221   : > { %v4796_v16 = vadd.f32 %v11654_v26, %v14539_v55  ;;  %v11765_v29 = vpop.f32.mrb[71].mxu1 }
 0x222   : > { %12388 = vmatmul.mubr.bf16.gmra.mrb[152].mxu0 %v10753_v21  ;;  %v11766_v57 = vadd.f32 %v11765_v29, %v11764_v27  ;;  %v14628_v13 = vadd.f32 %v11763_v34, %v4793_v8 }
 0x223   : > { %12391 = vmatprep.mubr.bf16.mxu0 %v10754_v11 }
 0x224   : > { %v14630_v15 = vadd.f32 %v11766_v57, %v4796_v16 }
 0x225   : > { %v11655_v24 = vpop.f32.mrb[72].mxu0 }
 0x226   : > { %v11656_v47 = vpop.f32.mrb[73].mxu0 }
 0x227   : > { %v11657_v1 = vadd.f32 %v11656_v47, %v11655_v24  ;;  %v11658_v22 = vpop.f32.mrb[74].mxu0 }
 0x228   : > { %v11659_v21 = vpop.f32.mrb[75].mxu0  ;;  %v11767_v37 = vpop.f32.mrb[72].mxu1 }
 0x229   : > { %v4801_v55 = vadd.f32 %v11657_v1, %v14545_v0  ;;  %v11660_v25 = vadd.f32 %v11659_v21, %v11658_v22  ;;  %v11768_v42 = vpop.f32.mrb[73].mxu1  ;;  %v12647_v21 = vld [vmem:[#allocation9 + $0xc0] sm:$0xff]  }
 0x22a   : > { %12392 = vmatmul.mubr.bf16.gmra.mrb[156].mxu0 %v10755_v9  ;;  %v11769_v36 = vadd.f32 %v11768_v42, %v11767_v37  ;;  %v11770_v20 = vpop.f32.mrb[74].mxu1  ;;  %11987 = vmatprep.subr.bf16.mxu0 %v12647_v21  ;;  %v12649_v42 = vld [vmem:[#allocation9 + $0x80] sm:$0xff]   ;;  %v12656_v21 = vld [vmem:[#allocation9 + $0x98] sm:$0xff]  }
 0x22b   : > { %v4804_v2 = vadd.f32 %v11660_v25, %v14549_v39  ;;  %v11771_v19 = vpop.f32.mrb[75].mxu1  ;;  %v12648_v25 = vld [vmem:[#allocation9 + $0x70] sm:$0xff]   ;;  %11988 = vmatpush3.bf16.msra.mxu0 %v12649_v42 }
 0x22c   : > { %v11772_v11 = vadd.f32 %v11771_v19, %v11770_v20  ;;  %v14634_v10 = vadd.f32 %v11769_v36, %v4801_v55  ;;  %11887 = vmatprep.subr.bf16.mxu1 %v12648_v25 }
 0x22e   : > { %v11661_v48 = vpop.f32.mrb[76].mxu0  ;;  %v14636_v18 = vadd.f32 %v11772_v11, %v4804_v2  ;;  %v12650_v2 = vld [vmem:[#allocation9 + $0x30] sm:$0xff]  }
 0x22f   : > { %v11662_v50 = vpop.f32.mrb[77].mxu0  ;;  %11888 = vmatpush3.bf16.msra.mxu1 %v12650_v2 }
 0x230   : > { %v11663_v31 = vadd.f32 %v11662_v50, %v11661_v48  ;;  %v11664_v33 = vpop.f32.mrb[78].mxu0 }
 0x231   : > { %v11665_v3 = vpop.f32.mrb[79].mxu0 }
 0x232   : > { %v4809_v0 = vadd.f32 %v11663_v31, %v14553_v61  ;;  %v11773_v46 = vpop.f32.mrb[76].mxu1  ;;  %v11666_v54 = vadd.f32 %v11665_v3, %v11664_v33 }
 0x233   : > { %v11774_v62 = vpop.f32.mrb[77].mxu1 }
 0x234   : > { %v4812_v39 = vadd.f32 %v11666_v54, %v14557_v35  ;;  %v11775_v53 = vadd.f32 %v11774_v62, %v11773_v46  ;;  %v11776_v9 = vpop.f32.mrb[78].mxu1 }
 0x235   : > { %v11777_v8 = vpop.f32.mrb[79].mxu1 }
 0x236   : > { %v11778_v7 = vadd.f32 %v11777_v8, %v11776_v9  ;;  %v14640_v26 = vadd.f32 %v11775_v53, %v4809_v0  ;;  %v12652_v9 = vld [vmem:[#allocation9 + $0x88] sm:$0xff]  }
 0x238   : > { %v11667_v14 = vpop.f32.mrb[80].mxu0  ;;  %v14642_v16 = vadd.f32 %v11778_v7, %v4812_v39  ;;  %v12651_v39 = vld [vmem:[#allocation9 + $0xc8] sm:$0xff]  }
 0x239   : > { %v11668_v34 = vpop.f32.mrb[81].mxu0  ;;  %11989 = vmatprep.subr.bf16.mxu0 %v12651_v39 }
 0x23a   : > { %v11669_v27 = vadd.f32 %v11668_v34, %v11667_v14  ;;  %v11670_v29 = vpop.f32.mrb[82].mxu0  ;;  %11990 = vmatpush3.bf16.msra.mxu0 %v12652_v9  ;;  %v12653_v14 = vld [vmem:[#allocation9 + $0xd0] sm:$0xff]   ;;  %v12662_v9 = vld [vmem:[#allocation9 + $0xa8] sm:$0xff]  }
 0x23b   : > { %v11671_v41 = vpop.f32.mrb[83].mxu0  ;;  %11991 = vmatprep.subr.bf16.mxu0 %v12653_v14 }
 0x23c   : > { %v4817_v61 = vadd.f32 %v11669_v27, %v14561_v51  ;;  %v11672_v43 = vadd.f32 %v11671_v41, %v11670_v29 }
 0x23d   : > { %v11779_v57 = vpop.f32.mrb[80].mxu1 }
 0x23e   : > { %v4820_v24 = vadd.f32 %v11672_v43, %v14565_v17  ;;  %v11780_v35 = vpop.f32.mrb[81].mxu1 }
 0x23f   : > { %v11781_v47 = vadd.f32 %v11780_v35, %v11779_v57  ;;  %v11782_v1 = vpop.f32.mrb[82].mxu1 }
 0x240   : > { %v11783_v22 = vpop.f32.mrb[83].mxu1 }
 0x241   : > { %v11784_v55 = vadd.f32 %v11783_v22, %v11782_v1  ;;  %v14646_v37 = vadd.f32 %v11781_v47, %v4817_v61  ;;  %v12655_v47 = vld [vmem:[#allocation9 + $0xd8] sm:$0xff]  }
 0x242   : > { %v11673_v36 = vpop.f32.mrb[84].mxu0 }
 0x243   : > { %v14648_v20 = vadd.f32 %v11784_v55, %v4820_v24  ;;  %v11674_v51 = vpop.f32.mrb[85].mxu0 }
 0x244   : > { %v11675_v19 = vadd.f32 %v11674_v51, %v11673_v36  ;;  %v11676_v17 = vpop.f32.mrb[86].mxu0 }
 0x245   : > { %v11677_v11 = vpop.f32.mrb[87].mxu0 }
 0x246   : > { %v4825_v48 = vadd.f32 %v11675_v19, %v14570_v28  ;;  %v11678_v31 = vadd.f32 %v11677_v11, %v11676_v17  ;;  %v12654_v28 = vld [vmem:[#allocation9 + $0x90] sm:$0xff]  }
 0x247   : > { %v11785_v50 = vpop.f32.mrb[84].mxu1  ;;  %11992 = vmatpush3.bf16.msra.mxu0 %v12654_v28 }
 0x248   : > { %v11786_v33 = vpop.f32.mrb[85].mxu1  ;;  %v4828_v3 = vadd.f32 %v11678_v31, %v14574_v12  ;;  %11993 = vmatprep.subr.bf16.mxu0 %v12655_v47 }
 0x249   : > { %v11787_v0 = vadd.f32 %v11786_v33, %v11785_v50  ;;  %v11788_v46 = vpop.f32.mrb[86].mxu1  ;;  %v12657_v50 = vld [vmem:[#allocation9 + $0xe0] sm:$0xff]  }
 0x24a   : > { %v11789_v54 = vpop.f32.mrb[87].mxu1 }
 0x24b   : > { %v11790_v62 = vadd.f32 %v11789_v54, %v11788_v46  ;;  %v14652_v53 = vadd.f32 %v11787_v0, %v4825_v48  ;;  %11994 = vmatpush3.bf16.msra.mxu0 %v12656_v21  ;;  %v12660_v0 = vld [vmem:[#allocation9 + $0x38] sm:$0xff]  }
 0x24c   : > { %11995 = vmatprep.subr.bf16.mxu0 %v12657_v50  ;;  %v12666_v21 = vld [vmem:[#allocation9 + $0xb8] sm:$0xff]  }
 0x24d   : > { %v14654_v8 = vadd.f32 %v11790_v62, %v4828_v3  ;;  %v11679_v7 = vpop.f32.mrb[88].mxu0  ;;  %v12659_v3 = vld [vmem:[#allocation9 + $0xa0] sm:$0xff]   ;;  %v12661_v62 = vld [vmem:[#allocation9 + $0xe8] sm:$0xff]  }
 0x24e   : > { %v11680_v34 = vpop.f32.mrb[89].mxu0 }
 0x24f   : > { %v11681_v27 = vadd.f32 %v11680_v34, %v11679_v7  ;;  %v11682_v29 = vpop.f32.mrb[90].mxu0  ;;  %11996 = vmatpush3.bf16.msra.mxu0 %v12659_v3 }
 0x250   : > { %v11683_v41 = vpop.f32.mrb[91].mxu0  ;;  %11997 = vmatprep.subr.bf16.mxu0 %v12661_v62 }
 0x251   : > { %v11791_v12 = vpop.f32.mrb[88].mxu1  ;;  %v4833_v61 = vadd.f32 %v11681_v27, %v14578_v38  ;;  %v11684_v43 = vadd.f32 %v11683_v41, %v11682_v29  ;;  %v12664_v41 = vld [vmem:[#allocation9 + $0xb0] sm:$0xff]  }
 0x252   : > { %v11792_v57 = vpop.f32.mrb[89].mxu1 }
 0x253   : > { %v11793_v24 = vadd.f32 %v11792_v57, %v11791_v12  ;;  %v11794_v35 = vpop.f32.mrb[90].mxu1  ;;  %v4836_v1 = vadd.f32 %v11684_v43, %v14582_v52  ;;  %v12658_v52 = vld [vmem:[#allocation9 + $0x78] sm:$0xff]   ;;  %11998 = vmatpush3.bf16.msra.mxu0 %v12662_v9  ;;  %v12663_v12 = vld [vmem:[#allocation9 + $0xf0] sm:$0xff]   ;;  %v12670_v9 = vld [vmem:[#allocation9 + $0x140] sm:$0xff]  }
 0x254   : > { %v11795_v22 = vpop.f32.mrb[91].mxu1  ;;  %11889 = vmatprep.subr.bf16.mxu1 %v12658_v52  ;;  %11999 = vmatprep.subr.bf16.mxu0 %v12663_v12 }
 0x255   : > { %v11796_v55 = vadd.f32 %v11795_v22, %v11794_v35  ;;  %v14658_v25 = vadd.f32 %v11793_v24, %v4833_v61  ;;  %11890 = vmatpush3.bf16.msra.mxu1 %v12660_v0  ;;  %v16320_v61 = vld [vmem:[#allocation32_spill] sm:$0xff]  ;;  %v16321_v35 = vld [vmem:[#allocation37_spill] sm:$0xff] }
 0x256   : > { %v11685_v42 = vpop.f32.mrb[92].mxu0  ;;  %v12665_v22 = vld [vmem:[#allocation9 + $0xf8] sm:$0xff]   ;;  %12099 = vmatprep.subr.bf16.mxu1 %v12670_v9 }
 0x257   : > { %v11686_v2 = vpop.f32.mrb[93].mxu0  ;;  %v14660_v36 = vadd.f32 %v11796_v55, %v4836_v1  ;;  %12000 = vmatpush3.bf16.msra.mxu0 %v12664_v41 }
 0x258   : > { %v11687_v38 = vadd.f32 %v11686_v2, %v11685_v42  ;;  %v11688_v51 = vpop.f32.mrb[94].mxu0  ;;  %12001 = vmatprep.subr.bf16.mxu0 %v12665_v22 }
 0x259   : > { %v11689_v19 = vpop.f32.mrb[95].mxu0 }
 0x25a   : > { %v4841_v17 = vadd.f32 %v11687_v38, %v14586_v5  ;;  %v11690_v11 = vadd.f32 %v11689_v19, %v11688_v51 }
 0x25b   : > { %v11797_v48 = vpop.f32.mrb[92].mxu1  ;;  %12002 = vmatpush3.bf16.msra.mxu0 %v12666_v21 }
 0x25c   : > { %v4844_v31 = vadd.f32 %v11690_v11, %v14590_v56  ;;  %v11798_v33 = vpop.f32.mrb[93].mxu1  ;;  %v5937_v11 = vld [vmem:[#allocation2] sm:$0xf] }
 0x25d   : > { %v11799_v46 = vadd.f32 %v11798_v33, %v11797_v48  ;;  %v11800_v54 = vpop.f32.mrb[94].mxu1  ;;  %v5938_v48 = vld [vmem:[#allocation2 + $0x4] sm:$0xf]  ;;  %v5939_v33 = vld [vmem:[#allocation2 + $0x8] sm:$0x1]  ;;  %v5986_v3 = vshrl.u32 %v5937_v11, 16 }
 0x25e   : > { %v11801_v39 = vpop.f32.mrb[95].mxu1  ;;  %v5989_v0 = vshll.u32 %v5937_v11, 16  ;;  %v5999_v62 = vshrl.u32 %v5938_v48, 16 }
 0x25f   : > { %v11802_v7 = vadd.f32 %v11801_v39, %v11800_v54  ;;  %v14664_v5 = vadd.f32 %v11799_v46, %v4841_v17  ;;  %v5995_v46 = vshll.u32 %v5938_v48, 16  ;;  %v6005_v39 = vshll.u32 %v5939_v33, 16 }
 0x260   : > { %v6001_v41 = vrot.slane %v5999_v62, 4 }
 0x261   : > { %v11691_v14 = vpop.f32.mrb[96].mxu0  ;;  %v14666_v28 = vadd.f32 %v11802_v7, %v4844_v31  ;;  %v16322_v7 = vld [vmem:[#allocation38_spill] sm:$0xff]  ;;  %v5997_v12 = vrot.slane %v5995_v46, 5  ;;  %v6007_v22 = vrot.slane %v6005_v39, 5 }
 0x262   : > { %v11692_v56 = vpop.f32.mrb[97].mxu0  ;;  %v16325_v39 = vld [vmem:[#allocation42_spill] sm:$0xff] }
 0x263   : > { %v11693_v34 = vadd.f32 %v11692_v56, %v11691_v14  ;;  %v11694_v27 = vpop.f32.mrb[98].mxu0 }
 0x264   : > { %v11695_v29 = vpop.f32.mrb[99].mxu0 }
 0x265   : > { %v4849_v43 = vadd.f32 %v11693_v34, %v16320_v61  ;;  %v11696_v57 = vadd.f32 %v11695_v29, %v11694_v27  ;;  %v11803_v24 = vpop.f32.mrb[96].mxu1  ;;  %v5988_v34 = vrot.slane %v5986_v3, 4  ;;  %v5991_v27 = vrot.slane %v5989_v0, 5  ;;  %v16323_v61 = vld [vmem:[#allocation40_spill] sm:$0xff] }
 0x266   : > { %v11804_v1 = vpop.f32.mrb[97].mxu1 }
 0x267   : > { %v4852_v47 = vadd.f32 %v11696_v57, %v16321_v35  ;;  %v11805_v55 = vadd.f32 %v11804_v1, %v11803_v24  ;;  %v11806_v42 = vpop.f32.mrb[98].mxu1  ;;  %v5992_v24 = vor.u32 %v5991_v27, %v5988_v34  ;;  %v6002_v1 = vor.u32 %v6001_v41, %v5997_v12 }
 0x268   : > { %v11807_v2 = vpop.f32.mrb[99].mxu1 }
 0x269   : > { %v11808_v38 = vadd.f32 %v11807_v2, %v11806_v42  ;;  %v14670_v51 = vadd.f32 %v11805_v55, %v4849_v43  ;;  %v5993_v55 = vrot.slane %v5992_v24, 4  ;;  %v6003_v2 = vrot.slane %v6002_v1, 4 }
 0x26b   : > { %v11697_v19 = vpop.f32.mrb[100].mxu0  ;;  %v14672_v50 = vadd.f32 %v11808_v38, %v4852_v47  ;;  %v5998_v11 = vsel %vm13190_vm13, %v5993_v55, %v5997_v12 }
 0x26c   : > { %v11698_v17 = vpop.f32.mrb[101].mxu0 }
 0x26d   : > { %v11699_v52 = vadd.f32 %v11698_v17, %v11697_v19  ;;  %v11700_v31 = vpop.f32.mrb[102].mxu0 }
 0x26e   : > { %v11701_v54 = vpop.f32.mrb[103].mxu0 }
 0x26f   : > { %v4857_v14 = vadd.f32 %v11699_v52, %v16322_v7  ;;  %v11702_v56 = vadd.f32 %v11701_v54, %v11700_v31  ;;  %v6008_v52 = vsel %vm13190_vm13, %v6003_v2, %v6007_v22  ;;  %v12667_v31 = vld [vmem:[#allocation2] sm:$0xff]   ;;  %v12671_v54 = vld [vmem:[#allocation9 + $0x100] sm:$0xff]  }
 0x270   : > { %v11809_v29 = vpop.f32.mrb[100].mxu1  ;;  %v10877_v46 = vcombine.low %v5998_v11, %v6008_v52 }
 0x271   : > { %v4860_v43 = vadd.f32 %v11702_v56, %v16323_v61  ;;  %v11810_v57 = vpop.f32.mrb[101].mxu1  ;;  %v16326_v56 = vld [vmem:[#allocation43_spill] sm:$0xff] }
 0x272   : > { %v11811_v35 = vadd.f32 %v11810_v57, %v11809_v29  ;;  %v11812_v47 = vpop.f32.mrb[102].mxu1  ;;  %9384 = vmatprep.mubr.bf16.mxu1 %v10877_v46 }
 0x273   : > { %v11813_v21 = vpop.f32.mrb[103].mxu1  ;;  %9385 = vmatmul.mubr.bf16.vlgmr.msra.gmra.mrb[128].mxu1 %v12667_v31  ;;  %v12676_v31 = vld [vmem:[#allocation9 + $0x148] sm:$0xff]  }
 0x274   : > { %v11814_v42 = vadd.f32 %v11813_v21, %v11812_v47  ;;  %v14676_v38 = vadd.f32 %v11811_v35, %v4857_v14  ;;  %12100 = vmatpush3.bf16.msra.mxu1 %v12671_v54 }
 0x275   : > { %v11703_v19 = vpop.f32.mrb[104].mxu0  ;;  %12101 = vmatprep.subr.bf16.mxu1 %v12676_v31 }
 0x276   : > { %v11704_v48 = vpop.f32.mrb[105].mxu0  ;;  %v14682_v33 = vadd.f32 %v11814_v42, %v4860_v43 }
 0x277   : > { %v11705_v3 = vadd.f32 %v11704_v48, %v11703_v19  ;;  %v11706_v0 = vpop.f32.mrb[106].mxu0 }
 0x278   : > { %v11707_v62 = vpop.f32.mrb[107].mxu0 }
 0x279   : > { %v4865_v9 = vadd.f32 %v11705_v3, %v16325_v39  ;;  %v11708_v7 = vadd.f32 %v11707_v62, %v11706_v0 }
 0x27a   : > { %v11815_v14 = vpop.f32.mrb[104].mxu1 }
 0x27b   : > { %v4868_v34 = vadd.f32 %v11708_v7, %v16326_v56  ;;  %v11816_v27 = vpop.f32.mrb[105].mxu1 }
 0x27c   : > { %v11817_v29 = vadd.f32 %v11816_v27, %v11815_v14  ;;  %v11818_v12 = vpop.f32.mrb[106].mxu1  ;;  %v12677_v27 = vld [vmem:[#allocation9 + $0x108] sm:$0xff]  }
 0x27d   : > { %v11819_v41 = vpop.f32.mrb[107].mxu1  ;;  %12102 = vmatpush3.bf16.msra.mxu1 %v12677_v27 }
 0x27e   : > { %v11820_v61 = vadd.f32 %v11819_v41, %v11818_v12  ;;  %v14686_v43 = vadd.f32 %v11817_v29, %v4865_v9 }
 0x280   : > { %v14688_v57 = vadd.f32 %v11820_v61, %v4868_v34  ;;  %v11709_v24 = vpop.f32.mrb[108].mxu0 }
 0x281   : > { %v11710_v35 = vpop.f32.mrb[109].mxu0 }
 0x282   : > { %v11711_v47 = vadd.f32 %v11710_v35, %v11709_v24  ;;  %v11712_v1 = vpop.f32.mrb[110].mxu0 }
 0x283   : > { %v11713_v22 = vpop.f32.mrb[111].mxu0 }
 0x284   : > { %v4873_v21 = vadd.f32 %v11711_v47, %v14441_v63  ;;  %v11714_v55 = vadd.f32 %v11713_v22, %v11712_v1 }
 0x285   : > { %v11821_v42 = vpop.f32.mrb[108].mxu1 }
 0x286   : > { %v4876_v2 = vadd.f32 %v11714_v55, %v14445_v6  ;;  %v11822_v19 = vpop.f32.mrb[109].mxu1 }
 0x287   : > { %v11823_v11 = vadd.f32 %v11822_v19, %v11821_v42  ;;  %v11824_v48 = vpop.f32.mrb[110].mxu1 }
 0x288   : > { %v11825_v52 = vpop.f32.mrb[111].mxu1 }
 0x289   : > { %v11826_v3 = vadd.f32 %v11825_v52, %v11824_v48  ;;  %v14692_v0 = vadd.f32 %v11823_v11, %v4873_v21 }
 0x28b   : > { %v14694_v46 = vadd.f32 %v11826_v3, %v4876_v2 }
 0x28c   : > { %v11715_v54 = vpop.f32.mrb[112].mxu0 }
 0x28d   : > { %v11716_v62 = vpop.f32.mrb[113].mxu0 }
 0x28e   : > { %v11717_v39 = vadd.f32 %v11716_v62, %v11715_v54  ;;  %v11718_v9 = vpop.f32.mrb[114].mxu0 }
 0x28f   : > { %v11719_v63 = vpop.f32.mrb[115].mxu0 }
 0x290   : > { %v4881_v7 = vadd.f32 %v11717_v39, %v14484_v45  ;;  %v11720_v14 = vadd.f32 %v11719_v63, %v11718_v9  ;;  %v11827_v6 = vpop.f32.mrb[112].mxu1 }
 0x291   : > { %v11828_v34 = vpop.f32.mrb[113].mxu1 }
 0x292   : > { %v4884_v56 = vadd.f32 %v11720_v14, %v14492_v59  ;;  %v11829_v29 = vadd.f32 %v11828_v34, %v11827_v6  ;;  %v11830_v12 = vpop.f32.mrb[114].mxu1  ;;  %v12682_v14 = vld [vmem:[#allocation9 + $0x150] sm:$0xff]  }
 0x293   : > { %v11831_v41 = vpop.f32.mrb[115].mxu1  ;;  %12103 = vmatprep.subr.bf16.mxu1 %v12682_v14 }
 0x294   : > { %v11832_v61 = vadd.f32 %v11831_v41, %v11830_v12  ;;  %v14698_v24 = vadd.f32 %v11829_v29, %v4881_v7 }
 0x296   : > { %v14700_v35 = vadd.f32 %v11832_v61, %v4884_v56  ;;  %v12683_v56 = vld [vmem:[#allocation9 + $0x110] sm:$0xff]  }
 0x297   : > { %v11721_v47 = vpop.f32.mrb[116].mxu0  ;;  %12104 = vmatpush3.bf16.msra.mxu1 %v12683_v56  ;;  %v14719_v56 = vld [vmem:[#allocation2 + $0x8] sm:$0x1] }
 0x298   : > { %v11722_v1 = vpop.f32.mrb[117].mxu0 }
 0x299   : > { %v11723_v22 = vadd.f32 %v11722_v1, %v11721_v47  ;;  %v11724_v21 = vpop.f32.mrb[118].mxu0 }
 0x29a   : > { %v11725_v45 = vpop.f32.mrb[119].mxu0 }
 0x29b   : > { %v4889_v55 = vadd.f32 %v11723_v22, %v14519_v32  ;;  %v11726_v59 = vadd.f32 %v11725_v45, %v11724_v21 }
 0x29c   : > { %v11833_v42 = vpop.f32.mrb[116].mxu1 }
 0x29d   : > { %v11834_v2 = vpop.f32.mrb[117].mxu1  ;;  %v4892_v19 = vadd.f32 %v11726_v59, %v14524_v4  ;;  %v12688_v59 = vld [vmem:[#allocation9 + $0x158] sm:$0xff]  }
 0x29e   : > { %v11835_v11 = vadd.f32 %v11834_v2, %v11833_v42  ;;  %v11836_v48 = vpop.f32.mrb[118].mxu1  ;;  %v6449_v2 = vld [vmem:[#allocation2] sm:$0xe]  ;;  %12105 = vmatprep.subr.bf16.mxu1 %v12688_v59 }
 0x29f   : > { %v11837_v52 = vpop.f32.mrb[119].mxu1 }
 0x2a0   : > { %v11838_v31 = vadd.f32 %v11837_v52, %v11836_v48  ;;  %v14704_v3 = vadd.f32 %v11835_v11, %v4889_v55  ;;  %v6450_v48 = vld [vmem:[#allocation2 + $0x4] sm:$0xf]  ;;  %v12689_v52 = vld [vmem:[#allocation9 + $0x118] sm:$0xff]  }
 0x2a1   : > { %12106 = vmatpush3.bf16.msra.mxu1 %v12689_v52 }
 0x2a2   : > { %v14706_v54 = vadd.f32 %v11838_v31, %v4892_v19 }
 0x2a5   : > { %v11727_v62 = vpop.f32.mrb[120].mxu0 }
 0x2a6   : > { %v11728_v39 = vpop.f32.mrb[121].mxu0 }
 0x2a7   : > { %v11729_v9 = vadd.f32 %v11728_v39, %v11727_v62  ;;  %v11730_v63 = vpop.f32.mrb[122].mxu0 }
 0x2a8   : > { %v11731_v7 = vpop.f32.mrb[123].mxu0 }
 0x2a9   : > { %v4897_v32 = vadd.f32 %v11729_v9, %v14531_v40  ;;  %v11732_v6 = vadd.f32 %v11731_v7, %v11730_v63  ;;  %v10893_v7 = vrot.slane %v6449_v2, 9  ;;  %v12692_v2 = vld [vmem:[#allocation9 + $0x1c0] sm:$0xff]  }
 0x2aa   : > { %12211 = vmatprep.subr.bf16.mxu0 %v12692_v2  ;;  %v5685_v2 = vld [vmem:[#allocation2 + $0x14] sm:$0x1] }
 0x2ab   : > { %v4900_v4 = vadd.f32 %v11732_v6, %v14541_v49 }
 0x2bc   : > { %v11839_v27 = vpop.f32.mrb[120].mxu1 }
 0x2bd   : > { %v11733_v34 = vpop.f32.mrb[124].mxu0  ;;  %v11840_v12 = vpop.f32.mrb[121].mxu1 }
 0x2be   : > { %v11734_v29 = vpop.f32.mrb[125].mxu0  ;;  %v11841_v47 = vadd.f32 %v11840_v12, %v11839_v27  ;;  %v11842_v1 = vpop.f32.mrb[122].mxu1 }
 0x2bf   : > { %v11735_v41 = vadd.f32 %v11734_v29, %v11733_v34  ;;  %v11736_v61 = vpop.f32.mrb[126].mxu0  ;;  %v11843_v21 = vpop.f32.mrb[123].mxu1  ;;  %v6547_v34 = vrot.slane %v6450_v48, 5 }
 0x2c0   : > { %v11737_v22 = vpop.f32.mrb[127].mxu0  ;;  %v11844_v40 = vadd.f32 %v11843_v21, %v11842_v1  ;;  %v14711_v42 = vadd.f32 %v11841_v47, %v4897_v32 }
 0x2c1   : > { %v4905_v45 = vadd.f32 %v11735_v41, %v14593_v60  ;;  %v11738_v55 = vadd.f32 %v11737_v22, %v11736_v61  ;;  %v14726_v22 = vsel %vm13205_vm14, %v10893_v7, %v6547_v34 }
 0x2c2   : > { %v14714_v19 = vadd.f32 %v11844_v40, %v4900_v4  ;;  %v6549_v40 = vrot.slane %v6547_v34, 4 }
 0x2c3   : > { %v4908_v49 = vadd.f32 %v11738_v55, %v14606_v23 }
 0x2c4   : > { %v11845_v31 = vpop.f32.mrb[124].mxu1 }
 0x2c5   : > { %v12365_v11 = vpop.f32.mrb[128].mxu0  ;;  %v11846_v9 = vpop.f32.mrb[125].mxu1 }
 0x2c6   : > { %v5115_v62 = vadd.f32 %v12365_v11, %v14628_v13  ;;  %v5106_v39 = vpop.f32.mrb[129].mxu0  ;;  %v11847_v14 = vadd.f32 %v11846_v9, %v11845_v31  ;;  %v11848_v23 = vpop.f32.mrb[126].mxu1 }
 0x2c7   : > { %v5107_v60 = vadd.f32 %v5106_v39, %v14618_v58  ;;  %v12366_v63 = vpop.f32.mrb[130].mxu0  ;;  %v11849_v27 = vpop.f32.mrb[127].mxu1 }
 0x2c8   : > { %v5235_v32 = vmax.f32 %v5115_v62, 0.0  ;;  %v5118_v6 = vadd.f32 %v12366_v63, %v14630_v15  ;;  %v5109_v4 = vpop.f32.mrb[131].mxu0  ;;  %v11850_v12 = vadd.f32 %v11849_v27, %v11848_v23  ;;  %v14722_v58 = vadd.f32 %v11847_v14, %v4905_v45  ;;  %v5688_v63 = vld [vmem:[#allocation2 + $0x18] sm:$0xf] }
 0x2c9   : > { %v5233_v29 = vmax.f32 %v5107_v60, 0.0  ;;  %v5110_v13 = vadd.f32 %v5109_v4, %v14620_v44  ;;  %v6550_v15 = vrot.slane %v14719_v56, 5  ;;  %v5681_v56 = vld [vmem:[#allocation2 + $0xc] sm:$0xf] }
 0x2ca   : > { %v11166_v41 = vpack.c.bf16 %v5235_v32, %v5235_v32  ;;  %v5236_v61 = vmax.f32 %v5118_v6, 0.0  ;;  %v14729_v59 = vadd.f32 %v11850_v12, %v4908_v49 }
 0x2cb   : > { %v11164_v47 = vpack.c.bf16 %v5233_v29, %v5233_v29  ;;  %v5234_v1 = vmax.f32 %v5110_v13, 0.0 }
 0x2cc   : > { %v5379_v21 = vshrl.u32 %v11166_v41, 16  ;;  %v11167_v55 = vpack.c.bf16 %v5236_v61, %v5236_v61  ;;  %v5382_v44 = vshll.u32 %v11166_v41, 16  ;;  %v5692_v41 = vld [vmem:[#allocation2 + $0x20] sm:$0x1] }
 0x2cd   : > { %v5362_v11 = vshrl.u32 %v11164_v47, 16  ;;  %v5365_v48 = vshll.u32 %v11164_v47, 16  ;;  %v11165_v52 = vpack.c.bf16 %v5234_v1, %v5234_v1  ;;  %v12369_v45 = vpop.f32.mrb[132].mxu0 }
 0x2ce   : > { %v5381_v31 = vrot.slane %v5379_v21, 7  ;;  %v5387_v62 = vshrl.u32 %v11167_v55, 16  ;;  %v5390_v39 = vshll.u32 %v11167_v55, 16  ;;  %v5131_v9 = vadd.f32 %v12369_v45, %v14640_v26  ;;  %v5122_v60 = vpop.f32.mrb[133].mxu0 }
 0x2cf   : > { %v5364_v7 = vrot.slane %v5362_v11, 7  ;;  %v5370_v14 = vshrl.u32 %v11165_v52, 16  ;;  %v5373_v23 = vshll.u32 %v11165_v52, 16  ;;  %v5123_v49 = vadd.f32 %v5122_v60, %v14634_v10  ;;  %v12370_v32 = vpop.f32.mrb[134].mxu0 }
 0x2d0   : > { %v5384_v6 = vor.u32 %v5382_v44, %v5381_v31  ;;  %v5385_v4 = vrot.slane %v5381_v31, 4  ;;  %v5389_v34 = vrot.slane %v5387_v62, 7  ;;  %v5239_v27 = vmax.f32 %v5131_v9, 0.0  ;;  %v5125_v29 = vpop.f32.mrb[135].mxu0  ;;  %v12696_v31 = vld [vmem:[#allocation9 + $0x160] sm:$0xff]  }
 0x2d1   : > { %v5367_v13 = vor.u32 %v5365_v48, %v5364_v7  ;;  %v5368_v12 = vrot.slane %v5364_v7, 4  ;;  %v5372_v61 = vrot.slane %v5370_v14, 7  ;;  %v5237_v26 = vmax.f32 %v5123_v49, 0.0  ;;  %v12697_v7 = vld [vmem:[#allocation9 + $0x120] sm:$0xff]   ;;  %12107 = vmatprep.subr.bf16.mxu1 %v12696_v31 }
 0x2d2   : > { %v5689_v1 = vsel %vm13183_vm12, %v5384_v6, %v5688_v63  ;;  %v5392_v21 = vor.u32 %v5390_v39, %v5389_v34  ;;  %v5394_v55 = vrot.slane %v5389_v34, 4  ;;  %v11170_v11 = vpack.c.bf16 %v5239_v27, %v5239_v27  ;;  %12108 = vmatpush3.bf16.msra.mxu1 %v12697_v7 }
 0x2d3   : > { %5690 = vst [vmem:[#allocation2 + $0x18] sm:$0xf] %v5689_v1  ;;  %v5682_v10 = vsel %vm13183_vm12, %v5367_v13, %v5681_v56  ;;  %v5375_v44 = vor.u32 %v5373_v23, %v5372_v61  ;;  %v5377_v52 = vrot.slane %v5372_v61, 4  ;;  %v11168_v45 = vpack.c.bf16 %v5237_v26, %v5237_v26  ;;  %v5702_v13 = vld [vmem:[#allocation2 + $0x30] sm:$0xf] }
 0x2d4   : > { %5683 = vst [vmem:[#allocation2 + $0xc] sm:$0xf] %v5682_v10  ;;  %v5393_v62 = vsel %vm13177_vm11, %v5385_v4, %v5392_v21  ;;  %v5693_v60 = vsel %vm13153_vm3, %v5394_v55, %v5692_v41  ;;  %v5413_v63 = vshrl.u32 %v11170_v11, 16  ;;  %v14743_v39 = vsel %vm13205_vm14, %v6549_v40, %v6550_v15 }
 0x2d5   : > { %5691 = vst [vmem:[#allocation2 + $0x1c] sm:$0xf] %v5393_v62  ;;  %5694 = vst [vmem:[#allocation2 + $0x20] sm:$0x1] %v5693_v60  ;;  %v5376_v14 = vsel %vm13177_vm11, %v5368_v12, %v5375_v44  ;;  %v5686_v23 = vsel %vm13153_vm3, %v5377_v52, %v5685_v2  ;;  %v5416_v49 = vshll.u32 %v11170_v11, 16  ;;  %v5396_v6 = vshrl.u32 %v11168_v45, 16 }
 0x2d6   : > { %v12373_v4 = vpop.f32.mrb[136].mxu0  ;;  %5684 = vst [vmem:[#allocation2 + $0x10] sm:$0xf] %v5376_v14  ;;  %5687 = vst [vmem:[#allocation2 + $0x14] sm:$0x1] %v5686_v23  ;;  %v14749_v56 = vrot.slane %v5413_v63, 7  ;;  %v5134_v15 = vadd.f32 %v12370_v32, %v14642_v16  ;;  %v5126_v40 = vadd.f32 %v5125_v29, %v14636_v18  ;;  %v10909_v1 = vcombine.low %v14726_v22, %v14743_v39 }
 0x2d7   : > { %v5147_v34 = vadd.f32 %v12373_v4, %v14652_v53  ;;  %v5138_v27 = vpop.f32.mrb[137].mxu0  ;;  %v14754_v12 = vrot.slane %v5396_v6, 7  ;;  %v5399_v41 = vshll.u32 %v11168_v45, 16  ;;  %v5695_v32 = vld [vmem:[#allocation2 + $0x24] sm:$0xf]  ;;  %v12693_v63 = vld [vmem:[#allocation9 + $0x180] sm:$0xff]  }
 0x2d8   : > { %v5139_v61 = vadd.f32 %v5138_v27, %v14646_v37  ;;  %v12374_v26 = vpop.f32.mrb[138].mxu0  ;;  %v5418_v21 = vor.u32 %v5416_v49, %v14749_v56  ;;  %v5419_v16 = vrot.slane %v14749_v56, 4  ;;  %v5240_v18 = vmax.f32 %v5134_v15, 0.0  ;;  %v5706_v49 = vld [vmem:[#allocation2 + $0x38] sm:$0x1] }
 0x2d9   : > { %v5238_v29 = vmax.f32 %v5126_v40, 0.0  ;;  %v5141_v53 = vpop.f32.mrb[139].mxu0  ;;  %v5401_v55 = vor.u32 %v5399_v41, %v14754_v12  ;;  %v5402_v2 = vrot.slane %v14754_v12, 4  ;;  %v5243_v11 = vmax.f32 %v5147_v34, 0.0  ;;  %v5699_v6 = vld [vmem:[#allocation2 + $0x2c] sm:$0x1] }
 0x2da   : > { %v5241_v10 = vmax.f32 %v5139_v61, 0.0  ;;  %v5703_v37 = vsel %vm13183_vm12, %v5418_v21, %v5702_v13  ;;  %v11171_v44 = vpack.c.bf16 %v5240_v18, %v5240_v18  ;;  %v5150_v22 = vadd.f32 %v12374_v26, %v14654_v8  ;;  %v5716_v12 = vld [vmem:[#allocation2 + $0x48] sm:$0xf] }
 0x2db   : > { %v11169_v52 = vpack.c.bf16 %v5238_v29, %v5238_v29  ;;  %5704 = vst [vmem:[#allocation2 + $0x30] sm:$0xf] %v5703_v37  ;;  %v5696_v45 = vsel %vm13183_vm12, %v5401_v55, %v5695_v32  ;;  %v11174_v31 = vpack.c.bf16 %v5243_v11, %v5243_v11  ;;  %v5142_v60 = vadd.f32 %v5141_v53, %v14648_v20 }
 0x2dc   : > { %v11172_v62 = vpack.c.bf16 %v5241_v10, %v5241_v10  ;;  %5697 = vst [vmem:[#allocation2 + $0x24] sm:$0xf] %v5696_v45  ;;  %v5421_v39 = vshrl.u32 %v11171_v44, 16  ;;  %v5424_v7 = vshll.u32 %v11171_v44, 16  ;;  %v5244_v41 = vmax.f32 %v5150_v22, 0.0  ;;  %v12669_v53 = vld [vmem:[#allocation2 + $0x18] sm:$0xff]  }
 0x2dd   : > { %v5404_v14 = vshrl.u32 %v11169_v52, 16  ;;  %v5407_v23 = vshll.u32 %v11169_v52, 16  ;;  %v5447_v4 = vshrl.u32 %v11174_v31, 16  ;;  %v5450_v56 = vshll.u32 %v11174_v31, 16  ;;  %v12377_v40 = vpop.f32.mrb[140].mxu0  ;;  %v12668_v34 = vld [vmem:[#allocation2 + $0xc] sm:$0xff]  }
 0x2de   : > { %v5430_v15 = vshrl.u32 %v11172_v62, 16  ;;  %v5433_v8 = vshll.u32 %v11172_v62, 16  ;;  %v5423_v27 = vrot.slane %v5421_v39, 7  ;;  %v5242_v61 = vmax.f32 %v5142_v60, 0.0  ;;  %v5154_v20 = vpop.f32.mrb[141].mxu0  ;;  %9545 = vmatprep.mubr.bf16.mxu0 %v12668_v34 }
 0x2df   : > { %v5406_v13 = vrot.slane %v5404_v14, 7  ;;  %v14769_v26 = vrot.slane %v5447_v4, 7  ;;  %v5163_v32 = vadd.f32 %v12377_v40, %v14664_v5  ;;  %v5155_v18 = vadd.f32 %v5154_v20, %v14658_v25  ;;  %v12378_v29 = vpop.f32.mrb[142].mxu0  ;;  %v5709_v44 = vld [vmem:[#allocation2 + $0x3c] sm:$0xf]  ;;  %9546 = vmatmul.mubr.bf16.vlgmr.msra.gmra.mrb[160].mxu0 %v10909_v1  ;;  %v12700_v40 = vld [vmem:[#allocation9 + $0x1c8] sm:$0xff]  }
 0x2e0   : > { %v14771_v21 = vrot.slane %v5430_v15, 7  ;;  %v5426_v55 = vor.u32 %v5424_v7, %v5423_v27  ;;  %v5428_v11 = vrot.slane %v5423_v27, 4  ;;  %v5157_v52 = vpop.f32.mrb[143].mxu0  ;;  %9553 = vmatprep.mubr.bf16.mxu0 %v12669_v53  ;;  %12212 = vmatpush3.bf16.msra.mxu0 %v12693_v63  ;;  %v11173_v7 = vpack.c.bf16 %v5242_v61, %v5242_v61  ;;  %v5720_v34 = vld [vmem:[#allocation2 + $0x50] sm:$0x1] }
 0x2e1   : > { %v5409_v10 = vor.u32 %v5407_v23, %v5406_v13  ;;  %v5411_v37 = vrot.slane %v5406_v13, 4  ;;  %v5452_v22 = vor.u32 %v5450_v56, %v14769_v26  ;;  %v5453_v45 = vrot.slane %v14769_v26, 4  ;;  %v5713_v27 = vld [vmem:[#allocation2 + $0x44] sm:$0x1]  ;;  %12213 = vmatprep.subr.bf16.mxu0 %v12700_v40 }
 0x2e2   : > { %v5435_v31 = vor.u32 %v5433_v8, %v14771_v21  ;;  %v5436_v5 = vrot.slane %v14771_v21, 4  ;;  %v5427_v25 = vsel %vm13177_vm11, %v5419_v16, %v5426_v55  ;;  %v5707_v62 = vsel %vm13153_vm3, %v5428_v11, %v5706_v49  ;;  %v12701_v26 = vld [vmem:[#allocation9 + $0x188] sm:$0xff]  }
 0x2e3   : > { %v5410_v60 = vsel %vm13177_vm11, %v5402_v2, %v5409_v10  ;;  %v5700_v1 = vsel %vm13153_vm3, %v5411_v37, %v5699_v6  ;;  %5705 = vst [vmem:[#allocation2 + $0x34] sm:$0xf] %v5427_v25  ;;  %5708 = vst [vmem:[#allocation2 + $0x38] sm:$0x1] %v5707_v62  ;;  %v5717_v39 = vsel %vm13183_vm12, %v5452_v22, %v5716_v12  ;;  %v5247_v14 = vmax.f32 %v5163_v32, 0.0 }
 0x2e4   : > { %5698 = vst [vmem:[#allocation2 + $0x28] sm:$0xf] %v5410_v60  ;;  %5701 = vst [vmem:[#allocation2 + $0x2c] sm:$0x1] %v5700_v1  ;;  %v5710_v63 = vsel %vm13183_vm12, %v5435_v31, %v5709_v44  ;;  %v11175_v16 = vpack.c.bf16 %v5244_v41, %v5244_v41  ;;  %v5245_v23 = vmax.f32 %v5155_v18, 0.0  ;;  %v5166_v2 = vadd.f32 %v12378_v29, %v14666_v28  ;;  %v12704_v29 = vld [vmem:[#allocation9 + $0x168] sm:$0xff]  }
 0x2e5   : > { %5718 = vst [vmem:[#allocation2 + $0x48] sm:$0xf] %v5717_v39  ;;  %5711 = vst [vmem:[#allocation2 + $0x3c] sm:$0xf] %v5710_v63  ;;  %v5158_v49 = vadd.f32 %v5157_v52, %v14660_v36  ;;  %v5438_v56 = vshrl.u32 %v11173_v7, 16  ;;  %v5441_v15 = vshll.u32 %v11173_v7, 16  ;;  %v11178_v13 = vpack.c.bf16 %v5247_v14, %v5247_v14  ;;  %12214 = vmatpush3.bf16.msra.mxu0 %v12701_v26 }
 0x2e6   : > { %v5455_v6 = vshrl.u32 %v11175_v16, 16  ;;  %v5458_v4 = vshll.u32 %v11175_v16, 16  ;;  %v12381_v8 = vpop.f32.mrb[144].mxu0  ;;  %v11176_v12 = vpack.c.bf16 %v5245_v23, %v5245_v23  ;;  %v5248_v41 = vmax.f32 %v5166_v2, 0.0  ;;  %v12705_v44 = vld [vmem:[#allocation9 + $0x128] sm:$0xff]   ;;  %12109 = vmatprep.subr.bf16.mxu1 %v12704_v29 }
 0x2e7   : > { %v5246_v61 = vmax.f32 %v5158_v49, 0.0  ;;  %v5170_v20 = vpop.f32.mrb[145].mxu0  ;;  %v5440_v32 = vrot.slane %v5438_v56, 7  ;;  %v5179_v28 = vadd.f32 %v12381_v8, %v14676_v38  ;;  %v5481_v53 = vshrl.u32 %v11178_v13, 16  ;;  %12110 = vmatpush3.bf16.msra.mxu1 %v12705_v44  ;;  %v5730_v7 = vld [vmem:[#allocation2 + $0x60] sm:$0xf] }
 0x2e8   : > { %v5457_v21 = vrot.slane %v5455_v6, 7  ;;  %v5171_v36 = vadd.f32 %v5170_v20, %v14670_v51  ;;  %v12382_v18 = vpop.f32.mrb[146].mxu0  ;;  %v5484_v55 = vshll.u32 %v11178_v13, 16  ;;  %v5464_v11 = vshrl.u32 %v11176_v12, 16  ;;  %v5723_v14 = vld [vmem:[#allocation2 + $0x54] sm:$0xf] }
 0x2e9   : > { %v5467_v10 = vshll.u32 %v11176_v12, 16  ;;  %v5173_v37 = vpop.f32.mrb[147].mxu0  ;;  %v5443_v31 = vor.u32 %v5441_v15, %v5440_v32  ;;  %v5445_v25 = vrot.slane %v5440_v32, 4  ;;  %v5483_v62 = vrot.slane %v5481_v53, 7  ;;  %v5727_v13 = vld [vmem:[#allocation2 + $0x5c] sm:$0x1] }
 0x2ea   : > { %v5460_v52 = vor.u32 %v5458_v4, %v5457_v21  ;;  %v5462_v22 = vrot.slane %v5457_v21, 4  ;;  %v5466_v60 = vrot.slane %v5464_v11, 7  ;;  %v11179_v38 = vpack.c.bf16 %v5248_v41, %v5248_v41  ;;  %v12708_v53 = vld [vmem:[#allocation9 + $0x1d0] sm:$0xff]  }
 0x2eb   : > { %v11177_v1 = vpack.c.bf16 %v5246_v61, %v5246_v61  ;;  %v5444_v63 = vsel %vm13177_vm11, %v5436_v5, %v5443_v31  ;;  %v5714_v16 = vsel %vm13153_vm3, %v5445_v25, %v5713_v27  ;;  %v5486_v23 = vor.u32 %v5484_v55, %v5483_v62  ;;  %v5734_v27 = vld [vmem:[#allocation2 + $0x68] sm:$0x1]  ;;  %12215 = vmatprep.subr.bf16.mxu0 %v12708_v53  ;;  %v5943_v53 = vld [vmem:[#allocation2 + $0x18] sm:$0xf] }
 0x2ec   : > { %v5461_v51 = vsel %vm13177_vm11, %v5453_v45, %v5460_v52  ;;  %v5721_v39 = vsel %vm13153_vm3, %v5462_v22, %v5720_v34  ;;  %5712 = vst [vmem:[#allocation2 + $0x40] sm:$0xf] %v5444_v63  ;;  %5715 = vst [vmem:[#allocation2 + $0x44] sm:$0x1] %v5714_v16  ;;  %v5487_v2 = vrot.slane %v5483_v62, 4  ;;  %v5469_v49 = vor.u32 %v5467_v10, %v5466_v60 }
 0x2ed   : > { %5719 = vst [vmem:[#allocation2 + $0x4c] sm:$0xf] %v5461_v51  ;;  %5722 = vst [vmem:[#allocation2 + $0x50] sm:$0x1] %v5721_v39  ;;  %v5470_v6 = vrot.slane %v5466_v60, 4  ;;  %v5489_v4 = vshrl.u32 %v11179_v38, 16  ;;  %v5731_v5 = vsel %vm13183_vm12, %v5486_v23, %v5730_v7  ;;  %v5182_v21 = vadd.f32 %v12382_v18, %v14682_v33 }
 0x2ee   : > { %v5940_v45 = vld [vmem:[#allocation2 + $0xc] sm:$0xf]  ;;  %v5492_v56 = vshll.u32 %v11179_v38, 16  ;;  %v5472_v15 = vshrl.u32 %v11177_v1, 16  ;;  %v5475_v8 = vshll.u32 %v11177_v1, 16  ;;  %v14803_v40 = vpop.f32.mrb[148].mxu0  ;;  %v5724_v34 = vsel %vm13183_vm12, %v5469_v49, %v5723_v14 }
 0x2ef   : > { %v5251_v12 = vmax.f32 %v5179_v28, 0.0  ;;  %v5249_v41 = vmax.f32 %v5171_v36, 0.0  ;;  %v14809_v61 = vpop.f32.mrb[149].mxu0  ;;  %5732 = vst [vmem:[#allocation2 + $0x60] sm:$0xf] %v5731_v5  ;;  %v5491_v20 = vrot.slane %v5489_v4, 7  ;;  %v5174_v32 = vadd.f32 %v5173_v37, %v14672_v50 }
 0x2f0   : > { %5725 = vst [vmem:[#allocation2 + $0x54] sm:$0xf] %v5724_v34  ;;  %v5474_v26 = vrot.slane %v5472_v15, 7  ;;  %v14813_v29 = vpop.f32.mrb[150].mxu0  ;;  %v6010_v10 = vshrl.u32 %v5940_v45, 16  ;;  %v6013_v44 = vshll.u32 %v5940_v45, 16 }
 0x2f1   : > { %v11182_v55 = vpack.c.bf16 %v5251_v12, %v5251_v12  ;;  %v11180_v11 = vpack.c.bf16 %v5249_v41, %v5249_v41  ;;  %v14815_v52 = vpop.f32.mrb[151].mxu0  ;;  %v12709_v28 = vld [vmem:[#allocation9 + $0x190] sm:$0xff]   ;;  %v5494_v36 = vor.u32 %v5492_v56, %v5491_v20  ;;  %v5496_v22 = vrot.slane %v5491_v20, 4  ;;  %v5941_v50 = vld [vmem:[#allocation2 + $0x10] sm:$0xf] }
 0x2f2   : > { %v5477_v31 = vor.u32 %v5475_v8, %v5474_v26  ;;  %v5479_v25 = vrot.slane %v5474_v26, 4  ;;  %12216 = vmatpush3.bf16.msra.mxu0 %v12709_v28  ;;  %v5744_v39 = vld [vmem:[#allocation2 + $0x78] sm:$0xf]  ;;  %v5737_v63 = vld [vmem:[#allocation2 + $0x6c] sm:$0xf]  ;;  %v5252_v14 = vmax.f32 %v5182_v21, 0.0 }
 0x2f3   : > { %v5515_v62 = vshrl.u32 %v11182_v55, 16  ;;  %v5518_v60 = vshll.u32 %v11182_v55, 16  ;;  %v5498_v33 = vshrl.u32 %v11180_v11, 16  ;;  %v5501_v18 = vshll.u32 %v11180_v11, 16  ;;  %v6452_v56 = vld [vmem:[#allocation2 + $0xc] sm:$0xe] }
 0x2f4   : > { %v5495_v37 = vsel %vm13177_vm11, %v5487_v2, %v5494_v36  ;;  %v5735_v38 = vsel %vm13153_vm3, %v5496_v22, %v5734_v27  ;;  %v5478_v1 = vsel %vm13177_vm11, %v5470_v6, %v5477_v31  ;;  %v5728_v51 = vsel %vm13153_vm3, %v5479_v25, %v5727_v13  ;;  %v5942_v2 = vld [vmem:[#allocation2 + $0x14] sm:$0x1]  ;;  %v6453_v13 = vld [vmem:[#allocation2 + $0x10] sm:$0xf]  ;;  %v6467_v48 = vld [vmem:[#allocation2 + $0x48] sm:$0xe] }
 0x2f5   : > { %5733 = vst [vmem:[#allocation2 + $0x64] sm:$0xf] %v5495_v37  ;;  %5736 = vst [vmem:[#allocation2 + $0x68] sm:$0x1] %v5735_v38  ;;  %v14825_v16 = vrot.slane %v5515_v62, 7  ;;  %v14827_v7 = vrot.slane %v5498_v33, 7  ;;  %v11183_v41 = vpack.c.bf16 %v5252_v14, %v5252_v14 }
 0x2f6   : > { %5726 = vst [vmem:[#allocation2 + $0x58] sm:$0xf] %v5478_v1  ;;  %5729 = vst [vmem:[#allocation2 + $0x5c] sm:$0x1] %v5728_v51  ;;  %v5250_v23 = vmax.f32 %v5174_v32, 0.0  ;;  %v6012_v49 = vrot.slane %v6010_v10, 4 }
 0x2f7   : > { %v6015_v45 = vrot.slane %v6013_v44, 5  ;;  %v6019_v4 = vshll.u32 %v5941_v50, 16  ;;  %v6023_v6 = vshrl.u32 %v5941_v50, 16  ;;  %v14829_v15 = vpop.f32.mrb[152].mxu0  ;;  %v5520_v8 = vor.u32 %v5518_v60, %v14825_v16  ;;  %v6454_v32 = vld [vmem:[#allocation2 + $0x14] sm:$0x1] }
 0x2f8   : > { %v5521_v5 = vrot.slane %v14825_v16, 4  ;;  %v5503_v34 = vor.u32 %v5501_v18, %v14827_v7  ;;  %v5504_v27 = vrot.slane %v14827_v7, 4  ;;  %v14835_v12 = vpop.f32.mrb[153].mxu0  ;;  %v11181_v20 = vpack.c.bf16 %v5250_v23, %v5250_v23  ;;  %v12712_v37 = vld [vmem:[#allocation9 + $0x170] sm:$0xff]   ;;  %v5748_v1 = vld [vmem:[#allocation2 + $0x80] sm:$0x1] }
 0x2f9   : > { %v6016_v26 = vor.u32 %v6015_v45, %v6012_v49  ;;  %v6021_v21 = vrot.slane %v6019_v4, 5  ;;  %v14837_v55 = vpop.f32.mrb[154].mxu0  ;;  %v5745_v11 = vsel %vm13183_vm12, %v5520_v8, %v5744_v39  ;;  %v6025_v44 = vrot.slane %v6023_v6, 4  ;;  %v5741_v16 = vld [vmem:[#allocation2 + $0x74] sm:$0x1]  ;;  %12111 = vmatprep.subr.bf16.mxu1 %v12712_v37 }
 0x2fa   : > { %v5738_v10 = vsel %vm13183_vm12, %v5503_v34, %v5737_v63  ;;  %v6029_v28 = vshll.u32 %v5942_v2, 16  ;;  %v14843_v36 = vpop.f32.mrb[155].mxu0  ;;  %5746 = vst [vmem:[#allocation2 + $0x78] sm:$0xf] %v5745_v11  ;;  %v5523_v22 = vshrl.u32 %v11183_v41, 16  ;;  %v5526_v31 = vshll.u32 %v11183_v41, 16 }
 0x2fb   : > { %5739 = vst [vmem:[#allocation2 + $0x6c] sm:$0xf] %v5738_v10  ;;  %v5506_v25 = vshrl.u32 %v11181_v20, 16  ;;  %v5509_v62 = vshll.u32 %v11181_v20, 16  ;;  %v6017_v60 = vrot.slane %v6016_v26, 4  ;;  %v6026_v33 = vor.u32 %v6025_v44, %v6021_v21  ;;  %v12672_v44 = vld [vmem:[#allocation2 + $0xc] sm:$0xff]  }
 0x2fc   : > { %v6031_v18 = vrot.slane %v6029_v28, 5  ;;  %v10894_v50 = vrot.slane %v6452_v56, 9  ;;  %v5525_v38 = vrot.slane %v5523_v22, 7  ;;  %v6554_v39 = vrot.slane %v6453_v13, 5  ;;  %v5944_v8 = vld [vmem:[#allocation2 + $0x1c] sm:$0xf] }
 0x2fd   : > { %v5508_v51 = vrot.slane %v5506_v25, 7  ;;  %v6557_v63 = vrot.slane %v6454_v32, 5  ;;  %v6022_v7 = vsel %vm13190_vm13, %v6017_v60, %v6021_v21  ;;  %v6027_v14 = vrot.slane %v6026_v33, 4  ;;  %v14847_v56 = vpop.f32.mrb[156].mxu0  ;;  %v5945_v20 = vld [vmem:[#allocation2 + $0x20] sm:$0x1] }
 0x2fe   : > { %v6034_v23 = vshrl.u32 %v5943_v53, 16  ;;  %v6037_v2 = vshll.u32 %v5943_v53, 16  ;;  %v5528_v49 = vor.u32 %v5526_v31, %v5525_v38  ;;  %v5530_v45 = vrot.slane %v5525_v38, 4  ;;  %v14853_v21 = vpop.f32.mrb[157].mxu0  ;;  %v14863_v28 = vld [vmem:[#allocation2 + $0x18] sm:$0xe] }
 0x2ff   : > { %v5511_v4 = vor.u32 %v5509_v62, %v5508_v51  ;;  %v5513_v6 = vrot.slane %v5508_v51, 4  ;;  %v6032_v34 = vsel %vm13190_vm13, %v6027_v14, %v6031_v18  ;;  %v6555_v13 = vsel %vm13205_vm14, %v10894_v50, %v6554_v39  ;;  %v14865_v22 = vpop.f32.mrb[158].mxu0  ;;  %v14869_v60 = vld [vmem:[#allocation2 + $0x1c] sm:$0xf]  ;;  %v12713_v33 = vld [vmem:[#allocation9 + $0x130] sm:$0xff]  }
 0x300   : > { %v6556_v41 = vrot.slane %v6554_v39, 4  ;;  %v6036_v26 = vrot.slane %v6034_v23, 4  ;;  %v5529_v32 = vsel %vm13177_vm11, %v5521_v5, %v5528_v49  ;;  %v5749_v53 = vsel %vm13153_vm3, %v5530_v45, %v5748_v1  ;;  %v12673_v1 = vld [vmem:[#allocation2 + $0x24] sm:$0xff]   ;;  %12112 = vmatpush3.bf16.msra.mxu1 %v12713_v33  ;;  %v12717_v49 = vld [vmem:[#allocation9 + $0x198] sm:$0xff]  }
 0x301   : > { %v5512_v11 = vsel %vm13177_vm11, %v5504_v27, %v5511_v4  ;;  %v5742_v10 = vsel %vm13153_vm3, %v5513_v6, %v5741_v16  ;;  %5747 = vst [vmem:[#allocation2 + $0x7c] sm:$0xf] %v5529_v32  ;;  %5750 = vst [vmem:[#allocation2 + $0x80] sm:$0x1] %v5749_v53  ;;  %v10878_v31 = vcombine.low %v6022_v7, %v6032_v34  ;;  %v6039_v25 = vrot.slane %v6037_v2, 5  ;;  %v14871_v27 = vpop.f32.mrb[159].mxu0 }
 0x302   : > { %5740 = vst [vmem:[#allocation2 + $0x70] sm:$0xf] %v5512_v11  ;;  %5743 = vst [vmem:[#allocation2 + $0x74] sm:$0x1] %v5742_v10  ;;  %v6558_v5 = vsel %vm13205_vm14, %v6556_v41, %v6557_v63  ;;  %v6043_v62 = vshll.u32 %v5944_v8, 16  ;;  %v6047_v50 = vshrl.u32 %v5944_v8, 16  ;;  %v5195_v38 = vadd.f32 %v14803_v40, %v14692_v0 }
 0x303   : > { %v10910_v18 = vcombine.low %v6555_v13, %v6558_v5  ;;  %v6053_v37 = vshll.u32 %v5945_v20, 16  ;;  %9392 = vmatprep.mubr.bf16.mxu1 %v10878_v31  ;;  %v6040_v51 = vor.u32 %v6039_v25, %v6036_v26  ;;  %v5187_v63 = vadd.f32 %v14809_v61, %v14686_v43  ;;  %v12716_v7 = vld [vmem:[#allocation9 + $0x1d8] sm:$0xff]   ;;  %v6457_v40 = vld [vmem:[#allocation2 + $0x20] sm:$0x1]  ;;  %v12718_v41 = vld [vmem:[#allocation9 + $0x1e0] sm:$0xff]  }
 0x304   : > { %v6045_v39 = vrot.slane %v6043_v62, 5  ;;  %v5198_v16 = vadd.f32 %v14813_v29, %v14694_v46  ;;  %9393 = vmatmul.mubr.bf16.gmra.mrb[132].mxu1 %v12672_v44  ;;  %v6049_v14 = vrot.slane %v6047_v50, 4  ;;  %v5255_v2 = vmax.f32 %v5195_v38, 0.0  ;;  %12217 = vmatprep.subr.bf16.mxu0 %v12716_v7  ;;  %v5758_v11 = vld [vmem:[#allocation2 + $0x90] sm:$0xf] }
 0x305   : > { %9554 = vmatmul.mubr.bf16.gmra.mrb[164].mxu0 %v10910_v18  ;;  %v6055_v23 = vrot.slane %v6053_v37, 5  ;;  %v5190_v0 = vadd.f32 %v14815_v52, %v14688_v57  ;;  %v6041_v45 = vrot.slane %v6040_v51, 4  ;;  %v5253_v4 = vmax.f32 %v5187_v63, 0.0  ;;  %v5751_v50 = vld [vmem:[#allocation2 + $0x84] sm:$0xf] }
 0x306   : > { %9561 = vmatprep.mubr.bf16.mxu0 %v12673_v1  ;;  %v5256_v6 = vmax.f32 %v5198_v16, 0.0  ;;  %v10895_v43 = vrot.slane %v14863_v28, 9  ;;  %v6050_v46 = vor.u32 %v6049_v14, %v6045_v39  ;;  %v11186_v61 = vpack.c.bf16 %v5255_v2, %v5255_v2  ;;  %12218 = vmatpush3.bf16.msra.mxu0 %v12717_v49  ;;  %v5762_v38 = vld [vmem:[#allocation2 + $0x98] sm:$0x1]  ;;  %v5755_v16 = vld [vmem:[#allocation2 + $0x8c] sm:$0x1] }
 0x307   : > { %v5254_v29 = vmax.f32 %v5190_v0, 0.0  ;;  %v6561_v8 = vrot.slane %v14869_v60, 5  ;;  %v6046_v34 = vsel %vm13190_vm13, %v6041_v45, %v6045_v39  ;;  %v11184_v13 = vpack.c.bf16 %v5253_v4, %v5253_v4  ;;  %12219 = vmatprep.subr.bf16.mxu0 %v12718_v41  ;;  %v12674_v14 = vld [vmem:[#allocation2 + $0x18] sm:$0xff]   ;;  %v5946_v49 = vld [vmem:[#allocation2 + $0x24] sm:$0xf]  ;;  %v12675_v41 = vld [vmem:[#allocation2 + $0x30] sm:$0xff]  }
 0x308   : > { %v11187_v57 = vpack.c.bf16 %v5256_v6, %v5256_v6  ;;  %v6564_v52 = vrot.slane %v6457_v40, 5  ;;  %v6051_v20 = vrot.slane %v6050_v46, 4  ;;  %v5549_v26 = vshrl.u32 %v11186_v61, 16  ;;  %v5947_v45 = vld [vmem:[#allocation2 + $0x28] sm:$0xf] }
 0x309   : > { %v5552_v32 = vshll.u32 %v11186_v61, 16  ;;  %v11185_v53 = vpack.c.bf16 %v5254_v29, %v5254_v29  ;;  %v5532_v10 = vshrl.u32 %v11184_v13, 16  ;;  %v5535_v44 = vshll.u32 %v11184_v13, 16  ;;  %v5948_v61 = vld [vmem:[#allocation2 + $0x2c] sm:$0x1] }
 0x30a   : > { %v5557_v28 = vshrl.u32 %v11187_v57, 16  ;;  %v5560_v31 = vshll.u32 %v11187_v57, 16  ;;  %v6056_v5 = vsel %vm13190_vm13, %v6051_v20, %v6055_v23  ;;  %v5551_v25 = vrot.slane %v5549_v26, 7 }
 0x30b   : > { %v5540_v62 = vshrl.u32 %v11185_v53, 16  ;;  %v5543_v60 = vshll.u32 %v11185_v53, 16  ;;  %v10879_v33 = vcombine.low %v6046_v34, %v6056_v5  ;;  %v5534_v18 = vrot.slane %v5532_v10, 7 }
 0x30c   : > { %v5559_v37 = vrot.slane %v5557_v28, 7  ;;  %v6562_v1 = vsel %vm13205_vm14, %v10895_v43, %v6561_v8  ;;  %v5554_v51 = vor.u32 %v5552_v32, %v5551_v25  ;;  %v5555_v39 = vrot.slane %v5551_v25, 4 }
 0x30d   : > { %v5542_v63 = vrot.slane %v5540_v62, 7  ;;  %v6563_v7 = vrot.slane %v6561_v8, 4  ;;  %9400 = vmatprep.mubr.bf16.mxu1 %v10879_v33  ;;  %v5537_v2 = vor.u32 %v5535_v44, %v5534_v18  ;;  %v5538_v23 = vrot.slane %v5534_v18, 4  ;;  %v12721_v44 = vld [vmem:[#allocation9 + $0x178] sm:$0xff]   ;;  %v6458_v62 = vld [vmem:[#allocation2 + $0x24] sm:$0xe] }
 0x30e   : > { %v5562_v0 = vor.u32 %v5560_v31, %v5559_v37  ;;  %v5564_v40 = vrot.slane %v5559_v37, 4  ;;  %v5759_v4 = vsel %vm13183_vm12, %v5554_v51, %v5758_v11  ;;  %9401 = vmatmul.mubr.bf16.gmra.mrb[136].mxu1 %v12674_v14  ;;  %v6058_v20 = vshrl.u32 %v5946_v49, 16  ;;  %12113 = vmatprep.subr.bf16.mxu1 %v12721_v44 }
 0x30f   : > { %v5545_v6 = vor.u32 %v5543_v60, %v5542_v63  ;;  %v5547_v46 = vrot.slane %v5542_v63, 4  ;;  %v6565_v43 = vsel %vm13205_vm14, %v6563_v7, %v6564_v52  ;;  %5760 = vst [vmem:[#allocation2 + $0x90] sm:$0xf] %v5759_v4  ;;  %v5752_v29 = vsel %vm13183_vm12, %v5537_v2, %v5751_v50  ;;  %v6459_v60 = vld [vmem:[#allocation2 + $0x28] sm:$0xf] }
 0x310   : > { %v5563_v8 = vsel %vm13177_vm11, %v5555_v39, %v5562_v0  ;;  %v5763_v34 = vsel %vm13153_vm3, %v5564_v40, %v5762_v38  ;;  %v10911_v13 = vcombine.low %v6562_v1, %v6565_v43  ;;  %5753 = vst [vmem:[#allocation2 + $0x84] sm:$0xf] %v5752_v29  ;;  %v6061_v26 = vshll.u32 %v5946_v49, 16  ;;  %v5772_v40 = vld [vmem:[#allocation2 + $0xa8] sm:$0xf] }
 0x311   : > { %5761 = vst [vmem:[#allocation2 + $0x94] sm:$0xf] %v5563_v8  ;;  %5764 = vst [vmem:[#allocation2 + $0x98] sm:$0x1] %v5763_v34  ;;  %v5546_v57 = vsel %vm13177_vm11, %v5538_v23, %v5545_v6  ;;  %v5756_v52 = vsel %vm13153_vm3, %v5547_v46, %v5755_v16  ;;  %v6067_v32 = vshll.u32 %v5947_v45, 16  ;;  %v6071_v53 = vshrl.u32 %v5947_v45, 16 }
 0x312   : > { %5754 = vst [vmem:[#allocation2 + $0x88] sm:$0xf] %v5546_v57  ;;  %5757 = vst [vmem:[#allocation2 + $0x8c] sm:$0x1] %v5756_v52  ;;  %9562 = vmatmul.mubr.bf16.gmra.mrb[168].mxu0 %v10911_v13  ;;  %v6077_v11 = vshll.u32 %v5948_v61, 16  ;;  %v5211_v10 = vadd.f32 %v14829_v15, %v14704_v3  ;;  %v6060_v28 = vrot.slane %v6058_v20, 4  ;;  %v5203_v5 = vadd.f32 %v14835_v12, %v14698_v24 }
 0x313   : > { %9569 = vmatprep.mubr.bf16.mxu0 %v12675_v41  ;;  %v6063_v31 = vrot.slane %v6061_v26, 5  ;;  %v5214_v25 = vadd.f32 %v14837_v55, %v14706_v54  ;;  %v6069_v33 = vrot.slane %v6067_v32, 5  ;;  %v6073_v18 = vrot.slane %v6071_v53, 4  ;;  %v5765_v6 = vld [vmem:[#allocation2 + $0x9c] sm:$0xf]  ;;  %v12678_v53 = vld [vmem:[#allocation2 + $0x24] sm:$0xff]  }
 0x314   : > { %v6079_v50 = vrot.slane %v6077_v11, 5  ;;  %v5259_v37 = vmax.f32 %v5211_v10, 0.0  ;;  %v5257_v1 = vmax.f32 %v5203_v5, 0.0  ;;  %v5206_v15 = vadd.f32 %v14843_v36, %v14700_v35  ;;  %v5776_v43 = vld [vmem:[#allocation2 + $0xb0] sm:$0x1] }
 0x315   : > { %v6064_v38 = vor.u32 %v6063_v31, %v6060_v28  ;;  %v5260_v3 = vmax.f32 %v5214_v25, 0.0  ;;  %v6074_v51 = vor.u32 %v6073_v18, %v6069_v33  ;;  %v10896_v63 = vrot.slane %v6458_v62, 9  ;;  %v6460_v29 = vld [vmem:[#allocation2 + $0x2c] sm:$0x1]  ;;  %v5949_v8 = vld [vmem:[#allocation2 + $0x30] sm:$0xf] }
 0x316   : > { %v11190_v39 = vpack.c.bf16 %v5259_v37, %v5259_v37  ;;  %v6568_v24 = vrot.slane %v6459_v60, 5  ;;  %v11188_v16 = vpack.c.bf16 %v5257_v1, %v5257_v1  ;;  %v5258_v55 = vmax.f32 %v5206_v15, 0.0  ;;  %v5950_v62 = vld [vmem:[#allocation2 + $0x34] sm:$0xf]  ;;  %v5951_v1 = vld [vmem:[#allocation2 + $0x38] sm:$0x1] }
 0x317   : > { %v6065_v12 = vrot.slane %v6064_v38, 4  ;;  %v11191_v54 = vpack.c.bf16 %v5260_v3, %v5260_v3  ;;  %v6075_v7 = vrot.slane %v6074_v51, 4  ;;  %v6571_v25 = vrot.slane %v6460_v29, 5  ;;  %v5769_v38 = vld [vmem:[#allocation2 + $0xa4] sm:$0x1]  ;;  %v12723_v15 = vld [vmem:[#allocation9 + $0x138] sm:$0xff]  }
 0x318   : > { %v5583_v14 = vshrl.u32 %v11190_v39, 16  ;;  %v5586_v2 = vshll.u32 %v11190_v39, 16  ;;  %v14913_v23 = vsel %vm13205_vm14, %v10896_v63, %v6568_v24  ;;  %v5566_v35 = vshrl.u32 %v11188_v16, 16  ;;  %12114 = vmatpush3.bf16.msra.mxu1 %v12723_v15 }
 0x319   : > { %v6070_v0 = vsel %vm13190_vm13, %v6065_v12, %v6069_v33  ;;  %v5569_v36 = vshll.u32 %v11188_v16, 16  ;;  %v5591_v49 = vshrl.u32 %v11191_v54, 16  ;;  %v6080_v45 = vsel %vm13190_vm13, %v6075_v7, %v6079_v50  ;;  %v12722_v33 = vld [vmem:[#allocation9 + $0x1a0] sm:$0xff]   ;;  %v6461_v16 = vld [vmem:[#allocation2 + $0x30] sm:$0xe] }
 0x31a   : > { %v5585_v4 = vrot.slane %v5583_v14, 7  ;;  %v5594_v46 = vshll.u32 %v11191_v54, 16  ;;  %v11189_v61 = vpack.c.bf16 %v5258_v55, %v5258_v55  ;;  %v10880_v34 = vcombine.low %v6070_v0, %v6080_v45  ;;  %12220 = vmatpush3.bf16.msra.mxu0 %v12722_v33  ;;  %v12724_v0 = vld [vmem:[#allocation9 + $0x1e8] sm:$0xff]  }
 0x31b   : > { %v5568_v13 = vrot.slane %v5566_v35, 7  ;;  %v5593_v57 = vrot.slane %v5591_v49, 7  ;;  %v6570_v52 = vrot.slane %v6568_v24, 4  ;;  %v6082_v60 = vshrl.u32 %v5949_v8, 16  ;;  %v12679_v24 = vld [vmem:[#allocation2 + $0x3c] sm:$0xff]   ;;  %12221 = vmatprep.subr.bf16.mxu0 %v12724_v0 }
 0x31c   : > { %v5588_v41 = vor.u32 %v5586_v2, %v5585_v4  ;;  %v5589_v20 = vrot.slane %v5585_v4, 4  ;;  %v5574_v26 = vshrl.u32 %v11189_v61, 16  ;;  %v5577_v32 = vshll.u32 %v11189_v61, 16  ;;  %9408 = vmatprep.mubr.bf16.mxu1 %v10880_v34  ;;  %v6462_v2 = vld [vmem:[#allocation2 + $0x34] sm:$0xf]  ;;  %v12725_v45 = vld [vmem:[#allocation9 + $0x1a8] sm:$0xff]  }
 0x31d   : > { %v5571_v11 = vor.u32 %v5569_v36, %v5568_v13  ;;  %v5572_v10 = vrot.slane %v5568_v13, 4  ;;  %v5596_v44 = vor.u32 %v5594_v46, %v5593_v57  ;;  %v5598_v28 = vrot.slane %v5593_v57, 4  ;;  %9409 = vmatmul.mubr.bf16.gmra.mrb[140].mxu1 %v12678_v53 }
 0x31e   : > { %v5773_v31 = vsel %vm13183_vm12, %v5588_v41, %v5772_v40  ;;  %v5576_v5 = vrot.slane %v5574_v26, 7  ;;  %v6085_v3 = vshll.u32 %v5949_v8, 16  ;;  %v6572_v63 = vsel %vm13205_vm14, %v6570_v52, %v6571_v25  ;;  %12222 = vmatpush3.bf16.msra.mxu0 %v12725_v45  ;;  %v12726_v52 = vld [vmem:[#allocation9 + $0x1f0] sm:$0xff]  }
 0x31f   : > { %5774 = vst [vmem:[#allocation2 + $0xa8] sm:$0xf] %v5773_v31  ;;  %v5766_v18 = vsel %vm13183_vm12, %v5571_v11, %v5765_v6  ;;  %v5597_v50 = vsel %vm13177_vm11, %v5589_v20, %v5596_v44  ;;  %v5777_v37 = vsel %vm13153_vm3, %v5598_v28, %v5776_v43  ;;  %v6084_v12 = vrot.slane %v6082_v60, 4  ;;  %v12728_v26 = vld [vmem:[#allocation9 + $0x1b0] sm:$0xff]   ;;  %12223 = vmatprep.subr.bf16.mxu0 %v12726_v52  ;;  %v5786_v28 = vld [vmem:[#allocation2 + $0xc0] sm:$0xf] }
 0x320   : > { %5767 = vst [vmem:[#allocation2 + $0x9c] sm:$0xf] %v5766_v18  ;;  %5775 = vst [vmem:[#allocation2 + $0xac] sm:$0xf] %v5597_v50  ;;  %v5579_v51 = vor.u32 %v5577_v32, %v5576_v5  ;;  %v5581_v39 = vrot.slane %v5576_v5, 4  ;;  %v10912_v54 = vcombine.low %v14913_v23, %v6572_v63  ;;  %v6087_v55 = vrot.slane %v6085_v3, 5 }
 0x321   : > { %5778 = vst [vmem:[#allocation2 + $0xb0] sm:$0x1] %v5777_v37  ;;  %v6091_v7 = vshll.u32 %v5950_v62, 16  ;;  %v6095_v14 = vshrl.u32 %v5950_v62, 16  ;;  %v6101_v36 = vshll.u32 %v5951_v1, 16  ;;  %v5227_v49 = vadd.f32 %v14847_v56, %v14722_v58 }
 0x322   : > { %v5580_v40 = vsel %vm13177_vm11, %v5572_v10, %v5579_v51  ;;  %v5770_v35 = vsel %vm13153_vm3, %v5581_v39, %v5769_v38  ;;  %9570 = vmatmul.mubr.bf16.gmra.mrb[172].mxu0 %v10912_v54  ;;  %v6088_v23 = vor.u32 %v6087_v55, %v6084_v12  ;;  %v5219_v46 = vadd.f32 %v14853_v21, %v14711_v42  ;;  %v6463_v56 = vld [vmem:[#allocation2 + $0x38] sm:$0x1]  ;;  %v5952_v62 = vld [vmem:[#allocation2 + $0x3c] sm:$0xf]  ;;  %v5779_v18 = vld [vmem:[#allocation2 + $0xb4] sm:$0xf] }
 0x323   : > { %5768 = vst [vmem:[#allocation2 + $0xa0] sm:$0xf] %v5580_v40  ;;  %5771 = vst [vmem:[#allocation2 + $0xa4] sm:$0x1] %v5770_v35  ;;  %v6093_v4 = vrot.slane %v6091_v7, 5  ;;  %v6097_v6 = vrot.slane %v6095_v14, 4  ;;  %9577 = vmatprep.mubr.bf16.mxu0 %v12679_v24  ;;  %v5230_v29 = vadd.f32 %v14865_v22, %v14729_v59  ;;  %v5222_v58 = vadd.f32 %v14871_v27, %v14714_v19 }
 0x324   : > { %v6103_v43 = vrot.slane %v6101_v36, 5  ;;  %v5263_v61 = vmax.f32 %v5227_v49, 0.0  ;;  %v6089_v8 = vrot.slane %v6088_v23, 4  ;;  %v5261_v13 = vmax.f32 %v5219_v46, 0.0  ;;  %12224 = vmatpush3.bf16.msra.mxu0 %v12728_v26  ;;  %v12680_v38 = vld [vmem:[#allocation2 + $0x30] sm:$0xff]  }
 0x325   : > { %v6098_v34 = vor.u32 %v6097_v6, %v6093_v4  ;;  %v10897_v57 = vrot.slane %v6461_v16, 9  ;;  %v5264_v20 = vmax.f32 %v5230_v29, 0.0  ;;  %v5262_v42 = vmax.f32 %v5222_v58, 0.0  ;;  %v5790_v3 = vld [vmem:[#allocation2 + $0xc8] sm:$0x1] }
 0x326   : > { %v11194_v41 = vpack.c.bf16 %v5263_v61, %v5263_v61  ;;  %v6575_v21 = vrot.slane %v6462_v2, 5  ;;  %v6094_v32 = vsel %vm13190_vm13, %v6089_v8, %v6093_v4  ;;  %v11192_v59 = vpack.c.bf16 %v5261_v13, %v5261_v13  ;;  %v5953_v63 = vld [vmem:[#allocation2 + $0x40] sm:$0xf]  ;;  %v5783_v54 = vld [vmem:[#allocation2 + $0xbc] sm:$0x1]  ;;  %v12681_v6 = vld [vmem:[#allocation2 + $0x48] sm:$0xff]  }
 0x327   : > { %v6099_v53 = vrot.slane %v6098_v34, 4  ;;  %v6578_v22 = vrot.slane %v6463_v56, 5  ;;  %v11195_v11 = vpack.c.bf16 %v5264_v20, %v5264_v20  ;;  %v11193_v10 = vpack.c.bf16 %v5262_v42, %v5262_v42  ;;  %v5954_v55 = vld [vmem:[#allocation2 + $0x44] sm:$0x1]  ;;  %v6464_v35 = vld [vmem:[#allocation2 + $0x3c] sm:$0xe] }
 0x328   : > { %v5617_v19 = vshrl.u32 %v11194_v41, 16  ;;  %v5620_v27 = vshll.u32 %v11194_v41, 16  ;;  %v5600_v31 = vshrl.u32 %v11192_v59, 16  ;;  %v5603_v5 = vshll.u32 %v11192_v59, 16  ;;  %v6465_v36 = vld [vmem:[#allocation2 + $0x40] sm:$0xf] }
 0x329   : > { %v6104_v44 = vsel %vm13190_vm13, %v6099_v53, %v6103_v43  ;;  %v6576_v25 = vsel %vm13205_vm14, %v10897_v57, %v6575_v21  ;;  %v5625_v50 = vshrl.u32 %v11195_v11, 16  ;;  %v5628_v37 = vshll.u32 %v11195_v11, 16  ;;  %v6466_v46 = vld [vmem:[#allocation2 + $0x44] sm:$0x1]  ;;  %v5955_v57 = vld [vmem:[#allocation2 + $0x48] sm:$0xf] }
 0x32a   : > { %v10881_v60 = vcombine.low %v6094_v32, %v6104_v44  ;;  %v5619_v33 = vrot.slane %v5617_v19, 7  ;;  %v5602_v1 = vrot.slane %v5600_v31, 7  ;;  %v5608_v15 = vshrl.u32 %v11193_v10, 16  ;;  %v5956_v42 = vld [vmem:[#allocation2 + $0x4c] sm:$0xf] }
 0x32b   : > { %v5611_v51 = vshll.u32 %v11193_v10, 16  ;;  %v6577_v39 = vrot.slane %v6575_v21, 4  ;;  %v5627_v16 = vrot.slane %v5625_v50, 7  ;;  %v6106_v7 = vshrl.u32 %v5952_v62, 16  ;;  %v5957_v59 = vld [vmem:[#allocation2 + $0x50] sm:$0x1] }
 0x32c   : > { %9416 = vmatprep.mubr.bf16.mxu1 %v10881_v60  ;;  %v5622_v24 = vor.u32 %v5620_v27, %v5619_v33  ;;  %v5623_v12 = vrot.slane %v5619_v33, 4  ;;  %v5605_v14 = vor.u32 %v5603_v5, %v5602_v1  ;;  %v5606_v2 = vrot.slane %v5602_v1, 4  ;;  %v6468_v31 = vld [vmem:[#allocation2 + $0x4c] sm:$0xf]  ;;  %v6469_v5 = vld [vmem:[#allocation2 + $0x50] sm:$0x1] }
 0x32d   : > { %v5610_v0 = vrot.slane %v5608_v15, 7  ;;  %v6579_v40 = vsel %vm13205_vm14, %v6577_v39, %v6578_v22  ;;  %9417 = vmatmul.mubr.bf16.gmra.mrb[144].mxu1 %v12680_v38  ;;  %v5630_v45 = vor.u32 %v5628_v37, %v5627_v16  ;;  %v5632_v23 = vrot.slane %v5627_v16, 4  ;;  %v5958_v1 = vld [vmem:[#allocation2 + $0x54] sm:$0xf] }
 0x32e   : > { %v5787_v49 = vsel %vm13183_vm12, %v5622_v24, %v5786_v28  ;;  %v10913_v4 = vcombine.low %v6576_v25, %v6579_v40  ;;  %v5780_v43 = vsel %vm13183_vm12, %v5605_v14, %v5779_v18  ;;  %v6108_v58 = vrot.slane %v6106_v7, 4  ;;  %v12730_v24 = vld [vmem:[#allocation9 + $0x1b8] sm:$0xff]   ;;  %v5959_v14 = vld [vmem:[#allocation2 + $0x58] sm:$0xf] }
 0x32f   : > { %5788 = vst [vmem:[#allocation2 + $0xc0] sm:$0xf] %v5787_v49  ;;  %v5613_v61 = vor.u32 %v5611_v51, %v5610_v0  ;;  %v5615_v29 = vrot.slane %v5610_v0, 4  ;;  %5781 = vst [vmem:[#allocation2 + $0xb4] sm:$0xf] %v5780_v43  ;;  %v5631_v56 = vsel %vm13177_vm11, %v5623_v12, %v5630_v45  ;;  %v5791_v8 = vsel %vm13153_vm3, %v5632_v23, %v5790_v3  ;;  %v12729_v3 = vld [vmem:[#allocation9 + $0x1f8] sm:$0xff]  }
 0x330   : > { %9578 = vmatmul.mubr.bf16.gmra.mrb[176].mxu0 %v10913_v4  ;;  %v6109_v34 = vshll.u32 %v5952_v62, 16  ;;  %v6115_v13 = vshll.u32 %v5953_v63, 16  ;;  %5789 = vst [vmem:[#allocation2 + $0xc4] sm:$0xf] %v5631_v56  ;;  %5792 = vst [vmem:[#allocation2 + $0xc8] sm:$0x1] %v5791_v8  ;;  %12225 = vmatprep.subr.bf16.mxu0 %v12729_v3 }
 0x331   : > { %v5614_v47 = vsel %vm13177_vm11, %v5606_v2, %v5613_v61  ;;  %v5784_v52 = vsel %vm13153_vm3, %v5615_v29, %v5783_v54  ;;  %9585 = vmatprep.mubr.bf16.mxu0 %v12681_v6  ;;  %v6119_v41 = vshrl.u32 %v5953_v63, 16  ;;  %v6125_v20 = vshll.u32 %v5954_v55, 16  ;;  %v12685_v16 = vld [vmem:[#allocation2 + $0x54] sm:$0xff]   ;;  %v6472_v43 = vld [vmem:[#allocation2 + $0x5c] sm:$0x1]  ;;  %12226 = vmatpush3.bf16.msra.mxu0 %v12730_v24 }
 0x332   : > { %5782 = vst [vmem:[#allocation2 + $0xb8] sm:$0xf] %v5614_v47  ;;  %5785 = vst [vmem:[#allocation2 + $0xbc] sm:$0x1] %v5784_v52  ;;  %v6111_v21 = vrot.slane %v6109_v34, 5  ;;  %v6117_v26 = vrot.slane %v6115_v13, 5 }
 0x333   : > { %v10898_v32 = vrot.slane %v6464_v35, 9  ;;  %v6582_v53 = vrot.slane %v6465_v36, 5  ;;  %v6121_v22 = vrot.slane %v6119_v41, 4  ;;  %v6127_v19 = vrot.slane %v6125_v20, 5  ;;  %v5960_v36 = vld [vmem:[#allocation2 + $0x5c] sm:$0x1] }
 0x334   : > { %v6585_v27 = vrot.slane %v6466_v46, 5  ;;  %v6130_v11 = vshrl.u32 %v5955_v57, 16  ;;  %v6112_v10 = vor.u32 %v6111_v21, %v6108_v58  ;;  %v6133_v28 = vshll.u32 %v5955_v57, 16  ;;  %v6470_v6 = vld [vmem:[#allocation2 + $0x54] sm:$0xe]  ;;  %v12684_v61 = vld [vmem:[#allocation2 + $0x3c] sm:$0xff]  }
 0x335   : > { %v6583_v9 = vsel %vm13205_vm14, %v10898_v32, %v6582_v53  ;;  %v6584_v44 = vrot.slane %v6582_v53, 4  ;;  %v6122_v25 = vor.u32 %v6121_v22, %v6117_v26  ;;  %v6139_v60 = vshll.u32 %v5956_v42, 16  ;;  %v6471_v46 = vld [vmem:[#allocation2 + $0x58] sm:$0xf]  ;;  %v5961_v34 = vld [vmem:[#allocation2 + $0x60] sm:$0xf] }
 0x336   : > { %v6132_v62 = vrot.slane %v6130_v11, 4  ;;  %v6143_v33 = vshrl.u32 %v5956_v42, 16  ;;  %v6113_v18 = vrot.slane %v6112_v10, 4  ;;  %v6135_v37 = vrot.slane %v6133_v28, 5  ;;  %v5962_v41 = vld [vmem:[#allocation2 + $0x64] sm:$0xf] }
 0x337   : > { %v6586_v50 = vsel %vm13205_vm14, %v6584_v44, %v6585_v27  ;;  %v6149_v38 = vshll.u32 %v5957_v59, 16  ;;  %v6123_v15 = vrot.slane %v6122_v25, 4  ;;  %v6141_v39 = vrot.slane %v6139_v60, 5  ;;  %v12732_v20 = vld [vmem:[#allocation9 + $0x200] sm:$0xff]   ;;  %v12687_v44 = vld [vmem:[#allocation2 + $0x60] sm:$0xff]  }
 0x338   : > { %v10914_v51 = vcombine.low %v6583_v9, %v6586_v50  ;;  %v6145_v63 = vrot.slane %v6143_v33, 4  ;;  %v6118_v12 = vsel %vm13190_vm13, %v6113_v18, %v6117_v26  ;;  %v6136_v54 = vor.u32 %v6135_v37, %v6132_v62  ;;  %12395 = vmatprep.subr.bf16.mxu1 %v12732_v20  ;;  %v5963_v9 = vld [vmem:[#allocation2 + $0x68] sm:$0x1]  ;;  %v6473_v62 = vld [vmem:[#allocation2 + $0x60] sm:$0xe] }
 0x339   : > { %v6151_v55 = vrot.slane %v6149_v38, 5  ;;  %v10899_v7 = vrot.slane %v6467_v48, 9  ;;  %v6128_v2 = vsel %vm13190_vm13, %v6123_v15, %v6127_v19  ;;  %v6589_v40 = vrot.slane %v6468_v31, 5  ;;  %v6474_v37 = vld [vmem:[#allocation2 + $0x64] sm:$0xf] }
 0x33a   : > { %9586 = vmatmul.mubr.bf16.gmra.mrb[180].mxu0 %v10914_v51  ;;  %v6146_v0 = vor.u32 %v6145_v63, %v6141_v39  ;;  %v6592_v35 = vrot.slane %v6469_v5, 5  ;;  %v10882_v49 = vcombine.low %v6118_v12, %v6128_v2  ;;  %v6137_v45 = vrot.slane %v6136_v54, 4  ;;  %v6475_v51 = vld [vmem:[#allocation2 + $0x68] sm:$0x1]  ;;  %v5964_v54 = vld [vmem:[#allocation2 + $0x6c] sm:$0xf] }
 0x33b   : > { %9593 = vmatprep.mubr.bf16.mxu0 %v12685_v16  ;;  %v6154_v23 = vshrl.u32 %v5958_v1, 16  ;;  %v6157_v4 = vshll.u32 %v5958_v1, 16  ;;  %v6590_v58 = vsel %vm13205_vm14, %v10899_v7, %v6589_v40  ;;  %v6591_v56 = vrot.slane %v6589_v40, 4 }
 0x33c   : > { %v6147_v29 = vrot.slane %v6146_v0, 4  ;;  %v6163_v8 = vshll.u32 %v5959_v14, 16  ;;  %9424 = vmatprep.mubr.bf16.mxu1 %v10882_v49  ;;  %v6142_v13 = vsel %vm13190_vm13, %v6137_v45, %v6141_v39  ;;  %v6167_v52 = vshrl.u32 %v5959_v14, 16  ;;  %v12686_v39 = vld [vmem:[#allocation2 + $0x48] sm:$0xff]   ;;  %v5965_v0 = vld [vmem:[#allocation2 + $0x70] sm:$0xf] }
 0x33d   : > { %v6156_v57 = vrot.slane %v6154_v23, 4  ;;  %v6159_v47 = vrot.slane %v6157_v4, 5  ;;  %9425 = vmatmul.mubr.bf16.gmra.mrb[148].mxu1 %v12684_v61  ;;  %v6593_v21 = vsel %vm13205_vm14, %v6591_v56, %v6592_v35  ;;  %v6173_v32 = vshll.u32 %v5960_v36, 16  ;;  %v5966_v45 = vld [vmem:[#allocation2 + $0x74] sm:$0x1] }
 0x33e   : > { %v6152_v42 = vsel %vm13190_vm13, %v6147_v29, %v6151_v55  ;;  %v6165_v26 = vrot.slane %v6163_v8, 5  ;;  %v10915_v59 = vcombine.low %v6590_v58, %v6593_v21  ;;  %v6169_v19 = vrot.slane %v6167_v52, 4  ;;  %v6477_v8 = vld [vmem:[#allocation2 + $0x70] sm:$0xf] }
 0x33f   : > { %v10883_v53 = vcombine.low %v6142_v13, %v6152_v42  ;;  %v6160_v22 = vor.u32 %v6159_v47, %v6156_v57  ;;  %v6175_v27 = vrot.slane %v6173_v32, 5  ;;  %v10900_v11 = vrot.slane %v6470_v6, 9  ;;  %v5967_v32 = vld [vmem:[#allocation2 + $0x78] sm:$0xf] }
 0x340   : > { %v6596_v48 = vrot.slane %v6471_v46, 5  ;;  %v6599_v10 = vrot.slane %v6472_v43, 5  ;;  %v6170_v31 = vor.u32 %v6169_v19, %v6165_v26  ;;  %v6178_v5 = vshrl.u32 %v5961_v34, 16  ;;  %v6476_v43 = vld [vmem:[#allocation2 + $0x6c] sm:$0xe] }
 0x341   : > { %9432 = vmatprep.mubr.bf16.mxu1 %v10883_v53  ;;  %v6161_v28 = vrot.slane %v6160_v22, 4  ;;  %v6181_v25 = vshll.u32 %v5961_v34, 16  ;;  %v6187_v18 = vshll.u32 %v5962_v41, 16  ;;  %v6191_v50 = vshrl.u32 %v5962_v41, 16  ;;  %v12691_v34 = vld [vmem:[#allocation2 + $0x6c] sm:$0xff]  }
 0x342   : > { %9594 = vmatmul.mubr.bf16.gmra.mrb[184].mxu0 %v10915_v59  ;;  %v6597_v60 = vsel %vm13205_vm14, %v10900_v11, %v6596_v48  ;;  %v6598_v33 = vrot.slane %v6596_v48, 4  ;;  %v6171_v1 = vrot.slane %v6170_v31, 4  ;;  %v6180_v3 = vrot.slane %v6178_v5, 4  ;;  %v6478_v41 = vld [vmem:[#allocation2 + $0x74] sm:$0x1] }
 0x343   : > { %9601 = vmatprep.mubr.bf16.mxu0 %v12687_v44  ;;  %v6166_v38 = vsel %vm13190_vm13, %v6161_v28, %v6165_v26  ;;  %v6183_v15 = vrot.slane %v6181_v25, 5  ;;  %v6189_v24 = vrot.slane %v6187_v18, 5  ;;  %v6193_v12 = vrot.slane %v6191_v50, 4  ;;  %v5968_v53 = vld [vmem:[#allocation2 + $0x7c] sm:$0xf]  ;;  %v12690_v59 = vld [vmem:[#allocation2 + $0x54] sm:$0xff]  }
 0x344   : > { %v6600_v63 = vsel %vm13205_vm14, %v6598_v33, %v6599_v10  ;;  %v6197_v16 = vshll.u32 %v5963_v9, 16  ;;  %v6176_v55 = vsel %vm13190_vm13, %v6171_v1, %v6175_v27  ;;  %v10901_v2 = vrot.slane %v6473_v62, 9  ;;  %v5969_v28 = vld [vmem:[#allocation2 + $0x80] sm:$0x1] }
 0x345   : > { %v10916_v7 = vcombine.low %v6597_v60, %v6600_v63  ;;  %v6184_v14 = vor.u32 %v6183_v15, %v6180_v3  ;;  %9433 = vmatmul.mubr.bf16.gmra.mrb[152].mxu1 %v12686_v39  ;;  %v10884_v40 = vcombine.low %v6166_v38, %v6176_v55  ;;  %v6194_v35 = vor.u32 %v6193_v12, %v6189_v24  ;;  %v6479_v60 = vld [vmem:[#allocation2 + $0x78] sm:$0xe]  ;;  %v6480_v38 = vld [vmem:[#allocation2 + $0x7c] sm:$0xf]  ;;  %v6481_v39 = vld [vmem:[#allocation2 + $0x80] sm:$0x1] }
 0x346   : > { %v6199_v36 = vrot.slane %v6197_v16, 5  ;;  %v6603_v49 = vrot.slane %v6474_v37, 5  ;;  %v6606_v4 = vrot.slane %v6475_v51, 5  ;;  %v6202_v6 = vshrl.u32 %v5964_v54, 16  ;;  %v12695_v55 = vld [vmem:[#allocation2 + $0x78] sm:$0xff]  }
 0x347   : > { %v6185_v23 = vrot.slane %v6184_v14, 4  ;;  %v6205_v46 = vshll.u32 %v5964_v54, 16  ;;  %9440 = vmatprep.mubr.bf16.mxu1 %v10884_v40  ;;  %v6195_v61 = vrot.slane %v6194_v35, 4  ;;  %v6211_v56 = vshll.u32 %v5965_v0, 16  ;;  %v5970_v54 = vld [vmem:[#allocation2 + $0x84] sm:$0xf] }
 0x348   : > { %v6604_v29 = vsel %vm13205_vm14, %v10901_v2, %v6603_v49  ;;  %v6605_v58 = vrot.slane %v6603_v49, 4  ;;  %v6204_v57 = vrot.slane %v6202_v6, 4  ;;  %v6215_v52 = vshrl.u32 %v5965_v0, 16  ;;  %v5971_v40 = vld [vmem:[#allocation2 + $0x88] sm:$0xf] }
 0x349   : > { %v6190_v13 = vsel %vm13190_vm13, %v6185_v23, %v6189_v24  ;;  %v6207_v47 = vrot.slane %v6205_v46, 5  ;;  %v6200_v20 = vsel %vm13190_vm13, %v6195_v61, %v6199_v36  ;;  %v6213_v21 = vrot.slane %v6211_v56, 5  ;;  %v5972_v23 = vld [vmem:[#allocation2 + $0x8c] sm:$0x1]  ;;  %v6482_v61 = vld [vmem:[#allocation2 + $0x84] sm:$0xe] }
 0x34a   : > { %9602 = vmatmul.mubr.bf16.gmra.mrb[188].mxu0 %v10916_v7  ;;  %v6607_v42 = vsel %vm13205_vm14, %v6605_v58, %v6606_v4  ;;  %v6221_v26 = vshll.u32 %v5966_v45, 16  ;;  %v10885_v22 = vcombine.low %v6190_v13, %v6200_v20  ;;  %v6217_v11 = vrot.slane %v6215_v52, 4  ;;  %v12694_v58 = vld [vmem:[#allocation2 + $0x60] sm:$0xff]   ;;  %v6484_v20 = vld [vmem:[#allocation2 + $0x8c] sm:$0x1] }
 0x34b   : > { %9609 = vmatprep.mubr.bf16.mxu0 %v12691_v34  ;;  %v10917_v19 = vcombine.low %v6604_v29, %v6607_v42  ;;  %v6208_v27 = vor.u32 %v6207_v47, %v6204_v57  ;;  %v10902_v10 = vrot.slane %v6476_v43, 9  ;;  %v6610_v9 = vrot.slane %v6477_v8, 5  ;;  %v6483_v29 = vld [vmem:[#allocation2 + $0x88] sm:$0xf] }
 0x34c   : > { %v6223_v48 = vrot.slane %v6221_v26, 5  ;;  %v6613_v44 = vrot.slane %v6478_v41, 5  ;;  %v6218_v5 = vor.u32 %v6217_v11, %v6213_v21  ;;  %v6226_v25 = vshrl.u32 %v5967_v32, 16  ;;  %v5974_v11 = vld [vmem:[#allocation2 + $0x94] sm:$0xf] }
 0x34d   : > { %v6209_v31 = vrot.slane %v6208_v27, 4  ;;  %v6229_v62 = vshll.u32 %v5967_v32, 16  ;;  %9441 = vmatmul.mubr.bf16.gmra.mrb[156].mxu1 %v12690_v59  ;;  %v14996_v33 = vsel %vm13205_vm14, %v10902_v10, %v6610_v9  ;;  %v6612_v18 = vrot.slane %v6610_v9, 4 }
 0x34e   : > { %v6235_v50 = vshll.u32 %v5968_v53, 16  ;;  %v6239_v37 = vshrl.u32 %v5968_v53, 16  ;;  %9448 = vmatprep.mubr.bf16.mxu1 %v10885_v22  ;;  %v6219_v3 = vrot.slane %v6218_v5, 4  ;;  %v6228_v15 = vrot.slane %v6226_v25, 4  ;;  %v5973_v53 = vld [vmem:[#allocation2 + $0x90] sm:$0xf] }
 0x34f   : > { %v6214_v1 = vsel %vm13190_vm13, %v6209_v31, %v6213_v21  ;;  %v6231_v51 = vrot.slane %v6229_v62, 5  ;;  %v6614_v63 = vsel %vm13205_vm14, %v6612_v18, %v6613_v44  ;;  %v6245_v16 = vshll.u32 %v5969_v28, 16  ;;  %v6485_v31 = vld [vmem:[#allocation2 + $0x90] sm:$0xe]  ;;  %v12699_v5 = vld [vmem:[#allocation2 + $0x84] sm:$0xff]  }
 0x350   : > { %v6237_v24 = vrot.slane %v6235_v50, 5  ;;  %v6241_v12 = vrot.slane %v6239_v37, 4  ;;  %v6224_v7 = vsel %vm13190_vm13, %v6219_v3, %v6223_v48  ;;  %v10918_v14 = vcombine.low %v14996_v33, %v6614_v63  ;;  %v5975_v48 = vld [vmem:[#allocation2 + $0x98] sm:$0x1]  ;;  %v6486_v18 = vld [vmem:[#allocation2 + $0x94] sm:$0xf] }
 0x351   : > { %v6232_v2 = vor.u32 %v6231_v51, %v6228_v15  ;;  %v10903_v0 = vrot.slane %v6479_v60, 9  ;;  %v10886_v35 = vcombine.low %v6214_v1, %v6224_v7  ;;  %v6247_v49 = vrot.slane %v6245_v16, 5  ;;  %v6487_v3 = vld [vmem:[#allocation2 + $0x98] sm:$0x1] }
 0x352   : > { %9610 = vmatmul.mubr.bf16.gmra.mrb[192].mxu0 %v10917_v19  ;;  %v6242_v36 = vor.u32 %v6241_v12, %v6237_v24  ;;  %v6617_v45 = vrot.slane %v6480_v38, 5  ;;  %v6620_v6 = vrot.slane %v6481_v39, 5  ;;  %v6250_v46 = vshrl.u32 %v5970_v54, 16  ;;  %v12698_v12 = vld [vmem:[#allocation2 + $0x6c] sm:$0xff]  }
 0x353   : > { %9617 = vmatprep.mubr.bf16.mxu0 %v12695_v55  ;;  %v6233_v4 = vrot.slane %v6232_v2, 4  ;;  %v6253_v43 = vshll.u32 %v5970_v54, 16  ;;  %v6259_v13 = vshll.u32 %v5971_v40, 16  ;;  %v6263_v41 = vshrl.u32 %v5971_v40, 16 }
 0x354   : > { %v6243_v56 = vrot.slane %v6242_v36, 4  ;;  %v15007_v8 = vsel %vm13205_vm14, %v10903_v0, %v6617_v45  ;;  %v6619_v34 = vrot.slane %v6617_v45, 4  ;;  %v6252_v47 = vrot.slane %v6250_v46, 4 }
 0x355   : > { %v6238_v57 = vsel %vm13190_vm13, %v6233_v4, %v6237_v24  ;;  %v6255_v52 = vrot.slane %v6253_v43, 5  ;;  %9449 = vmatmul.mubr.bf16.gmra.mrb[160].mxu1 %v12694_v58  ;;  %v6261_v26 = vrot.slane %v6259_v13, 5  ;;  %v6269_v32 = vshll.u32 %v5972_v23, 16  ;;  %v5976_v24 = vld [vmem:[#allocation2 + $0x9c] sm:$0xf] }
 0x356   : > { %v6248_v42 = vsel %vm13190_vm13, %v6243_v56, %v6247_v49  ;;  %v15015_v21 = vsel %vm13205_vm14, %v6619_v34, %v6620_v6  ;;  %9456 = vmatprep.mubr.bf16.mxu1 %v10886_v35  ;;  %v6265_v27 = vrot.slane %v6263_v41, 4  ;;  %v10904_v9 = vrot.slane %v6482_v61, 9  ;;  %v5977_v35 = vld [vmem:[#allocation2 + $0xa0] sm:$0xf]  ;;  %v5978_v4 = vld [vmem:[#allocation2 + $0xa4] sm:$0x1] }
 0x357   : > { %v10887_v59 = vcombine.low %v6238_v57, %v6248_v42  ;;  %v10919_v22 = vcombine.low %v15007_v8, %v15015_v21  ;;  %v6256_v19 = vor.u32 %v6255_v52, %v6252_v47  ;;  %v6271_v10 = vrot.slane %v6269_v32, 5  ;;  %v6489_v13 = vld [vmem:[#allocation2 + $0xa0] sm:$0xf]  ;;  %v12703_v57 = vld [vmem:[#allocation2 + $0x90] sm:$0xff]   ;;  %v6490_v42 = vld [vmem:[#allocation2 + $0xa4] sm:$0x1] }
 0x358   : > { %v6624_v44 = vrot.slane %v6483_v29, 5  ;;  %v6627_v28 = vrot.slane %v6484_v20, 5  ;;  %v6266_v62 = vor.u32 %v6265_v27, %v6261_v26  ;;  %v6274_v60 = vshrl.u32 %v5973_v53, 16  ;;  %v6488_v29 = vld [vmem:[#allocation2 + $0x9c] sm:$0xe] }
 0x359   : > { %v6257_v25 = vrot.slane %v6256_v19, 4  ;;  %v6277_v33 = vshll.u32 %v5973_v53, 16  ;;  %v6283_v38 = vshll.u32 %v5974_v11, 16  ;;  %v6287_v1 = vshrl.u32 %v5974_v11, 16  ;;  %v5980_v19 = vld [vmem:[#allocation2 + $0xac] sm:$0xf] }
 0x35a   : > { %9618 = vmatmul.mubr.bf16.gmra.mrb[196].mxu0 %v10918_v14  ;;  %v15021_v50 = vsel %vm13205_vm14, %v10904_v9, %v6624_v44  ;;  %v6626_v37 = vrot.slane %v6624_v44, 4  ;;  %v6267_v51 = vrot.slane %v6266_v62, 4  ;;  %v6276_v39 = vrot.slane %v6274_v60, 4  ;;  %v12702_v27 = vld [vmem:[#allocation2 + $0x78] sm:$0xff]   ;;  %v5981_v9 = vld [vmem:[#allocation2 + $0xb0] sm:$0x1] }
 0x35b   : > { %9625 = vmatprep.mubr.bf16.mxu0 %v12699_v5  ;;  %v6262_v15 = vsel %vm13190_vm13, %v6257_v25, %v6261_v26  ;;  %v6279_v63 = vrot.slane %v6277_v33, 5  ;;  %v6285_v54 = vrot.slane %v6283_v38, 5  ;;  %v6289_v55 = vrot.slane %v6287_v1, 4 }
 0x35c   : > { %v15027_v16 = vsel %vm13205_vm14, %v6626_v37, %v6627_v28  ;;  %v6293_v7 = vshll.u32 %v5975_v48, 16  ;;  %v6272_v14 = vsel %vm13190_vm13, %v6267_v51, %v6271_v10  ;;  %v10905_v40 = vrot.slane %v6485_v31, 9 }
 0x35d   : > { %v10920_v2 = vcombine.low %v15021_v50, %v15027_v16  ;;  %v6280_v0 = vor.u32 %v6279_v63, %v6276_v39  ;;  %9457 = vmatmul.mubr.bf16.gmra.mrb[164].mxu1 %v12698_v12  ;;  %v10888_v36 = vcombine.low %v6262_v15, %v6272_v14  ;;  %v6290_v49 = vor.u32 %v6289_v55, %v6285_v54  ;;  %v6492_v15 = vld [vmem:[#allocation2 + $0xac] sm:$0xf]  ;;  %v6493_v12 = vld [vmem:[#allocation2 + $0xb0] sm:$0x1] }
 0x35e   : > { %v6295_v45 = vrot.slane %v6293_v7, 5  ;;  %v6631_v23 = vrot.slane %v6486_v18, 5  ;;  %9464 = vmatprep.mubr.bf16.mxu1 %v10887_v59  ;;  %v6634_v46 = vrot.slane %v6487_v3, 5  ;;  %v6298_v43 = vshrl.u32 %v5976_v24, 16  ;;  %v5979_v59 = vld [vmem:[#allocation2 + $0xa8] sm:$0xf] }
 0x35f   : > { %v6281_v6 = vrot.slane %v6280_v0, 4  ;;  %v6301_v61 = vshll.u32 %v5976_v24, 16  ;;  %v6291_v58 = vrot.slane %v6290_v49, 4  ;;  %v6307_v34 = vshll.u32 %v5977_v35, 16  ;;  %v6491_v18 = vld [vmem:[#allocation2 + $0xa8] sm:$0xe] }
 0x360   : > { %v15035_v56 = vsel %vm13205_vm14, %v10905_v40, %v6631_v23  ;;  %v6633_v8 = vrot.slane %v6631_v23, 4  ;;  %v6300_v52 = vrot.slane %v6298_v43, 4  ;;  %v6311_v20 = vshrl.u32 %v5977_v35, 16  ;;  %v5982_v0 = vld [vmem:[#allocation2 + $0xb4] sm:$0xf]  ;;  %v12707_v40 = vld [vmem:[#allocation2 + $0x9c] sm:$0xff]  }
 0x361   : > { %v6286_v47 = vsel %vm13190_vm13, %v6281_v6, %v6285_v54  ;;  %v6303_v41 = vrot.slane %v6301_v61, 5  ;;  %v6296_v21 = vsel %vm13190_vm13, %v6291_v58, %v6295_v45  ;;  %v6309_v32 = vrot.slane %v6307_v34, 5  ;;  %v5983_v23 = vld [vmem:[#allocation2 + $0xb8] sm:$0xf]  ;;  %v5984_v61 = vld [vmem:[#allocation2 + $0xbc] sm:$0x1] }
 0x362   : > { %9626 = vmatmul.mubr.bf16.gmra.mrb[200].mxu0 %v10919_v22  ;;  %v15043_v26 = vsel %vm13205_vm14, %v6633_v8, %v6634_v46  ;;  %v6317_v53 = vshll.u32 %v5978_v4, 16  ;;  %v15045_v11 = vcombine.low %v6286_v47, %v6296_v21  ;;  %v6313_v22 = vrot.slane %v6311_v20, 4  ;;  %v6496_v47 = vld [vmem:[#allocation2 + $0xbc] sm:$0x1] }
 0x363   : > { %9633 = vmatprep.mubr.bf16.mxu0 %v12703_v57  ;;  %v10921_v48 = vcombine.low %v15035_v56, %v15043_v26  ;;  %v6304_v10 = vor.u32 %v6303_v41, %v6300_v52  ;;  %v10906_v28 = vrot.slane %v6488_v29, 9  ;;  %v6638_v31 = vrot.slane %v6489_v13, 5  ;;  %v6494_v13 = vld [vmem:[#allocation2 + $0xb4] sm:$0xe]  ;;  %v6495_v57 = vld [vmem:[#allocation2 + $0xb8] sm:$0xf] }
 0x364   : > { %v6319_v44 = vrot.slane %v6317_v53, 5  ;;  %v6641_v5 = vrot.slane %v6490_v42, 5  ;;  %v6314_v62 = vor.u32 %v6313_v22, %v6309_v32  ;;  %v6322_v60 = vshrl.u32 %v5979_v59, 16  ;;  %v12706_v52 = vld [vmem:[#allocation2 + $0x84] sm:$0xff]   ;;  %v6881_v56 = vld [vmem:[#allocation2 + $0xc] sm:$0xf] }
 0x365   : > { %v6305_v25 = vrot.slane %v6304_v10, 4  ;;  %v6325_v33 = vshll.u32 %v5979_v59, 16  ;;  %9465 = vmatmul.mubr.bf16.gmra.mrb[168].mxu1 %v12702_v27  ;;  %v15051_v37 = vsel %vm13205_vm14, %v10906_v28, %v6638_v31  ;;  %v6640_v38 = vrot.slane %v6638_v31, 4  ;;  %v7825_v10 = vld [vmem:[#allocation2 + $0x18] sm:$0xf]  ;;  %v12711_v22 = vld [vmem:[#allocation2 + $0xa8] sm:$0xff]  }
 0x366   : > { %v6331_v1 = vshll.u32 %v5980_v19, 16  ;;  %v6335_v3 = vshrl.u32 %v5980_v19, 16  ;;  %9472 = vmatprep.mubr.bf16.mxu1 %v10888_v36  ;;  %v6315_v39 = vrot.slane %v6314_v62, 4  ;;  %v6324_v63 = vrot.slane %v6322_v60, 4 }
 0x367   : > { %v6310_v51 = vsel %vm13190_vm13, %v6305_v25, %v6309_v32  ;;  %v6327_v24 = vrot.slane %v6325_v33, 5  ;;  %v15057_v54 = vsel %vm13205_vm14, %v6640_v38, %v6641_v5  ;;  %v6341_v14 = vshll.u32 %v5981_v9, 16  ;;  %v7826_v5 = vld [vmem:[#allocation2 + $0x1c] sm:$0xf]  ;;  %v7827_v25 = vld [vmem:[#allocation2 + $0x20] sm:$0x1] }
 0x368   : > { %v6333_v55 = vrot.slane %v6331_v1, 5  ;;  %v6337_v7 = vrot.slane %v6335_v3, 4  ;;  %v6320_v35 = vsel %vm13190_vm13, %v6315_v39, %v6319_v44  ;;  %v10922_v36 = vcombine.low %v15051_v37, %v15057_v54  ;;  %v7393_v38 = vld [vmem:[#allocation2 + $0xc] sm:$0xe]  ;;  %v15085_v39 = vpop.f32.mrb[128].mxu1 }
 0x369   : > { %v6328_v49 = vor.u32 %v6327_v24, %v6324_v63  ;;  %v10907_v45 = vrot.slane %v6491_v18, 9  ;;  %v15066_v4 = vcombine.low %v6310_v51, %v6320_v35  ;;  %v6343_v46 = vrot.slane %v6341_v14, 5  ;;  %v12710_v63 = vld [vmem:[#allocation2 + $0x90] sm:$0xff]  }
 0x36a   : > { %9634 = vmatmul.mubr.bf16.gmra.mrb[204].mxu0 %v10920_v2  ;;  %v6338_v6 = vor.u32 %v6337_v7, %v6333_v55  ;;  %v6645_v43 = vrot.slane %v6492_v15, 5  ;;  %v6648_v58 = vrot.slane %v6493_v12, 5  ;;  %v6346_v8 = vshrl.u32 %v5982_v0, 16  ;;  %v7395_v14 = vld [vmem:[#allocation2 + $0x14] sm:$0x1] }
 0x36b   : > { %9641 = vmatprep.mubr.bf16.mxu0 %v12707_v40  ;;  %v6329_v29 = vrot.slane %v6328_v49, 4  ;;  %v6349_v34 = vshll.u32 %v5982_v0, 16  ;;  %v6355_v2 = vshll.u32 %v5983_v23, 16  ;;  %v6359_v32 = vshrl.u32 %v5983_v23, 16  ;;  %v15094_v0 = vpop.f32.mrb[129].mxu1 }
 0x36c   : > { %v6339_v41 = vrot.slane %v6338_v6, 4  ;;  %v15070_v50 = vsel %vm13205_vm14, %v10907_v45, %v6645_v43  ;;  %v6647_v16 = vrot.slane %v6645_v43, 4  ;;  %v6348_v42 = vrot.slane %v6346_v8, 4  ;;  %v15098_v26 = vpop.f32.mrb[130].mxu1  ;;  %v6882_v43 = vld [vmem:[#allocation2 + $0x10] sm:$0xf] }
 0x36d   : > { %v6334_v20 = vsel %vm13190_vm13, %v6329_v29, %v6333_v55  ;;  %v6351_v21 = vrot.slane %v6349_v34, 5  ;;  %9473 = vmatmul.mubr.bf16.gmra.mrb[172].mxu1 %v12706_v52  ;;  %v6357_v19 = vrot.slane %v6355_v2, 5  ;;  %v6365_v27 = vshll.u32 %v5984_v61, 16  ;;  %v15104_v61 = vpop.f32.mrb[131].mxu1  ;;  %v6883_v2 = vld [vmem:[#allocation2 + $0x14] sm:$0x1] }
 0x36e   : > { %v6344_v53 = vsel %vm13190_vm13, %v6339_v41, %v6343_v46  ;;  %v15078_v59 = vsel %vm13205_vm14, %v6647_v16, %v6648_v58  ;;  %9480 = vmatprep.mubr.bf16.mxu1 %v15045_v11  ;;  %v6361_v31 = vrot.slane %v6359_v32, 4  ;;  %v10908_v60 = vrot.slane %v6494_v13, 9  ;;  %v7394_v11 = vld [vmem:[#allocation2 + $0x10] sm:$0xf] }
 0x36f   : > { %v15081_v9 = vcombine.low %v6334_v20, %v6344_v53  ;;  %v10923_v44 = vcombine.low %v15070_v50, %v15078_v59  ;;  %v6352_v28 = vor.u32 %v6351_v21, %v6348_v42  ;;  %v6367_v62 = vrot.slane %v6365_v27, 5  ;;  %v7828_v27 = vld [vmem:[#allocation2 + $0x24] sm:$0xf] }
 0x370   : > { %v6652_v33 = vrot.slane %v6495_v57, 5  ;;  %v6655_v18 = vrot.slane %v6496_v47, 5  ;;  %v6362_v3 = vor.u32 %v6361_v31, %v6357_v19  ;;  %v7874_v15 = vshrl.u32 %v7825_v10, 16 }
 0x371   : > { %v6353_v1 = vrot.slane %v6352_v28, 4  ;;  %v7877_v51 = vshll.u32 %v7825_v10, 16  ;;  %v7883_v55 = vshll.u32 %v7826_v5, 16  ;;  %v7887_v7 = vshrl.u32 %v7826_v5, 16  ;;  %v12715_v10 = vld [vmem:[#allocation2 + $0xb4] sm:$0xff]  }
 0x372   : > { %9642 = vmatmul.mubr.bf16.gmra.mrb[208].mxu0 %v10921_v48  ;;  %v15092_v24 = vsel %vm13205_vm14, %v10908_v60, %v6652_v33  ;;  %v6654_v12 = vrot.slane %v6652_v33, 4  ;;  %v6363_v35 = vrot.slane %v6362_v3, 4  ;;  %v7876_v49 = vrot.slane %v7874_v15, 4  ;;  %v7829_v5 = vld [vmem:[#allocation2 + $0x28] sm:$0xf] }
 0x373   : > { %9649 = vmatprep.mubr.bf16.mxu0 %v12711_v22  ;;  %v6358_v40 = vsel %vm13190_vm13, %v6353_v1, %v6357_v19  ;;  %v7879_v45 = vrot.slane %v7877_v51, 5  ;;  %v7885_v23 = vrot.slane %v7883_v55, 5  ;;  %v7889_v6 = vrot.slane %v7887_v7, 4  ;;  %v12714_v1 = vld [vmem:[#allocation2 + $0x9c] sm:$0xff]  }
 0x374   : > { %v15102_v48 = vsel %vm13205_vm14, %v6654_v12, %v6655_v18  ;;  %v7893_v46 = vshll.u32 %v7827_v25, 16  ;;  %v6368_v29 = vsel %vm13190_vm13, %v6363_v35, %v6367_v62  ;;  %v10957_v34 = vrot.slane %v7393_v38, 9  ;;  %v7830_v18 = vld [vmem:[#allocation2 + $0x2c] sm:$0x1]  ;;  %v7396_v38 = vld [vmem:[#allocation2 + $0x18] sm:$0xe] }
 0x375   : > { %v10924_v58 = vcombine.low %v15092_v24, %v15102_v48  ;;  %v7880_v8 = vor.u32 %v7879_v45, %v7876_v49  ;;  %9481 = vmatmul.mubr.bf16.gmra.mrb[176].mxu1 %v12710_v63  ;;  %v15110_v13 = vcombine.low %v6358_v40, %v6368_v29  ;;  %v7890_v57 = vor.u32 %v7889_v6, %v7885_v23  ;;  %v7398_v51 = vld [vmem:[#allocation2 + $0x20] sm:$0x1] }
 0x376   : > { %v7895_v47 = vrot.slane %v7893_v46, 5  ;;  %v7491_v52 = vrot.slane %v7394_v11, 5  ;;  %9488 = vmatprep.mubr.bf16.mxu1 %v15066_v4  ;;  %v7494_v16 = vrot.slane %v7395_v14, 5  ;;  %v6930_v20 = vshrl.u32 %v6881_v56, 16  ;;  %v6884_v11 = vld [vmem:[#allocation2 + $0x18] sm:$0xf] }
 0x377   : > { %v7881_v41 = vrot.slane %v7880_v8, 4  ;;  %v6933_v42 = vshll.u32 %v6881_v56, 16  ;;  %v7891_v21 = vrot.slane %v7890_v57, 4  ;;  %v6939_v19 = vshll.u32 %v6882_v43, 16  ;;  %v6885_v46 = vld [vmem:[#allocation2 + $0x1c] sm:$0xf] }
 0x378   : > { %v15115_v32 = vsel %vm13205_vm14, %v10957_v34, %v7491_v52  ;;  %v7493_v53 = vrot.slane %v7491_v52, 4  ;;  %v6932_v28 = vrot.slane %v6930_v20, 4  ;;  %v6943_v4 = vshrl.u32 %v6882_v43, 16 }
 0x379   : > { %v7886_v22 = vsel %vm13190_vm13, %v7881_v41, %v7885_v23  ;;  %v6935_v31 = vrot.slane %v6933_v42, 5  ;;  %v7896_v25 = vsel %vm13190_vm13, %v7891_v21, %v7895_v47  ;;  %v6941_v60 = vrot.slane %v6939_v19, 5  ;;  %v6886_v42 = vld [vmem:[#allocation2 + $0x20] sm:$0x1] }
 0x37a   : > { %9650 = vmatmul.mubr.bf16.gmra.mrb[212].mxu0 %v10922_v36  ;;  %v15126_v62 = vsel %vm13205_vm14, %v7493_v53, %v7494_v16  ;;  %v6949_v33 = vshll.u32 %v6883_v2, 16  ;;  %v15128_v3 = vcombine.low %v7886_v22, %v7896_v25  ;;  %v6945_v54 = vrot.slane %v6943_v4, 4  ;;  %v7397_v36 = vld [vmem:[#allocation2 + $0x1c] sm:$0xf]  ;;  %v12720_v16 = vld [vmem:[#allocation2 + $0xc0] sm:$0xff]  }
 0x37b   : > { %9657 = vmatprep.mubr.bf16.mxu0 %v12715_v10  ;;  %v10973_v15 = vcombine.low %v15115_v32, %v15126_v62  ;;  %v6936_v37 = vor.u32 %v6935_v31, %v6932_v28  ;;  %v7898_v12 = vshrl.u32 %v7828_v27, 16  ;;  %v7901_v55 = vshll.u32 %v7828_v27, 16  ;;  %v7831_v28 = vld [vmem:[#allocation2 + $0x30] sm:$0xf]  ;;  %v7404_v62 = vld [vmem:[#allocation2 + $0x38] sm:$0x1] }
 0x37c   : > { %v6951_v63 = vrot.slane %v6949_v33, 5  ;;  %v7907_v7 = vshll.u32 %v7829_v5, 16  ;;  %v6946_v40 = vor.u32 %v6945_v54, %v6941_v60  ;;  %v7911_v35 = vshrl.u32 %v7829_v5, 16 }
 0x37d   : > { %v6937_v14 = vrot.slane %v6936_v37, 4  ;;  %v7917_v49 = vshll.u32 %v7830_v18, 16  ;;  %9489 = vmatmul.mubr.bf16.gmra.mrb[180].mxu1 %v12714_v1  ;;  %v7900_v45 = vrot.slane %v7898_v12, 4  ;;  %v7903_v56 = vrot.slane %v7901_v55, 5  ;;  %v7833_v18 = vld [vmem:[#allocation2 + $0x38] sm:$0x1] }
 0x37e   : > { %v7909_v23 = vrot.slane %v7907_v7, 5  ;;  %v10958_v6 = vrot.slane %v7396_v38, 9  ;;  %9496 = vmatprep.mubr.bf16.mxu1 %v15081_v9  ;;  %v6947_v29 = vrot.slane %v6946_v40, 4  ;;  %v7913_v8 = vrot.slane %v7911_v35, 4  ;;  %v12719_v9 = vld [vmem:[#allocation2 + $0xa8] sm:$0xff]  }
 0x37f   : > { %v6942_v43 = vsel %vm13190_vm13, %v6937_v14, %v6941_v60  ;;  %v7919_v34 = vrot.slane %v7917_v49, 5  ;;  %v7904_v57 = vor.u32 %v7903_v56, %v7900_v45  ;;  %v7498_v47 = vrot.slane %v7397_v36, 5  ;;  %v7832_v60 = vld [vmem:[#allocation2 + $0x34] sm:$0xf]  ;;  %v7399_v36 = vld [vmem:[#allocation2 + $0x24] sm:$0xe] }
 0x380   : > { %v7501_v52 = vrot.slane %v7398_v51, 5  ;;  %v6954_v41 = vshrl.u32 %v6884_v11, 16  ;;  %v6952_v2 = vsel %vm13190_vm13, %v6947_v29, %v6951_v63  ;;  %v7914_v20 = vor.u32 %v7913_v8, %v7909_v23  ;;  %v7400_v55 = vld [vmem:[#allocation2 + $0x28] sm:$0xf]  ;;  %v7401_v49 = vld [vmem:[#allocation2 + $0x2c] sm:$0x1] }
 0x381   : > { %v6957_v21 = vshll.u32 %v6884_v11, 16  ;;  %v6963_v53 = vshll.u32 %v6885_v46, 16  ;;  %v15140_v19 = vcombine.low %v6942_v43, %v6952_v2  ;;  %v7905_v27 = vrot.slane %v7904_v57, 4  ;;  %v6888_v57 = vld [vmem:[#allocation2 + $0x28] sm:$0xf] }
 0x382   : > { %9658 = vmatmul.mubr.bf16.gmra.mrb[216].mxu0 %v10923_v44  ;;  %v15144_v10 = vsel %vm13205_vm14, %v10958_v6, %v7498_v47  ;;  %v7500_v22 = vrot.slane %v7498_v47, 4  ;;  %v7915_v31 = vrot.slane %v7914_v20, 4  ;;  %v6956_v4 = vrot.slane %v6954_v41, 4 }
 0x383   : > { %9665 = vmatprep.mubr.bf16.mxu0 %v12720_v16  ;;  %v6959_v5 = vrot.slane %v6957_v21, 5  ;;  %v6965_v25 = vrot.slane %v6963_v53, 5  ;;  %v7910_v50 = vsel %vm13190_vm13, %v7905_v27, %v7909_v23  ;;  %v6967_v44 = vshrl.u32 %v6885_v46, 16  ;;  %v6887_v46 = vld [vmem:[#allocation2 + $0x24] sm:$0xf] }
 0x384   : > { %v15150_v59 = vsel %vm13205_vm14, %v7500_v22, %v7501_v52  ;;  %v6973_v33 = vshll.u32 %v6886_v42, 16  ;;  %v7920_v38 = vsel %vm13190_vm13, %v7915_v31, %v7919_v34  ;;  %v7922_v54 = vshrl.u32 %v7831_v28, 16  ;;  %v6889_v42 = vld [vmem:[#allocation2 + $0x2c] sm:$0x1]  ;;  %v7834_v53 = vld [vmem:[#allocation2 + $0x3c] sm:$0xf] }
 0x385   : > { %v10974_v1 = vcombine.low %v15144_v10, %v15150_v59  ;;  %v6960_v37 = vor.u32 %v6959_v5, %v6956_v4  ;;  %9497 = vmatmul.mubr.bf16.gmra.mrb[184].mxu1 %v12719_v9  ;;  %v15156_v51 = vcombine.low %v7910_v50, %v7920_v38  ;;  %v6969_v11 = vrot.slane %v6967_v44, 4  ;;  %v12727_v9 = vld [vmem:[#allocation2 + $0xb4] sm:$0xff]   ;;  %v7835_v22 = vld [vmem:[#allocation2 + $0x40] sm:$0xf] }
 0x386   : > { %v6975_v63 = vrot.slane %v6973_v33, 5  ;;  %v7925_v12 = vshll.u32 %v7831_v28, 16  ;;  %9504 = vmatprep.mubr.bf16.mxu1 %v15110_v13  ;;  %v7924_v14 = vrot.slane %v7922_v54, 4  ;;  %v7931_v40 = vshll.u32 %v7832_v60, 16  ;;  %v12731_v44 = vld [vmem:[#allocation2 + $0x18] sm:$0xff]  }
 0x387   : > { %v6961_v7 = vrot.slane %v6960_v37, 4  ;;  %v7935_v35 = vshrl.u32 %v7832_v60, 16  ;;  %v6970_v45 = vor.u32 %v6969_v11, %v6965_v25  ;;  %v7941_v23 = vshll.u32 %v7833_v18, 16  ;;  %v7836_v37 = vld [vmem:[#allocation2 + $0x44] sm:$0x1] }
 0x388   : > { %v7927_v56 = vrot.slane %v7925_v12, 5  ;;  %v10959_v6 = vrot.slane %v7399_v36, 9  ;;  %v7933_v29 = vrot.slane %v7931_v40, 5  ;;  %v7505_v34 = vrot.slane %v7400_v55, 5  ;;  %v7402_v55 = vld [vmem:[#allocation2 + $0x30] sm:$0xe] }
 0x389   : > { %v6966_v43 = vsel %vm13190_vm13, %v6961_v7, %v6965_v25  ;;  %v7937_v8 = vrot.slane %v7935_v35, 4  ;;  %v6971_v13 = vrot.slane %v6970_v45, 4  ;;  %v7943_v52 = vrot.slane %v7941_v23, 5  ;;  %v7403_v7 = vld [vmem:[#allocation2 + $0x34] sm:$0xf] }
 0x38a   : > { %9666 = vmatmul.mubr.bf16.gmra.mrb[220].mxu0 %v10924_v58  ;;  %v7928_v47 = vor.u32 %v7927_v56, %v7924_v14  ;;  %v7508_v41 = vrot.slane %v7401_v49, 5  ;;  %v15167_v2 = vsel %vm13205_vm14, %v10959_v6, %v7505_v34  ;;  %v7507_v20 = vrot.slane %v7505_v34, 4  ;;  %v6890_v23 = vld [vmem:[#allocation2 + $0x30] sm:$0xf] }
 0x38b   : > { %9867 = vmatprep.mubr.bf16.mxu0 %v15128_v3  ;;  %v7938_v16 = vor.u32 %v7937_v8, %v7933_v29  ;;  %v6978_v21 = vshrl.u32 %v6887_v46, 16  ;;  %v6976_v24 = vsel %vm13190_vm13, %v6971_v13, %v6975_v63  ;;  %v6981_v58 = vshll.u32 %v6887_v46, 16  ;;  %v6891_v8 = vld [vmem:[#allocation2 + $0x34] sm:$0xf] }
 0x38c   : > { %v7929_v48 = vrot.slane %v7928_v47, 4  ;;  %v6987_v27 = vshll.u32 %v6888_v57, 16  ;;  %v15171_v28 = vcombine.low %v6966_v43, %v6976_v24  ;;  %v15175_v31 = vsel %vm13205_vm14, %v7507_v20, %v7508_v41  ;;  %v12735_v47 = vld [vmem:[#allocation9 + $0x208] sm:$0xff]  }
 0x38d   : > { %v7939_v3 = vrot.slane %v7938_v16, 4  ;;  %v6980_v4 = vrot.slane %v6978_v21, 4  ;;  %9505 = vmatmul.mubr.bf16.gmra.mrb[188].mxu1 %v12727_v9  ;;  %v10975_v25 = vcombine.low %v15167_v2, %v15175_v31  ;;  %v6983_v60 = vrot.slane %v6981_v58, 5  ;;  %v7840_v31 = vld [vmem:[#allocation2 + $0x54] sm:$0xf] }
 0x38e   : > { %v7934_v5 = vsel %vm13190_vm13, %v7929_v48, %v7933_v29  ;;  %v6989_v50 = vrot.slane %v6987_v27, 5  ;;  %9706 = vmatprep.mubr.bf16.mxu1 %v10973_v15  ;;  %v6991_v18 = vshrl.u32 %v6888_v57, 16  ;;  %v6997_v38 = vshll.u32 %v6889_v42, 16  ;;  %v12756_v48 = vld [vmem:[#allocation9 + $0x200] sm:$0xff]  }
 0x38f   : > { %v7944_v33 = vsel %vm13190_vm13, %v7939_v3, %v7943_v52  ;;  %v7946_v54 = vshrl.u32 %v7834_v53, 16  ;;  %v6984_v11 = vor.u32 %v6983_v60, %v6980_v4  ;;  %v7949_v63 = vshll.u32 %v7834_v53, 16  ;;  %v7837_v4 = vld [vmem:[#allocation2 + $0x48] sm:$0xf] }
 0x390   : > { %v15186_v36 = vcombine.low %v7934_v5, %v7944_v33  ;;  %v7955_v12 = vshll.u32 %v7835_v22, 16  ;;  %v6993_v14 = vrot.slane %v6991_v18, 4  ;;  %v6999_v40 = vrot.slane %v6997_v38, 5 }
 0x391   : > { %v7948_v35 = vrot.slane %v7946_v54, 4  ;;  %v7959_v32 = vshrl.u32 %v7835_v22, 16  ;;  %v6985_v15 = vrot.slane %v6984_v11, 4  ;;  %v7951_v49 = vrot.slane %v7949_v63, 5  ;;  %v7405_v54 = vld [vmem:[#allocation2 + $0x3c] sm:$0xe] }
 0x392   : > { %9868 = vmatmul.mubr.bf16.vlgmr.msra.gmra.mrb[224].mxu0 %v12731_v44  ;;  %v7957_v45 = vrot.slane %v7955_v12, 5  ;;  %v7965_v56 = vshll.u32 %v7836_v37, 16  ;;  %v6994_v6 = vor.u32 %v6993_v14, %v6989_v50  ;;  %v10960_v43 = vrot.slane %v7402_v55, 9  ;;  %v12738_v44 = vld [vmem:[#allocation9 + $0x210] sm:$0xff]   ;;  %v12741_v14 = vld [vmem:[#allocation9 + $0x218] sm:$0xff]  }
 0x393   : > { %9875 = vmatprep.mubr.bf16.mxu0 %v15156_v51  ;;  %v7961_v46 = vrot.slane %v7959_v32, 4  ;;  %v7512_v29 = vrot.slane %v7403_v7, 5  ;;  %v6990_v34 = vsel %vm13190_vm13, %v6985_v15, %v6989_v50  ;;  %v7952_v57 = vor.u32 %v7951_v49, %v7948_v35  ;;  %v12733_v51 = vld [vmem:[#allocation2 + $0x24] sm:$0xff]   ;;  %v7839_v50 = vld [vmem:[#allocation2 + $0x50] sm:$0x1] }
 0x394   : > { %v7967_v13 = vrot.slane %v7965_v56, 5  ;;  %v7515_v52 = vrot.slane %v7404_v62, 5  ;;  %v6995_v41 = vrot.slane %v6994_v6, 4  ;;  %v7002_v53 = vshrl.u32 %v6890_v23, 16  ;;  %v7406_v7 = vld [vmem:[#allocation2 + $0x40] sm:$0xf] }
 0x395   : > { %v7962_v16 = vor.u32 %v7961_v46, %v7957_v45  ;;  %v15193_v20 = vsel %vm13205_vm14, %v10960_v43, %v7512_v29  ;;  %v7514_v42 = vrot.slane %v7512_v29, 4  ;;  %9707 = vmatmul.mubr.bf16.vlgmr.msra.gmra.mrb[192].mxu1 %v15140_v19  ;;  %v7953_v21 = vrot.slane %v7952_v57, 4  ;;  %v6892_v19 = vld [vmem:[#allocation2 + $0x38] sm:$0x1]  ;;  %v7407_v15 = vld [vmem:[#allocation2 + $0x44] sm:$0x1] }
 0x396   : > { %v7005_v9 = vshll.u32 %v6890_v23, 16  ;;  %v7011_v24 = vshll.u32 %v6891_v8, 16  ;;  %9714 = vmatprep.mubr.bf16.mxu1 %v10974_v1  ;;  %12396 = vmatpush3.bf16.msra.mxu1 %v12756_v48  ;;  %v7000_v58 = vsel %vm13190_vm13, %v6995_v41, %v6999_v40  ;;  %v7015_v3 = vshrl.u32 %v6891_v8, 16  ;;  %v7838_v1 = vld [vmem:[#allocation2 + $0x4c] sm:$0xf] }
 0x397   : > { %v7963_v27 = vrot.slane %v7962_v16, 4  ;;  %v15203_v22 = vsel %vm13205_vm14, %v7514_v42, %v7515_v52  ;;  %v15205_v5 = vcombine.low %v6990_v34, %v7000_v58  ;;  %v7958_v60 = vsel %vm13190_vm13, %v7953_v21, %v7957_v45  ;;  %12397 = vmatprep.subr.bf16.mxu1 %v12735_v47  ;;  %v6893_v8 = vld [vmem:[#allocation2 + $0x3c] sm:$0xf] }
 0x398   : > { %v10976_v10 = vcombine.low %v15193_v20, %v15203_v22  ;;  %v7004_v59 = vrot.slane %v7002_v53, 4  ;;  %v7007_v18 = vrot.slane %v7005_v9, 5  ;;  %v7013_v38 = vrot.slane %v7011_v24, 5 }
 0x399   : > { %v7968_v33 = vsel %vm13190_vm13, %v7963_v27, %v7967_v13  ;;  %v7017_v37 = vrot.slane %v7015_v3, 4  ;;  %v7021_v63 = vshll.u32 %v6892_v19, 16  ;;  %v7970_v12 = vshrl.u32 %v7837_v4, 16  ;;  %v7841_v19 = vld [vmem:[#allocation2 + $0x58] sm:$0xf] }
 0x39a   : > { %9876 = vmatmul.mubr.bf16.gmra.mrb[228].mxu0 %v12733_v51  ;;  %v11008_v11 = vcombine.low %v7958_v60, %v7968_v33  ;;  %v7973_v55 = vshll.u32 %v7837_v4, 16  ;;  %12398 = vmatpush3.bf16.msra.mxu1 %v12735_v47  ;;  %v7008_v40 = vor.u32 %v7007_v18, %v7004_v59  ;;  %v7979_v32 = vshll.u32 %v7838_v1, 16  ;;  %v6894_v47 = vld [vmem:[#allocation2 + $0x40] sm:$0xf]  ;;  %v6895_v51 = vld [vmem:[#allocation2 + $0x44] sm:$0x1] }
 0x39b   : > { %9883 = vmatprep.mubr.bf16.mxu0 %v15186_v36  ;;  %v7018_v35 = vor.u32 %v7017_v37, %v7013_v38  ;;  %v7983_v62 = vshrl.u32 %v7838_v1, 16  ;;  %v7023_v49 = vrot.slane %v7021_v63, 5  ;;  %v7972_v45 = vrot.slane %v7970_v12, 4  ;;  %12399 = vmatprep.subr.bf16.mxu1 %v12738_v44  ;;  %v7842_v1 = vld [vmem:[#allocation2 + $0x5c] sm:$0x1] }
 0x39c   : > { %v7975_v56 = vrot.slane %v7973_v55, 5  ;;  %v7989_v23 = vshll.u32 %v7839_v50, 16  ;;  %v7009_v6 = vrot.slane %v7008_v40, 4  ;;  %v7981_v43 = vrot.slane %v7979_v32, 5  ;;  %v7408_v50 = vld [vmem:[#allocation2 + $0x48] sm:$0xe] }
 0x39d   : > { %v7019_v46 = vrot.slane %v7018_v35, 4  ;;  %v7985_v29 = vrot.slane %v7983_v62, 4  ;;  %9715 = vmatmul.mubr.bf16.gmra.mrb[196].mxu1 %v15171_v28  ;;  %v10961_v57 = vrot.slane %v7405_v54, 9  ;;  %v7519_v13 = vrot.slane %v7406_v7, 5  ;;  %v12734_v28 = vld [vmem:[#allocation2 + $0x30] sm:$0xff]   ;;  %v12747_v7 = vld [vmem:[#allocation9 + $0x228] sm:$0xff]  }
 0x39e   : > { %v7976_v34 = vor.u32 %v7975_v56, %v7972_v45  ;;  %v7991_v36 = vrot.slane %v7989_v23, 5  ;;  %9722 = vmatprep.mubr.bf16.mxu1 %v10975_v25  ;;  %v7014_v52 = vsel %vm13190_vm13, %v7009_v6, %v7013_v38  ;;  %v7522_v42 = vrot.slane %v7407_v15, 5  ;;  %12400 = vmatpush3.bf16.msra.mxu1 %v12738_v44  ;;  %v12744_v25 = vld [vmem:[#allocation9 + $0x220] sm:$0xff]   ;;  %v7409_v37 = vld [vmem:[#allocation2 + $0x4c] sm:$0xf] }
 0x39f   : > { %v7024_v41 = vsel %vm13190_vm13, %v7019_v46, %v7023_v49  ;;  %v7986_v16 = vor.u32 %v7985_v29, %v7981_v43  ;;  %v15226_v9 = vsel %vm13205_vm14, %v10961_v57, %v7519_v13  ;;  %v7521_v2 = vrot.slane %v7519_v13, 4  ;;  %12401 = vmatprep.subr.bf16.mxu1 %v12741_v14  ;;  %v7410_v62 = vld [vmem:[#allocation2 + $0x50] sm:$0x1]  ;;  %v6896_v23 = vld [vmem:[#allocation2 + $0x48] sm:$0xf]  ;;  %v12736_v29 = vld [vmem:[#allocation2 + $0x3c] sm:$0xff]  }
 0x3a0   : > { %v15222_v21 = vcombine.low %v7014_v52, %v7024_v41  ;;  %v7977_v53 = vrot.slane %v7976_v34, 4  ;;  %v7026_v48 = vshrl.u32 %v6893_v8, 16  ;;  %v7029_v58 = vshll.u32 %v6893_v8, 16  ;;  %v6897_v41 = vld [vmem:[#allocation2 + $0x4c] sm:$0xf] }
 0x3a1   : > { %v7987_v24 = vrot.slane %v7986_v16, 4  ;;  %v7035_v27 = vshll.u32 %v6894_v47, 16  ;;  %v15232_v4 = vsel %vm13205_vm14, %v7521_v2, %v7522_v42  ;;  %v7039_v60 = vshrl.u32 %v6894_v47, 16 }
 0x3a2   : > { %9884 = vmatmul.mubr.bf16.gmra.mrb[232].mxu0 %v12734_v28  ;;  %v7982_v3 = vsel %vm13190_vm13, %v7977_v53, %v7981_v43  ;;  %v7045_v59 = vshll.u32 %v6895_v51, 16  ;;  %v10977_v33 = vcombine.low %v15226_v9, %v15232_v4  ;;  %v7028_v18 = vrot.slane %v7026_v48, 4  ;;  %12402 = vmatpush3.bf16.msra.mxu1 %v12741_v14  ;;  %v6898_v51 = vld [vmem:[#allocation2 + $0x50] sm:$0x1]  ;;  %v7843_v28 = vld [vmem:[#allocation2 + $0x60] sm:$0xf] }
 0x3a3   : > { %9891 = vmatprep.mubr.bf16.mxu0 %v11008_v11  ;;  %v7992_v44 = vsel %vm13190_vm13, %v7987_v24, %v7991_v36  ;;  %v7031_v38 = vrot.slane %v7029_v58, 5  ;;  %v7037_v63 = vrot.slane %v7035_v27, 5  ;;  %v7041_v12 = vrot.slane %v7039_v60, 4  ;;  %12403 = vmatprep.subr.bf16.mxu1 %v12744_v25  ;;  %v7844_v24 = vld [vmem:[#allocation2 + $0x64] sm:$0xf] }
 0x3a4   : > { %v11009_v54 = vcombine.low %v7982_v3, %v7992_v44  ;;  %v7047_v55 = vrot.slane %v7045_v59, 5  ;;  %v7994_v35 = vshrl.u32 %v7840_v31, 16  ;;  %v7997_v32 = vshll.u32 %v7840_v31, 16  ;;  %v12753_v3 = vld [vmem:[#allocation9 + $0x238] sm:$0xff]   ;;  %v7845_v44 = vld [vmem:[#allocation2 + $0x68] sm:$0x1] }
 0x3a5   : > { %v7032_v40 = vor.u32 %v7031_v38, %v7028_v18  ;;  %v8003_v11 = vshll.u32 %v7841_v19, 16  ;;  %9723 = vmatmul.mubr.bf16.gmra.mrb[200].mxu1 %v15205_v5  ;;  %v7042_v15 = vor.u32 %v7041_v12, %v7037_v63  ;;  %v8007_v49 = vshrl.u32 %v7841_v19, 16  ;;  %v12750_v5 = vld [vmem:[#allocation9 + $0x230] sm:$0xff]  }
 0x3a6   : > { %v8013_v45 = vshll.u32 %v7842_v1, 16  ;;  %v10962_v56 = vrot.slane %v7408_v50, 9  ;;  %9730 = vmatprep.mubr.bf16.mxu1 %v10976_v10  ;;  %v7996_v6 = vrot.slane %v7994_v35, 4  ;;  %v7999_v46 = vrot.slane %v7997_v32, 5  ;;  %12404 = vmatpush3.bf16.msra.mxu1 %v12744_v25  ;;  %v7412_v35 = vld [vmem:[#allocation2 + $0x58] sm:$0xf] }
 0x3a7   : > { %v7033_v14 = vrot.slane %v7032_v40, 4  ;;  %v8005_v43 = vrot.slane %v8003_v11, 5  ;;  %v7043_v8 = vrot.slane %v7042_v15, 4  ;;  %v8009_v34 = vrot.slane %v8007_v49, 4  ;;  %12405 = vmatprep.subr.bf16.mxu1 %v12747_v7  ;;  %v12737_v32 = vld [vmem:[#allocation2 + $0x48] sm:$0xff]  }
 0x3a8   : > { %v8015_v36 = vrot.slane %v8013_v45, 5  ;;  %v7526_v57 = vrot.slane %v7409_v37, 5  ;;  %v8000_v47 = vor.u32 %v7999_v46, %v7996_v6  ;;  %v7529_v52 = vrot.slane %v7410_v62, 5  ;;  %v7413_v49 = vld [vmem:[#allocation2 + $0x5c] sm:$0x1] }
 0x3a9   : > { %v7038_v13 = vsel %vm13190_vm13, %v7033_v14, %v7037_v63  ;;  %v7050_v20 = vshrl.u32 %v6896_v23, 16  ;;  %v7048_v22 = vsel %vm13190_vm13, %v7043_v8, %v7047_v55  ;;  %v8010_v10 = vor.u32 %v8009_v34, %v8005_v43  ;;  %v7411_v63 = vld [vmem:[#allocation2 + $0x54] sm:$0xe] }
 0x3aa   : > { %9892 = vmatmul.mubr.bf16.gmra.mrb[236].mxu0 %v12736_v29  ;;  %v15248_v16 = vsel %vm13205_vm14, %v10962_v56, %v7526_v57  ;;  %v7528_v42 = vrot.slane %v7526_v57, 4  ;;  %v15250_v53 = vcombine.low %v7038_v13, %v7048_v22  ;;  %v8001_v2 = vrot.slane %v8000_v47, 4  ;;  %12406 = vmatpush3.bf16.msra.mxu1 %v12747_v7  ;;  %v6899_v46 = vld [vmem:[#allocation2 + $0x54] sm:$0xf]  ;;  %v6901_v57 = vld [vmem:[#allocation2 + $0x5c] sm:$0x1] }
 0x3ab   : > { %9899 = vmatprep.mubr.bf16.mxu0 %v11009_v54  ;;  %v7052_v31 = vrot.slane %v7050_v20, 4  ;;  %v7053_v25 = vshll.u32 %v6896_v23, 16  ;;  %v8011_v48 = vrot.slane %v8010_v10, 4  ;;  %v7059_v27 = vshll.u32 %v6897_v41, 16  ;;  %12407 = vmatprep.subr.bf16.mxu1 %v12750_v5 }
 0x3ac   : > { %v15254_v58 = vsel %vm13205_vm14, %v7528_v42, %v7529_v52  ;;  %v7063_v19 = vshrl.u32 %v6897_v41, 16  ;;  %v8006_v60 = vsel %vm13190_vm13, %v8001_v2, %v8005_v43  ;;  %v7069_v50 = vshll.u32 %v6898_v51, 16 }
 0x3ad   : > { %v10978_v59 = vcombine.low %v15248_v16, %v15254_v58  ;;  %v7055_v1 = vrot.slane %v7053_v25, 5  ;;  %9731 = vmatmul.mubr.bf16.gmra.mrb[204].mxu1 %v15222_v21  ;;  %v8016_v18 = vsel %vm13190_vm13, %v8011_v48, %v8015_v36  ;;  %v7061_v38 = vrot.slane %v7059_v27, 5  ;;  %v6900_v36 = vld [vmem:[#allocation2 + $0x58] sm:$0xf]  ;;  %v7846_v16 = vld [vmem:[#allocation2 + $0x6c] sm:$0xf] }
 0x3ae   : > { %v7065_v37 = vrot.slane %v7063_v19, 4  ;;  %v8018_v54 = vshrl.u32 %v7843_v28, 16  ;;  %9738 = vmatprep.mubr.bf16.mxu1 %v10977_v33  ;;  %v11010_v12 = vcombine.low %v8006_v60, %v8016_v18  ;;  %v7071_v7 = vrot.slane %v7069_v50, 5  ;;  %12408 = vmatpush3.bf16.msra.mxu1 %v12750_v5  ;;  %v7414_v18 = vld [vmem:[#allocation2 + $0x60] sm:$0xe] }
 0x3af   : > { %v7056_v55 = vor.u32 %v7055_v1, %v7052_v31  ;;  %v8021_v40 = vshll.u32 %v7843_v28, 16  ;;  %v8027_v62 = vshll.u32 %v7844_v24, 16  ;;  %v8031_v15 = vshrl.u32 %v7844_v24, 16  ;;  %12409 = vmatprep.subr.bf16.mxu1 %v12753_v3  ;;  %v7847_v31 = vld [vmem:[#allocation2 + $0x70] sm:$0xf]  ;;  %v12739_v24 = vld [vmem:[#allocation2 + $0x54] sm:$0xff]  }
 0x3b0   : > { %v7066_v11 = vor.u32 %v7065_v37, %v7061_v38  ;;  %v8020_v21 = vrot.slane %v8018_v54, 4  ;;  %v8037_v23 = vshll.u32 %v7845_v44, 16  ;;  %v10963_v14 = vrot.slane %v7411_v63, 9 }
 0x3b1   : > { %v7057_v45 = vrot.slane %v7056_v55, 4  ;;  %v8023_v56 = vrot.slane %v8021_v40, 5  ;;  %v8029_v4 = vrot.slane %v8027_v62, 5  ;;  %v8033_v33 = vrot.slane %v8031_v15, 4 }
 0x3b2   : > { %9900 = vmatmul.mubr.bf16.gmra.mrb[240].mxu0 %v12737_v32  ;;  %v7067_v9 = vrot.slane %v7066_v11, 4  ;;  %v7533_v6 = vrot.slane %v7412_v35, 5  ;;  %v8039_v8 = vrot.slane %v8037_v23, 5  ;;  %v7536_v34 = vrot.slane %v7413_v49, 5  ;;  %12410 = vmatpush3.bf16.msra.mxu1 %v12753_v3  ;;  %v15275_v25 = vpop.f32.mrb[160].mxu0 }
 0x3b3   : > { %9907 = vmatprep.mubr.bf16.mxu0 %v11010_v12  ;;  %v7062_v43 = vsel %vm13190_vm13, %v7057_v45, %v7061_v38  ;;  %v8024_v29 = vor.u32 %v8023_v56, %v8020_v21  ;;  %v8034_v13 = vor.u32 %v8033_v33, %v8029_v4  ;;  %v7074_v22 = vshrl.u32 %v6899_v46, 16  ;;  %v7848_v3 = vld [vmem:[#allocation2 + $0x74] sm:$0x1]  ;;  %v15279_v60 = vpop.f32.mrb[161].mxu0  ;;  %v7415_v12 = vld [vmem:[#allocation2 + $0x64] sm:$0xf] }
 0x3b4   : > { %v7072_v5 = vsel %vm13190_vm13, %v7067_v9, %v7071_v7  ;;  %v7534_v47 = vsel %vm13205_vm14, %v10963_v14, %v7533_v6  ;;  %v7535_v52 = vrot.slane %v7533_v6, 4  ;;  %v7077_v10 = vshll.u32 %v6899_v46, 16  ;;  %v15283_v38 = vpop.f32.mrb[162].mxu0  ;;  %v7416_v11 = vld [vmem:[#allocation2 + $0x68] sm:$0x1] }
 0x3b5   : > { %v10946_v41 = vcombine.low %v7062_v43, %v7072_v5  ;;  %v8025_v20 = vrot.slane %v8024_v29, 4  ;;  %9739 = vmatmul.mubr.bf16.gmra.mrb[208].mxu1 %v15250_v53  ;;  %v8035_v42 = vrot.slane %v8034_v13, 4  ;;  %v7083_v28 = vshll.u32 %v6900_v36, 16  ;;  %v15285_v55 = vpop.f32.mrb[163].mxu0  ;;  %v6902_v45 = vld [vmem:[#allocation2 + $0x60] sm:$0xf] }
 0x3b6   : > { %v7537_v51 = vsel %vm13205_vm14, %v7535_v52, %v7536_v34  ;;  %v7087_v2 = vshrl.u32 %v6900_v36, 16  ;;  %9746 = vmatprep.mubr.bf16.mxu1 %v10978_v59  ;;  %v7076_v27 = vrot.slane %v7074_v22, 4  ;;  %v7079_v19 = vrot.slane %v7077_v10, 5  ;;  %v6903_v43 = vld [vmem:[#allocation2 + $0x64] sm:$0xf] }
 0x3b7   : > { %v8030_v48 = vsel %vm13190_vm13, %v8025_v20, %v8029_v4  ;;  %v10979_v58 = vcombine.low %v7534_v47, %v7537_v51  ;;  %v8040_v53 = vsel %vm13190_vm13, %v8035_v42, %v8039_v8  ;;  %v7085_v1 = vrot.slane %v7083_v28, 5  ;;  %v6904_v36 = vld [vmem:[#allocation2 + $0x68] sm:$0x1]  ;;  %v12740_v5 = vld [vmem:[#allocation2 + $0x60] sm:$0xff]  }
 0x3b8   : > { %v7089_v50 = vrot.slane %v7087_v2, 4  ;;  %v7093_v44 = vshll.u32 %v6901_v57, 16  ;;  %v11011_v59 = vcombine.low %v8030_v48, %v8040_v53  ;;  %v7080_v37 = vor.u32 %v7079_v19, %v7076_v27  ;;  %v7417_v53 = vld [vmem:[#allocation2 + $0x6c] sm:$0xe] }
 0x3b9   : > { %v8042_v54 = vshrl.u32 %v7846_v16, 16  ;;  %v8045_v63 = vshll.u32 %v7846_v16, 16  ;;  %v8051_v35 = vshll.u32 %v7847_v31, 16  ;;  %v8055_v32 = vshrl.u32 %v7847_v31, 16 }
 0x3ba   : > { %9908 = vmatmul.mubr.bf16.gmra.mrb[244].mxu0 %v12739_v24  ;;  %v7090_v7 = vor.u32 %v7089_v50, %v7085_v1  ;;  %v7095_v40 = vrot.slane %v7093_v44, 5  ;;  %v7081_v21 = vrot.slane %v7080_v37, 4  ;;  %v8061_v49 = vshll.u32 %v7848_v3, 16  ;;  %v7850_v24 = vld [vmem:[#allocation2 + $0x7c] sm:$0xf] }
 0x3bb   : > { %9915 = vmatprep.mubr.bf16.mxu0 %v11011_v59  ;;  %v8044_v62 = vrot.slane %v8042_v54, 4  ;;  %v8047_v15 = vrot.slane %v8045_v63, 5  ;;  %v8053_v23 = vrot.slane %v8051_v35, 5  ;;  %v8057_v14 = vrot.slane %v8055_v32, 4  ;;  %v7851_v3 = vld [vmem:[#allocation2 + $0x80] sm:$0x1] }
 0x3bc   : > { %v7091_v56 = vrot.slane %v7090_v7, 4  ;;  %v10964_v9 = vrot.slane %v7414_v18, 9  ;;  %v7086_v4 = vsel %vm13190_vm13, %v7081_v21, %v7085_v1  ;;  %v8063_v6 = vrot.slane %v8061_v49, 5  ;;  %v7418_v59 = vld [vmem:[#allocation2 + $0x70] sm:$0xf] }
 0x3bd   : > { %v8048_v33 = vor.u32 %v8047_v15, %v8044_v62  ;;  %v7540_v46 = vrot.slane %v7415_v12, 5  ;;  %9747 = vmatmul.mubr.bf16.gmra.mrb[212].mxu1 %v10946_v41  ;;  %v8058_v8 = vor.u32 %v8057_v14, %v8053_v23  ;;  %v7543_v34 = vrot.slane %v7416_v11, 5  ;;  %v7849_v41 = vld [vmem:[#allocation2 + $0x78] sm:$0xf]  ;;  %v7419_v7 = vld [vmem:[#allocation2 + $0x74] sm:$0x1] }
 0x3be   : > { %v7096_v29 = vsel %vm13190_vm13, %v7091_v56, %v7095_v40  ;;  %v7098_v57 = vshrl.u32 %v6902_v45, 16  ;;  %9754 = vmatprep.mubr.bf16.mxu1 %v10979_v58  ;;  %v7101_v16 = vshll.u32 %v6902_v45, 16  ;;  %v7107_v42 = vshll.u32 %v6903_v43, 16  ;;  %v6905_v21 = vld [vmem:[#allocation2 + $0x6c] sm:$0xf] }
 0x3bf   : > { %v10947_v13 = vcombine.low %v7086_v4, %v7096_v29  ;;  %v8049_v47 = vrot.slane %v8048_v33, 4  ;;  %v7541_v52 = vsel %vm13205_vm14, %v10964_v9, %v7540_v46  ;;  %v7542_v20 = vrot.slane %v7540_v46, 4  ;;  %v12742_v4 = vld [vmem:[#allocation2 + $0x6c] sm:$0xff]  }
 0x3c0   : > { %v8059_v22 = vrot.slane %v8058_v8, 4  ;;  %v7100_v10 = vrot.slane %v7098_v57, 4  ;;  %v7111_v2 = vshrl.u32 %v6903_v43, 16  ;;  %v7117_v31 = vshll.u32 %v6904_v36, 16  ;;  %v6906_v43 = vld [vmem:[#allocation2 + $0x70] sm:$0xf] }
 0x3c1   : > { %v8054_v51 = vsel %vm13190_vm13, %v8049_v47, %v8053_v23  ;;  %v7544_v28 = vsel %vm13205_vm14, %v7542_v20, %v7543_v34  ;;  %v7103_v27 = vrot.slane %v7101_v16, 5  ;;  %v7109_v19 = vrot.slane %v7107_v42, 5  ;;  %v6907_v57 = vld [vmem:[#allocation2 + $0x74] sm:$0x1] }
 0x3c2   : > { %9916 = vmatmul.mubr.bf16.gmra.mrb[248].mxu0 %v12740_v5  ;;  %v8064_v48 = vsel %vm13190_vm13, %v8059_v22, %v8063_v6  ;;  %v10980_v58 = vcombine.low %v7541_v52, %v7544_v28  ;;  %v7113_v50 = vrot.slane %v7111_v2, 4  ;;  %v7119_v44 = vrot.slane %v7117_v31, 5  ;;  %v7852_v22 = vld [vmem:[#allocation2 + $0x84] sm:$0xf] }
 0x3c3   : > { %v11012_v1 = vcombine.low %v8054_v51, %v8064_v48  ;;  %v8066_v18 = vshrl.u32 %v7849_v41, 16  ;;  %v7104_v37 = vor.u32 %v7103_v27, %v7100_v10  ;;  %v8069_v54 = vshll.u32 %v7849_v41, 16  ;;  %v7853_v51 = vld [vmem:[#allocation2 + $0x88] sm:$0xf]  ;;  %v7854_v48 = vld [vmem:[#allocation2 + $0x8c] sm:$0x1] }
 0x3c4   : > { %v8075_v63 = vshll.u32 %v7850_v24, 16  ;;  %v8079_v12 = vshrl.u32 %v7850_v24, 16  ;;  %v7114_v40 = vor.u32 %v7113_v50, %v7109_v19  ;;  %v8085_v32 = vshll.u32 %v7851_v3, 16 }
 0x3c5   : > { %9923 = vmatprep.mubr.bf16.mxu0 %v11012_v1  ;;  %v8068_v35 = vrot.slane %v8066_v18, 4  ;;  %v10965_v11 = vrot.slane %v7417_v53, 9  ;;  %9755 = vmatmul.mubr.bf16.gmra.mrb[216].mxu1 %v10947_v13  ;;  %v7105_v62 = vrot.slane %v7104_v37, 4  ;;  %v8071_v15 = vrot.slane %v8069_v54, 5  ;;  %v7420_v53 = vld [vmem:[#allocation2 + $0x78] sm:$0xe] }
 0x3c6   : > { %v8077_v49 = vrot.slane %v8075_v63, 5  ;;  %v8081_v45 = vrot.slane %v8079_v12, 4  ;;  %9762 = vmatprep.mubr.bf16.mxu1 %v10980_v58  ;;  %v7115_v56 = vrot.slane %v7114_v40, 4  ;;  %v8087_v23 = vrot.slane %v8085_v32, 5  ;;  %v7421_v1 = vld [vmem:[#allocation2 + $0x7c] sm:$0xf] }
 0x3c7   : > { %v7547_v14 = vrot.slane %v7418_v59, 5  ;;  %v7550_v9 = vrot.slane %v7419_v7, 5  ;;  %v7110_v33 = vsel %vm13190_vm13, %v7105_v62, %v7109_v19  ;;  %v8072_v6 = vor.u32 %v8071_v15, %v8068_v35  ;;  %v7422_v37 = vld [vmem:[#allocation2 + $0x80] sm:$0x1]  ;;  %v12743_v54 = vld [vmem:[#allocation2 + $0x78] sm:$0xff]  }
 0x3c8   : > { %v8082_v46 = vor.u32 %v8081_v45, %v8077_v49  ;;  %v7122_v29 = vshrl.u32 %v6905_v21, 16  ;;  %v7120_v8 = vsel %vm13190_vm13, %v7115_v56, %v7119_v44  ;;  %v7125_v5 = vshll.u32 %v6905_v21, 16  ;;  %v6908_v35 = vld [vmem:[#allocation2 + $0x78] sm:$0xf]  ;;  %v6909_v15 = vld [vmem:[#allocation2 + $0x7c] sm:$0xf] }
 0x3c9   : > { %v7548_v34 = vsel %vm13205_vm14, %v10965_v11, %v7547_v14  ;;  %v7549_v36 = vrot.slane %v7547_v14, 4  ;;  %v10948_v13 = vcombine.low %v7110_v33, %v7120_v8  ;;  %v8073_v47 = vrot.slane %v8072_v6, 4 }
 0x3ca   : > { %9924 = vmatmul.mubr.bf16.gmra.mrb[252].mxu0 %v12742_v4  ;;  %v8083_v52 = vrot.slane %v8082_v46, 4  ;;  %v7124_v20 = vrot.slane %v7122_v29, 4  ;;  %v7127_v16 = vrot.slane %v7125_v5, 5  ;;  %v7131_v42 = vshll.u32 %v6906_v43, 16 }
 0x3cb   : > { %v7551_v10 = vsel %vm13205_vm14, %v7549_v36, %v7550_v9  ;;  %v7135_v41 = vshrl.u32 %v6906_v43, 16  ;;  %v8078_v28 = vsel %vm13190_vm13, %v8073_v47, %v8077_v49  ;;  %v7141_v24 = vshll.u32 %v6907_v57, 16  ;;  %v6910_v43 = vld [vmem:[#allocation2 + $0x80] sm:$0x1] }
 0x3cc   : > { %v8088_v2 = vsel %vm13190_vm13, %v8083_v52, %v8087_v23  ;;  %v10981_v31 = vcombine.low %v7548_v34, %v7551_v10  ;;  %v7128_v27 = vor.u32 %v7127_v16, %v7124_v20  ;;  %v7133_v19 = vrot.slane %v7131_v42, 5  ;;  %v7856_v10 = vld [vmem:[#allocation2 + $0x94] sm:$0xf] }
 0x3cd   : > { %v11013_v58 = vcombine.low %v8078_v28, %v8088_v2  ;;  %v7137_v3 = vrot.slane %v7135_v41, 4  ;;  %9763 = vmatmul.mubr.bf16.gmra.mrb[220].mxu1 %v10948_v13  ;;  %v7143_v50 = vrot.slane %v7141_v24, 5  ;;  %v8090_v44 = vshrl.u32 %v7852_v22, 16  ;;  %v7855_v13 = vld [vmem:[#allocation2 + $0x90] sm:$0xf] }
 0x3ce   : > { %v8093_v18 = vshll.u32 %v7852_v22, 16  ;;  %v8099_v59 = vshll.u32 %v7853_v51, 16  ;;  %9770 = vmatprep.mubr.bf16.mxu1 %v10981_v31  ;;  %v7129_v63 = vrot.slane %v7128_v27, 4  ;;  %v8103_v7 = vshrl.u32 %v7853_v51, 16  ;;  %v7857_v28 = vld [vmem:[#allocation2 + $0x98] sm:$0x1] }
 0x3cf   : > { %9931 = vmatprep.mubr.bf16.mxu0 %v11013_v58  ;;  %v7138_v12 = vor.u32 %v7137_v3, %v7133_v19  ;;  %v8109_v40 = vshll.u32 %v7854_v48, 16  ;;  %v8092_v32 = vrot.slane %v8090_v44, 4  ;;  %v10966_v62 = vrot.slane %v7420_v53, 9  ;;  %v7423_v2 = vld [vmem:[#allocation2 + $0x84] sm:$0xe] }
 0x3d0   : > { %v8095_v11 = vrot.slane %v8093_v18, 5  ;;  %v8101_v21 = vrot.slane %v8099_v59, 5  ;;  %v7134_v49 = vsel %vm13190_vm13, %v7129_v63, %v7133_v19  ;;  %v8105_v56 = vrot.slane %v8103_v7, 4  ;;  %v7424_v27 = vld [vmem:[#allocation2 + $0x88] sm:$0xf] }
 0x3d1   : > { %v7139_v45 = vrot.slane %v7138_v12, 4  ;;  %v8111_v23 = vrot.slane %v8109_v40, 5  ;;  %v7554_v9 = vrot.slane %v7421_v1, 5  ;;  %v7557_v4 = vrot.slane %v7422_v37, 5  ;;  %v7425_v19 = vld [vmem:[#allocation2 + $0x8c] sm:$0x1] }
 0x3d2   : > { %9932 = vmatmul.mubr.bf16.gmra.mrb[0].mxu0 %v12743_v54  ;;  %v8096_v14 = vor.u32 %v8095_v11, %v8092_v32  ;;  %v7146_v33 = vshrl.u32 %v6908_v35, 16  ;;  %v8106_v46 = vor.u32 %v8105_v56, %v8101_v21  ;;  %v7149_v29 = vshll.u32 %v6908_v35, 16  ;;  %v12745_v53 = vld [vmem:[#allocation2 + $0x84] sm:$0xff]  }
 0x3d3   : > { %v7144_v6 = vsel %vm13190_vm13, %v7139_v45, %v7143_v50  ;;  %v7155_v8 = vshll.u32 %v6909_v15, 16  ;;  %v7555_v57 = vsel %vm13205_vm14, %v10966_v62, %v7554_v9  ;;  %v7556_v5 = vrot.slane %v7554_v9, 4  ;;  %v6911_v18 = vld [vmem:[#allocation2 + $0x84] sm:$0xf]  ;;  %v6912_v12 = vld [vmem:[#allocation2 + $0x88] sm:$0xf] }
 0x3d4   : > { %v10949_v34 = vcombine.low %v7134_v49, %v7144_v6  ;;  %v8097_v36 = vrot.slane %v8096_v14, 4  ;;  %v8107_v47 = vrot.slane %v8106_v46, 4  ;;  %v7148_v52 = vrot.slane %v7146_v33, 4 }
 0x3d5   : > { %v7151_v20 = vrot.slane %v7149_v29, 5  ;;  %v7157_v22 = vrot.slane %v7155_v8, 5  ;;  %v7558_v42 = vsel %vm13205_vm14, %v7556_v5, %v7557_v4  ;;  %v7159_v41 = vshrl.u32 %v6909_v15, 16 }
 0x3d6   : > { %9771 = vmatmul.mubr.bf16.gmra.mrb[224].mxu1 %v10949_v34  ;;  %v8102_v16 = vsel %vm13190_vm13, %v8097_v36, %v8101_v21  ;;  %v7165_v51 = vshll.u32 %v6910_v43, 16  ;;  %v8112_v31 = vsel %vm13190_vm13, %v8107_v47, %v8111_v23  ;;  %v10982_v24 = vcombine.low %v7555_v57, %v7558_v42  ;;  %v6913_v57 = vld [vmem:[#allocation2 + $0x8c] sm:$0x1] }
 0x3d7   : > { %v7152_v48 = vor.u32 %v7151_v20, %v7148_v52  ;;  %v8114_v58 = vshrl.u32 %v7855_v13, 16  ;;  %v11014_v3 = vcombine.low %v8102_v16, %v8112_v31  ;;  %v7161_v1 = vrot.slane %v7159_v41, 4  ;;  %v15325_v40 = vpop.f32.mrb[132].mxu1 }
 0x3d8   : > { %v7167_v50 = vrot.slane %v7165_v51, 5  ;;  %v8117_v44 = vshll.u32 %v7855_v13, 16  ;;  %9778 = vmatprep.mubr.bf16.mxu1 %v10982_v24  ;;  %v8123_v54 = vshll.u32 %v7856_v10, 16  ;;  %v8127_v63 = vshrl.u32 %v7856_v10, 16  ;;  %v15323_v7 = vpop.f32.mrb[164].mxu0  ;;  %v15329_v15 = vpop.f32.mrb[133].mxu1 }
 0x3d9   : > { %v7153_v59 = vrot.slane %v7152_v48, 4  ;;  %v8116_v37 = vrot.slane %v8114_v58, 4  ;;  %9939 = vmatprep.mubr.bf16.mxu0 %v11014_v3  ;;  %v7162_v35 = vor.u32 %v7161_v1, %v7157_v22  ;;  %v8133_v11 = vshll.u32 %v7857_v28, 16  ;;  %v15327_v62 = vpop.f32.mrb[165].mxu0  ;;  %v15335_v9 = vpop.f32.mrb[134].mxu1 }
 0x3da   : > { %v8119_v32 = vrot.slane %v8117_v44, 5  ;;  %v10967_v21 = vrot.slane %v7423_v2, 9  ;;  %9940 = vmatmul.mubr.bf16.gmra.mrb[4].mxu0 %v12745_v53  ;;  %v8125_v45 = vrot.slane %v8123_v54, 5  ;;  %v8129_v56 = vrot.slane %v8127_v63, 4  ;;  %v15333_v14 = vpop.f32.mrb[166].mxu0  ;;  %v15339_v29 = vpop.f32.mrb[135].mxu1 }
 0x3db   : > { %v7158_v49 = vsel %vm13190_vm13, %v7153_v59, %v7157_v22  ;;  %v7561_v23 = vrot.slane %v7424_v27, 5  ;;  %v7163_v4 = vrot.slane %v7162_v35, 4  ;;  %v8135_v6 = vrot.slane %v8133_v11, 5  ;;  %v15337_v43 = vpop.f32.mrb[167].mxu0  ;;  %v7858_v22 = vld [vmem:[#allocation2 + $0x9c] sm:$0xf] }
 0x3dc   : > { %v8120_v33 = vor.u32 %v8119_v32, %v8116_v37  ;;  %v7564_v46 = vrot.slane %v7425_v19, 5  ;;  %v8130_v8 = vor.u32 %v8129_v56, %v8125_v45  ;;  %v7170_v5 = vshrl.u32 %v6911_v18, 16  ;;  %v7859_v51 = vld [vmem:[#allocation2 + $0xa0] sm:$0xf]  ;;  %v7860_v48 = vld [vmem:[#allocation2 + $0xa4] sm:$0x1] }
 0x3dd   : > { %v7562_v34 = vsel %vm13205_vm14, %v10967_v21, %v7561_v23  ;;  %v7563_v36 = vrot.slane %v7561_v23, 4  ;;  %v7168_v13 = vsel %vm13190_vm13, %v7163_v4, %v7167_v50  ;;  %v7173_v52 = vshll.u32 %v6911_v18, 16  ;;  %v7426_v53 = vld [vmem:[#allocation2 + $0x90] sm:$0xe]  ;;  %v7427_v59 = vld [vmem:[#allocation2 + $0x94] sm:$0xf] }
 0x3de   : > { %v8121_v47 = vrot.slane %v8120_v33, 4  ;;  %v7179_v20 = vshll.u32 %v6912_v12, 16  ;;  %v10950_v10 = vcombine.low %v7158_v49, %v7168_v13  ;;  %v8131_v16 = vrot.slane %v8130_v8, 4  ;;  %v7428_v37 = vld [vmem:[#allocation2 + $0x98] sm:$0x1]  ;;  %v12746_v54 = vld [vmem:[#allocation2 + $0x90] sm:$0xff]  }
 0x3df   : > { %v7565_v42 = vsel %vm13205_vm14, %v7563_v36, %v7564_v46  ;;  %v7172_v41 = vrot.slane %v7170_v5, 4  ;;  %v7175_v31 = vrot.slane %v7173_v52, 5  ;;  %v7183_v27 = vshrl.u32 %v6912_v12, 16 }
 0x3e0   : > { %v8126_v28 = vsel %vm13190_vm13, %v8121_v47, %v8125_v45  ;;  %v10983_v2 = vcombine.low %v7562_v34, %v7565_v42  ;;  %v7181_v24 = vrot.slane %v7179_v20, 5  ;;  %9779 = vmatmul.mubr.bf16.gmra.mrb[228].mxu1 %v10950_v10  ;;  %v8136_v58 = vsel %vm13190_vm13, %v8131_v16, %v8135_v6  ;;  %v15368_v16 = vld [vmem:[%s16158_s4] ss:$0 sm:$0xff] }
 0x3e1   : > { %v7189_v19 = vshll.u32 %v6913_v57, 16  ;;  %v8138_v3 = vshrl.u32 %v7858_v22, 16  ;;  %v11015_v1 = vcombine.low %v8126_v28, %v8136_v58  ;;  %v7176_v50 = vor.u32 %v7175_v31, %v7172_v41  ;;  %v15351_v21 = vpop.f32.mrb[136].mxu1  ;;  %v6914_v31 = vld [vmem:[#allocation2 + $0x90] sm:$0xf] }
 0x3e2   : > { %9786 = vmatprep.mubr.bf16.mxu1 %v10983_v2  ;;  %v8141_v44 = vshll.u32 %v7858_v22, 16  ;;  %v8147_v18 = vshll.u32 %v7859_v51, 16  ;;  %v7185_v63 = vrot.slane %v7183_v27, 4  ;;  %v8151_v11 = vshrl.u32 %v7859_v51, 16  ;;  %v15353_v23 = vpop.f32.mrb[137].mxu1 }
 0x3e3   : > { %v7191_v35 = vrot.slane %v7189_v19, 5  ;;  %v8140_v32 = vrot.slane %v8138_v3, 4  ;;  %9947 = vmatprep.mubr.bf16.mxu0 %v11015_v1  ;;  %v7177_v49 = vrot.slane %v7176_v50, 4  ;;  %v8157_v56 = vshll.u32 %v7860_v48, 16  ;;  %v15355_v8 = vpop.f32.mrb[138].mxu1 }
 0x3e4   : > { %v8143_v12 = vrot.slane %v8141_v44, 5  ;;  %v8149_v45 = vrot.slane %v8147_v18, 5  ;;  %9948 = vmatmul.mubr.bf16.gmra.mrb[8].mxu0 %v12746_v54  ;;  %v7186_v4 = vor.u32 %v7185_v63, %v7181_v24  ;;  %v8153_v33 = vrot.slane %v8151_v11, 4  ;;  %v15361_v47 = vpop.f32.mrb[139].mxu1  ;;  %v6916_v3 = vld [vmem:[#allocation2 + $0x98] sm:$0x1] }
 0x3e5   : > { %v10968_v6 = vrot.slane %v7426_v53, 9  ;;  %v7568_v46 = vrot.slane %v7427_v59, 5  ;;  %v7182_v34 = vsel %vm13190_vm13, %v7177_v49, %v7181_v24  ;;  %v8159_v57 = vrot.slane %v8157_v56, 5  ;;  %v15359_v13 = vpop.f32.mrb[168].mxu0  ;;  %v7861_v18 = vld [vmem:[#allocation2 + $0xa8] sm:$0xf] }
 0x3e6   : > { %v8144_v36 = vor.u32 %v8143_v12, %v8140_v32  ;;  %v7571_v5 = vrot.slane %v7428_v37, 5  ;;  %v7187_v52 = vrot.slane %v7186_v4, 4  ;;  %v8154_v20 = vor.u32 %v8153_v33, %v8149_v45  ;;  %v15370_v42 = vpop.f32.mrb[169].mxu0  ;;  %v7862_v54 = vld [vmem:[#allocation2 + $0xac] sm:$0xf] }
 0x3e7   : > { %v7569_v22 = vsel %vm13205_vm14, %v10968_v6, %v7568_v46  ;;  %v7570_v10 = vrot.slane %v7568_v46, 4  ;;  %v11893_v51 = vadd.f32 %v15094_v0, %v15085_v39  ;;  %v11896_v28 = vadd.f32 %v15104_v61, %v15098_v26  ;;  %v15378_v24 = vpop.f32.mrb[170].mxu0  ;;  %v6915_v39 = vld [vmem:[#allocation2 + $0x94] sm:$0xf]  ;;  %v7863_v12 = vld [vmem:[#allocation2 + $0xb0] sm:$0x1] }
 0x3e8   : > { %v8145_v41 = vrot.slane %v8144_v36, 4  ;;  %v12005_v2 = vadd.f32 %v15279_v60, %v15275_v25  ;;  %v7192_v48 = vsel %vm13190_vm13, %v7187_v52, %v7191_v35  ;;  %v8155_v58 = vrot.slane %v8154_v20, 4  ;;  %v15386_v0 = vpop.f32.mrb[171].mxu0  ;;  %v12748_v35 = vld [vmem:[#allocation2 + $0x9c] sm:$0xff]  }
 0x3e9   : > { %v7572_v27 = vsel %vm13205_vm14, %v7570_v10, %v7571_v5  ;;  %v12008_v19 = vadd.f32 %v15285_v55, %v15283_v38  ;;  %v10951_v26 = vcombine.low %v7182_v34, %v7192_v48  ;;  %v9387_v60 = vadd.f32 %v11893_v51, %v15368_v16  ;;  %v7429_v36 = vld [vmem:[#allocation2 + $0x9c] sm:$0xe] }
 0x3ea   : > { %v8150_v61 = vsel %vm13190_vm13, %v8145_v41, %v8149_v45  ;;  %v10984_v25 = vcombine.low %v7569_v22, %v7572_v27  ;;  %v8160_v53 = vsel %vm13190_vm13, %v8155_v58, %v8159_v57  ;;  %v9390_v1 = vadd.f32 %v11896_v28, %v15368_v16  ;;  %v7430_v57 = vld [vmem:[#allocation2 + $0xa0] sm:$0xf] }
 0x3eb   : > { %v7194_v50 = vshrl.u32 %v6914_v31, 16  ;;  %v7197_v44 = vshll.u32 %v6914_v31, 16  ;;  %9787 = vmatmul.mubr.bf16.gmra.mrb[232].mxu1 %v10951_v26  ;;  %v11016_v38 = vcombine.low %v8150_v61, %v8160_v53  ;;  %v15394_v55 = vadd.f32 %v12005_v2, %v9387_v60  ;;  %v7431_v2 = vld [vmem:[#allocation2 + $0xa4] sm:$0x1]  ;;  %v6917_v60 = vld [vmem:[#allocation2 + $0x9c] sm:$0xf] }
 0x3ec   : > { %v7203_v59 = vshll.u32 %v6915_v39, 16  ;;  %v7207_v37 = vshrl.u32 %v6915_v39, 16  ;;  %9794 = vmatprep.mubr.bf16.mxu1 %v10984_v25  ;;  %v15396_v63 = vadd.f32 %v12008_v19, %v9390_v1  ;;  %v7213_v49 = vshll.u32 %v6916_v3, 16 }
 0x3ed   : > { %16330 = vst [vmem:[#allocation15_spill] sm:$0xff] %v15394_v55  ;;  %v7196_v32 = vrot.slane %v7194_v50, 4  ;;  %v7199_v11 = vrot.slane %v7197_v44, 5  ;;  %9955 = vmatprep.mubr.bf16.mxu0 %v11016_v38  ;;  %v8162_v4 = vshrl.u32 %v7861_v18, 16  ;;  %v8165_v33 = vshll.u32 %v7861_v18, 16 }
 0x3ee   : > { %16331 = vst [vmem:[#allocation46_spill] sm:$0xff] %v15396_v63  ;;  %v7205_v45 = vrot.slane %v7203_v59, 5  ;;  %v7209_v56 = vrot.slane %v7207_v37, 4  ;;  %9956 = vmatmul.mubr.bf16.gmra.mrb[12].mxu0 %v12748_v35  ;;  %v8171_v46 = vshll.u32 %v7862_v54, 16  ;;  %v8175_v34 = vshrl.u32 %v7862_v54, 16 }
 0x3ef   : > { %v7200_v6 = vor.u32 %v7199_v11, %v7196_v32  ;;  %v8164_v52 = vrot.slane %v8162_v4, 4  ;;  %v8167_v20 = vrot.slane %v8165_v33, 5  ;;  %v8181_v22 = vshll.u32 %v7863_v12, 16  ;;  %v7866_v4 = vld [vmem:[#allocation2 + $0xbc] sm:$0x1] }
 0x3f0   : > { %v7210_v5 = vor.u32 %v7209_v56, %v7205_v45  ;;  %v7215_v41 = vrot.slane %v7213_v49, 5  ;;  %v8173_v51 = vrot.slane %v8171_v46, 5  ;;  %v8177_v28 = vrot.slane %v8175_v34, 4  ;;  %v15398_v19 = vpop.f32.mrb[140].mxu1  ;;  %v6919_v49 = vld [vmem:[#allocation2 + $0xa4] sm:$0x1] }
 0x3f1   : > { %v7201_v10 = vrot.slane %v7200_v6, 4  ;;  %v8168_v48 = vor.u32 %v8167_v20, %v8164_v52  ;;  %v10969_v58 = vrot.slane %v7429_v36, 9  ;;  %v7575_v27 = vrot.slane %v7430_v57, 5  ;;  %v15406_v3 = vpop.f32.mrb[141].mxu1  ;;  %v7865_v56 = vld [vmem:[#allocation2 + $0xb8] sm:$0xf] }
 0x3f2   : > { %v7211_v31 = vrot.slane %v7210_v5, 4  ;;  %v8178_v26 = vor.u32 %v8177_v28, %v8173_v51  ;;  %v8183_v61 = vrot.slane %v8181_v22, 5  ;;  %v15404_v25 = vadd.f32 %v15327_v62, %v15323_v7  ;;  %v15410_v18 = vpop.f32.mrb[142].mxu1  ;;  %v6918_v62 = vld [vmem:[#allocation2 + $0xa0] sm:$0xf]  ;;  %v12749_v36 = vld [vmem:[#allocation2 + $0xa8] sm:$0xff]  }
 0x3f3   : > { %v7206_v39 = vsel %vm13190_vm13, %v7201_v10, %v7205_v45  ;;  %v8169_v1 = vrot.slane %v8168_v48, 4  ;;  %v7577_v50 = vrot.slane %v7575_v27, 4  ;;  %v7578_v44 = vrot.slane %v7431_v2, 5  ;;  %v15420_v54 = vpop.f32.mrb[143].mxu1 }
 0x3f4   : > { %v7216_v53 = vsel %vm13190_vm13, %v7211_v31, %v7215_v41  ;;  %v8179_v59 = vrot.slane %v8178_v26, 4  ;;  %v15414_v37 = vadd.f32 %v15329_v15, %v15325_v40  ;;  %v15418_v7 = vadd.f32 %v15337_v43, %v15333_v14  ;;  %v7864_v15 = vld [vmem:[#allocation2 + $0xb4] sm:$0xf] }
 0x3f5   : > { %v10952_v38 = vcombine.low %v7206_v39, %v7216_v53  ;;  %v7576_v35 = vsel %vm13205_vm14, %v10969_v58, %v7575_v27  ;;  %v7579_v32 = vsel %vm13205_vm14, %v7577_v50, %v7578_v44  ;;  %v15428_v11 = vadd.f32 %v15339_v29, %v15335_v9  ;;  %v15434_v33 = vpop.f32.mrb[172].mxu0  ;;  %v7433_v29 = vld [vmem:[#allocation2 + $0xac] sm:$0xf]  ;;  %v7432_v27 = vld [vmem:[#allocation2 + $0xa8] sm:$0xe] }
 0x3f6   : > { %v7218_v40 = vshrl.u32 %v6917_v60, 16  ;;  %v8174_v14 = vsel %vm13190_vm13, %v8169_v1, %v8173_v51  ;;  %v8184_v43 = vsel %vm13190_vm13, %v8179_v59, %v8183_v61  ;;  %v10985_v12 = vcombine.low %v7576_v35, %v7579_v32  ;;  %v15436_v34 = vpop.f32.mrb[173].mxu0  ;;  %v7434_v53 = vld [vmem:[#allocation2 + $0xb0] sm:$0x1] }
 0x3f7   : > { %9795 = vmatmul.mubr.bf16.gmra.mrb[236].mxu1 %v10952_v38  ;;  %v7221_v45 = vshll.u32 %v6917_v60, 16  ;;  %v11017_v6 = vcombine.low %v8174_v14, %v8184_v43  ;;  %v7227_v9 = vshll.u32 %v6918_v62, 16  ;;  %v7231_v5 = vshrl.u32 %v6918_v62, 16  ;;  %v15438_v22 = vpop.f32.mrb[174].mxu0 }
 0x3f8   : > { %v7220_v46 = vrot.slane %v7218_v40, 4  ;;  %9802 = vmatprep.mubr.bf16.mxu1 %v10985_v12  ;;  %v7237_v52 = vshll.u32 %v6919_v49, 16  ;;  %v8186_v20 = vshrl.u32 %v7864_v15, 16  ;;  %v8189_v41 = vshll.u32 %v7864_v15, 16  ;;  %v15440_v2 = vpop.f32.mrb[175].mxu0 }
 0x3f9   : > { %v7223_v57 = vrot.slane %v7221_v45, 5  ;;  %9963 = vmatprep.mubr.bf16.mxu0 %v11017_v6  ;;  %v7229_v10 = vrot.slane %v7227_v9, 5  ;;  %v8195_v51 = vshll.u32 %v7865_v56, 16  ;;  %v8199_v28 = vshrl.u32 %v7865_v56, 16 }
 0x3fa   : > { %9964 = vmatmul.mubr.bf16.gmra.mrb[16].mxu0 %v12749_v36  ;;  %v7233_v48 = vrot.slane %v7231_v5, 4  ;;  %v8188_v58 = vrot.slane %v8186_v20, 4  ;;  %v8191_v39 = vrot.slane %v8189_v41, 5  ;;  %v8205_v60 = vshll.u32 %v7866_v4, 16  ;;  %v6920_v4 = vld [vmem:[#allocation2 + $0xa8] sm:$0xf] }
 0x3fb   : > { %v7224_v31 = vor.u32 %v7223_v57, %v7220_v46  ;;  %v8197_v26 = vrot.slane %v8195_v51, 5  ;;  %v8201_v61 = vrot.slane %v8199_v28, 4  ;;  %v7239_v44 = vrot.slane %v7237_v52, 5  ;;  %v12751_v20 = vld [vmem:[#allocation2 + $0xb4] sm:$0xff]   ;;  %v7869_v41 = vld [vmem:[#allocation2 + $0xc8] sm:$0x1] }
 0x3fc   : > { %v7234_v50 = vor.u32 %v7233_v48, %v7229_v10  ;;  %v7582_v38 = vrot.slane %v7433_v29, 5  ;;  %v8192_v59 = vor.u32 %v8191_v39, %v8188_v58  ;;  %v8207_v35 = vrot.slane %v8205_v60, 5  ;;  %v7436_v39 = vld [vmem:[#allocation2 + $0xb8] sm:$0xf] }
 0x3fd   : > { %v7225_v1 = vrot.slane %v7224_v31, 4  ;;  %v8202_v62 = vor.u32 %v8201_v61, %v8197_v26  ;;  %v10970_v32 = vrot.slane %v7432_v27, 9  ;;  %v7585_v14 = vrot.slane %v7434_v53, 5  ;;  %v7435_v27 = vld [vmem:[#allocation2 + $0xb4] sm:$0xe] }
 0x3fe   : > { %v7235_v40 = vrot.slane %v7234_v50, 4  ;;  %v7584_v15 = vrot.slane %v7582_v38, 4  ;;  %v8193_v43 = vrot.slane %v8192_v59, 4  ;;  %v15446_v45 = vadd.f32 %v15370_v42, %v15359_v13  ;;  %v6921_v13 = vld [vmem:[#allocation2 + $0xac] sm:$0xf] }
 0x3ff   : > { %v7230_v49 = vsel %vm13190_vm13, %v7225_v1, %v7229_v10  ;;  %v8203_v12 = vrot.slane %v8202_v62, 4  ;;  %v15450_v56 = vadd.f32 %v15353_v23, %v15351_v21  ;;  %v15458_v9 = vadd.f32 %v15386_v0, %v15378_v24  ;;  %v6922_v42 = vld [vmem:[#allocation2 + $0xb0] sm:$0x1]  ;;  %v7867_v24 = vld [vmem:[#allocation2 + $0xc0] sm:$0xf] }
 0x400   : > { %v7240_v6 = vsel %vm13190_vm13, %v7235_v40, %v7239_v44  ;;  %v7586_v46 = vsel %vm13205_vm14, %v7584_v15, %v7585_v14  ;;  %v15462_v29 = vadd.f32 %v15361_v47, %v15355_v8  ;;  %v15464_v36 = vpop.f32.mrb[144].mxu1  ;;  %v8198_v23 = vsel %vm13190_vm13, %v8193_v43, %v8197_v26  ;;  %v7868_v0 = vld [vmem:[#allocation2 + $0xc4] sm:$0xf] }
 0x401   : > { %v10953_v21 = vcombine.low %v7230_v49, %v7240_v6  ;;  %v8208_v57 = vsel %vm13190_vm13, %v8203_v12, %v8207_v35  ;;  %v7583_v5 = vsel %vm13205_vm14, %v10970_v32, %v7582_v38  ;;  %v15472_v52 = vpop.f32.mrb[145].mxu1  ;;  %v7242_v10 = vshrl.u32 %v6920_v4, 16  ;;  %v7437_v35 = vld [vmem:[#allocation2 + $0xbc] sm:$0x1] }
 0x402   : > { %v11018_v8 = vcombine.low %v8198_v23, %v8208_v57  ;;  %v10986_v47 = vcombine.low %v7583_v5, %v7586_v46  ;;  %v15474_v51 = vpop.f32.mrb[146].mxu1  ;;  %v7245_v28 = vshll.u32 %v6920_v4, 16  ;;  %v7251_v31 = vshll.u32 %v6921_v13, 16 }
 0x403   : > { %9803 = vmatmul.mubr.bf16.gmra.mrb[240].mxu1 %v10953_v21  ;;  %v7255_v48 = vshrl.u32 %v6921_v13, 16  ;;  %v7261_v58 = vshll.u32 %v6922_v42, 16  ;;  %v15476_v26 = vpop.f32.mrb[176].mxu0  ;;  %v15478_v61 = vpop.f32.mrb[147].mxu1  ;;  %v7244_v60 = vrot.slane %v7242_v10, 4  ;;  %v8210_v53 = vshrl.u32 %v7867_v24, 16 }
 0x404   : > { %9971 = vmatprep.mubr.bf16.mxu0 %v11018_v8  ;;  %9810 = vmatprep.mubr.bf16.mxu1 %v10986_v47  ;;  %v8213_v1 = vshll.u32 %v7867_v24, 16  ;;  %v8219_v50 = vshll.u32 %v7868_v0, 16  ;;  %v15480_v44 = vpop.f32.mrb[177].mxu0  ;;  %v7247_v38 = vrot.slane %v7245_v28, 5  ;;  %v7253_v59 = vrot.slane %v7251_v31, 5 }
 0x405   : > { %9972 = vmatmul.mubr.bf16.gmra.mrb[20].mxu0 %v12751_v20  ;;  %v7257_v62 = vrot.slane %v7255_v48, 4  ;;  %v15482_v32 = vpop.f32.mrb[178].mxu0  ;;  %v8212_v49 = vrot.slane %v8210_v53, 4  ;;  %v8223_v14 = vshrl.u32 %v7868_v0, 16  ;;  %v7263_v6 = vrot.slane %v7261_v58, 5 }
 0x406   : > { %v8215_v40 = vrot.slane %v8213_v1, 5  ;;  %v8221_v15 = vrot.slane %v8219_v50, 5  ;;  %v15484_v43 = vpop.f32.mrb[179].mxu0  ;;  %v7248_v12 = vor.u32 %v7247_v38, %v7244_v60  ;;  %v8229_v46 = vshll.u32 %v7869_v41, 16  ;;  %v6923_v28 = vld [vmem:[#allocation2 + $0xb4] sm:$0xf] }
 0x407   : > { %v7258_v4 = vor.u32 %v7257_v62, %v7253_v59  ;;  %v8225_v42 = vrot.slane %v8223_v14, 4  ;;  %v10971_v21 = vrot.slane %v7435_v27, 9  ;;  %v7589_v23 = vrot.slane %v7436_v39, 5  ;;  %v7438_v50 = vld [vmem:[#allocation2 + $0xc0] sm:$0xe] }
 0x408   : > { %v8216_v13 = vor.u32 %v8215_v40, %v8212_v49  ;;  %v7249_v57 = vrot.slane %v7248_v12, 4  ;;  %v7592_v24 = vrot.slane %v7437_v35, 5  ;;  %v15488_v8 = vadd.f32 %v15436_v34, %v15434_v33  ;;  %v6924_v33 = vld [vmem:[#allocation2 + $0xb8] sm:$0xf]  ;;  %v7439_v40 = vld [vmem:[#allocation2 + $0xc4] sm:$0xf] }
 0x409   : > { %v7259_v5 = vrot.slane %v7258_v4, 4  ;;  %v8226_v20 = vor.u32 %v8225_v42, %v8221_v15  ;;  %v8231_v0 = vrot.slane %v8229_v46, 5  ;;  %v7591_v10 = vrot.slane %v7589_v23, 4 }
 0x40a   : > { %v8217_v47 = vrot.slane %v8216_v13, 4  ;;  %v7254_v31 = vsel %vm13190_vm13, %v7249_v57, %v7253_v59  ;;  %v15496_v48 = vadd.f32 %v15406_v3, %v15398_v19  ;;  %v15500_v58 = vadd.f32 %v15440_v2, %v15438_v22  ;;  %v6925_v22 = vld [vmem:[#allocation2 + $0xbc] sm:$0x1] }
 0x40b   : > { %v7264_v41 = vsel %vm13190_vm13, %v7259_v5, %v7263_v6  ;;  %v8227_v27 = vrot.slane %v8226_v20, 4  ;;  %v7590_v39 = vsel %vm13205_vm14, %v10971_v21, %v7589_v23  ;;  %v7593_v60 = vsel %vm13205_vm14, %v7591_v10, %v7592_v24  ;;  %v12752_v6 = vld [vmem:[#allocation2 + $0xc0] sm:$0xff]  }
 0x40c   : > { %v10954_v34 = vcombine.low %v7254_v31, %v7264_v41  ;;  %v8222_v1 = vsel %vm13190_vm13, %v8217_v47, %v8221_v15  ;;  %v10987_v19 = vcombine.low %v7590_v39, %v7593_v60  ;;  %v15512_v3 = vadd.f32 %v15420_v54, %v15410_v18  ;;  %v7440_v18 = vld [vmem:[#allocation2 + $0xc8] sm:$0x1]  ;;  %v6926_v54 = vld [vmem:[#allocation2 + $0xc0] sm:$0xf]  ;;  %v6927_v31 = vld [vmem:[#allocation2 + $0xc4] sm:$0xf] }
 0x40d   : > { %v15506_v53 = vpop.f32.mrb[180].mxu0  ;;  %v7266_v2 = vshrl.u32 %v6923_v28, 16  ;;  %v8232_v59 = vsel %vm13190_vm13, %v8227_v27, %v8231_v0  ;;  %v7269_v62 = vshll.u32 %v6923_v28, 16  ;;  %v7275_v35 = vshll.u32 %v6924_v33, 16  ;;  %v6928_v41 = vld [vmem:[#allocation2 + $0xc8] sm:$0x1] }
 0x40e   : > { %v15514_v38 = vpop.f32.mrb[181].mxu0  ;;  %9811 = vmatmul.mubr.bf16.gmra.mrb[244].mxu1 %v10954_v34  ;;  %v7279_v49 = vshrl.u32 %v6924_v33, 16  ;;  %v11019_v15 = vcombine.low %v8222_v1, %v8232_v59  ;;  %v7285_v21 = vshll.u32 %v6925_v22, 16  ;;  %v10972_v57 = vrot.slane %v7438_v50, 9  ;;  %v7870_v39 = vld [vmem:[#allocation2 + $0xcc] sm:$0xf] }
 0x40f   : > { %v15518_v14 = vpop.f32.mrb[182].mxu0  ;;  %9818 = vmatprep.mubr.bf16.mxu1 %v10987_v19  ;;  %v7268_v12 = vrot.slane %v7266_v2, 4  ;;  %v7271_v46 = vrot.slane %v7269_v62, 5  ;;  %v7277_v13 = vrot.slane %v7275_v35, 5  ;;  %v7596_v5 = vrot.slane %v7439_v40, 5 }
 0x410   : > { %v15520_v4 = vpop.f32.mrb[183].mxu0  ;;  %v7281_v42 = vrot.slane %v7279_v49, 4  ;;  %v15522_v23 = vpop.f32.mrb[148].mxu1  ;;  %9979 = vmatprep.mubr.bf16.mxu0 %v11019_v15  ;;  %v15526_v24 = vadd.f32 %v15480_v44, %v15476_v26  ;;  %v15532_v10 = vadd.f32 %v15472_v52, %v15464_v36  ;;  %v15536_v28 = vadd.f32 %v15484_v43, %v15482_v32  ;;  %v7872_v40 = vld [vmem:[#allocation2 + $0xd4] sm:$0x1] }
 0x411   : > { %v15528_v47 = vpop.f32.mrb[149].mxu1  ;;  %9980 = vmatmul.mubr.bf16.gmra.mrb[24].mxu0 %v12752_v6  ;;  %v7272_v20 = vor.u32 %v7271_v46, %v7268_v12  ;;  %v7598_v34 = vrot.slane %v7596_v5, 4  ;;  %v7599_v26 = vrot.slane %v7440_v18, 5  ;;  %v15542_v44 = vadd.f32 %v15478_v61, %v15474_v51  ;;  %v7871_v51 = vld [vmem:[#allocation2 + $0xd0] sm:$0xf] }
 0x412   : > { %v7282_v0 = vor.u32 %v7281_v42, %v7277_v13  ;;  %v15538_v33 = vpop.f32.mrb[150].mxu1  ;;  %v7290_v27 = vshrl.u32 %v6926_v54, 16  ;;  %v7287_v1 = vrot.slane %v7285_v21, 5  ;;  %v7293_v19 = vshll.u32 %v6926_v54, 16 }
 0x413   : > { %v15544_v60 = vpop.f32.mrb[151].mxu1  ;;  %v7273_v36 = vrot.slane %v7272_v20, 4  ;;  %v7597_v43 = vsel %vm13205_vm14, %v10972_v57, %v7596_v5  ;;  %v7600_v22 = vsel %vm13205_vm14, %v7598_v34, %v7599_v26  ;;  %v7299_v50 = vshll.u32 %v6927_v31, 16  ;;  %v8337_v20 = vld [vmem:[#allocation2 + $0x18] sm:$0xe] }
 0x414   : > { %v7283_v52 = vrot.slane %v7282_v0, 4  ;;  %v7292_v2 = vrot.slane %v7290_v27, 4  ;;  %v10988_v35 = vcombine.low %v7597_v43, %v7600_v22  ;;  %v7295_v49 = vrot.slane %v7293_v19, 5  ;;  %v8338_v27 = vld [vmem:[#allocation2 + $0x1c] sm:$0xf] }
 0x415   : > { %v15546_v32 = vpop.f32.mrb[184].mxu0  ;;  %v7278_v59 = vsel %vm13190_vm13, %v7273_v36, %v7277_v13  ;;  %v7301_v18 = vrot.slane %v7299_v50, 5  ;;  %v7303_v54 = vshrl.u32 %v6927_v31, 16  ;;  %v7309_v6 = vshll.u32 %v6928_v41, 16 }
 0x416   : > { %v15552_v61 = vpop.f32.mrb[185].mxu0  ;;  %v7288_v62 = vsel %vm13190_vm13, %v7283_v52, %v7287_v1  ;;  %v7296_v42 = vor.u32 %v7295_v49, %v7292_v2  ;;  %v8234_v21 = vshrl.u32 %v7870_v39, 16  ;;  %v8237_v57 = vshll.u32 %v7870_v39, 16  ;;  %v8339_v2 = vld [vmem:[#allocation2 + $0x20] sm:$0x1] }
 0x417   : > { %v15558_v15 = vpop.f32.mrb[186].mxu0  ;;  %v10955_v12 = vcombine.low %v7278_v59, %v7288_v62  ;;  %v8243_v5 = vshll.u32 %v7871_v51, 16  ;;  %v7305_v0 = vrot.slane %v7303_v54, 4  ;;  %v8247_v34 = vshrl.u32 %v7871_v51, 16 }
 0x418   : > { %v15560_v46 = vpop.f32.mrb[187].mxu0  ;;  %v15562_v13 = vpop.f32.mrb[152].mxu1  ;;  %v8253_v26 = vshll.u32 %v7872_v40, 16  ;;  %v8236_v52 = vrot.slane %v8234_v21, 4  ;;  %v8239_v1 = vrot.slane %v8237_v57, 5  ;;  %v7297_v19 = vrot.slane %v7296_v42, 4 }
 0x419   : > { %9819 = vmatmul.mubr.bf16.gmra.mrb[248].mxu1 %v10955_v12  ;;  %v11928_v36 = vpop.f32.mrb[153].mxu1  ;;  %v8245_v31 = vrot.slane %v8243_v5, 5  ;;  %v7306_v43 = vor.u32 %v7305_v0, %v7301_v18  ;;  %v7311_v22 = vrot.slane %v7309_v6, 5  ;;  %v8249_v39 = vrot.slane %v8247_v34, 4  ;;  %v8341_v0 = vld [vmem:[#allocation2 + $0x28] sm:$0xf] }
 0x41a   : > { %9826 = vmatprep.mubr.bf16.mxu1 %v10988_v35  ;;  %v15564_v41 = vpop.f32.mrb[154].mxu1  ;;  %v8240_v59 = vor.u32 %v8239_v1, %v8236_v52  ;;  %v8255_v62 = vrot.slane %v8253_v26, 5  ;;  %v11021_v49 = vrot.slane %v8337_v20, 9  ;;  %v8435_v12 = vrot.slane %v8338_v27, 5  ;;  %v8340_v1 = vld [vmem:[#allocation2 + $0x24] sm:$0xe] }
 0x41b   : > { %v11931_v50 = vpop.f32.mrb[155].mxu1  ;;  %v7307_v40 = vrot.slane %v7306_v43, 4  ;;  %v8250_v54 = vor.u32 %v8249_v39, %v8245_v31  ;;  %v15570_v35 = vadd.f32 %v15514_v38, %v15506_v53  ;;  %v15574_v42 = vadd.f32 %v15528_v47, %v15522_v23  ;;  %v8344_v47 = vld [vmem:[#allocation2 + $0x34] sm:$0xf] }
 0x41c   : > { %v8241_v21 = vrot.slane %v8240_v59, 4  ;;  %v8437_v57 = vrot.slane %v8435_v12, 4  ;;  %v8438_v5 = vrot.slane %v8339_v2, 5  ;;  %v15578_v20 = vadd.f32 %v15520_v4, %v15518_v14  ;;  %v8345_v2 = vld [vmem:[#allocation2 + $0x38] sm:$0x1] }
 0x41d   : > { %v15566_v51 = vpop.f32.mrb[188].mxu0  ;;  %v7302_v26 = vsel %vm13190_vm13, %v7297_v19, %v7301_v18  ;;  %v7312_v53 = vsel %vm13190_vm13, %v7307_v40, %v7311_v22  ;;  %v8251_v38 = vrot.slane %v8250_v54, 4  ;;  %v15586_v23 = vadd.f32 %v15544_v60, %v15538_v33  ;;  %v8342_v19 = vld [vmem:[#allocation2 + $0x2c] sm:$0x1] }
 0x41e   : > { %v12046_v6 = vpop.f32.mrb[189].mxu0  ;;  %v10956_v52 = vcombine.low %v7302_v26, %v7312_v53  ;;  %v8246_v14 = vsel %vm13190_vm13, %v8241_v21, %v8245_v31  ;;  %v8436_v4 = vsel %vm13205_vm14, %v11021_v49, %v8435_v12  ;;  %v8439_v18 = vsel %vm13205_vm14, %v8437_v57, %v8438_v5  ;;  %v12754_v60 = vld [vmem:[#allocation2 + $0xcc] sm:$0xff]   ;;  %v15596_v21 = vld [vmem:[#allocation2 + $0x40] sm:$0xf] }
 0x41f   : > { %v12048_v34 = vpop.f32.mrb[190].mxu0  ;;  %v8256_v22 = vsel %vm13190_vm13, %v8251_v38, %v8255_v62  ;;  %v11037_v33 = vcombine.low %v8436_v4, %v8439_v18  ;;  %v8442_v39 = vrot.slane %v8341_v0, 5  ;;  %v8343_v31 = vld [vmem:[#allocation2 + $0x30] sm:$0xe]  ;;  %v8449_v54 = vrot.slane %v8344_v47, 5 }
 0x420   : > { %v12049_v27 = vpop.f32.mrb[191].mxu0  ;;  %v11933_v43 = vpop.f32.mrb[156].mxu1  ;;  %v11020_v40 = vcombine.low %v8246_v14, %v8256_v22  ;;  %v11022_v12 = vrot.slane %v8340_v1, 9  ;;  %v8445_v5 = vrot.slane %v8342_v19, 5  ;;  %v15600_v17 = vadd.f32 %v15552_v61, %v15546_v32  ;;  %v8350_v4 = vld [vmem:[#allocation2 + $0x4c] sm:$0xf] }
 0x421   : > { %v11934_v59 = vpop.f32.mrb[157].mxu1  ;;  %9827 = vmatmul.mubr.bf16.gmra.mrb[252].mxu1 %v10956_v52  ;;  %v8444_v57 = vrot.slane %v8442_v39, 4  ;;  %v8451_v0 = vrot.slane %v8449_v54, 4  ;;  %v8452_v26 = vrot.slane %v8345_v2, 5  ;;  %v15603_v53 = vadd.f32 %v11928_v36, %v15562_v13 }
 0x422   : > { %v11936_v49 = vpop.f32.mrb[158].mxu1  ;;  %12411 = vmatprep.mubr.bf16.mxu1 %v11037_v33  ;;  %9987 = vmatprep.mubr.bf16.mxu0 %v11020_v40  ;;  %v15607_v38 = vadd.f32 %v15560_v46, %v15558_v15  ;;  %v11023_v14 = vrot.slane %v8343_v31, 9  ;;  %v15612_v32 = vadd.f32 %v11931_v50, %v15564_v41  ;;  %v8456_v61 = vrot.slane %v15596_v21, 5  ;;  %v8348_v33 = vld [vmem:[#allocation2 + $0x44] sm:$0x1] }
 0x423   : > { %v11937_v62 = vpop.f32.mrb[159].mxu1  ;;  %9988 = vmatmul.mubr.bf16.gmra.mrb[28].mxu0 %v12754_v60  ;;  %v8446_v52 = vsel %vm13205_vm14, %v8444_v57, %v8445_v5  ;;  %v8453_v13 = vsel %vm13205_vm14, %v8451_v0, %v8452_v26  ;;  %v8443_v15 = vsel %vm13205_vm14, %v11022_v12, %v8442_v39  ;;  %v8463_v41 = vrot.slane %v8350_v4, 5  ;;  %v8351_v40 = vld [vmem:[#allocation2 + $0x50] sm:$0x1]  ;;  %v15630_v39 = vld [vmem:[#allocation2 + $0x58] sm:$0xf] }
 0x424   : > { %v8450_v46 = vsel %vm13205_vm14, %v11023_v14, %v8449_v54  ;;  %v11038_v19 = vcombine.low %v8443_v15, %v8446_v52  ;;  %v15622_v50 = vadd.f32 %v12046_v6, %v15566_v51  ;;  %v8458_v2 = vrot.slane %v8456_v61, 4  ;;  %v8346_v12 = vld [vmem:[#allocation2 + $0x3c] sm:$0xe]  ;;  %v8349_v5 = vld [vmem:[#allocation2 + $0x48] sm:$0xe] }
 0x425   : > { %v12051_v47 = vpop.f32.mrb[192].mxu0  ;;  %v11039_v22 = vcombine.low %v8450_v46, %v8453_v13  ;;  %v15624_v31 = vadd.f32 %v11934_v59, %v11933_v43  ;;  %v15626_v21 = vadd.f32 %v12049_v27, %v12048_v34  ;;  %v15628_v57 = vadd.f32 %v11937_v62, %v11936_v49  ;;  %v15632_v6 = vld [vmem:[#allocation2 + $0x64] sm:$0xf] }
 0x426   : > { %v12052_v18 = vpop.f32.mrb[193].mxu0  ;;  %v8465_v0 = vrot.slane %v8463_v41, 4  ;;  %v8459_v51 = vrot.slane %v8348_v33, 5  ;;  %v8466_v14 = vrot.slane %v8351_v40, 5  ;;  %v8470_v43 = vrot.slane %v15630_v39, 5 }
 0x427   : > { %v12054_v36 = vpop.f32.mrb[194].mxu0  ;;  %v11024_v27 = vrot.slane %v8346_v12, 9  ;;  %v11025_v49 = vrot.slane %v8349_v5, 9  ;;  %v15637_v62 = vadd.f32 %v12052_v18, %v12051_v47  ;;  %v8477_v15 = vrot.slane %v15632_v6, 5  ;;  %v8354_v40 = vld [vmem:[#allocation2 + $0x5c] sm:$0x1] }
 0x428   : > { %v12055_v1 = vpop.f32.mrb[195].mxu0  ;;  %v11939_v60 = vpop.f32.mrb[160].mxu1  ;;  %v8460_v59 = vsel %vm13205_vm14, %v8458_v2, %v8459_v51  ;;  %v8467_v13 = vsel %vm13205_vm14, %v8465_v0, %v8466_v14  ;;  %v8352_v12 = vld [vmem:[#allocation2 + $0x54] sm:$0xe]  ;;  %v8472_v5 = vrot.slane %v8470_v43, 4  ;;  %v8473_v51 = vrot.slane %v8354_v40, 5 }
 0x429   : > { %v11940_v54 = vpop.f32.mrb[161].mxu1  ;;  %12412 = vmatmul.mubr.bf16.vlgmr.msra.gmra.mrb[0].mxu1 %v11038_v19  ;;  %16332 = vst [vmem:[#allocation19_spill] sm:$0xff] %v15637_v62  ;;  %v15644_v19 = vadd.f32 %v12055_v1, %v12054_v36  ;;  %v8457_v33 = vsel %vm13205_vm14, %v11024_v27, %v8456_v61  ;;  %v8464_v18 = vsel %vm13205_vm14, %v11025_v49, %v8463_v41  ;;  %v8357_v1 = vld [vmem:[#allocation2 + $0x68] sm:$0x1]  ;;  %v8355_v6 = vld [vmem:[#allocation2 + $0x60] sm:$0xe] }
 0x42a   : > { %v11942_v26 = vpop.f32.mrb[162].mxu1  ;;  %12415 = vmatprep.mubr.bf16.mxu1 %v11039_v22  ;;  %v15642_v46 = vadd.f32 %v11940_v54, %v11939_v60  ;;  %v11040_v47 = vcombine.low %v8457_v33, %v8460_v59  ;;  %v15654_v60 = vadd.f32 %v15414_v37, %v15368_v16  ;;  %v11041_v36 = vcombine.low %v8464_v18, %v8467_v13  ;;  %v15656_v54 = vld [vmem:[#allocation2 + $0x70] sm:$0xf]  ;;  %v15668_v59 = vld [vmem:[#allocation2 + $0x7c] sm:$0xf] }
 0x42b   : > { %v11943_v52 = vpop.f32.mrb[163].mxu1  ;;  %16333 = vst [vmem:[#allocation50_spill] sm:$0xff] %v15644_v19  ;;  %v8479_v41 = vrot.slane %v8477_v15, 4  ;;  %v15666_v37 = vadd.f32 %v15450_v56, %v15368_v16  ;;  %v11026_v27 = vrot.slane %v8352_v12, 9  ;;  %v8474_v33 = vsel %vm13205_vm14, %v8472_v5, %v8473_v51  ;;  %v15691_v12 = vld [vmem:[#allocation2 + $0x88] sm:$0xf] }
 0x42c   : > { %v15648_v39 = vadd.f32 %v11943_v52, %v11942_v26  ;;  %v15660_v26 = vadd.f32 %v15428_v11, %v15368_v16  ;;  %v8480_v40 = vrot.slane %v8357_v1, 5  ;;  %v15681_v56 = vadd.f32 %v15462_v29, %v15368_v16  ;;  %v15693_v5 = vld [vmem:[#allocation2 + $0x94] sm:$0xf] }
 0x42d   : > { %v12057_v34 = vpop.f32.mrb[196].mxu0  ;;  %v15685_v18 = vadd.f32 %v15496_v48, %v15368_v16  ;;  %v8471_v29 = vsel %vm13205_vm14, %v11026_v27, %v8470_v43  ;;  %v8491_v1 = vrot.slane %v15668_v59, 5  ;;  %v8363_v27 = vld [vmem:[#allocation2 + $0x80] sm:$0x1]  ;;  %v8505_v59 = vrot.slane %v15693_v5, 5 }
 0x42e   : > { %v12058_v4 = vpop.f32.mrb[197].mxu0  ;;  %v8481_v48 = vsel %vm13205_vm14, %v8479_v41, %v8480_v40  ;;  %v8498_v41 = vrot.slane %v15691_v12, 5  ;;  %v15730_v5 = vadd.f32 %v15612_v32, %v15368_v16  ;;  %v8369_v32 = vld [vmem:[#allocation2 + $0x98] sm:$0x1] }
 0x42f   : > { %v12060_v22 = vpop.f32.mrb[198].mxu0  ;;  %v15662_v52 = vadd.f32 %v12058_v4, %v12057_v34  ;;  %v8484_v34 = vrot.slane %v15656_v54, 5  ;;  %v15706_v54 = vadd.f32 %v15542_v44, %v15368_v16  ;;  %v15718_v44 = vadd.f32 %v15574_v42, %v15368_v16  ;;  %v8364_v42 = vld [vmem:[#allocation2 + $0x84] sm:$0xe] }
 0x430   : > { %v12061_v2 = vpop.f32.mrb[199].mxu0  ;;  %v11945_v0 = vpop.f32.mrb[164].mxu1 }
 0x431   : > { %v11946_v61 = vpop.f32.mrb[165].mxu1  ;;  %12416 = vmatmul.mubr.bf16.gmra.mrb[4].mxu1 %v11040_v47  ;;  %16334 = vst [vmem:[#allocation47_spill] sm:$0xff] %v15662_v52  ;;  %v15672_v13 = vadd.f32 %v12061_v2, %v12060_v22  ;;  %v15689_v22 = vadd.f32 %v15512_v3, %v15368_v16  ;;  %v11027_v2 = vrot.slane %v8355_v6, 9  ;;  %v8358_v6 = vld [vmem:[#allocation2 + $0x6c] sm:$0xe]  ;;  %v8486_v43 = vrot.slane %v8484_v34, 4 }
 0x432   : > { %v11948_v14 = vpop.f32.mrb[166].mxu1  ;;  %12419 = vmatprep.mubr.bf16.mxu1 %v11041_v36  ;;  %v15670_v49 = vadd.f32 %v11946_v61, %v11945_v0  ;;  %v15697_v36 = vadd.f32 %v15532_v10, %v15368_v16  ;;  %v11042_v61 = vcombine.low %v8471_v29, %v8474_v33  ;;  %v8360_v10 = vld [vmem:[#allocation2 + $0x74] sm:$0x1]  ;;  %v15726_v33 = vadd.f32 %v15603_v53, %v15368_v16  ;;  %v15756_v52 = vld [vmem:[#allocation2 + $0xac] sm:$0xf] }
 0x433   : > { %16335 = vst [vmem:[#allocation48_spill] sm:$0xff] %v15672_v13  ;;  %v11949_v11 = vpop.f32.mrb[167].mxu1  ;;  %v8478_v51 = vsel %vm13205_vm14, %v11027_v2, %v8477_v15  ;;  %v15722_v15 = vadd.f32 %v15586_v23, %v15368_v16  ;;  %v8361_v2 = vld [vmem:[#allocation2 + $0x78] sm:$0xe]  ;;  %v8493_v29 = vrot.slane %v8491_v1, 4  ;;  %v15734_v23 = vadd.f32 %v15624_v31, %v15368_v16 }
 0x434   : > { %v15677_v4 = vadd.f32 %v11949_v11, %v11948_v14  ;;  %v15738_v53 = vadd.f32 %v15628_v57, %v15368_v16  ;;  %v15744_v31 = vadd.f32 %v15642_v46, %v15368_v16  ;;  %v15748_v57 = vadd.f32 %v15648_v39, %v15368_v16 }
 0x435   : > { %v12063_v47 = vpop.f32.mrb[200].mxu0 }
 0x436   : > { %v12064_v0 = vpop.f32.mrb[201].mxu0  ;;  %16338 = vst [vmem:[#allocation53_spill] sm:$0xff] %v15748_v57  ;;  %v11030_v57 = vrot.slane %v8364_v42, 9 }
 0x437   : > { %v12066_v3 = vpop.f32.mrb[202].mxu0  ;;  %v15710_v14 = vadd.f32 %v12064_v0, %v12063_v47  ;;  %v11043_v47 = vcombine.low %v8478_v51, %v8481_v48  ;;  %v8487_v0 = vrot.slane %v8360_v10, 5  ;;  %v11028_v48 = vrot.slane %v8358_v6, 9 }
 0x438   : > { %v12067_v11 = vpop.f32.mrb[203].mxu0  ;;  %v11951_v40 = vpop.f32.mrb[168].mxu1  ;;  %v8494_v51 = vrot.slane %v8363_v27, 5  ;;  %v8500_v10 = vrot.slane %v8498_v41, 4  ;;  %v11029_v27 = vrot.slane %v8361_v2, 9 }
 0x439   : > { %16336 = vst [vmem:[#allocation51_spill] sm:$0xff] %v15710_v14  ;;  %v15714_v63 = vadd.f32 %v12067_v11, %v12066_v3  ;;  %v11952_v12 = vpop.f32.mrb[169].mxu1  ;;  %12420 = vmatmul.mubr.bf16.gmra.mrb[8].mxu1 %v11042_v61  ;;  %v8366_v3 = vld [vmem:[#allocation2 + $0x8c] sm:$0x1]  ;;  %v8488_v61 = vsel %vm13205_vm14, %v8486_v43, %v8487_v0  ;;  %v8367_v14 = vld [vmem:[#allocation2 + $0x90] sm:$0xe]  ;;  %v8485_v6 = vsel %vm13205_vm14, %v11028_v48, %v8484_v34 }
 0x43a   : > { %v11953_v11 = vadd.f32 %v11952_v12, %v11951_v40  ;;  %v11954_v55 = vpop.f32.mrb[170].mxu1  ;;  %12423 = vmatprep.mubr.bf16.mxu1 %v11043_v47  ;;  %v8507_v40 = vrot.slane %v8505_v59, 4  ;;  %v15752_v47 = vld [vmem:[#allocation2 + $0xa0] sm:$0xf]  ;;  %v8495_v0 = vsel %vm13205_vm14, %v8493_v29, %v8494_v51  ;;  %v11044_v62 = vcombine.low %v8485_v6, %v8488_v61 }
 0x43b   : > { %16337 = vst [vmem:[#allocation52_spill] sm:$0xff] %v15714_v63  ;;  %v11955_v63 = vpop.f32.mrb[171].mxu1  ;;  %v8492_v39 = vsel %vm13205_vm14, %v11029_v27, %v8491_v1  ;;  %v11031_v34 = vrot.slane %v8367_v14, 9  ;;  %v9459_v61 = vadd.f32 %v15670_v49, %v15368_v16  ;;  %v8519_v1 = vrot.slane %v15756_v52, 5 }
 0x43c   : > { %v11956_v12 = vadd.f32 %v11955_v63, %v11954_v55  ;;  %v8501_v55 = vrot.slane %v8366_v3, 5  ;;  %v8508_v63 = vrot.slane %v8369_v32, 5  ;;  %v8512_v3 = vrot.slane %v15752_v47, 5  ;;  %v8376_v47 = vld [vmem:[#allocation2 + $0xb4] sm:$0xe] }
 0x43d   : > { %v12069_v13 = vpop.f32.mrb[204].mxu0  ;;  %v15774_v14 = vadd.f32 %v15404_v25, %v15654_v60  ;;  %v8506_v16 = vsel %vm13205_vm14, %v11031_v34, %v8505_v59  ;;  %v15789_v27 = vadd.f32 %v15418_v7, %v15660_v26  ;;  %v8521_v7 = vrot.slane %v8519_v1, 4  ;;  %v8372_v34 = vld [vmem:[#allocation2 + $0xa4] sm:$0x1] }
 0x43e   : > { %v12070_v43 = vpop.f32.mrb[205].mxu0  ;;  %v8502_v48 = vsel %vm13205_vm14, %v8500_v10, %v8501_v55  ;;  %v8509_v29 = vsel %vm13205_vm14, %v8507_v40, %v8508_v63  ;;  %v15779_v10 = vld [vmem:[%s16158_s4] ss:$0 sm:$0xff]  ;;  %v8499_v40 = vsel %vm13205_vm14, %v11030_v57, %v8498_v41  ;;  %v8514_v41 = vrot.slane %v8512_v3, 4 }
 0x43f   : > { %v15758_v46 = vadd.f32 %v12070_v43, %v12069_v13  ;;  %v12072_v19 = vpop.f32.mrb[206].mxu0  ;;  %v11045_v13 = vcombine.low %v8492_v39, %v8495_v0  ;;  %v11046_v25 = vcombine.low %v8499_v40, %v8502_v48  ;;  %v11047_v60 = vcombine.low %v8506_v16, %v8509_v29  ;;  %v16343_v29 = vld [vmem:[#allocation48_spill] sm:$0xff] }
 0x440   : > { %v12073_v2 = vpop.f32.mrb[207].mxu0  ;;  %v11957_v51 = vpop.f32.mrb[172].mxu1  ;;  %v15793_v43 = vadd.f32 %v15446_v45, %v15666_v37  ;;  %v15800_v0 = vadd.f32 %v15458_v9, %v15681_v56  ;;  %v9470_v55 = vadd.f32 %v15779_v10, %v11956_v12  ;;  %v15807_v45 = vadd.f32 %v15488_v8, %v15685_v18 }
 0x441   : > { %v15767_v32 = vadd.f32 %v12073_v2, %v12072_v19  ;;  %v11958_v42 = vpop.f32.mrb[173].mxu1  ;;  %12424 = vmatmul.mubr.bf16.gmra.mrb[12].mxu1 %v11044_v62  ;;  %v9462_v19 = vadd.f32 %v15779_v10, %v15677_v4  ;;  %v9467_v4 = vadd.f32 %v15779_v10, %v11953_v11  ;;  %v15811_v37 = vadd.f32 %v15500_v58, %v15689_v22  ;;  %v16341_v2 = vld [vmem:[#allocation50_spill] sm:$0xff] }
 0x442   : > { %v11959_v49 = vadd.f32 %v11958_v42, %v11957_v51  ;;  %v11960_v6 = vpop.f32.mrb[174].mxu1  ;;  %12427 = vmatprep.mubr.bf16.mxu1 %v11045_v13  ;;  %v15819_v12 = vadd.f32 %v15526_v24, %v15697_v36  ;;  %v15823_v8 = vadd.f32 %v15536_v28, %v15706_v54  ;;  %v15827_v58 = vadd.f32 %v15570_v35, %v15718_v44  ;;  %v8375_v54 = vld [vmem:[#allocation2 + $0xb0] sm:$0x1]  ;;  %v16344_v13 = vld [vmem:[#allocation51_spill] sm:$0xff] }
 0x443   : > { %v11961_v62 = vpop.f32.mrb[175].mxu1  ;;  %v15831_v18 = vadd.f32 %v15578_v20, %v15722_v15  ;;  %v15835_v22 = vadd.f32 %v15600_v17, %v15726_v33  ;;  %v15841_v28 = vadd.f32 %v15607_v38, %v15730_v5  ;;  %v15845_v35 = vadd.f32 %v15622_v50, %v15734_v23  ;;  %v16339_v17 = vld [vmem:[#allocation19_spill] sm:$0xff]  ;;  %v16340_v33 = vld [vmem:[#allocation53_spill] sm:$0xff]  ;;  %v8370_v23 = vld [vmem:[#allocation2 + $0x9c] sm:$0xe] }
 0x444   : > { %v11962_v59 = vadd.f32 %v11961_v62, %v11960_v6  ;;  %v9475_v11 = vadd.f32 %v15779_v10, %v11959_v49  ;;  %v15849_v20 = vadd.f32 %v15626_v21, %v15738_v53  ;;  %v15853_v15 = vadd.f32 %v16339_v17, %v15744_v31  ;;  %v16342_v38 = vld [vmem:[#allocation47_spill] sm:$0xff]  ;;  %v15865_v21 = vld [vmem:[#allocation2 + $0xb8] sm:$0xf]  ;;  %v16345_v31 = vld [vmem:[#allocation52_spill] sm:$0xff] }
 0x445   : > { %v12075_v57 = vpop.f32.mrb[208].mxu0  ;;  %v15857_v48 = vadd.f32 %v16341_v2, %v16340_v33  ;;  %v15860_v5 = vadd.f32 %v16342_v38, %v9459_v61  ;;  %v15863_v50 = vadd.f32 %v16343_v29, %v9462_v19  ;;  %v15868_v42 = vadd.f32 %v16344_v13, %v9467_v4  ;;  %v8373_v49 = vld [vmem:[#allocation2 + $0xa8] sm:$0xe]  ;;  %v8380_v19 = vld [vmem:[#allocation2 + $0xc4] sm:$0xf] }
 0x446   : > { %v12076_v26 = vpop.f32.mrb[209].mxu0  ;;  %v9478_v63 = vadd.f32 %v15779_v10, %v11962_v59  ;;  %v15871_v40 = vadd.f32 %v16345_v31, %v9470_v55  ;;  %v15874_v16 = vadd.f32 %v15758_v46, %v9475_v11  ;;  %v8515_v61 = vrot.slane %v8372_v34, 5  ;;  %v8381_v38 = vld [vmem:[#allocation2 + $0xc8] sm:$0x1] }
 0x447   : > { %v15815_v9 = vadd.f32 %v12076_v26, %v12075_v57  ;;  %v12078_v56 = vpop.f32.mrb[210].mxu0  ;;  %v11032_v57 = vrot.slane %v8370_v23, 9  ;;  %v8526_v4 = vrot.slane %v15865_v21, 5  ;;  %v11033_v46 = vrot.slane %v8373_v49, 9  ;;  %v8379_v23 = vld [vmem:[#allocation2 + $0xc0] sm:$0xe] }
 0x448   : > { %v12079_v39 = vpop.f32.mrb[211].mxu0  ;;  %v11963_v24 = vpop.f32.mrb[176].mxu1  ;;  %v8516_v26 = vsel %vm13205_vm14, %v8514_v41, %v8515_v61  ;;  %v15880_v55 = vadd.f32 %v15767_v32, %v9478_v63  ;;  %v8533_v11 = vrot.slane %v8380_v19, 5  ;;  %v8378_v63 = vld [vmem:[#allocation2 + $0xbc] sm:$0x1]  ;;  %v8536_v61 = vrot.slane %v8381_v38, 5 }
 0x449   : > { %v15837_v36 = vadd.f32 %v12079_v39, %v12078_v56  ;;  %v11964_v44 = vpop.f32.mrb[177].mxu1  ;;  %12428 = vmatmul.mubr.bf16.gmra.mrb[16].mxu1 %v11046_v25  ;;  %v8522_v25 = vrot.slane %v8375_v54, 5  ;;  %v8520_v32 = vsel %vm13205_vm14, %v11033_v46, %v8519_v1  ;;  %v8528_v2 = vrot.slane %v8526_v4, 4  ;;  %v8382_v49 = vld [vmem:[#allocation2 + $0xcc] sm:$0xe] }
 0x44a   : > { %v11965_v53 = vadd.f32 %v11964_v44, %v11963_v24  ;;  %v11966_v51 = vpop.f32.mrb[178].mxu1  ;;  %12431 = vmatprep.mubr.bf16.mxu1 %v11047_v60  ;;  %v8513_v24 = vsel %vm13205_vm14, %v11032_v57, %v8512_v3  ;;  %v8383_v44 = vld [vmem:[#allocation2 + $0xd0] sm:$0xf]  ;;  %v8535_v3 = vrot.slane %v8533_v11, 4  ;;  %v8529_v13 = vrot.slane %v8378_v63, 5 }
 0x44b   : > { %v11967_v6 = vpop.f32.mrb[179].mxu1  ;;  %v8523_v60 = vsel %vm13205_vm14, %v8521_v7, %v8522_v25  ;;  %v11048_v54 = vcombine.low %v8513_v24, %v8516_v26  ;;  %v8540_v1 = vrot.slane %v8383_v44, 5  ;;  %v8384_v19 = vld [vmem:[#allocation2 + $0xd4] sm:$0x1]  ;;  %v11035_v26 = vrot.slane %v8379_v23, 9 }
 0x44c   : > { %v11968_v62 = vadd.f32 %v11967_v6, %v11966_v51  ;;  %v11049_v33 = vcombine.low %v8520_v32, %v8523_v60  ;;  %v9483_v21 = vadd.f32 %v15779_v10, %v11965_v53  ;;  %v8530_v57 = vsel %vm13205_vm14, %v8528_v2, %v8529_v13 }
 0x44d   : > { %v12081_v59 = vpop.f32.mrb[212].mxu0  ;;  %v8537_v53 = vsel %vm13205_vm14, %v8535_v3, %v8536_v61  ;;  %v8542_v32 = vrot.slane %v8540_v1, 4  ;;  %v8543_v63 = vrot.slane %v8384_v19, 5 }
 0x44e   : > { %v12082_v56 = vpop.f32.mrb[213].mxu0  ;;  %v9486_v46 = vadd.f32 %v15779_v10, %v11968_v62  ;;  %v15903_v24 = vadd.f32 %v15815_v9, %v9483_v21 }
 0x44f   : > { %v15884_v39 = vadd.f32 %v12082_v56, %v12081_v59  ;;  %v12084_v34 = vpop.f32.mrb[214].mxu0  ;;  %v11034_v59 = vrot.slane %v8376_v47, 9  ;;  %v8544_v3 = vsel %vm13205_vm14, %v8542_v32, %v8543_v63 }
 0x450   : > { %v12085_v41 = vpop.f32.mrb[215].mxu0  ;;  %v11969_v17 = vpop.f32.mrb[180].mxu1  ;;  %v15910_v9 = vadd.f32 %v15837_v36, %v9486_v46 }
 0x451   : > { %v15894_v7 = vadd.f32 %v12085_v41, %v12084_v34  ;;  %v11970_v29 = vpop.f32.mrb[181].mxu1  ;;  %12432 = vmatmul.mubr.bf16.gmra.mrb[20].mxu1 %v11048_v54  ;;  %v8527_v41 = vsel %vm13205_vm14, %v11034_v59, %v8526_v4  ;;  %v11036_v54 = vrot.slane %v8382_v49, 9 }
 0x452   : > { %v11971_v51 = vadd.f32 %v11970_v29, %v11969_v17  ;;  %v11972_v52 = vpop.f32.mrb[182].mxu1  ;;  %12435 = vmatprep.mubr.bf16.mxu1 %v11049_v33  ;;  %v11050_v17 = vcombine.low %v8527_v41, %v8530_v57  ;;  %v8534_v33 = vsel %vm13205_vm14, %v11035_v26, %v8533_v11 }
 0x453   : > { %v11973_v31 = vpop.f32.mrb[183].mxu1  ;;  %v11051_v29 = vcombine.low %v8534_v33, %v8537_v53  ;;  %v8541_v4 = vsel %vm13205_vm14, %v11036_v54, %v8540_v1 }
 0x454   : > { %v11974_v6 = vadd.f32 %v11973_v31, %v11972_v52  ;;  %v9491_v13 = vadd.f32 %v15779_v10, %v11971_v51  ;;  %v11052_v61 = vcombine.low %v8541_v4, %v8544_v3 }
 0x455   : > { %v12087_v25 = vpop.f32.mrb[216].mxu0 }
 0x456   : > { %v12088_v56 = vpop.f32.mrb[217].mxu0  ;;  %v9494_v57 = vadd.f32 %v15779_v10, %v11974_v6  ;;  %v15919_v1 = vadd.f32 %v15884_v39, %v9491_v13  ;;  %v16347_v13 = vld [vmem:[#allocation46_spill] sm:$0xff] }
 0x457   : > { %v12089_v60 = vadd.f32 %v12088_v56, %v12087_v25  ;;  %v12090_v34 = vpop.f32.mrb[218].mxu0 }
 0x458   : > { %v12091_v44 = vpop.f32.mrb[219].mxu0  ;;  %v11975_v2 = vpop.f32.mrb[184].mxu1  ;;  %v15922_v41 = vadd.f32 %v15894_v7, %v9494_v57 }
 0x459   : > { %v12092_v38 = vadd.f32 %v12091_v44, %v12090_v34  ;;  %v11976_v62 = vpop.f32.mrb[185].mxu1  ;;  %12436 = vmatmul.mubr.bf16.gmra.mrb[24].mxu1 %v11050_v17 }
 0x45a   : > { %v11977_v47 = vadd.f32 %v11976_v62, %v11975_v2  ;;  %v11978_v23 = vpop.f32.mrb[186].mxu1  ;;  %12439 = vmatprep.mubr.bf16.mxu1 %v11051_v29 }
 0x45b   : > { %v11979_v21 = vpop.f32.mrb[187].mxu1 }
 0x45c   : > { %v11980_v52 = vadd.f32 %v11979_v21, %v11978_v23  ;;  %v9499_v44 = vadd.f32 %v15779_v10, %v11977_v47  ;;  %v16346_v23 = vld [vmem:[#allocation15_spill] sm:$0xff] }
 0x45d   : > { %v12093_v11 = vpop.f32.mrb[220].mxu0 }
 0x45e   : > { %v12094_v31 = vpop.f32.mrb[221].mxu0  ;;  %v9502_v62 = vadd.f32 %v15779_v10, %v11980_v52  ;;  %v15929_v7 = vadd.f32 %v12089_v60, %v9499_v44 }
 0x45f   : > { %v12095_v49 = vadd.f32 %v12094_v31, %v12093_v11  ;;  %v12096_v19 = vpop.f32.mrb[222].mxu0 }
 0x460   : > { %v12097_v25 = vpop.f32.mrb[223].mxu0  ;;  %v11981_v59 = vpop.f32.mrb[188].mxu1  ;;  %v15932_v57 = vadd.f32 %v12092_v38, %v9502_v62 }
 0x461   : > { %v12098_v36 = vadd.f32 %v12097_v25, %v12096_v19  ;;  %v11982_v26 = vpop.f32.mrb[189].mxu1  ;;  %12440 = vmatmul.mubr.bf16.gmra.mrb[28].mxu1 %v11052_v61 }
 0x462   : > { %v11983_v30 = vadd.f32 %v11982_v26, %v11981_v59  ;;  %v11984_v56 = vpop.f32.mrb[190].mxu1 }
 0x463   : > { %v11985_v53 = vpop.f32.mrb[191].mxu1 }
 0x464   : > { %v11986_v46 = vadd.f32 %v11985_v53, %v11984_v56  ;;  %v9507_v26 = vadd.f32 %v15779_v10, %v11983_v30 }
 0x465   : > { %v12227_v34 = vpop.f32.mrb[224].mxu0 }
 0x466   : > { %v12228_v51 = vpop.f32.mrb[225].mxu0 }
 0x467   : > { %v12229_v54 = vadd.f32 %v12228_v51, %v12227_v34  ;;  %v12230_v32 = vpop.f32.mrb[226].mxu0 }
 0x468   : > { %v12231_v63 = vpop.f32.mrb[227].mxu0  ;;  %v12115_v6 = vpop.f32.mrb[192].mxu1 }
 0x469   : > { %v15925_v17 = vadd.f32 %v12231_v63, %v12230_v32  ;;  %v12116_v39 = vpop.f32.mrb[193].mxu1  ;;  %v9510_v63 = vadd.f32 %v15779_v10, %v11986_v46 }
 0x46a   : > { %v12117_v33 = vadd.f32 %v12116_v39, %v12115_v6  ;;  %v12118_v2 = vpop.f32.mrb[194].mxu1  ;;  %v15937_v6 = vadd.f32 %v12095_v49, %v9507_v26 }
 0x46b   : > { %v12119_v29 = vpop.f32.mrb[195].mxu1 }
 0x46c   : > { %v9709_v4 = vadd.f32 %v12117_v33, %v16346_v23  ;;  %v12120_v3 = vadd.f32 %v12119_v29, %v12118_v2  ;;  %v15940_v23 = vadd.f32 %v12098_v36, %v9510_v63 }
 0x46d   : > { %v12233_v21 = vpop.f32.mrb[228].mxu0 }
 0x46e   : > { %v12234_v11 = vpop.f32.mrb[229].mxu0  ;;  %v9712_v31 = vadd.f32 %v12120_v3, %v16347_v13 }
 0x46f   : > { %v12235_v61 = vadd.f32 %v12234_v11, %v12233_v21  ;;  %v12236_v47 = vpop.f32.mrb[230].mxu0 }
 0x470   : > { %v12237_v19 = vpop.f32.mrb[231].mxu0  ;;  %v12121_v25 = vpop.f32.mrb[196].mxu1 }
 0x471   : > { %v12238_v59 = vadd.f32 %v12237_v19, %v12236_v47  ;;  %v12122_v56 = vpop.f32.mrb[197].mxu1 }
 0x472   : > { %v12123_v52 = vadd.f32 %v12122_v56, %v12121_v25  ;;  %v12124_v53 = vpop.f32.mrb[198].mxu1 }
 0x473   : > { %v12125_v34 = vpop.f32.mrb[199].mxu1 }
 0x474   : > { %v9717_v51 = vadd.f32 %v12123_v52, %v15774_v14  ;;  %v12126_v60 = vadd.f32 %v12125_v34, %v12124_v53  ;;  %v15946_v34 = vadd.f32 %v12229_v54, %v9709_v4 }
 0x475   : > { %v12239_v32 = vpop.f32.mrb[232].mxu0 }
 0x476   : > { %v12240_v44 = vpop.f32.mrb[233].mxu0  ;;  %v9720_v39 = vadd.f32 %v12126_v60, %v15789_v27  ;;  %v15943_v46 = vadd.f32 %v12235_v61, %v9717_v51 }
 0x477   : > { %v12241_v33 = vadd.f32 %v12240_v44, %v12239_v32  ;;  %v12242_v38 = vpop.f32.mrb[234].mxu0 }
 0x478   : > { %v12243_v2 = vpop.f32.mrb[235].mxu0  ;;  %v12127_v29 = vpop.f32.mrb[200].mxu1  ;;  %v15948_v32 = vadd.f32 %v12238_v59, %v9720_v39 }
 0x479   : > { %v12244_v30 = vadd.f32 %v12243_v2, %v12242_v38  ;;  %v12128_v62 = vpop.f32.mrb[201].mxu1 }
 0x47a   : > { %v12129_v3 = vadd.f32 %v12128_v62, %v12127_v29  ;;  %v12130_v21 = vpop.f32.mrb[202].mxu1 }
 0x47b   : > { %v12131_v14 = vpop.f32.mrb[203].mxu1 }
 0x47c   : > { %v9725_v11 = vadd.f32 %v12129_v3, %v15793_v43  ;;  %v12132_v13 = vadd.f32 %v12131_v14, %v12130_v21  ;;  %v15953_v3 = vadd.f32 %v15925_v17, %v9712_v31 }
 0x47d   : > { %v12245_v10 = vpop.f32.mrb[236].mxu0 }
 0x47e   : > { %v12246_v49 = vpop.f32.mrb[237].mxu0  ;;  %v9728_v27 = vadd.f32 %v12132_v13, %v15800_v0  ;;  %v15957_v21 = vadd.f32 %v12241_v33, %v9725_v11 }
 0x47f   : > { %v12247_v47 = vadd.f32 %v12246_v49, %v12245_v10  ;;  %v12248_v19 = vpop.f32.mrb[238].mxu0 }
 0x480   : > { %v12249_v25 = vpop.f32.mrb[239].mxu0  ;;  %v12133_v26 = vpop.f32.mrb[204].mxu1 }
 0x481   : > { %v12250_v56 = vadd.f32 %v12249_v25, %v12248_v19  ;;  %v12134_v52 = vpop.f32.mrb[205].mxu1 }
 0x482   : > { %v12135_v36 = vadd.f32 %v12134_v52, %v12133_v26  ;;  %v12136_v53 = vpop.f32.mrb[206].mxu1  ;;  %v15963_v52 = vadd.f32 %v12244_v30, %v9728_v27 }
 0x483   : > { %v12137_v60 = vpop.f32.mrb[207].mxu1 }
 0x484   : > { %v9733_v43 = vadd.f32 %v12135_v36, %v15807_v45  ;;  %v12138_v61 = vadd.f32 %v12137_v60, %v12136_v53 }
 0x485   : > { %v12251_v51 = vpop.f32.mrb[240].mxu0 }
 0x486   : > { %v12252_v63 = vpop.f32.mrb[241].mxu0  ;;  %v9736_v0 = vadd.f32 %v12138_v61, %v15811_v37  ;;  %v15955_v4 = vadd.f32 %v12247_v47, %v9733_v43 }
 0x487   : > { %v12253_v44 = vadd.f32 %v12252_v63, %v12251_v51  ;;  %v12254_v38 = vpop.f32.mrb[242].mxu0 }
 0x488   : > { %v12255_v2 = vpop.f32.mrb[243].mxu0  ;;  %v12139_v29 = vpop.f32.mrb[208].mxu1  ;;  %v15959_v14 = vadd.f32 %v12250_v56, %v9736_v0 }
 0x489   : > { %v12256_v62 = vadd.f32 %v12255_v2, %v12254_v38  ;;  %v12140_v54 = vpop.f32.mrb[209].mxu1 }
 0x48a   : > { %v12141_v59 = vadd.f32 %v12140_v54, %v12139_v29  ;;  %v12142_v39 = vpop.f32.mrb[210].mxu1 }
 0x48b   : > { %v12143_v45 = vpop.f32.mrb[211].mxu1 }
 0x48c   : > { %v9741_v37 = vadd.f32 %v12141_v59, %v15819_v12  ;;  %v12144_v13 = vadd.f32 %v12143_v45, %v12142_v39 }
 0x48d   : > { %v12257_v10 = vpop.f32.mrb[244].mxu0 }
 0x48e   : > { %v12258_v49 = vpop.f32.mrb[245].mxu0  ;;  %v9744_v19 = vadd.f32 %v12144_v13, %v15823_v8  ;;  %v15965_v53 = vadd.f32 %v12253_v44, %v9741_v37 }
 0x48f   : > { %v12259_v25 = vadd.f32 %v12258_v49, %v12257_v10  ;;  %v12260_v17 = vpop.f32.mrb[246].mxu0 }
 0x490   : > { %v12261_v31 = vpop.f32.mrb[247].mxu0  ;;  %v12145_v26 = vpop.f32.mrb[212].mxu1  ;;  %v15973_v29 = vadd.f32 %v12256_v62, %v9744_v19 }
 0x491   : > { %v12262_v47 = vadd.f32 %v12261_v31, %v12260_v17  ;;  %v12146_v36 = vpop.f32.mrb[213].mxu1 }
 0x492   : > { %v12147_v33 = vadd.f32 %v12146_v36, %v12145_v26  ;;  %v12148_v11 = vpop.f32.mrb[214].mxu1 }
 0x493   : > { %v12149_v56 = vpop.f32.mrb[215].mxu1 }
 0x494   : > { %v9749_v12 = vadd.f32 %v12147_v33, %v15827_v58  ;;  %v12150_v60 = vadd.f32 %v12149_v56, %v12148_v11 }
 0x495   : > { %v12263_v43 = vpop.f32.mrb[248].mxu0 }
 0x496   : > { %v12264_v61 = vpop.f32.mrb[249].mxu0  ;;  %v9752_v8 = vadd.f32 %v12150_v60, %v15831_v18  ;;  %v15969_v0 = vadd.f32 %v12259_v25, %v9749_v12 }
 0x497   : > { %v12265_v51 = vadd.f32 %v12264_v61, %v12263_v43  ;;  %v12266_v63 = vpop.f32.mrb[250].mxu0 }
 0x498   : > { %v12267_v38 = vpop.f32.mrb[251].mxu0  ;;  %v12151_v30 = vpop.f32.mrb[216].mxu1  ;;  %v15971_v2 = vadd.f32 %v12262_v47, %v9752_v8 }
 0x499   : > { %v12268_v27 = vadd.f32 %v12267_v38, %v12266_v63  ;;  %v12152_v44 = vpop.f32.mrb[217].mxu1 }
 0x49a   : > { %v12153_v54 = vadd.f32 %v12152_v44, %v12151_v30  ;;  %v12154_v59 = vpop.f32.mrb[218].mxu1 }
 0x49b   : > { %v12155_v58 = vpop.f32.mrb[219].mxu1 }
 0x49c   : > { %v9757_v39 = vadd.f32 %v12153_v54, %v15835_v22  ;;  %v12156_v45 = vadd.f32 %v12155_v58, %v12154_v59 }
 0x49d   : > { %v12269_v37 = vpop.f32.mrb[252].mxu0 }
 0x49e   : > { %v12270_v18 = vpop.f32.mrb[253].mxu0  ;;  %v9760_v13 = vadd.f32 %v12156_v45, %v15841_v28  ;;  %v15977_v25 = vadd.f32 %v12265_v51, %v9757_v39 }
 0x49f   : > { %v12271_v10 = vadd.f32 %v12270_v18, %v12269_v37  ;;  %v12272_v49 = vpop.f32.mrb[254].mxu0 }
 0x4a0   : > { %v12273_v17 = vpop.f32.mrb[255].mxu0  ;;  %v12157_v31 = vpop.f32.mrb[220].mxu1  ;;  %v15979_v62 = vadd.f32 %v12268_v27, %v9760_v13 }
 0x4a1   : > { %v12274_v26 = vadd.f32 %v12273_v17, %v12272_v49  ;;  %v12158_v19 = vpop.f32.mrb[221].mxu1 }
 0x4a2   : > { %v12159_v47 = vadd.f32 %v12158_v19, %v12157_v31  ;;  %v12160_v36 = vpop.f32.mrb[222].mxu1 }
 0x4a3   : > { %v12161_v33 = vpop.f32.mrb[223].mxu1 }
 0x4a4   : > { %v9765_v22 = vadd.f32 %v12159_v47, %v15845_v35  ;;  %v12162_v11 = vadd.f32 %v12161_v33, %v12160_v36 }
 0x4a5   : > { %v12275_v56 = vpop.f32.mrb[0].mxu0 }
 0x4a6   : > { %v12276_v12 = vpop.f32.mrb[1].mxu0  ;;  %v9768_v28 = vadd.f32 %v12162_v11, %v15849_v20  ;;  %v15983_v61 = vadd.f32 %v12271_v10, %v9765_v22 }
 0x4a7   : > { %v12277_v60 = vadd.f32 %v12276_v12, %v12275_v56  ;;  %v12278_v43 = vpop.f32.mrb[2].mxu0 }
 0x4a8   : > { %v12279_v8 = vpop.f32.mrb[3].mxu0  ;;  %v15985_v38 = vadd.f32 %v12274_v26, %v9768_v28 }
 0x4a9   : > { %v12163_v51 = vpop.f32.mrb[224].mxu1  ;;  %v12280_v63 = vadd.f32 %v12279_v8, %v12278_v43 }
 0x4aa   : > { %v12164_v30 = vpop.f32.mrb[225].mxu1 }
 0x4ab   : > { %v12165_v27 = vadd.f32 %v12164_v30, %v12163_v51  ;;  %v12166_v44 = vpop.f32.mrb[226].mxu1 }
 0x4ac   : > { %v12167_v54 = vpop.f32.mrb[227].mxu1 }
 0x4ad   : > { %v9773_v35 = vadd.f32 %v12165_v27, %v15853_v15  ;;  %v12168_v59 = vadd.f32 %v12167_v54, %v12166_v44  ;;  %v12281_v58 = vpop.f32.mrb[4].mxu0 }
 0x4ae   : > { %v12282_v20 = vpop.f32.mrb[5].mxu0 }
 0x4af   : > { %v9776_v39 = vadd.f32 %v12168_v59, %v15857_v48  ;;  %v15989_v45 = vadd.f32 %v12277_v60, %v9773_v35  ;;  %v12283_v37 = vadd.f32 %v12282_v20, %v12281_v58  ;;  %v12284_v18 = vpop.f32.mrb[6].mxu0 }
 0x4b0   : > { %v12285_v13 = vpop.f32.mrb[7].mxu0 }
 0x4b1   : > { %v15991_v10 = vadd.f32 %v12280_v63, %v9776_v39  ;;  %v12286_v49 = vadd.f32 %v12285_v13, %v12284_v18 }
 0x4b3   : > { %v12169_v17 = vpop.f32.mrb[228].mxu1 }
 0x4b4   : > { %v12170_v31 = vpop.f32.mrb[229].mxu1 }
 0x4b5   : > { %v12171_v26 = vadd.f32 %v12170_v31, %v12169_v17  ;;  %v12172_v19 = vpop.f32.mrb[230].mxu1 }
 0x4b6   : > { %v12173_v47 = vpop.f32.mrb[231].mxu1 }
 0x4b7   : > { %v9781_v15 = vadd.f32 %v12171_v26, %v15860_v5  ;;  %v12174_v36 = vadd.f32 %v12173_v47, %v12172_v19  ;;  %v12287_v33 = vpop.f32.mrb[8].mxu0 }
 0x4b8   : > { %v12288_v22 = vpop.f32.mrb[9].mxu0 }
 0x4b9   : > { %v9784_v48 = vadd.f32 %v12174_v36, %v15863_v50  ;;  %v12289_v11 = vadd.f32 %v12288_v22, %v12287_v33  ;;  %v12290_v56 = vpop.f32.mrb[10].mxu0  ;;  %v15995_v12 = vadd.f32 %v12283_v37, %v9781_v15 }
 0x4ba   : > { %v12291_v28 = vpop.f32.mrb[11].mxu0 }
 0x4bb   : > { %v12292_v60 = vadd.f32 %v12291_v28, %v12290_v56  ;;  %v15997_v43 = vadd.f32 %v12286_v49, %v9784_v48 }
 0x4be   : > { %v12175_v8 = vpop.f32.mrb[232].mxu1 }
 0x4bf   : > { %v12176_v51 = vpop.f32.mrb[233].mxu1 }
 0x4c0   : > { %v12177_v63 = vadd.f32 %v12176_v51, %v12175_v8  ;;  %v12178_v30 = vpop.f32.mrb[234].mxu1 }
 0x4c1   : > { %v12179_v27 = vpop.f32.mrb[235].mxu1  ;;  %v12293_v44 = vpop.f32.mrb[12].mxu0 }
 0x4c2   : > { %v9789_v5 = vadd.f32 %v12177_v63, %v15868_v42  ;;  %v12180_v54 = vadd.f32 %v12179_v27, %v12178_v30  ;;  %v12294_v35 = vpop.f32.mrb[13].mxu0 }
 0x4c3   : > { %v12295_v59 = vadd.f32 %v12294_v35, %v12293_v44  ;;  %v12296_v50 = vpop.f32.mrb[14].mxu0 }
 0x4c4   : > { %v9792_v58 = vadd.f32 %v12180_v54, %v15871_v40  ;;  %v12297_v39 = vpop.f32.mrb[15].mxu0  ;;  %v16001_v20 = vadd.f32 %v12289_v11, %v9789_v5 }
 0x4c5   : > { %v12298_v37 = vadd.f32 %v12297_v39, %v12296_v50 }
 0x4c6   : > { %v16003_v18 = vadd.f32 %v12292_v60, %v9792_v58 }
 0x4ca   : > { %v12181_v13 = vpop.f32.mrb[236].mxu1 }
 0x4cb   : > { %v12182_v49 = vpop.f32.mrb[237].mxu1 }
 0x4cc   : > { %v12183_v17 = vadd.f32 %v12182_v49, %v12181_v13  ;;  %v12184_v31 = vpop.f32.mrb[238].mxu1 }
 0x4cd   : > { %v12185_v26 = vpop.f32.mrb[239].mxu1  ;;  %v12299_v47 = vpop.f32.mrb[16].mxu0 }
 0x4ce   : > { %v9797_v19 = vadd.f32 %v12183_v17, %v15874_v16  ;;  %v12186_v42 = vadd.f32 %v12185_v26, %v12184_v31  ;;  %v12300_v15 = vpop.f32.mrb[17].mxu0 }
 0x4cf   : > { %v12301_v33 = vadd.f32 %v12300_v15, %v12299_v47  ;;  %v12302_v40 = vpop.f32.mrb[18].mxu0 }
 0x4d0   : > { %v9800_v36 = vadd.f32 %v12186_v42, %v15880_v55  ;;  %v16007_v22 = vadd.f32 %v12295_v59, %v9797_v19  ;;  %v12303_v48 = vpop.f32.mrb[19].mxu0 }
 0x4d1   : > { %v12304_v11 = vadd.f32 %v12303_v48, %v12302_v40 }
 0x4d2   : > { %v16009_v56 = vadd.f32 %v12298_v37, %v9800_v36 }
 0x4d6   : > { %v12187_v28 = vpop.f32.mrb[240].mxu1 }
 0x4d7   : > { %v12188_v60 = vpop.f32.mrb[241].mxu1 }
 0x4d8   : > { %v12189_v8 = vadd.f32 %v12188_v60, %v12187_v28  ;;  %v12190_v51 = vpop.f32.mrb[242].mxu1  ;;  %v12305_v63 = vpop.f32.mrb[20].mxu0 }
 0x4d9   : > { %v12191_v30 = vpop.f32.mrb[243].mxu1  ;;  %v12306_v16 = vpop.f32.mrb[21].mxu0 }
 0x4da   : > { %v9805_v27 = vadd.f32 %v12189_v8, %v15903_v24  ;;  %v12192_v44 = vadd.f32 %v12191_v30, %v12190_v51  ;;  %v12307_v5 = vadd.f32 %v12306_v16, %v12305_v63  ;;  %v12308_v55 = vpop.f32.mrb[22].mxu0 }
 0x4db   : > { %v12309_v54 = vpop.f32.mrb[23].mxu0 }
 0x4dc   : > { %v9808_v35 = vadd.f32 %v12192_v44, %v15910_v9  ;;  %v12310_v59 = vadd.f32 %v12309_v54, %v12308_v55  ;;  %v16013_v50 = vadd.f32 %v12301_v33, %v9805_v27 }
 0x4de   : > { %v16015_v58 = vadd.f32 %v12304_v11, %v9808_v35 }
 0x4e1   : > { %v12193_v39 = vpop.f32.mrb[244].mxu1 }
 0x4e2   : > { %v12194_v37 = vpop.f32.mrb[245].mxu1 }
 0x4e3   : > { %v12195_v13 = vadd.f32 %v12194_v37, %v12193_v39  ;;  %v12196_v49 = vpop.f32.mrb[246].mxu1  ;;  %v11373_v37 = vld [vmem:[%s13142_s12 + $0x8] sm:$0xff]  }
 0x4e4   : > { %v12197_v17 = vpop.f32.mrb[247].mxu1  ;;  %v12311_v24 = vpop.f32.mrb[24].mxu0 }
 0x4e5   : > { %v9813_v31 = vadd.f32 %v12195_v13, %v15919_v1  ;;  %v12198_v26 = vadd.f32 %v12197_v17, %v12196_v49  ;;  %v12312_v19 = vpop.f32.mrb[25].mxu0  ;;  %v11230_v49 = vld [vmem:[%s13142_s12] sm:$0xff]  }
 0x4e6   : > { %v12313_v47 = vadd.f32 %v12312_v19, %v12311_v24  ;;  %v12314_v15 = vpop.f32.mrb[26].mxu0 }
 0x4e7   : > { %v9816_v42 = vadd.f32 %v12198_v26, %v15922_v41  ;;  %v16019_v9 = vadd.f32 %v12307_v5, %v9813_v31  ;;  %v12315_v36 = vpop.f32.mrb[27].mxu0  ;;  %v11235_v26 = vunpack.c.l.bf16 %v11373_v37 }
 0x4e8   : > { %v12316_v33 = vadd.f32 %v12315_v36, %v12314_v15  ;;  %v11236_v15 = vunpack.c.h.bf16 %v11373_v37 }
 0x4e9   : > { %v16021_v40 = vadd.f32 %v12310_v59, %v9816_v42  ;;  %v11231_v42 = vunpack.c.l.bf16 %v11230_v49 }
 0x4ec   : > { %v12199_v48 = vpop.f32.mrb[248].mxu1 }
 0x4ed   : > { %v12200_v11 = vpop.f32.mrb[249].mxu1 }
 0x4ee   : > { %v12201_v28 = vadd.f32 %v12200_v11, %v12199_v48  ;;  %v12202_v60 = vpop.f32.mrb[250].mxu1  ;;  %v11232_v11 = vunpack.c.h.bf16 %v11230_v49 }
 0x4ef   : > { %v12203_v8 = vpop.f32.mrb[251].mxu1 }
 0x4f0   : > { %v9821_v1 = vadd.f32 %v12201_v28, %v15929_v7  ;;  %v12204_v51 = vadd.f32 %v12203_v8, %v12202_v60 }
 0x4f2   : > { %v9824_v41 = vadd.f32 %v12204_v51, %v15932_v57  ;;  %v16025_v63 = vadd.f32 %v12313_v47, %v9821_v1  ;;  %v11375_v51 = vld [vmem:[%s13142_s12 + $0x18] sm:$0xff]  }
 0x4f3   : > { %v11244_v37 = vunpack.c.h.bf16 %v11375_v51 }
 0x4f4   : > { %v16027_v30 = vadd.f32 %v12316_v33, %v9824_v41  ;;  %v12205_v16 = vpop.f32.mrb[252].mxu1 }
 0x4f5   : > { %v12206_v27 = vpop.f32.mrb[253].mxu1 }
 0x4f6   : > { %v12207_v44 = vadd.f32 %v12206_v27, %v12205_v16  ;;  %v12208_v5 = vpop.f32.mrb[254].mxu1  ;;  %v12317_v55 = vpop.f32.mrb[28].mxu0  ;;  %v11374_v16 = vld [vmem:[%s13142_s12 + $0x10] sm:$0xff]  }
 0x4f7   : > { %v12209_v54 = vpop.f32.mrb[255].mxu1  ;;  %v12318_v39 = vpop.f32.mrb[29].mxu0  ;;  %v11240_v49 = vunpack.c.h.bf16 %v11374_v16 }
 0x4f8   : > { %v9829_v35 = vadd.f32 %v12207_v44, %v15937_v6  ;;  %v12210_v59 = vadd.f32 %v12209_v54, %v12208_v5  ;;  %v12319_v7 = vadd.f32 %v12318_v39, %v12317_v55  ;;  %v12320_v13 = vpop.f32.mrb[30].mxu0  ;;  %v11243_v5 = vunpack.c.l.bf16 %v11375_v51 }
 0x4f9   : > { %v12321_v17 = vpop.f32.mrb[31].mxu0 }
 0x4fa   : > { %v9832_v57 = vadd.f32 %v12210_v59, %v15940_v23  ;;  %v12322_v31 = vadd.f32 %v12321_v17, %v12320_v13  ;;  %v16033_v24 = vadd.f32 %v12319_v7, %v9829_v35  ;;  %v11239_v35 = vunpack.c.l.bf16 %v11374_v16 }
 0x4fc   : > { %v12413_v19 = vpop.f32.mrb[0].mxu1  ;;  %v16036_v36 = vadd.f32 %v12322_v31, %v9832_v57 }
 0x4fd   : > { %v10039_v47 = vadd.f32 %v12413_v19, %v15943_v46  ;;  %v10030_v6 = vpop.f32.mrb[1].mxu1  ;;  %v11377_v19 = vld [vmem:[%s13142_s12 + $0x28] sm:$0xff]  }
 0x4fe   : > { %v10031_v33 = vadd.f32 %v10030_v6, %v15946_v34  ;;  %v12414_v48 = vpop.f32.mrb[2].mxu1 }
 0x4ff   : > { %v10223_v23 = vadd.f32 %v11235_v26, %v10039_v47  ;;  %v10042_v28 = vadd.f32 %v12414_v48, %v15948_v32  ;;  %v10033_v60 = vpop.f32.mrb[3].mxu1  ;;  %v11376_v47 = vld [vmem:[%s13142_s12 + $0x20] sm:$0xff]  }
 0x500   : > { %v10221_v8 = vadd.f32 %v11231_v42, %v10031_v33  ;;  %v10034_v1 = vadd.f32 %v10033_v60, %v15953_v3  ;;  %v11251_v33 = vunpack.c.l.bf16 %v11377_v19  ;;  %v11248_v16 = vunpack.c.h.bf16 %v11376_v47 }
 0x501   : > { %v10224_v41 = vadd.f32 %v11236_v15, %v10042_v28  ;;  %v10255_v46 = vmax.f32 %v10223_v23, 0.0  ;;  %v11247_v28 = vunpack.c.l.bf16 %v11376_v47 }
 0x502   : > { %v10222_v27 = vadd.f32 %v11232_v11, %v10034_v1  ;;  %v10253_v55 = vmax.f32 %v10221_v8, 0.0 }
 0x503   : > { %v10256_v44 = vmax.f32 %v10224_v41, 0.0 }
 0x504   : > { %v10254_v54 = vmax.f32 %v10222_v27, 0.0  ;;  %v12417_v34 = vpop.f32.mrb[4].mxu1 }
 0x505   : > { %v11301_v59 = vpack.c.bf16 %v10256_v44, %v10255_v46  ;;  %v10055_v32 = vadd.f32 %v12417_v34, %v15955_v4  ;;  %v10046_v39 = vpop.f32.mrb[5].mxu1 }
 0x506   : > { %v11296_v3 = vpack.c.bf16 %v10254_v54, %v10253_v55  ;;  %v10047_v7 = vadd.f32 %v10046_v39, %v15957_v21  ;;  %v12418_v13 = vpop.f32.mrb[6].mxu1  ;;  %v11379_v54 = vld [vmem:[%s13142_s12 + $0x38] sm:$0xff]  }
 0x507   : > { %11388 = vst [vmem:[%s16047_s13 + $0x8] sm:$0xff] %v11301_v59   ;;  %v10227_v57 = vadd.f32 %v11243_v5, %v10055_v32  ;;  %v10058_v17 = vadd.f32 %v12418_v13, %v15959_v14  ;;  %v10049_v31 = vpop.f32.mrb[7].mxu1  ;;  %v11259_v39 = vunpack.c.l.bf16 %v11379_v54 }
 0x508   : > { %11297 = vst [vmem:[%s16047_s13] sm:$0xff] %v11296_v3   ;;  %v10225_v4 = vadd.f32 %v11239_v35, %v10047_v7  ;;  %v10050_v26 = vadd.f32 %v10049_v31, %v15963_v52  ;;  %v11252_v52 = vunpack.c.h.bf16 %v11377_v19 }
 0x509   : > { %v10228_v42 = vadd.f32 %v11244_v37, %v10058_v17  ;;  %v10259_v6 = vmax.f32 %v10227_v57, 0.0 }
 0x50a   : > { %v10226_v21 = vadd.f32 %v11240_v49, %v10050_v26  ;;  %v10257_v48 = vmax.f32 %v10225_v4, 0.0 }
 0x50b   : > { %v10260_v15 = vmax.f32 %v10228_v42, 0.0 }
 0x50c   : > { %v10258_v11 = vmax.f32 %v10226_v21, 0.0  ;;  %v12421_v23 = vpop.f32.mrb[8].mxu1 }
 0x50d   : > { %v11311_v14 = vpack.c.bf16 %v10260_v15, %v10259_v6  ;;  %v10071_v60 = vadd.f32 %v12421_v23, %v15969_v0  ;;  %v10062_v8 = vpop.f32.mrb[9].mxu1  ;;  %v11378_v0 = vld [vmem:[%s13142_s12 + $0x30] sm:$0xff]   ;;  %v11381_v6 = vld [vmem:[%s13142_s12 + $0x48] sm:$0xff]  }
 0x50e   : > { %v11306_v1 = vpack.c.bf16 %v10258_v11, %v10257_v48  ;;  %v10063_v51 = vadd.f32 %v10062_v8, %v15965_v53  ;;  %v12422_v41 = vpop.f32.mrb[10].mxu1  ;;  %v11255_v7 = vunpack.c.l.bf16 %v11378_v0  ;;  %v11256_v4 = vunpack.c.h.bf16 %v11378_v0 }
 0x50f   : > { %11390 = vst [vmem:[%s16047_s13 + $0x18] sm:$0xff] %v11311_v14   ;;  %v10231_v27 = vadd.f32 %v11251_v33, %v10071_v60  ;;  %v10074_v46 = vadd.f32 %v12422_v41, %v15971_v2  ;;  %v10065_v44 = vpop.f32.mrb[11].mxu1  ;;  %v11267_v23 = vunpack.c.l.bf16 %v11381_v6 }
 0x510   : > { %11389 = vst [vmem:[%s16047_s13 + $0x10] sm:$0xff] %v11306_v1   ;;  %v10229_v5 = vadd.f32 %v11247_v28, %v10063_v51  ;;  %v10066_v55 = vadd.f32 %v10065_v44, %v15973_v29  ;;  %v11260_v29 = vunpack.c.h.bf16 %v11379_v54  ;;  %v11383_v54 = vld [vmem:[%s13142_s12 + $0x58] sm:$0xff]  }
 0x511   : > { %v10232_v34 = vadd.f32 %v11252_v52, %v10074_v46  ;;  %v10263_v59 = vmax.f32 %v10231_v27, 0.0 }
 0x512   : > { %v10230_v35 = vadd.f32 %v11248_v16, %v10066_v55  ;;  %v10261_v53 = vmax.f32 %v10229_v5, 0.0 }
 0x513   : > { %v10264_v32 = vmax.f32 %v10232_v34, 0.0 }
 0x514   : > { %v10262_v37 = vmax.f32 %v10230_v35, 0.0  ;;  %v12425_v3 = vpop.f32.mrb[12].mxu1 }
 0x515   : > { %v11321_v2 = vpack.c.bf16 %v10264_v32, %v10263_v59  ;;  %v10087_v13 = vadd.f32 %v12425_v3, %v15983_v61  ;;  %v10078_v49 = vpop.f32.mrb[13].mxu1  ;;  %v11380_v61 = vld [vmem:[%s13142_s12 + $0x40] sm:$0xff]   ;;  %v11275_v32 = vunpack.c.l.bf16 %v11383_v54 }
 0x516   : > { %v11316_v57 = vpack.c.bf16 %v10262_v37, %v10261_v53  ;;  %v10079_v17 = vadd.f32 %v10078_v49, %v15977_v25  ;;  %v12426_v31 = vpop.f32.mrb[14].mxu1  ;;  %v11263_v60 = vunpack.c.l.bf16 %v11380_v61  ;;  %v11264_v16 = vunpack.c.h.bf16 %v11380_v61 }
 0x517   : > { %11392 = vst [vmem:[%s16047_s13 + $0x28] sm:$0xff] %v11321_v2   ;;  %v10235_v26 = vadd.f32 %v11259_v39, %v10087_v13  ;;  %v10090_v19 = vadd.f32 %v12426_v31, %v15985_v38  ;;  %v10081_v42 = vpop.f32.mrb[15].mxu1 }
 0x518   : > { %11391 = vst [vmem:[%s16047_s13 + $0x20] sm:$0xff] %v11316_v57   ;;  %v10233_v47 = vadd.f32 %v11255_v7, %v10079_v17  ;;  %v10082_v21 = vadd.f32 %v10081_v42, %v15979_v62  ;;  %v11268_v62 = vunpack.c.h.bf16 %v11381_v6 }
 0x519   : > { %v10236_v15 = vadd.f32 %v11260_v29, %v10090_v19  ;;  %v10267_v48 = vmax.f32 %v10235_v26, 0.0  ;;  %v11385_v19 = vld [vmem:[%s13142_s12 + $0x68] sm:$0xff]  }
 0x51a   : > { %v10234_v33 = vadd.f32 %v11256_v4, %v10082_v21  ;;  %v10265_v25 = vmax.f32 %v10233_v47, 0.0 }
 0x51b   : > { %v10268_v11 = vmax.f32 %v10236_v15, 0.0  ;;  %v11283_v15 = vunpack.c.l.bf16 %v11385_v19 }
 0x51c   : > { %v10266_v28 = vmax.f32 %v10234_v33, 0.0  ;;  %v12429_v14 = vpop.f32.mrb[16].mxu1 }
 0x51d   : > { %v11331_v38 = vpack.c.bf16 %v10268_v11, %v10267_v48  ;;  %v10103_v8 = vadd.f32 %v12429_v14, %v15995_v12  ;;  %v10094_v52 = vpop.f32.mrb[17].mxu1  ;;  %v11382_v12 = vld [vmem:[%s13142_s12 + $0x50] sm:$0xff]  }
 0x51e   : > { %v11326_v1 = vpack.c.bf16 %v10266_v28, %v10265_v25  ;;  %v10095_v51 = vadd.f32 %v10094_v52, %v15989_v45  ;;  %v12430_v41 = vpop.f32.mrb[18].mxu1  ;;  %v11271_v37 = vunpack.c.l.bf16 %v11382_v12  ;;  %v11272_v29 = vunpack.c.h.bf16 %v11382_v12 }
 0x51f   : > { %11394 = vst [vmem:[%s16047_s13 + $0x38] sm:$0xff] %v11331_v38   ;;  %v10239_v27 = vadd.f32 %v11267_v23, %v10103_v8  ;;  %v10106_v46 = vadd.f32 %v12430_v41, %v15997_v43  ;;  %v10097_v44 = vpop.f32.mrb[19].mxu1 }
 0x520   : > { %11393 = vst [vmem:[%s16047_s13 + $0x30] sm:$0xff] %v11326_v1   ;;  %v10237_v5 = vadd.f32 %v11263_v60, %v10095_v51  ;;  %v10098_v55 = vadd.f32 %v10097_v44, %v15991_v10  ;;  %v11276_v10 = vunpack.c.h.bf16 %v11383_v54  ;;  %v11387_v51 = vld [vmem:[%s13142_s12 + $0x78] sm:$0xff]  }
 0x521   : > { %v10240_v34 = vadd.f32 %v11268_v62, %v10106_v46  ;;  %v10271_v35 = vmax.f32 %v10239_v27, 0.0  ;;  %v11291_v44 = vunpack.c.l.bf16 %v11387_v51 }
 0x522   : > { %v10238_v0 = vadd.f32 %v11264_v16, %v10098_v55  ;;  %v10269_v45 = vmax.f32 %v10237_v5, 0.0 }
 0x523   : > { %v10272_v59 = vmax.f32 %v10240_v34, 0.0 }
 0x524   : > { %v10270_v39 = vmax.f32 %v10238_v0, 0.0  ;;  %v12433_v53 = vpop.f32.mrb[20].mxu1 }
 0x525   : > { %v11341_v43 = vpack.c.bf16 %v10272_v59, %v10271_v35  ;;  %v10119_v3 = vadd.f32 %v12433_v53, %v16007_v22  ;;  %v10110_v7 = vpop.f32.mrb[21].mxu1  ;;  %v11384_v22 = vld [vmem:[%s13142_s12 + $0x60] sm:$0xff]  }
 0x526   : > { %v11336_v2 = vpack.c.bf16 %v10270_v39, %v10269_v45  ;;  %v10111_v13 = vadd.f32 %v10110_v7, %v16001_v20  ;;  %v12434_v49 = vpop.f32.mrb[22].mxu1  ;;  %v11279_v48 = vunpack.c.l.bf16 %v11384_v22  ;;  %v11280_v60 = vunpack.c.h.bf16 %v11384_v22 }
 0x527   : > { %11396 = vst [vmem:[%s16047_s13 + $0x48] sm:$0xff] %v11341_v43   ;;  %v10243_v57 = vadd.f32 %v11275_v32, %v10119_v3  ;;  %v10122_v17 = vadd.f32 %v12434_v49, %v16009_v56  ;;  %v10113_v31 = vpop.f32.mrb[23].mxu1 }
 0x528   : > { %11395 = vst [vmem:[%s16047_s13 + $0x40] sm:$0xff] %v11336_v2   ;;  %v10241_v4 = vadd.f32 %v11271_v37, %v10111_v13  ;;  %v10114_v26 = vadd.f32 %v10113_v31, %v16003_v18  ;;  %v11284_v18 = vunpack.c.h.bf16 %v11385_v19 }
 0x529   : > { %v10244_v42 = vadd.f32 %v11276_v10, %v10122_v17  ;;  %v10275_v21 = vmax.f32 %v10243_v57, 0.0 }
 0x52a   : > { %v10242_v47 = vadd.f32 %v11272_v29, %v10114_v26  ;;  %v10273_v20 = vmax.f32 %v10241_v4, 0.0 }
 0x52b   : > { %v10276_v6 = vmax.f32 %v10244_v42, 0.0 }
 0x52c   : > { %v10274_v61 = vmax.f32 %v10242_v47, 0.0  ;;  %v12437_v33 = vpop.f32.mrb[24].mxu1 }
 0x52d   : > { %v11351_v56 = vpack.c.bf16 %v10276_v6, %v10275_v21  ;;  %v10135_v11 = vadd.f32 %v12437_v33, %v16019_v9  ;;  %v10126_v23 = vpop.f32.mrb[25].mxu1  ;;  %v11386_v9 = vld [vmem:[%s13142_s12 + $0x70] sm:$0xff]   ;;  %s12848_s12 = sshll.u32 %s12922_s8, 4  ;;  %s12849_s12 = int_to_ptr.vmem [resolvable:$false] %s12848_s12 }
 0x52e   : > { %v11346_v25 = vpack.c.bf16 %v10274_v61, %v10273_v20  ;;  %v10127_v28 = vadd.f32 %v10126_v23, %v16013_v50  ;;  %v12438_v14 = vpop.f32.mrb[26].mxu1  ;;  %v11287_v54 = vunpack.c.l.bf16 %v11386_v9  ;;  %v11288_v32 = vunpack.c.h.bf16 %v11386_v9  ;;  %s12850_s24 = scalar_lea.vmem %s12849_s12, 4096  ;;  %p12851_p7 = scmp.lt.s32.totalorder %s16108_s30, %s12849_s12 }
 0x52f   : > { %11398 = vst [vmem:[%s16047_s13 + $0x58] sm:$0xff] %v11351_v56   ;;  %v10247_v38 = vadd.f32 %v11283_v15, %v10135_v11  ;;  %v10138_v8 = vadd.f32 %v12438_v14, %v16021_v40  ;;  %v10129_v52 = vpop.f32.mrb[27].mxu1  ;;  %p12852_p9 = scmp.lt.s32.totalorder %s12850_s24, %s12844_s6 }
 0x530   : > { %11397 = vst [vmem:[%s16047_s13 + $0x50] sm:$0xff] %v11346_v25   ;;  %v10245_v62 = vadd.f32 %v11279_v48, %v10127_v28  ;;  %v10130_v1 = vadd.f32 %v10129_v52, %v16015_v58  ;;  %v11292_v58 = vunpack.c.h.bf16 %v11387_v51 }
 0x531   : > { %v10248_v41 = vadd.f32 %v11284_v18, %v10138_v8  ;;  %v10279_v27 = vmax.f32 %v10247_v38, 0.0  ;;  %p12853_p12 = por %p12852_p9, %p12851_p7 }
 0x532   : > { %v10246_v16 = vadd.f32 %v11280_v60, %v10130_v1  ;;  %v10277_v50 = vmax.f32 %v10245_v62, 0.0 }
 0x533   : > { %v10280_v46 = vmax.f32 %v10248_v41, 0.0  ;;  %p12854_p1 = pnand %p12853_p12, %p12847_p3 }
 0x534   : > { %v10278_v5 = vmax.f32 %v10246_v16, 0.0  ;;  %v12441_v55 = vpop.f32.mrb[28].mxu1 }
 0x535   : > { %v11361_v34 = vpack.c.bf16 %v10280_v46, %v10279_v27  ;;  %v10151_v40 = vadd.f32 %v12441_v55, %v16033_v24  ;;  %v10142_v12 = vpop.f32.mrb[29].mxu1 }
 0x536   : > { %v11356_v0 = vpack.c.bf16 %v10278_v5, %v10277_v50  ;;  %v10143_v35 = vadd.f32 %v10142_v12, %v16025_v63  ;;  %v12442_v59 = vpop.f32.mrb[30].mxu1 }
 0x537   : > { %11400 = vst [vmem:[%s16047_s13 + $0x68] sm:$0xff] %v11361_v34   ;;  %v10251_v45 = vadd.f32 %v11291_v44, %v10151_v40  ;;  %v10154_v39 = vadd.f32 %v12442_v59, %v16036_v36  ;;  %v10145_v53 = vpop.f32.mrb[31].mxu1 }
 0x538   : > { %11399 = vst [vmem:[%s16047_s13 + $0x60] sm:$0xff] %v11356_v0   ;;  %v10249_v37 = vadd.f32 %v11287_v54, %v10143_v35  ;;  %v10146_v24 = vadd.f32 %v10145_v53, %v16027_v30 }
 0x539   : > { %v10252_v43 = vadd.f32 %v11292_v58, %v10154_v39  ;;  %v10283_v63 = vmax.f32 %v10251_v45, 0.0 }
 0x53a   : > { %v10250_v3 = vadd.f32 %v11288_v32, %v10146_v24  ;;  %v10281_v10 = vmax.f32 %v10249_v37, 0.0 }
 0x53b   : > { %v10284_v7 = vmax.f32 %v10252_v43, 0.0 }
 0x53c   : > { %v10282_v2 = vmax.f32 %v10250_v3, 0.0 }
 0x53d   : > { %v11371_v13 = vpack.c.bf16 %v10284_v7, %v10283_v63 }
 0x53e   : > { %v11366_v30 = vpack.c.bf16 %v10282_v2, %v10281_v10 }
 0x53f   : > { %11402 = vst [vmem:[%s16047_s13 + $0x78] sm:$0xff] %v11371_v13  }
 0x540   : > { %11401 = vst [vmem:[%s16047_s13 + $0x70] sm:$0xff] %v11366_v30  }
 0x541   : > { %12857 = shalt.err (!%p12854_p1)
}
 0x542   : > { %s12858_s26 = scalar_lea.hbm %s16106_s7, 2048  ;;  %s12862_s10 = scalar_lea.hbm %s16159_s5, 4096 }
 0x543   : > { %p12859_p13 = scmp.ne.s32.totalorder %s16106_s7, %s12858_s26  ;;  %p12863_p4 = scmp.lt.u32.totalorder %s16106_s7, %s16159_s5 }
 0x544   : > { %p12864_p5 = scmp.lt.u32.totalorder %s12862_s10, %s12858_s26  ;;  %p12866_p11 = scmp.lt.u32.totalorder %s12858_s26, %s16106_s7 }
 0x545   : > { %p12860_p6 = pnand %p12859_p13, %p16348_p0 }
 0x546   : > { %p12865_p8 = por %p12864_p5, %p12863_p4 }
 0x547   : > { %p12861_p10 = pneg %p12860_p6 }
 0x548   : > { %p12867_p2 = por %p12866_p11, %p12865_p8 }
 0x54a   : > { %p12868_p3 = pnand %p12867_p2, %p12861_p10 }
 0x54c   : > { %12871 = shalt.err (!%p12868_p3)
}
 0x54d   : > { %s12923_s9 = smov 64   ;;  %s12924_s11 = smov 4  }
 0x54e   : > { %12453 = dma.vmem_to_hbm [thread:$0]  (%p16348_p0), %s16108_s30, 2048, %s16106_s7, %s10446_s22, %s12923_s9, %s12923_s9, %s12924_s11  }
 0x54f PF: > { %s10474_s17 = sand.u32 1, %s12902_s18   ;;  %p16349_p7 = scmp.ne.s32.totalorder %s16176_s25, 0 }
 0x550   : > { %p16350_p9 = scmp.ge.s32.totalorder %s12914_s21, 2  ;;  %s10475_s6 = scalar_lea.sflag [#allocation6], %s10474_s17 }
 0x552   : > { %p12467_p12 = pnand %p16350_p9, %p16349_p7 }
 0x554   : > { %12897 = dma.done.wait (!%p12467_p12), %s10475_s6, 2048  }
 0x555   : > { %12899 = vsyncadd (!%p12467_p12), %s10475_s6, 4294965248  ;;  %p19_p1 = scmp.ge.s32.totalorder %s13071_s29, 4   ;;  %s16351_s18 = smov %s12906_s19 }
 0x556   : > { %s16352_s19 = smov %s12910_s20  ;;  %s16353_s20 = smov %s13087_s27 }
 0x557   : > { %s16354_s21 = smov %s13071_s29  ;;  %21 = sbr.rel (!%p19_p1) target bundleno = 6 (0x6), region = 96 }
 0x55e   :  { %10480 = vsyncpa [#allocation5], 1 }
 0x55f   :  { %10482 = vsyncpa [#allocation5 + $0x1], 1 }
 0x560   :  { %10483 = vsyncpa [#allocation8], 1 }
 0x561   :  { %10484 = vsyncpa [#allocation6], 1 }
 0x562   :  { %10486 = vsyncpa [#allocation6 + $0x1], 1 }

</bundles_post_ra>
